<compile_context>
chip_gen: v7x
topology: tpu7x:2x2x1
jax: 0.10.0
libtpu: 0.0.40
codegen_flags: <defaults>
</compile_context>

<pallas_src>
import jax
import jax.numpy as jnp
from jax.experimental import pallas as pl
from jax.experimental.pallas import tpu as pltpu


# ----------------------------------------------------------------------------
# In-kernel helpers (operate on VMEM values)
# ----------------------------------------------------------------------------
def _pad_hw1(v):
    """Zero-pad a (H, W, C) value by 1 on each side of H and W, in VMEM."""
    H, W, C = v.shape
    zc = jnp.zeros((H, 1, C), v.dtype)
    v = jnp.concatenate([zc, v, zc], axis=1)        # (H, W+2, C)
    zr = jnp.zeros((1, W + 2, C), v.dtype)
    return jnp.concatenate([zr, v, zr], axis=0)     # (H+2, W+2, C)


def _conv3x3_im2col(v, w9, b):
    """3x3 SAME conv of (H, W, Cin) as ONE (H*W, 9*Cin) x (9*Cin, Cout) matmul.

    w9 is the HWIO weight reshaped to (9*Cin, Cout) with (ky, kx, ci) row order,
    matching the tap concatenation order below.  Returns (H*W, Cout).
    """
    H, W, Cin = v.shape
    xp = _pad_hw1(v)
    taps = [xp[ky:ky + H, kx:kx + W, :] for ky in range(3) for kx in range(3)]
    patch = jnp.concatenate(taps, axis=-1).reshape(H * W, 9 * Cin)
    return jnp.dot(patch, w9, preferred_element_type=jnp.float32) + b


# ----------------------------------------------------------------------------
# Fused MSFF kernel: one batch element per grid step, everything in VMEM.
# ----------------------------------------------------------------------------
def _msff_fused_kernel(x_ref,
                       cw_ref, cb_ref,
                       w1_ref, b1_ref,
                       whw_ref, bhw_ref,
                       k1w_ref, k1b_ref, k2w_ref, k2b_ref,
                       o_ref):
    x = x_ref[0]                                    # (H, W, C)
    H, W, C = x.shape
    Ch = k1w_ref.shape[-1]                          # C // 2

    # --- branch 1: x_conv = conv3x3(x) ---
    x_conv = _conv3x3_im2col(x, cw_ref[...], cb_ref[...]).reshape(H, W, C)

    # --- branch 2: CoordAtt(x) ---
    x_h = jnp.mean(x, axis=1)                       # (H, C)  pool over W
    x_w = jnp.mean(x, axis=0)                       # (W, C)  pool over H
    y = jnp.concatenate([x_h, x_w], axis=0)         # (H+W, C)
    # conv1 + (folded) BatchNorm in a single matmul + bias
    y = jnp.dot(y, w1_ref[...], preferred_element_type=jnp.float32) + b1_ref[...]
    y = y * (jnp.clip(y + 3.0, 0.0, 6.0) * (1.0 / 6.0))   # h_swish
    # conv_h and conv_w fused into one (H+W, mip) x (mip, 2C) matmul
    z = jnp.dot(y, whw_ref[...], preferred_element_type=jnp.float32) + bhw_ref[...]
    a = jax.nn.sigmoid(z)                           # (H+W, 2C)
    a_h = a[:H, :C]                                 # conv_h branch
    a_w = a[H:, C:]                                 # conv_w branch

    # --- fusion: x_concat = x_conv * (x * a_w * a_h), single VPU pass ---
    x_cat = (x * x_conv) * a_h[:, None, :] * a_w[None, :, :]

    # --- conn: two 3x3 convs (C -> C//2 -> C//2) ---
    xk = _conv3x3_im2col(x_cat, k1w_ref[...], k1b_ref[...]).reshape(H, W, Ch)
    xk = _conv3x3_im2col(xk, k2w_ref[...], k2b_ref[...])        # (H*W, Ch)

    o_ref[0] = xk.reshape(H, W, Ch)


# ----------------------------------------------------------------------------
# Wrapper: single pallas_call for the whole MSFF block
# ----------------------------------------------------------------------------
def msff_block(x, params):
    N, H, W, C = x.shape
    Ch = params["conn1_w"].shape[-1]
    p = params["attn"]
    mip = p["w1"].shape[-1]

    # Fold the 3x3 taps into the contraction dim (row order = (ky, kx, ci)).
    cw9 = params["conv_w"].reshape(9 * C, C)
    k1w9 = params["conn1_w"].reshape(9 * C, Ch)
    k2w9 = params["conn2_w"].reshape(9 * Ch, Ch)

    # Fold eval-mode BatchNorm into conv1's weight/bias.
    w1f = p["w1"] * p["bn_scale"]                       # (C, mip)
    b1f = p["b1"] * p["bn_scale"] + p["bn_shift"]       # (1, mip)
    # Fuse conv_h and conv_w into one matmul (columns 0:C = h, C:2C = w).
    whw = jnp.concatenate([p["wh"], p["ww"]], axis=1)   # (mip, 2C)
    bhw = jnp.concatenate([p["bh"], p["bw"]], axis=1)   # (1, 2C)

    def rep(shape):
        zeros = (0,) * len(shape)
        return pl.BlockSpec(shape, lambda n, zeros=zeros: zeros)

    return pl.pallas_call(
        _msff_fused_kernel,
        out_shape=jax.ShapeDtypeStruct((N, H, W, Ch), jnp.float32),
        grid=(N,),
        in_specs=[
            pl.BlockSpec((1, H, W, C), lambda n: (n, 0, 0, 0)),
            rep((9 * C, C)), rep((1, C)),                       # conv
            rep((C, mip)), rep((1, mip)),                       # conv1 (+BN folded)
            rep((mip, 2 * C)), rep((1, 2 * C)),                 # conv_h|conv_w fused
            rep((9 * C, Ch)), rep((1, Ch)),                     # conn1
            rep((9 * Ch, Ch)), rep((1, Ch)),                    # conn2
        ],
        out_specs=pl.BlockSpec((1, H, W, Ch), lambda n: (n, 0, 0, 0)),
        compiler_params=pltpu.CompilerParams(
            dimension_semantics=("parallel",)),
    )(x, cw9, params["conv_b"],
      w1f, b1f, whw, bhw,
      k1w9, params["conn1_b"],
      k2w9, params["conn2_b"])


# ----------------------------------------------------------------------------
# Pure-JAX reference (for self-check) — unfused, mirrors PyTorch forward.
# ----------------------------------------------------------------------------
def _conv3x3_ref(x, w, b):
    y = jax.lax.conv_general_dilated(
        x, w, window_strides=(1, 1), padding="SAME",
        dimension_numbers=("NHWC", "HWIO", "NHWC"))
    return y + b.reshape(1, 1, 1, -1)


def _msff_ref(x, params):
    p = params["attn"]
    x_conv = _conv3x3_ref(x, params["conv_w"], params["conv_b"])
    x_h = jnp.mean(x, axis=2)                 # (N, H, C)
    x_w = jnp.mean(x, axis=1)                 # (N, W, C)
    y = jnp.concatenate([x_h, x_w], axis=1)   # (N, H+W, C)
    y = jnp.einsum("nsc,cm->nsm", y, p["w1"]) + p["b1"]
    y = y * p["bn_scale"] + p["bn_shift"]
    y = y * (jnp.clip(y + 3.0, 0.0, 6.0) / 6.0)
    H = x.shape[1]
    yh, yw = y[:, :H], y[:, H:]
    a_h = jax.nn.sigmoid(jnp.einsum("nhm,mc->nhc", yh, p["wh"]) + p["bh"])
    a_w = jax.nn.sigmoid(jnp.einsum("nwm,mc->nwc", yw, p["ww"]) + p["bw"])
    att = x * a_h[:, :, None, :] * a_w[:, None, :, :]
    xc = x_conv * att
    xk = _conv3x3_ref(xc, params["conn1_w"], params["conn1_b"])
    xk = _conv3x3_ref(xk, params["conn2_w"], params["conn2_b"])
    return xk


# ----------------------------------------------------------------------------
# Deterministic synthetic parameters
# ----------------------------------------------------------------------------
def make_params(key, C):
    mip = max(8, C // 32)
    ks = jax.random.split(key, 16)
    f32 = jnp.float32
    nrm = lambda k, shape, s: (s * jax.random.normal(k, shape)).astype(f32)
    params = {
        "conv_w": nrm(ks[0], (3, 3, C, C), 0.05),
        "conv_b": nrm(ks[1], (1, C), 0.05),
        "conn1_w": nrm(ks[2], (3, 3, C, C // 2), 0.05),
        "conn1_b": nrm(ks[3], (1, C // 2), 0.05),
        "conn2_w": nrm(ks[4], (3, 3, C // 2, C // 2), 0.05),
        "conn2_b": nrm(ks[5], (1, C // 2), 0.05),
        "attn": {},
    }
    # CoordAtt params (BN in eval mode, folded into scale/shift)
    gamma = 1.0 + nrm(ks[6], (1, mip), 0.1)
    beta = nrm(ks[7], (1, mip), 0.1)
    r_mean = nrm(ks[8], (1, mip), 0.1)
    r_var = jnp.abs(1.0 + nrm(ks[9], (1, mip), 0.1))
    eps = 1e-5
    bn_scale = gamma / jnp.sqrt(r_var + eps)
    bn_shift = beta - r_mean * bn_scale
    params["attn"] = {
        "w1": nrm(ks[10], (C, mip), 0.1),
        "b1": nrm(ks[11], (1, mip), 0.1),
        "bn_scale": bn_scale.astype(f32),
        "bn_shift": bn_shift.astype(f32),
        "wh": nrm(ks[12], (mip, C), 0.1),
        "bh": nrm(ks[13], (1, C), 0.1),
        "ww": nrm(ks[14], (mip, C), 0.1),
        "bw": nrm(ks[15], (1, C), 0.1),
    }
    return params


if __name__ == "__main__":
    key = jax.random.PRNGKey(0)
    k_x, k_p = jax.random.split(key)

    N, C, H, W = 2, 32, 16, 16            # PyTorch NCHW (2, 32, 16, 16)
    x = jax.random.normal(k_x, (N, H, W, C), dtype=jnp.float32)  # NHWC layout
    params = make_params(k_p, C)

    out = jax.jit(msff_block)(x, params)
    out = jax.block_until_ready(out)
    assert out.shape == (N, H, W, C // 2), out.shape

    ref = _msff_ref(x, params)
    err = float(jnp.max(jnp.abs(out - ref)))
    assert err < 1e-3, f"max abs err {err}"

    print("KERNEL_OK")
</pallas_src>

<mosaic_0001>
module attributes {stable_mosaic.version = 11 : i64} {
  func.func @_msff_fused_kernel(%arg0: i32, %arg1: memref<1x16x16x32xf32, #tpu.memory_space<vmem>>, %arg2: memref<288x32xf32, #tpu.memory_space<vmem>>, %arg3: memref<1x32xf32, #tpu.memory_space<vmem>>, %arg4: memref<32x8xf32, #tpu.memory_space<vmem>>, %arg5: memref<1x8xf32, #tpu.memory_space<vmem>>, %arg6: memref<8x64xf32, #tpu.memory_space<vmem>>, %arg7: memref<1x64xf32, #tpu.memory_space<vmem>>, %arg8: memref<288x16xf32, #tpu.memory_space<vmem>>, %arg9: memref<1x16xf32, #tpu.memory_space<vmem>>, %arg10: memref<144x16xf32, #tpu.memory_space<vmem>>, %arg11: memref<1x16xf32, #tpu.memory_space<vmem>>, %arg12: memref<1x16x16x16xf32, #tpu.memory_space<vmem>>) attributes {dimension_semantics = [#tpu.dimension_semantics<parallel>], iteration_bounds = array<i64: 2>, scalar_prefetch = 0 : i64, scratch_operands = 0 : i64, tpu.core_type = #tpu.core_type<tc>, window_params = [{transform_indices = @transform_0, window_bounds = array<i64: 1, 16, 16, 32>}, {pipeline_mode = #tpu.pipeline_mode<synchronous>, transform_indices = @transform_1, window_bounds = array<i64: 288, 32>}, {pipeline_mode = #tpu.pipeline_mode<synchronous>, transform_indices = @transform_2, window_bounds = array<i64: 1, 32>}, {pipeline_mode = #tpu.pipeline_mode<synchronous>, transform_indices = @transform_3, window_bounds = array<i64: 32, 8>}, {pipeline_mode = #tpu.pipeline_mode<synchronous>, transform_indices = @transform_4, window_bounds = array<i64: 1, 8>}, {pipeline_mode = #tpu.pipeline_mode<synchronous>, transform_indices = @transform_5, window_bounds = array<i64: 8, 64>}, {pipeline_mode = #tpu.pipeline_mode<synchronous>, transform_indices = @transform_6, window_bounds = array<i64: 1, 64>}, {pipeline_mode = #tpu.pipeline_mode<synchronous>, transform_indices = @transform_7, window_bounds = array<i64: 288, 16>}, {pipeline_mode = #tpu.pipeline_mode<synchronous>, transform_indices = @transform_8, window_bounds = array<i64: 1, 16>}, {pipeline_mode = #tpu.pipeline_mode<synchronous>, transform_indices = @transform_9, window_bounds = array<i64: 144, 16>}, {pipeline_mode = #tpu.pipeline_mode<synchronous>, transform_indices = @transform_10, window_bounds = array<i64: 1, 16>}, {transform_indices = @transform_11, window_bounds = array<i64: 1, 16, 16, 16>}]} {
    %c0 = arith.constant 0 : index
    %c0_0 = arith.constant 0 : index
    %c0_1 = arith.constant 0 : index
    %c0_2 = arith.constant 0 : index
    %0 = vector.load %arg1[%c0, %c0_0, %c0_1, %c0_2] : memref<1x16x16x32xf32, #tpu.memory_space<vmem>>, vector<1x16x16x32xf32>
    %1 = vector.shape_cast %0 : vector<1x16x16x32xf32> to vector<16x16x32xf32>
    %c0_3 = arith.constant 0 : index
    %c0_4 = arith.constant 0 : index
    %2 = vector.load %arg2[%c0_3, %c0_4] : memref<288x32xf32, #tpu.memory_space<vmem>>, vector<288x32xf32>
    %c0_5 = arith.constant 0 : index
    %c0_6 = arith.constant 0 : index
    %3 = vector.load %arg3[%c0_5, %c0_6] : memref<1x32xf32, #tpu.memory_space<vmem>>, vector<1x32xf32>
    %cst = arith.constant 0.000000e+00 : f32
    %4 = vector.broadcast %cst : f32 to vector<16x1x32xf32>
    %5 = tpu.concatenate %4, %1, %4 in 1 : vector<16x1x32xf32>, vector<16x16x32xf32>, vector<16x1x32xf32> -> vector<16x18x32xf32>
    %cst_7 = arith.constant 0.000000e+00 : f32
    %6 = vector.broadcast %cst_7 : f32 to vector<1x18x32xf32>
    %7 = tpu.concatenate %6, %5, %6 in 0 : vector<1x18x32xf32>, vector<16x18x32xf32>, vector<1x18x32xf32> -> vector<18x18x32xf32>
    %8 = vector.extract_strided_slice %7 {offsets = [0, 0, 0], sizes = [16, 16, 32], strides = [1, 1, 1]} : vector<18x18x32xf32> to vector<16x16x32xf32>
    %9 = vector.extract_strided_slice %7 {offsets = [0, 1, 0], sizes = [16, 16, 32], strides = [1, 1, 1]} : vector<18x18x32xf32> to vector<16x16x32xf32>
    %10 = vector.extract_strided_slice %7 {offsets = [0, 2, 0], sizes = [16, 16, 32], strides = [1, 1, 1]} : vector<18x18x32xf32> to vector<16x16x32xf32>
    %11 = vector.extract_strided_slice %7 {offsets = [1, 0, 0], sizes = [16, 16, 32], strides = [1, 1, 1]} : vector<18x18x32xf32> to vector<16x16x32xf32>
    %12 = vector.extract_strided_slice %7 {offsets = [1, 1, 0], sizes = [16, 16, 32], strides = [1, 1, 1]} : vector<18x18x32xf32> to vector<16x16x32xf32>
    %13 = vector.extract_strided_slice %7 {offsets = [1, 2, 0], sizes = [16, 16, 32], strides = [1, 1, 1]} : vector<18x18x32xf32> to vector<16x16x32xf32>
    %14 = vector.extract_strided_slice %7 {offsets = [2, 0, 0], sizes = [16, 16, 32], strides = [1, 1, 1]} : vector<18x18x32xf32> to vector<16x16x32xf32>
    %15 = vector.extract_strided_slice %7 {offsets = [2, 1, 0], sizes = [16, 16, 32], strides = [1, 1, 1]} : vector<18x18x32xf32> to vector<16x16x32xf32>
    %16 = vector.extract_strided_slice %7 {offsets = [2, 2, 0], sizes = [16, 16, 32], strides = [1, 1, 1]} : vector<18x18x32xf32> to vector<16x16x32xf32>
    %17 = tpu.concatenate %8, %9, %10, %11, %12, %13, %14, %15, %16 in 2 : vector<16x16x32xf32>, vector<16x16x32xf32>, vector<16x16x32xf32>, vector<16x16x32xf32>, vector<16x16x32xf32>, vector<16x16x32xf32>, vector<16x16x32xf32>, vector<16x16x32xf32>, vector<16x16x32xf32> -> vector<16x16x288xf32>
    %18 = vector.shape_cast %17 : vector<16x16x288xf32> to vector<256x288xf32>
    %cst_8 = arith.constant dense<0.000000e+00> : vector<256x32xf32>
    %19 = tpu.matmul %18, %2, %cst_8 {dimension_numbers = #tpu.dot_dimension_numbers<[1], [0], [0], [1], [0, 0, 1, 1], [], []>} : vector<256x288xf32>, vector<288x32xf32>, vector<256x32xf32> -> vector<256x32xf32>
    %20 = vector.broadcast %3 : vector<1x32xf32> to vector<256x32xf32>
    %21 = arith.addf %19, %20 : vector<256x32xf32>
    %22 = vector.shape_cast %21 : vector<256x32xf32> to vector<16x16x32xf32>
    %cst_9 = arith.constant dense<0.000000e+00> : vector<16x32xf32>
    %23 = vector.multi_reduction <add>, %1, %cst_9 [1] : vector<16x16x32xf32> to vector<16x32xf32>
    %cst_10 = arith.constant 1.600000e+01 : f32
    %24 = vector.broadcast %cst_10 : f32 to vector<16x32xf32>
    %25 = arith.divf %23, %24 : vector<16x32xf32>
    %cst_11 = arith.constant dense<0.000000e+00> : vector<16x32xf32>
    %26 = vector.multi_reduction <add>, %1, %cst_11 [0] : vector<16x16x32xf32> to vector<16x32xf32>
    %cst_12 = arith.constant 1.600000e+01 : f32
    %27 = vector.broadcast %cst_12 : f32 to vector<16x32xf32>
    %28 = arith.divf %26, %27 : vector<16x32xf32>
    %29 = tpu.concatenate %25, %28 in 0 : vector<16x32xf32>, vector<16x32xf32> -> vector<32x32xf32>
    %c0_13 = arith.constant 0 : index
    %c0_14 = arith.constant 0 : index
    %30 = vector.load %arg4[%c0_13, %c0_14] : memref<32x8xf32, #tpu.memory_space<vmem>>, vector<32x8xf32>
    %cst_15 = arith.constant dense<0.000000e+00> : vector<32x8xf32>
    %31 = tpu.matmul %29, %30, %cst_15 {dimension_numbers = #tpu.dot_dimension_numbers<[1], [0], [0], [1], [0, 0, 1, 1], [], []>} : vector<32x32xf32>, vector<32x8xf32>, vector<32x8xf32> -> vector<32x8xf32>
    %c0_16 = arith.constant 0 : index
    %c0_17 = arith.constant 0 : index
    %32 = vector.load %arg5[%c0_16, %c0_17] : memref<1x8xf32, #tpu.memory_space<vmem>>, vector<1x8xf32>
    %33 = vector.broadcast %32 : vector<1x8xf32> to vector<32x8xf32>
    %34 = arith.addf %31, %33 : vector<32x8xf32>
    %cst_18 = arith.constant 3.000000e+00 : f32
    %35 = vector.broadcast %cst_18 : f32 to vector<32x8xf32>
    %36 = arith.addf %34, %35 : vector<32x8xf32>
    %cst_19 = arith.constant 0.000000e+00 : f32
    %cst_20 = arith.constant 6.000000e+00 : f32
    %37 = vector.broadcast %cst_19 : f32 to vector<32x8xf32>
    %38 = arith.maximumf %37, %36 : vector<32x8xf32>
    %39 = vector.broadcast %cst_20 : f32 to vector<32x8xf32>
    %40 = arith.minimumf %39, %38 : vector<32x8xf32>
    %cst_21 = arith.constant 0.166666672 : f32
    %41 = vector.broadcast %cst_21 : f32 to vector<32x8xf32>
    %42 = arith.mulf %40, %41 : vector<32x8xf32>
    %43 = arith.mulf %34, %42 : vector<32x8xf32>
    %c0_22 = arith.constant 0 : index
    %c0_23 = arith.constant 0 : index
    %44 = vector.load %arg6[%c0_22, %c0_23] : memref<8x64xf32, #tpu.memory_space<vmem>>, vector<8x64xf32>
    %cst_24 = arith.constant dense<0.000000e+00> : vector<32x64xf32>
    %45 = tpu.matmul %43, %44, %cst_24 {dimension_numbers = #tpu.dot_dimension_numbers<[1], [0], [0], [1], [0, 0, 1, 1], [], []>} : vector<32x8xf32>, vector<8x64xf32>, vector<32x64xf32> -> vector<32x64xf32>
    %c0_25 = arith.constant 0 : index
    %c0_26 = arith.constant 0 : index
    %46 = vector.load %arg7[%c0_25, %c0_26] : memref<1x64xf32, #tpu.memory_space<vmem>>, vector<1x64xf32>
    %47 = vector.broadcast %46 : vector<1x64xf32> to vector<32x64xf32>
    %48 = arith.addf %45, %47 : vector<32x64xf32>
    %49 = arith.negf %48 : vector<32x64xf32>
    %50 = math.exp %49 : vector<32x64xf32>
    %cst_27 = arith.constant 1.000000e+00 : f32
    %51 = vector.broadcast %cst_27 : f32 to vector<32x64xf32>
    %52 = arith.addf %51, %50 : vector<32x64xf32>
    %53 = arith.divf %51, %52 : vector<32x64xf32>
    %54 = vector.extract_strided_slice %53 {offsets = [0, 0], sizes = [16, 32], strides = [1, 1]} : vector<32x64xf32> to vector<16x32xf32>
    %55 = vector.extract_strided_slice %53 {offsets = [16, 32], sizes = [16, 32], strides = [1, 1]} : vector<32x64xf32> to vector<16x32xf32>
    %56 = arith.mulf %1, %22 : vector<16x16x32xf32>
    %57 = vector.shape_cast %54 : vector<16x32xf32> to vector<16x1x32xf32>
    %58 = vector.broadcast %57 : vector<16x1x32xf32> to vector<16x16x32xf32>
    %59 = arith.mulf %56, %58 : vector<16x16x32xf32>
    %60 = vector.shape_cast %55 : vector<16x32xf32> to vector<1x16x32xf32>
    %61 = vector.broadcast %60 : vector<1x16x32xf32> to vector<16x16x32xf32>
    %62 = arith.mulf %59, %61 : vector<16x16x32xf32>
    %c0_28 = arith.constant 0 : index
    %c0_29 = arith.constant 0 : index
    %63 = vector.load %arg8[%c0_28, %c0_29] : memref<288x16xf32, #tpu.memory_space<vmem>>, vector<288x16xf32>
    %c0_30 = arith.constant 0 : index
    %c0_31 = arith.constant 0 : index
    %64 = vector.load %arg9[%c0_30, %c0_31] : memref<1x16xf32, #tpu.memory_space<vmem>>, vector<1x16xf32>
    %cst_32 = arith.constant 0.000000e+00 : f32
    %65 = vector.broadcast %cst_32 : f32 to vector<16x1x32xf32>
    %66 = tpu.concatenate %65, %62, %65 in 1 : vector<16x1x32xf32>, vector<16x16x32xf32>, vector<16x1x32xf32> -> vector<16x18x32xf32>
    %cst_33 = arith.constant 0.000000e+00 : f32
    %67 = vector.broadcast %cst_33 : f32 to vector<1x18x32xf32>
    %68 = tpu.concatenate %67, %66, %67 in 0 : vector<1x18x32xf32>, vector<16x18x32xf32>, vector<1x18x32xf32> -> vector<18x18x32xf32>
    %69 = vector.extract_strided_slice %68 {offsets = [0, 0, 0], sizes = [16, 16, 32], strides = [1, 1, 1]} : vector<18x18x32xf32> to vector<16x16x32xf32>
    %70 = vector.extract_strided_slice %68 {offsets = [0, 1, 0], sizes = [16, 16, 32], strides = [1, 1, 1]} : vector<18x18x32xf32> to vector<16x16x32xf32>
    %71 = vector.extract_strided_slice %68 {offsets = [0, 2, 0], sizes = [16, 16, 32], strides = [1, 1, 1]} : vector<18x18x32xf32> to vector<16x16x32xf32>
    %72 = vector.extract_strided_slice %68 {offsets = [1, 0, 0], sizes = [16, 16, 32], strides = [1, 1, 1]} : vector<18x18x32xf32> to vector<16x16x32xf32>
    %73 = vector.extract_strided_slice %68 {offsets = [1, 1, 0], sizes = [16, 16, 32], strides = [1, 1, 1]} : vector<18x18x32xf32> to vector<16x16x32xf32>
    %74 = vector.extract_strided_slice %68 {offsets = [1, 2, 0], sizes = [16, 16, 32], strides = [1, 1, 1]} : vector<18x18x32xf32> to vector<16x16x32xf32>
    %75 = vector.extract_strided_slice %68 {offsets = [2, 0, 0], sizes = [16, 16, 32], strides = [1, 1, 1]} : vector<18x18x32xf32> to vector<16x16x32xf32>
    %76 = vector.extract_strided_slice %68 {offsets = [2, 1, 0], sizes = [16, 16, 32], strides = [1, 1, 1]} : vector<18x18x32xf32> to vector<16x16x32xf32>
    %77 = vector.extract_strided_slice %68 {offsets = [2, 2, 0], sizes = [16, 16, 32], strides = [1, 1, 1]} : vector<18x18x32xf32> to vector<16x16x32xf32>
    %78 = tpu.concatenate %69, %70, %71, %72, %73, %74, %75, %76, %77 in 2 : vector<16x16x32xf32>, vector<16x16x32xf32>, vector<16x16x32xf32>, vector<16x16x32xf32>, vector<16x16x32xf32>, vector<16x16x32xf32>, vector<16x16x32xf32>, vector<16x16x32xf32>, vector<16x16x32xf32> -> vector<16x16x288xf32>
    %79 = vector.shape_cast %78 : vector<16x16x288xf32> to vector<256x288xf32>
    %cst_34 = arith.constant dense<0.000000e+00> : vector<256x16xf32>
    %80 = tpu.matmul %79, %63, %cst_34 {dimension_numbers = #tpu.dot_dimension_numbers<[1], [0], [0], [1], [0, 0, 1, 1], [], []>} : vector<256x288xf32>, vector<288x16xf32>, vector<256x16xf32> -> vector<256x16xf32>
    %81 = vector.broadcast %64 : vector<1x16xf32> to vector<256x16xf32>
    %82 = arith.addf %80, %81 : vector<256x16xf32>
    %83 = vector.shape_cast %82 : vector<256x16xf32> to vector<16x16x16xf32>
    %c0_35 = arith.constant 0 : index
    %c0_36 = arith.constant 0 : index
    %84 = vector.load %arg10[%c0_35, %c0_36] : memref<144x16xf32, #tpu.memory_space<vmem>>, vector<144x16xf32>
    %c0_37 = arith.constant 0 : index
    %c0_38 = arith.constant 0 : index
    %85 = vector.load %arg11[%c0_37, %c0_38] : memref<1x16xf32, #tpu.memory_space<vmem>>, vector<1x16xf32>
    %cst_39 = arith.constant 0.000000e+00 : f32
    %86 = vector.broadcast %cst_39 : f32 to vector<16x1x16xf32>
    %87 = tpu.concatenate %86, %83, %86 in 1 : vector<16x1x16xf32>, vector<16x16x16xf32>, vector<16x1x16xf32> -> vector<16x18x16xf32>
    %cst_40 = arith.constant 0.000000e+00 : f32
    %88 = vector.broadcast %cst_40 : f32 to vector<1x18x16xf32>
    %89 = tpu.concatenate %88, %87, %88 in 0 : vector<1x18x16xf32>, vector<16x18x16xf32>, vector<1x18x16xf32> -> vector<18x18x16xf32>
    %90 = vector.extract_strided_slice %89 {offsets = [0, 0, 0], sizes = [16, 16, 16], strides = [1, 1, 1]} : vector<18x18x16xf32> to vector<16x16x16xf32>
    %91 = vector.extract_strided_slice %89 {offsets = [0, 1, 0], sizes = [16, 16, 16], strides = [1, 1, 1]} : vector<18x18x16xf32> to vector<16x16x16xf32>
    %92 = vector.extract_strided_slice %89 {offsets = [0, 2, 0], sizes = [16, 16, 16], strides = [1, 1, 1]} : vector<18x18x16xf32> to vector<16x16x16xf32>
    %93 = vector.extract_strided_slice %89 {offsets = [1, 0, 0], sizes = [16, 16, 16], strides = [1, 1, 1]} : vector<18x18x16xf32> to vector<16x16x16xf32>
    %94 = vector.extract_strided_slice %89 {offsets = [1, 1, 0], sizes = [16, 16, 16], strides = [1, 1, 1]} : vector<18x18x16xf32> to vector<16x16x16xf32>
    %95 = vector.extract_strided_slice %89 {offsets = [1, 2, 0], sizes = [16, 16, 16], strides = [1, 1, 1]} : vector<18x18x16xf32> to vector<16x16x16xf32>
    %96 = vector.extract_strided_slice %89 {offsets = [2, 0, 0], sizes = [16, 16, 16], strides = [1, 1, 1]} : vector<18x18x16xf32> to vector<16x16x16xf32>
    %97 = vector.extract_strided_slice %89 {offsets = [2, 1, 0], sizes = [16, 16, 16], strides = [1, 1, 1]} : vector<18x18x16xf32> to vector<16x16x16xf32>
    %98 = vector.extract_strided_slice %89 {offsets = [2, 2, 0], sizes = [16, 16, 16], strides = [1, 1, 1]} : vector<18x18x16xf32> to vector<16x16x16xf32>
    %99 = tpu.concatenate %90, %91, %92, %93, %94, %95, %96, %97, %98 in 2 : vector<16x16x16xf32>, vector<16x16x16xf32>, vector<16x16x16xf32>, vector<16x16x16xf32>, vector<16x16x16xf32>, vector<16x16x16xf32>, vector<16x16x16xf32>, vector<16x16x16xf32>, vector<16x16x16xf32> -> vector<16x16x144xf32>
    %100 = vector.shape_cast %99 : vector<16x16x144xf32> to vector<256x144xf32>
    %cst_41 = arith.constant dense<0.000000e+00> : vector<256x16xf32>
    %101 = tpu.matmul %100, %84, %cst_41 {dimension_numbers = #tpu.dot_dimension_numbers<[1], [0], [0], [1], [0, 0, 1, 1], [], []>} : vector<256x144xf32>, vector<144x16xf32>, vector<256x16xf32> -> vector<256x16xf32>
    %102 = vector.broadcast %85 : vector<1x16xf32> to vector<256x16xf32>
    %103 = arith.addf %101, %102 : vector<256x16xf32>
    %104 = vector.shape_cast %103 : vector<256x16xf32> to vector<16x16x16xf32>
    %c0_42 = arith.constant 0 : index
    %c0_43 = arith.constant 0 : index
    %c0_44 = arith.constant 0 : index
    %c0_45 = arith.constant 0 : index
    %105 = vector.load %arg12[%c0_42, %c0_43, %c0_44, %c0_45] : memref<1x16x16x16xf32, #tpu.memory_space<vmem>>, vector<1x16x16x16xf32>
    %106 = vector.shape_cast %105 : vector<1x16x16x16xf32> to vector<16x16x16xf32>
    %107 = vector.shape_cast %104 : vector<16x16x16xf32> to vector<1x16x16x16xf32>
    tpu.vector_store %arg12[%c0_42, %c0_43, %c0_44, %c0_45], %107 {strides = array<i32>} : memref<1x16x16x16xf32, #tpu.memory_space<vmem>>, vector<1x16x16x16xf32>,
    return
  }
  func.func @transform_0(%arg0: i32) -> (i32, i32, i32, i32) {
    %c0_i32 = arith.constant 0 : i32
    %c0_i32_0 = arith.constant 0 : i32
    %c0_i32_1 = arith.constant 0 : i32
    %c0_i32_2 = arith.constant 0 : i32
    return %arg0, %c0_i32, %c0_i32_0, %c0_i32_1 : i32, i32, i32, i32
  }
  func.func @transform_1(%arg0: i32) -> (i32, i32) {
    %c0_i32 = arith.constant 0 : i32
    %c0_i32_0 = arith.constant 0 : i32
    %c0_i32_1 = arith.constant 0 : i32
    return %c0_i32, %c0_i32_0 : i32, i32
  }
  func.func @transform_2(%arg0: i32) -> (i32, i32) {
    %c0_i32 = arith.constant 0 : i32
    %c0_i32_0 = arith.constant 0 : i32
    %c0_i32_1 = arith.constant 0 : i32
    return %c0_i32, %c0_i32_0 : i32, i32
  }
  func.func @transform_3(%arg0: i32) -> (i32, i32) {
    %c0_i32 = arith.constant 0 : i32
    %c0_i32_0 = arith.constant 0 : i32
    %c0_i32_1 = arith.constant 0 : i32
    return %c0_i32, %c0_i32_0 : i32, i32
  }
  func.func @transform_4(%arg0: i32) -> (i32, i32) {
    %c0_i32 = arith.constant 0 : i32
    %c0_i32_0 = arith.constant 0 : i32
    %c0_i32_1 = arith.constant 0 : i32
    return %c0_i32, %c0_i32_0 : i32, i32
  }
  func.func @transform_5(%arg0: i32) -> (i32, i32) {
    %c0_i32 = arith.constant 0 : i32
    %c0_i32_0 = arith.constant 0 : i32
    %c0_i32_1 = arith.constant 0 : i32
    return %c0_i32, %c0_i32_0 : i32, i32
  }
  func.func @transform_6(%arg0: i32) -> (i32, i32) {
    %c0_i32 = arith.constant 0 : i32
    %c0_i32_0 = arith.constant 0 : i32
    %c0_i32_1 = arith.constant 0 : i32
    return %c0_i32, %c0_i32_0 : i32, i32
  }
  func.func @transform_7(%arg0: i32) -> (i32, i32) {
    %c0_i32 = arith.constant 0 : i32
    %c0_i32_0 = arith.constant 0 : i32
    %c0_i32_1 = arith.constant 0 : i32
    return %c0_i32, %c0_i32_0 : i32, i32
  }
  func.func @transform_8(%arg0: i32) -> (i32, i32) {
    %c0_i32 = arith.constant 0 : i32
    %c0_i32_0 = arith.constant 0 : i32
    %c0_i32_1 = arith.constant 0 : i32
    return %c0_i32, %c0_i32_0 : i32, i32
  }
  func.func @transform_9(%arg0: i32) -> (i32, i32) {
    %c0_i32 = arith.constant 0 : i32
    %c0_i32_0 = arith.constant 0 : i32
    %c0_i32_1 = arith.constant 0 : i32
    return %c0_i32, %c0_i32_0 : i32, i32
  }
  func.func @transform_10(%arg0: i32) -> (i32, i32) {
    %c0_i32 = arith.constant 0 : i32
    %c0_i32_0 = arith.constant 0 : i32
    %c0_i32_1 = arith.constant 0 : i32
    return %c0_i32, %c0_i32_0 : i32, i32
  }
  func.func @transform_11(%arg0: i32) -> (i32, i32, i32, i32) {
    %c0_i32 = arith.constant 0 : i32
    %c0_i32_0 = arith.constant 0 : i32
    %c0_i32_1 = arith.constant 0 : i32
    %c0_i32_2 = arith.constant 0 : i32
    return %arg0, %c0_i32, %c0_i32_0, %c0_i32_1 : i32, i32, i32, i32
  }
}

</mosaic_0001>

<bundles_post_ra>
// kernel: msff_block.1
= control target key start
LH: loop header
LB: loop body
LE: loop exit
PB: predicated region body
PF: predicated region fallthrough
CT: control target
= control target key end

     0   :  { %16 = vsyncpa [#allocation3], 0  ;;  %s13586_s0 = inlined_call_operand.vmem [shape: f32[2,16,16,32], index: 0, kind: input, shape index: {}]   ;;  %s13587_s1 = inlined_call_operand.hbm [shape: f32[288,32], index: 1, kind: input, shape index: {}]   ;;  %s13588_s2 = inlined_call_operand.vmem [shape: f32[1,32], index: 2, kind: input, shape index: {}]   ;;  %s13589_s3 = inlined_call_operand.vmem [shape: f32[32,8], index: 3, kind: input, shape index: {}]   ;;  %s13590_s4 = inlined_call_operand.vmem [shape: f32[1,8], index: 4, kind: input, shape index: {}]   ;;  %s13591_s5 = inlined_call_operand.vmem [shape: f32[8,64], index: 5, kind: input, shape index: {}]   ;;  %s13592_s6 = inlined_call_operand.vmem [shape: f32[1,64], index: 6, kind: input, shape index: {}]   ;;  %s13593_s7 = inlined_call_operand.vmem [shape: f32[288,16], index: 7, kind: input, shape index: {}]   ;;  %s13594_s8 = inlined_call_operand.vmem [shape: f32[1,16], index: 8, kind: input, shape index: {}]   ;;  %s13595_s9 = inlined_call_operand.hbm [shape: f32[144,16], index: 9, kind: input, shape index: {}]   ;;  %s13596_s10 = inlined_call_operand.vmem [shape: f32[1,16], index: 10, kind: input, shape index: {}]   ;;  %s13597_s11 = inlined_call_operand.hbm [shape: f32[2,16,16,16], index: 11, kind: output, shape index: {}]  }
   0x1   :  { %17 = vsyncpa [#allocation6], 0 }
   0x2   :  { %18 = vsyncpa [#allocation4], 0 }
   0x3   :  { %20 = vsyncpa [#allocation4 + $0x1], 0  ;;  %s8582_s17 = smov 0   ;;  %s8584_s18 = smov 0  }
   0x4   :  { %s8586_s19 = smov 0   ;;  %s8588_s20 = smov 0  }
   0x5 LB: > { %13966 = sst [smem:[#allocation11_spill]] %s8491_s17  ;;  %s8603_s21 = sadd.s32 4294967295, %s8503_s20   ;;  %s8503_s20 = sphi %s8588_s20, %s14565_s20   ;;  %s8499_s19 = sphi %s8586_s19, %s14567_s19   ;;  %s8495_s18 = sphi %s8584_s18, %s14569_s18   ;;  %s8491_s17 = sphi %s8582_s17, %s14568_s17  }
   0x6   : > { %13967 = sst [smem:[#allocation12_spill]] %s8499_s19  ;;  %s6275_s22 = sadd.s32 4294967294, %s8503_s20  }
   0x7   : > { %s8607_s23 = sadd.s32 1, %s8503_s20   ;;  %s269_s24 = sadd.s32 1, %s8499_s19 }
   0x8   : > { %13968 = sst [smem:[#allocation13_spill]] %s8607_s23  ;;  %s266_s25 = ssub.s32 %s8503_s20, %s8607_s23 }
   0x9   : > { %p279_p0 = scmp.ne.s32.totalorder %s8499_s19, %s8495_s18  ;;  %p267_p1 = scmp.eq.s32.totalorder %s266_s25, 0 }
   0xa   : > { %p280_p2 = scmp.eq.s32.totalorder %s8603_s21, 1  ;;  %p285_p3 = scmp.ne.s32.totalorder %s8495_s18, %s8491_s17 }
   0xb   : > { %p286_p4 = scmp.eq.s32.totalorder %s6275_s22, 1  ;;  %p6276_p7 = scmp.ge.s32.totalorder %s8503_s20, 1 }
   0xc   : > { %s8618_s26 = scalar_select %p267_p1, %s8499_s19, %s269_s24  }
   0xd   : > { %p8620_p5 = por %p280_p2, %p279_p0  ;;  %p8624_p6 = por %p286_p4, %p285_p3 }
   0xe   : > { %13969 = sst [smem:[#allocation14_spill]] %s8618_s26  ;;  %p293_p8 = scmp.lt.s32.totalorder %s8503_s20, 3 }
   0xf   : > { %s13970_s27 = scalar_select %p8620_p5, 1, 0 }
  0x10   : > { %s13971_s28 = scalar_select %p8624_p6, 1, 0 }
  0x11   : > { %p13599_p9 = scmp.eq.s32.totalorder %s8603_s21, 0  ;;  %p8631_p10 = pnand %p6276_p7, %p293_p8 }
  0x12   : > { %13972 = sst [smem:[#allocation15_spill]] %s13971_s28  ;;  %s8505_s30 = smov [#allocation2]  }
  0x13   : > { %s13973_s29 = scalar_select %p8631_p10, 1, 0 }
  0x14   : > { %s305_s12 = sshll.u32 %s8505_s30, 4  ;;  %p6800_p11 = pneg %p8631_p10  ;;  %s306_s12 = int_to_ptr.vmem [resolvable:$true] %s305_s12 }
  0x15   : > { %s8506_s14 = smov [#allocation5]   ;;  %s8377_s24 = scalar_lea.hbm %s13587_s1, 4608 }
  0x16   : > { %p8639_p12 = pnand %p13599_p9, %p6800_p11  ;;  %s339_s15 = sshll.u32 %s8506_s14, 4  ;;  %s8643_s15 = int_to_ptr.vmem [resolvable:$true] %s339_s15 }
  0x17   : > { %p8378_p13 = scmp.ne.s32.totalorder %s13587_s1, %s8377_s24  ;;  %p8384_p3 = scmp.lt.u32.totalorder %s8377_s24, %s13587_s1 }
  0x18   : > { %p8379_p0 = pneg %p8639_p12 }
  0x1a   : > { %p8380_p1 = pnand %p8379_p0, %p8378_p13 }
  0x1c   : > { %p8381_p2 = pneg %p8380_p1 }
  0x1e   : > { %p8386_p4 = pnand %p8384_p3, %p8381_p2 }
  0x20   : > { %8389 = shalt.err (!%p8386_p4)
}
  0x21   : > { %s8390_s14 = scalar_lea.vmem %s306_s12, 4608  ;;  %p8398_p9 = scmp.lt.s32.totalorder %s306_s12, %s306_s12 }
  0x22   : > { %p8391_p7 = scmp.ne.s32.totalorder %s306_s12, %s8390_s14  ;;  %p8399_p6 = scmp.lt.s32.totalorder %s8390_s14, %s8390_s14 }
  0x24   : > { %p8393_p8 = pnand %p8391_p7, %p8379_p0  ;;  %p8400_p5 = por %p8399_p6, %p8398_p9 }
  0x26   : > { %p8394_p11 = pneg %p8393_p8 }
  0x28   : > { %p8401_p10 = pnand %p8400_p5, %p8394_p11 }
  0x2a   : > { %8404 = shalt.err (!%p8401_p10)
}
  0x2b   : > { %s8507_s16 = smov 128   ;;  %s8508_s22 = smov 8  }
  0x2c   : > { %6803 = dma.hbm_to_vmem [thread:$0]  (!%p8639_p12), %s13587_s1, 4608, %s306_s12, [#allocation3], %s8507_s16, %s8507_s16, %s8508_s22  }
  0x2d   : > { %s8405_s30 = scalar_lea.hbm %s13595_s9, 2304 }
  0x2e   : > { %p8406_p13 = scmp.ne.s32.totalorder %s13595_s9, %s8405_s30  ;;  %p8412_p9 = scmp.lt.u32.totalorder %s8405_s30, %s13595_s9 }
  0x30   : > { %p8408_p5 = pnand %p8406_p13, %p8379_p0 }
  0x32   : > { %p8409_p6 = pneg %p8408_p5 }
  0x34   : > { %p8414_p10 = pnand %p8412_p9, %p8409_p6 }
  0x36   : > { %8417 = shalt.err (!%p8414_p10)
}
  0x37   : > { %s8418_s12 = scalar_lea.vmem %s8643_s15, 2304  ;;  %p8426_p4 = scmp.lt.s32.totalorder %s8643_s15, %s8643_s15 }
  0x38   : > { %p8419_p1 = scmp.ne.s32.totalorder %s8643_s15, %s8418_s12  ;;  %p8427_p7 = scmp.lt.s32.totalorder %s8418_s12, %s8418_s12 }
  0x3a   : > { %p8421_p2 = pnand %p8419_p1, %p8379_p0  ;;  %p8428_p8 = por %p8427_p7, %p8426_p4 }
  0x3c   : > { %p8422_p3 = pneg %p8421_p2 }
  0x3e   : > { %p8429_p11 = pnand %p8428_p8, %p8422_p3 }
  0x40   : > { %8432 = shalt.err (!%p8429_p11)
}
  0x41   : > { %6806 = dma.hbm_to_vmem [thread:$0]  (!%p8639_p12), %s13595_s9, 2304, %s8643_s15, [#allocation6], %s8507_s16, %s8507_s16, %s8508_s22  }
  0x42   : > { %p13975_p13 = scmp.ne.s32.totalorder %s13973_s29, 0 }
  0x44   : > { %366 = sbr.rel (%p13975_p13) target bundleno = 1834 (0x72a), region = 64 }
  0x4b   : > { %p13976_p5 = scmp.eq.s32.totalorder %s8603_s21, 0 }
  0x4d   : > { %8478 = dma.done.wait (%p13976_p5), [#allocation3], 4608   ;;  %p13977_p0 = pmov %p13976_p5 }
  0x4f   : > { %8480 = vsyncadd (%p13977_p0), [#allocation3], 4294962688  ;;  %p13978_p6 = pmov %p13977_p0 }
  0x50   : > { %p13979_p9 = pmov %p13977_p0 }
  0x51   : > { %8482 = dma.done.wait (%p13978_p6), [#allocation6], 2304  }
  0x52   : > { %8484 = vsyncadd (%p13979_p9), [#allocation6], 4294964992  ;;  %p410_p10 = scmp.lt.s32.totalorder %s8603_s21, 1  ;;  %v479_v0 = vld [vmem:[#allocation2 + $0x100] sm:$0xff]  ;;  %v480_v1 = vld [vmem:[#allocation2 + $0x108] sm:$0xff]  ;;  %vm516_vm0 = vcmask 1040384  }
  0x53   : > { %v481_v2 = vld [vmem:[#allocation2 + $0x110] sm:$0xff]  ;;  %vm675_vm1 = vcmask 1046528   ;;  %v13606_v3 = vmov 0.0   ;;  %v6673_v5 = vpack.c.bf16 %v480_v1, %v479_v0  ;;  %v482_v6 = vld [vmem:[#allocation2 + $0x118] sm:$0xff]  ;;  %vm1439_vm2 = vcmask 261120   ;;  %v2380_v28 = vld [vmem:[%s13589_s3] sm:$0xff] }
  0x54   : > { %s411_s28 = scalar_select %p410_p10, %s8603_s21, 1  ;;  %v8710_v4 = vrot.slane %v13606_v3, 1  ;;  %v8717_v9 = vrot.slane %v13606_v3, 2  ;;  %vm846_vm3 = vcmask 1045504   ;;  %v6677_v10 = vpack.c.bf16 %v482_v6, %v481_v2  ;;  %v2381_v33 = vld [vmem:[%s13589_s3 + $0x8] sm:$0xff] }
  0x55   : > { %6674 = vmatprep.subr.bf16.mxu1 %v6673_v5  ;;  %v6681_v45 = vpack.c.bf16 %v2381_v33, %v2380_v28  ;;  %s8510_s25 = smov 32   ;;  %s8511_s23 = smov 64   ;;  %vm2359_vm4 = vcmask 1041409   ;;  %vm2361_vm5 = vcmask 1042434   ;;  %vm2363_vm6 = vcmask 1043459  }
  0x56   : > { %s6404_s13 = sshll.u32 %s411_s28, 8  ;;  %13980 = vst [vmem:[#allocation16_spill] sm:$0xff] %v8710_v4  ;;  %13981 = vst [vmem:[#allocation17_spill] sm:$0xff] %v8717_v9  ;;  %6676 = vmatpush3.bf16.msra.mxu1 %v6673_v5  ;;  %s8512_s28 = smov 96   ;;  %vm2365_vm7 = vcmask 1044484   ;;  %vm2367_vm8 = vcmask 1045509  }
  0x57   : > { %s8707_s16 = scalar_lea.vmem %s13586_s0, %s6404_s13  ;;  %6678 = vmatprep.subr.bf16.mxu1 %v6677_v10  ;;  %vm2369_vm9 = vcmask 1046534   ;;  %vm2371_vm10 = vcmask 1047559   ;;  %vm1471_vm11 = vcmask 523264   ;;  %vm1503_vm12 = vcmask 785408   ;;  %s8515_s17 = smov 48  }
  0x58   : > { %v415_v7 = vld [vmem:[%s8707_s16] sm:$0xff]  ;;  %v8714_v8 = vld [vmem:[%s8707_s16 + $0x8] sm:$0xff]  ;;  %v417_v14 = vld [vmem:[%s8707_s16 + $0x10] sm:$0xff]  ;;  %vm2514_vm13 = vcmask 64512   ;;  %s8516_s13 = smov 16   ;;  %vm5626_vm14 = vcmask 130048  }
  0x59   : > { %v517_v11 = vrot.slane %v415_v7, 7  ;;  %v518_v12 = vrot.slane %v8714_v8, 7  ;;  %v2150_v13 = vsel %vm1439_vm2, %v415_v7, 0.0  ;;  %v418_v15 = vld [vmem:[%s8707_s16 + $0x18] sm:$0xff]  ;;  %v2151_v16 = vsel %vm1439_vm2, %v8714_v8, 0.0  ;;  %v419_v34 = vld [vmem:[%s8707_s16 + $0x20] sm:$0xff] }
  0x5a   : > { %v520_v17 = vrot.slane %v417_v14, 7  ;;  %v521_v18 = vrot.slane %v418_v15, 7  ;;  %v2159_v19 = vsel %vm1439_vm2, %v417_v14, 0.0  ;;  %v2152_v22 = vadd.f32 %v2151_v16, %v2150_v13  ;;  %v420_v35 = vld [vmem:[%s8707_s16 + $0x28] sm:$0xff]  ;;  %6680 = vmatpush3.bf16.msra.mxu1 %v6677_v10  ;;  %s8517_s15 = smov 80   ;;  %s8518_s29 = smov 112  }
  0x5b   : > { %v8727_v20 = vsel %vm516_vm0, %v517_v11, %v518_v12  ;;  %v8730_v21 = vsel %vm516_vm0, 0.0, %v517_v11  ;;  %v2160_v23 = vsel %vm1439_vm2, %v418_v15, 0.0  ;;  %v2311_v37 = vadd.f32 %v2159_v19, %v2150_v13  ;;  %6682 = vmatprep.subr.bf16.mxu1 %v6681_v45  ;;  %v421_v11 = vld [vmem:[%s8707_s16 + $0x30] sm:$0xff]  ;;  %v8809_v13 = vld [vmem:[%s8707_s16 + $0x40] sm:$0xff]  ;;  %p14561_p1 = scmp.ne.s32.totalorder %s13970_s27, 0 }
  0x5c   : > { %13982 = vst [vmem:[#allocation18_spill] sm:$0xff] %v8727_v20  ;;  %13983 = vst [vmem:[#allocation19_spill] sm:$0xff] %v8730_v21  ;;  %v678_v24 = vrot.slane %v8730_v21, 1  ;;  %v679_v25 = vrot.slane %v8727_v20, 1  ;;  %v8736_v26 = vsel %vm516_vm0, %v520_v17, %v521_v18  ;;  %v8739_v27 = vsel %vm516_vm0, 0.0, %v520_v17 }
  0x5d   : > { %13984 = vst [vmem:[#allocation20_spill] sm:$0xff] %v8736_v26  ;;  %v2153_v29 = vrot.slane %v2152_v22, 4  ;;  %v854_v30 = vrot.slane %v8739_v27, 2  ;;  %v855_v31 = vrot.slane %v8736_v26, 2  ;;  %v2161_v32 = vadd.f32 %v2160_v23, %v2159_v19  ;;  %v8824_v19 = vld [vmem:[%s8707_s16 + $0x50] sm:$0xff] }
  0x5e   : > { %v8752_v36 = vsel %vm675_vm1, %v678_v24, %v679_v25  ;;  %v2326_v38 = vadd.f32 %v2160_v23, %v2151_v16  ;;  %v629_v39 = vsel %vm516_vm0, %v521_v18, 0.0  ;;  %v523_v46 = vrot.slane %v419_v34, 7  ;;  %v8821_v18 = vld [vmem:[%s8707_s16 + $0x48] sm:$0xff]  ;;  %13994 = vst [vmem:[#allocation30_spill] sm:$0xff] %v8824_v19 }
  0x5f   : > { %13985 = vst [vmem:[#allocation21_spill] sm:$0xff] %v8752_v36  ;;  %v2154_v40 = vadd.f32 %v2153_v29, %v2152_v22  ;;  %v6864_v41 = vpack.i.bf16 %v8752_v36, %v8710_v4  ;;  %v8758_v42 = vsel %vm846_vm3, %v854_v30, %v855_v31  ;;  %v2162_v43 = vrot.slane %v2161_v32, 4 }
  0x60   : > { %6499 = vmatprep.mubr.msk.f32.mxu1 %vm1439_vm2, %v8758_v42  ;;  %v857_v44 = vrot.slane %v629_v39, 2  ;;  %v524_v47 = vrot.slane %v420_v35, 7  ;;  %v684_v50 = vrot.slane %v8736_v26, 1  ;;  %v686_v51 = vrot.slane %v629_v39, 1 }
  0x61   : > { %v2155_v48 = vrot.slane %v2154_v40, 2  ;;  %6865 = vrot.lane.b32.xlu0 %v6864_v41, %s8510_s25  ;;  %v8763_v49 = vadd.f32 %v2162_v43, %v2161_v32  ;;  %v8773_v54 = vsel %vm516_vm0, 0.0, %v523_v46  ;;  %v2168_v55 = vsel %vm1439_vm2, %v419_v34, 0.0  ;;  %v8861_v41 = vld [vmem:[%s8707_s16 + $0x58] sm:$0xff] }
  0x62   : > { %v8767_v52 = vsel %vm846_vm3, %v855_v31, %v857_v44  ;;  %v8770_v53 = vsel %vm516_vm0, %v523_v46, %v524_v47  ;;  %13987 = vst [vmem:[#allocation23_spill] sm:$0xff] %v8773_v54  ;;  %v8782_v58 = vsel %vm675_vm1, %v684_v50, %v686_v51  ;;  %v688_v59 = vrot.slane %v8773_v54, 1  ;;  %13999 = vst [vmem:[#allocation35_spill] sm:$0xff] %v8861_v41 }
  0x63   : > { %13986 = vst [vmem:[#allocation22_spill] sm:$0xff] %v8770_v53  ;;  %v8776_v56 = vadd.f32 %v2155_v48, %v2154_v40  ;;  %6500 = vmatmul.mubr.msk.f32.vlgmr.msra.gmra.mrb[0].mxu1 %vm1439_vm2, %v8767_v52  ;;  %13988 = vst [vmem:[#allocation24_spill] sm:$0xff] %v8782_v58  ;;  %v689_v60 = vrot.slane %v8770_v53, 1  ;;  %v2169_v61 = vsel %vm1439_vm2, %v420_v35, 0.0  ;;  %v8787_v62 = vadd.f32 %v2311_v37, %v2168_v55 }
  0x64   : > { %6684 = vmatpush3.bf16.msra.mxu1 %v6681_v45  ;;  %v8790_v63 = vsel %vm516_vm0, %v518_v12, 0.0  ;;  %v8792_v0 = vadd.f32 %v2169_v61, %v2168_v55  ;;  %v8794_v1 = vadd.f32 %v2326_v38, %v2169_v61  ;;  %v683_v5 = vrot.slane %v8739_v27, 1  ;;  %v8806_v12 = vld [vmem:[%s8707_s16 + $0x38] sm:$0xff] }
  0x65   : > { %13989 = vst [vmem:[#allocation25_spill] sm:$0xff] %v8787_v62  ;;  %v681_v2 = vrot.slane %v8790_v63, 1  ;;  %v8799_v6 = vsel %vm675_vm1, %v688_v59, %v689_v60  ;;  %v859_v7 = vrot.slane %v8773_v54, 2  ;;  %v860_v8 = vrot.slane %v8770_v53, 2 }
  0x66   : > { %13990 = vst [vmem:[#allocation26_spill] sm:$0xff] %v8794_v1  ;;  %13991 = vst [vmem:[#allocation27_spill] sm:$0xff] %v8799_v6  ;;  %v630_v10 = vsel %vm516_vm0, %v524_v47, 0.0  ;;  %v6874_v15 = vpack.i.bf16 %v8799_v6, %v8782_v58  ;;  %v8818_v17 = vsel %vm675_vm1, %v683_v5, %v684_v50  ;;  %v527_v29 = vrot.slane %v8806_v12, 7 }
  0x67   : > { %v8815_v16 = vsel %vm675_vm1, %v679_v25, %v681_v2  ;;  %13993 = vst [vmem:[#allocation29_spill] sm:$0xff] %v8818_v17  ;;  %v8829_v23 = vsel %vm846_vm3, %v859_v7, %v860_v8  ;;  %v691_v24 = vrot.slane %v630_v10, 1  ;;  %v862_v28 = vrot.slane %v630_v10, 2  ;;  %v8880_v2 = vld [vmem:[%s8707_s16 + $0x60] sm:$0xff] }
  0x68   : > { %13992 = vst [vmem:[#allocation28_spill] sm:$0xff] %v8815_v16  ;;  %v6869_v22 = vpack.i.bf16 %v8818_v17, %v8815_v16  ;;  %6875 = vrot.lane.b32.xlu1 %v6874_v15, %s8510_s25  ;;  %6502 = vmatprep.mubr.msk.f32.mxu1 %vm1439_vm2, %v8829_v23  ;;  %v526_v25 = vrot.slane %v421_v11, 7  ;;  %v8836_v30 = vsel %vm1439_vm2, %v421_v11, 0.0  ;;  %v529_v31 = vrot.slane %v8809_v13, 7  ;;  %14003 = vst [vmem:[#allocation39_spill] sm:$0xff] %v8880_v2  ;;  %v8894_v11 = vld [vmem:[%s8707_s16 + $0x68] sm:$0xff] }
  0x69   : > { %v8841_v32 = vsel %vm846_vm3, %v860_v8, %v862_v28  ;;  %v8844_v33 = vsel %vm675_vm1, %v689_v60, %v691_v24  ;;  %v530_v34 = vrot.slane %v8821_v18, 7  ;;  %v532_v35 = vrot.slane %v8824_v19, 7  ;;  %14006 = vst [vmem:[#allocation42_spill] sm:$0xff] %v8894_v11 }
  0x6a   : > { %6870 = vrot.lane.b32.xlu0 %v6869_v22, %s8510_s25  ;;  %13995 = vst [vmem:[#allocation31_spill] sm:$0xff] %v8844_v33  ;;  %6503 = vmatmul.mubr.msk.f32.gmra.mrb[2].mxu1 %vm1439_vm2, %v8841_v32  ;;  %v8851_v37 = vsel %vm516_vm0, %v526_v25, %v527_v29  ;;  %v8854_v38 = vsel %vm516_vm0, 0.0, %v526_v25  ;;  %v8857_v39 = vsel %vm516_vm0, 0.0, %v529_v31  ;;  %v631_v40 = vsel %vm516_vm0, %v527_v29, 0.0 }
  0x6b   : > { %13996 = vst [vmem:[#allocation32_spill] sm:$0xff] %v8851_v37  ;;  %13997 = vst [vmem:[#allocation33_spill] sm:$0xff] %v8854_v38  ;;  %v693_v43 = vrot.slane %v8854_v38, 1  ;;  %v694_v44 = vrot.slane %v8851_v37, 1  ;;  %v8866_v45 = vsel %vm516_vm0, %v529_v31, %v530_v34  ;;  %v696_v46 = vrot.slane %v631_v40, 1 }
  0x6c   : > { %13998 = vst [vmem:[#allocation34_spill] sm:$0xff] %v8857_v39  ;;  %14000 = vst [vmem:[#allocation36_spill] sm:$0xff] %v8866_v45  ;;  %v698_v47 = vrot.slane %v8857_v39, 1  ;;  %v699_v48 = vrot.slane %v8866_v45, 1  ;;  %v864_v50 = vrot.slane %v8854_v38, 2  ;;  %v865_v51 = vrot.slane %v8851_v37, 2 }
  0x6d   : > { %v8873_v55 = vsel %vm675_vm1, %v693_v43, %v694_v44  ;;  %v8876_v59 = vsel %vm675_vm1, %v694_v44, %v696_v46  ;;  %v867_v60 = vrot.slane %v631_v40, 2  ;;  %v533_v61 = vrot.slane %v8861_v41, 7  ;;  %v8919_v46 = vld [vmem:[%s8707_s16 + $0x70] sm:$0xff]  ;;  %v435_v37 = vld [vmem:[%s8707_s16 + $0xa0] sm:$0xff] }
  0x6e   : > { %14001 = vst [vmem:[#allocation37_spill] sm:$0xff] %v8873_v55  ;;  %14002 = vst [vmem:[#allocation38_spill] sm:$0xff] %v8876_v59  ;;  %v6879_v5 = vpack.i.bf16 %v8873_v55, %v8844_v33  ;;  %v8885_v7 = vsel %vm675_vm1, %v698_v47, %v699_v48  ;;  %v8888_v8 = vsel %vm846_vm3, %v864_v50, %v865_v51  ;;  %v8891_v10 = vsel %vm516_vm0, 0.0, %v532_v35 }
  0x6f   : > { %14004 = vst [vmem:[#allocation40_spill] sm:$0xff] %v8885_v7  ;;  %14005 = vst [vmem:[#allocation41_spill] sm:$0xff] %v8891_v10  ;;  %v6884_v15 = vpack.i.bf16 %v8885_v7, %v8876_v59  ;;  %6505 = vmatprep.mubr.msk.f32.mxu1 %vm1439_vm2, %v8888_v8  ;;  %v8901_v22 = vsel %vm846_vm3, %v865_v51, %v867_v60  ;;  %v8904_v24 = vsel %vm516_vm0, %v532_v35, %v533_v61  ;;  %vm5689_vm15 = vcmask 392192  }
  0x70   : > { %14007 = vst [vmem:[#allocation43_spill] sm:$0xff] %v8904_v24  ;;  %v632_v28 = vsel %vm516_vm0, %v530_v34, 0.0  ;;  %6880 = vrot.lane.b32.xlu1 %v6879_v5, %s8510_s25  ;;  %6506 = vmatmul.mubr.msk.f32.gmra.mrb[4].mxu1 %vm1439_vm2, %v8901_v22  ;;  %v703_v29 = vrot.slane %v8891_v10, 1  ;;  %v704_v31 = vrot.slane %v8904_v24, 1  ;;  %v535_v40 = vrot.slane %v8880_v2, 7  ;;  %14008 = vst [vmem:[#allocation44_spill] sm:$0xff] %v8919_v46 }
  0x71   : > { %v701_v25 = vrot.slane %v632_v28, 1  ;;  %6885 = vrot.lane.b32.xlu0 %v6884_v15, %s8510_s25  ;;  %v536_v35 = vrot.slane %v8894_v11, 7  ;;  %v633_v34 = vsel %vm516_vm0, %v533_v61, 0.0  ;;  %v869_v43 = vrot.slane %v8857_v39, 2  ;;  %v8931_v5 = vld [vmem:[%s8707_s16 + $0x78] sm:$0xff]  ;;  %v8934_v15 = vld [vmem:[%s8707_s16 + $0x80] sm:$0xff] }
  0x72   : > { %v870_v44 = vrot.slane %v8866_v45, 2  ;;  %v8925_v50 = vsel %vm675_vm1, %v703_v29, %v704_v31  ;;  %v8928_v51 = vsel %vm516_vm0, 0.0, %v535_v40  ;;  %v706_v60 = vrot.slane %v633_v34, 1  ;;  %14012 = vst [vmem:[#allocation48_spill] sm:$0xff] %v8931_v5  ;;  %14013 = vst [vmem:[#allocation49_spill] sm:$0xff] %v8934_v15  ;;  %v8937_v61 = vld [vmem:[%s8707_s16 + $0x88] sm:$0xff] }
  0x73   : > { %v8922_v47 = vsel %vm675_vm1, %v699_v48, %v701_v25  ;;  %14010 = vst [vmem:[#allocation46_spill] sm:$0xff] %v8925_v50  ;;  %14011 = vst [vmem:[#allocation47_spill] sm:$0xff] %v8928_v51  ;;  %v8942_v14 = vsel %vm516_vm0, %v535_v40, %v536_v35  ;;  %v708_v48 = vrot.slane %v8928_v51, 1  ;;  %v872_v16 = vrot.slane %v632_v28, 2 }
  0x74   : > { %14009 = vst [vmem:[#allocation45_spill] sm:$0xff] %v8922_v47  ;;  %14014 = vst [vmem:[#allocation50_spill] sm:$0xff] %v8937_v61  ;;  %v6889_v3 = vpack.i.bf16 %v8925_v50, %v8922_v47  ;;  %v8946_v25 = vsel %vm846_vm3, %v869_v43, %v870_v44  ;;  %v8949_v29 = vsel %vm675_vm1, %v704_v31, %v706_v60  ;;  %v709_v57 = vrot.slane %v8942_v14, 1 }
  0x75   : > { %14015 = vst [vmem:[#allocation51_spill] sm:$0xff] %v8942_v14  ;;  %14016 = vst [vmem:[#allocation52_spill] sm:$0xff] %v8949_v29  ;;  %6508 = vmatprep.mubr.msk.f32.mxu1 %vm1439_vm2, %v8946_v25  ;;  %v538_v36 = vrot.slane %v8919_v46, 7  ;;  %v539_v40 = vrot.slane %v8931_v5, 7  ;;  %v8958_v4 = vsel %vm516_vm0, %v536_v35, 0.0  ;;  %v541_v43 = vrot.slane %v8934_v15, 7 }
  0x76   : > { %6890 = vrot.lane.b32.xlu1 %v6889_v3, %s8510_s25  ;;  %v542_v31 = vrot.slane %v8937_v61, 7  ;;  %v8963_v60 = vsel %vm675_vm1, %v708_v48, %v709_v57  ;;  %v8966_v28 = vsel %vm846_vm3, %v870_v44, %v872_v16  ;;  %v711_v3 = vrot.slane %v8958_v4, 1  ;;  %v433_v16 = vld [vmem:[%s8707_s16 + $0x90] sm:$0xff] }
  0x77   : > { %14017 = vst [vmem:[#allocation53_spill] sm:$0xff] %v8963_v60  ;;  %v8969_v50 = vsel %vm516_vm0, 0.0, %v538_v36  ;;  %v6894_v35 = vpack.i.bf16 %v8963_v60, %v8949_v29  ;;  %6509 = vmatmul.mubr.msk.f32.gmra.mrb[6].mxu1 %vm1439_vm2, %v8966_v28  ;;  %v8977_v47 = vsel %vm516_vm0, %v538_v36, %v539_v40  ;;  %v8989_v55 = vsel %vm516_vm0, 0.0, %v541_v43  ;;  %v434_v36 = vld [vmem:[%s8707_s16 + $0x98] sm:$0xff] }
  0x78   : > { %14018 = vst [vmem:[#allocation54_spill] sm:$0xff] %v8969_v50  ;;  %14019 = vst [vmem:[#allocation55_spill] sm:$0xff] %v8977_v47  ;;  %v713_v48 = vrot.slane %v8969_v50, 1  ;;  %v8981_v7 = vsel %vm516_vm0, %v541_v43, %v542_v31  ;;  %v8985_v44 = vsel %vm675_vm1, %v709_v57, %v711_v3  ;;  %v714_v59 = vrot.slane %v8977_v47, 1 }
  0x79   : > { %14020 = vst [vmem:[#allocation56_spill] sm:$0xff] %v8981_v7  ;;  %14021 = vst [vmem:[#allocation57_spill] sm:$0xff] %v8985_v44  ;;  %v8992_v60 = vsel %vm516_vm0, %v539_v40, 0.0  ;;  %6895 = vrot.lane.b32.xlu0 %v6894_v35, %s8510_s25  ;;  %v718_v33 = vrot.slane %v8989_v55, 1  ;;  %v719_v57 = vrot.slane %v8981_v7, 1  ;;  %v874_v3 = vrot.slane %v8891_v10, 2 }
  0x7a   : > { %14022 = vst [vmem:[#allocation58_spill] sm:$0xff] %v8989_v55  ;;  %v716_v29 = vrot.slane %v8992_v60, 1  ;;  %v9001_v6 = vsel %vm675_vm1, %v713_v48, %v714_v59  ;;  %v875_v43 = vrot.slane %v8904_v24, 2  ;;  %v877_v58 = vrot.slane %v633_v34, 2 }
  0x7b   : > { %14023 = vst [vmem:[#allocation59_spill] sm:$0xff] %v9001_v6  ;;  %v544_v40 = vrot.slane %v433_v16, 7  ;;  %v6899_v17 = vpack.i.bf16 %v9001_v6, %v8985_v44  ;;  %v9010_v45 = vsel %vm675_vm1, %v718_v33, %v719_v57  ;;  %v545_v39 = vrot.slane %v434_v36, 7  ;;  %v436_v6 = vld [vmem:[%s8707_s16 + $0xa8] sm:$0xff] }
  0x7c   : > { %v9007_v35 = vsel %vm675_vm1, %v714_v59, %v716_v29  ;;  %14025 = vst [vmem:[#allocation61_spill] sm:$0xff] %v9010_v45  ;;  %v9016_v48 = vsel %vm846_vm3, %v874_v3, %v875_v43  ;;  %v9019_v34 = vsel %vm846_vm3, %v875_v43, %v877_v58  ;;  %v9032_v59 = vsel %vm516_vm0, %v542_v31, 0.0 }
  0x7d   : > { %14024 = vst [vmem:[#allocation60_spill] sm:$0xff] %v9007_v35  ;;  %v6904_v10 = vpack.i.bf16 %v9010_v45, %v9007_v35  ;;  %v9022_v24 = vsel %vm516_vm0, 0.0, %v544_v40  ;;  %6900 = vrot.lane.b32.xlu1 %v6899_v17, %s8510_s25  ;;  %6511 = vmatprep.mubr.msk.f32.mxu1 %vm1439_vm2, %v9016_v48  ;;  %v9029_v33 = vsel %vm516_vm0, %v544_v40, %v545_v39  ;;  %v9036_v58 = vsel %vm1439_vm2, %v433_v16, 0.0 }
  0x7e   : > { %14026 = vst [vmem:[#allocation62_spill] sm:$0xff] %v9022_v24  ;;  %14027 = vst [vmem:[#allocation63_spill] sm:$0xff] %v9029_v33  ;;  %v723_v29 = vrot.slane %v9022_v24, 1  ;;  %6512 = vmatmul.mubr.msk.f32.gmra.mrb[8].mxu1 %vm1439_vm2, %v9019_v34  ;;  %v721_v17 = vrot.slane %v9032_v59, 1  ;;  %v724_v3 = vrot.slane %v9029_v33, 1  ;;  %v9044_v43 = vsel %vm1439_vm2, %v434_v36, 0.0 }
  0x7f   : > { %14028 = vst [vmem:[#allocation64_spill] sm:$0xff] %v9036_v58  ;;  %6905 = vrot.lane.b32.xlu0 %v6904_v10, %s8510_s25  ;;  %14029 = vst [vmem:[#allocation65_spill] sm:$0xff] %v9044_v43  ;;  %v547_v31 = vrot.slane %v435_v37, 7  ;;  %v2233_v40 = vadd.f32 %v9044_v43, %v9036_v58  ;;  %v548_v16 = vrot.slane %v436_v6, 7  ;;  %v9049_v45 = vsel %vm516_vm0, %v545_v39, 0.0  ;;  %v437_v58 = vld [vmem:[%s8707_s16 + $0xb0] sm:$0xff] }
  0x80   : > { %v9052_v10 = vsel %vm1439_vm2, %v435_v37, 0.0  ;;  %v9055_v35 = vsel %vm675_vm1, %v719_v57, %v721_v17  ;;  %v9058_v44 = vsel %vm675_vm1, %v723_v29, %v724_v3  ;;  %v726_v38 = vrot.slane %v9049_v45, 1  ;;  %v438_v57 = vld [vmem:[%s8707_s16 + $0xb8] sm:$0xff] }
  0x81   : > { %14030 = vst [vmem:[#allocation66_spill] sm:$0xff] %v9052_v10  ;;  %14031 = vst [vmem:[#allocation67_spill] sm:$0xff] %v9055_v35  ;;  %v9061_v36 = vsel %vm516_vm0, 0.0, %v547_v31  ;;  %v2234_v53 = vrot.slane %v2233_v40, 4  ;;  %v6909_v43 = vpack.i.bf16 %v9058_v44, %v9055_v35  ;;  %v9067_v39 = vsel %vm516_vm0, %v547_v31, %v548_v16 }
  0x82   : > { %14032 = vst [vmem:[#allocation68_spill] sm:$0xff] %v9058_v44  ;;  %14033 = vst [vmem:[#allocation69_spill] sm:$0xff] %v9061_v36  ;;  %v728_v37 = vrot.slane %v9061_v36, 1  ;;  %v9073_v17 = vsel %vm675_vm1, %v724_v3, %v726_v38  ;;  %v729_v29 = vrot.slane %v9067_v39, 1  ;;  %v9077_v54 = vsel %vm1439_vm2, %v436_v6, 0.0 }
  0x83   : > { %14034 = vst [vmem:[#allocation70_spill] sm:$0xff] %v9067_v39  ;;  %14035 = vst [vmem:[#allocation71_spill] sm:$0xff] %v9073_v17  ;;  %v879_v26 = vrot.slane %v8928_v51, 2  ;;  %v9080_v44 = vadd.f32 %v2234_v53, %v2233_v40  ;;  %6910 = vrot.lane.b32.xlu1 %v6909_v43, %s8510_s25  ;;  %v2242_v31 = vadd.f32 %v9077_v54, %v9052_v10  ;;  %v880_v35 = vrot.slane %v8942_v14, 2  ;;  %v439_v10 = vld [vmem:[%s8707_s16 + $0xc0] sm:$0xff]  ;;  %v440_v14 = vld [vmem:[%s8707_s16 + $0xc8] sm:$0xff] }
  0x84   : > { %14036 = vst [vmem:[#allocation72_spill] sm:$0xff] %v9077_v54  ;;  %v882_v38 = vrot.slane %v8958_v4, 2  ;;  %v9088_v3 = vsel %vm675_vm1, %v728_v37, %v729_v29  ;;  %v550_v1 = vrot.slane %v437_v58, 7  ;;  %v551_v6 = vrot.slane %v438_v57, 7 }
  0x85   : > { %14037 = vst [vmem:[#allocation73_spill] sm:$0xff] %v9080_v44  ;;  %14038 = vst [vmem:[#allocation74_spill] sm:$0xff] %v9088_v3  ;;  %v9091_v62 = vsel %vm516_vm0, %v548_v16, 0.0  ;;  %v2243_v40 = vrot.slane %v2242_v31, 4  ;;  %v6914_v43 = vpack.i.bf16 %v9088_v3, %v9073_v17  ;;  %v9097_v54 = vsel %vm846_vm3, %v879_v26, %v880_v35 }
  0x86   : > { %6514 = vmatprep.mubr.msk.f32.mxu1 %vm1439_vm2, %v9097_v54  ;;  %v9104_v4 = vsel %vm846_vm3, %v880_v35, %v882_v38  ;;  %v9107_v16 = vsel %vm516_vm0, %v550_v1, %v551_v6  ;;  %v9110_v37 = vsel %vm516_vm0, 0.0, %v550_v1  ;;  %v731_v53 = vrot.slane %v9091_v62, 1 }
  0x87   : > { %14039 = vst [vmem:[#allocation75_spill] sm:$0xff] %v9107_v16  ;;  %14040 = vst [vmem:[#allocation76_spill] sm:$0xff] %v9110_v37  ;;  %v9113_v3 = vadd.f32 %v2243_v40, %v2242_v31  ;;  %6915 = vrot.lane.b32.xlu0 %v6914_v43, %s8510_s25  ;;  %6515 = vmatmul.mubr.msk.f32.gmra.mrb[10].mxu1 %vm1439_vm2, %v9104_v4  ;;  %v733_v26 = vrot.slane %v9110_v37, 1  ;;  %v734_v35 = vrot.slane %v9107_v16, 1  ;;  %v9121_v38 = vsel %vm1439_vm2, %v437_v58, 0.0 }
  0x88   : > { %14042 = vst [vmem:[#allocation78_spill] sm:$0xff] %v9121_v38  ;;  %v9124_v1 = vsel %vm675_vm1, %v729_v29, %v731_v53  ;;  %v9127_v31 = vsel %vm1439_vm2, %v438_v57, 0.0  ;;  %v553_v40 = vrot.slane %v439_v10, 7  ;;  %v554_v43 = vrot.slane %v440_v14, 7 }
  0x89   : > { %14041 = vst [vmem:[#allocation77_spill] sm:$0xff] %v9113_v3  ;;  %14043 = vst [vmem:[#allocation79_spill] sm:$0xff] %v9124_v1  ;;  %v9130_v17 = vsel %vm675_vm1, %v733_v26, %v734_v35  ;;  %v9134_v51 = vadd.f32 %v9127_v31, %v9121_v38  ;;  %v9137_v3 = vsel %vm516_vm0, %v551_v6, 0.0  ;;  %v9140_v58 = vsel %vm1439_vm2, %v439_v10, 0.0  ;;  %v9153_v38 = vld [vmem:[%s8707_s16 + $0xd8] sm:$0xff] }
  0x8a   : > { %14044 = vst [vmem:[#allocation80_spill] sm:$0xff] %v9127_v31  ;;  %14045 = vst [vmem:[#allocation81_spill] sm:$0xff] %v9130_v17  ;;  %v6919_v29 = vpack.i.bf16 %v9130_v17, %v9124_v1  ;;  %v9145_v57 = vsel %vm516_vm0, %v553_v40, %v554_v43  ;;  %v9148_v53 = vsel %vm516_vm0, 0.0, %v553_v40  ;;  %v736_v26 = vrot.slane %v9137_v3, 1  ;;  %v441_v31 = vld [vmem:[%s8707_s16 + $0xd0] sm:$0xff] }
  0x8b   : > { %14046 = vst [vmem:[#allocation82_spill] sm:$0xff] %v9134_v51  ;;  %14047 = vst [vmem:[#allocation83_spill] sm:$0xff] %v9140_v58  ;;  %v738_v10 = vrot.slane %v9148_v53, 1  ;;  %v739_v44 = vrot.slane %v9145_v57, 1  ;;  %v9159_v17 = vsel %vm1439_vm2, %v440_v14, 0.0  ;;  %v884_v61 = vrot.slane %v8969_v50, 2 }
  0x8c   : > { %14048 = vst [vmem:[#allocation84_spill] sm:$0xff] %v9145_v57  ;;  %14049 = vst [vmem:[#allocation85_spill] sm:$0xff] %v9148_v53  ;;  %6920 = vrot.lane.b32.xlu1 %v6919_v29, %s8510_s25  ;;  %v9163_v40 = vsel %vm675_vm1, %v734_v35, %v736_v26  ;;  %v9167_v1 = vadd.f32 %v9159_v17, %v9140_v58  ;;  %v885_v6 = vrot.slane %v8977_v47, 2  ;;  %v887_v15 = vrot.slane %v8992_v60, 2  ;;  %v9177_v29 = vld [vmem:[%s8707_s16 + $0xe0] sm:$0xff]  ;;  %v9180_v35 = vld [vmem:[%s8707_s16 + $0xe8] sm:$0xff] }
  0x8d   : > { %14050 = vst [vmem:[#allocation86_spill] sm:$0xff] %v9153_v38  ;;  %14051 = vst [vmem:[#allocation87_spill] sm:$0xff] %v9159_v17  ;;  %v9172_v51 = vsel %vm675_vm1, %v738_v10, %v739_v44  ;;  %v556_v14 = vrot.slane %v441_v31, 7  ;;  %v557_v5 = vrot.slane %v9153_v38, 7  ;;  %v9188_v58 = vsel %vm516_vm0, %v554_v43, 0.0 }
  0x8e   : > { %14052 = vst [vmem:[#allocation88_spill] sm:$0xff] %v9163_v40  ;;  %14053 = vst [vmem:[#allocation89_spill] sm:$0xff] %v9167_v1  ;;  %v6924_v26 = vpack.i.bf16 %v9172_v51, %v9163_v40  ;;  %v9185_v17 = vsel %vm846_vm3, %v884_v61, %v885_v6  ;;  %v9191_v10 = vsel %vm1439_vm2, %v441_v31, 0.0  ;;  %v9196_v60 = vsel %vm846_vm3, %v885_v6, %v887_v15 }
  0x8f   : > { %14054 = vst [vmem:[#allocation90_spill] sm:$0xff] %v9172_v51  ;;  %14055 = vst [vmem:[#allocation91_spill] sm:$0xff] %v9177_v29  ;;  %6517 = vmatprep.mubr.msk.f32.mxu1 %vm1439_vm2, %v9185_v17  ;;  %v9199_v47 = vsel %vm516_vm0, %v556_v14, %v557_v5  ;;  %v9202_v51 = vsel %vm516_vm0, 0.0, %v556_v14  ;;  %v741_v61 = vrot.slane %v9188_v58, 1  ;;  %v559_v15 = vrot.slane %v9177_v29, 7 }
  0x90   : > { %14056 = vst [vmem:[#allocation92_spill] sm:$0xff] %v9180_v35  ;;  %14057 = vst [vmem:[#allocation93_spill] sm:$0xff] %v9191_v10  ;;  %6925 = vrot.lane.b32.xlu0 %v6924_v26, %s8510_s25  ;;  %6518 = vmatmul.mubr.msk.f32.gmra.mrb[12].mxu1 %vm1439_vm2, %v9196_v60  ;;  %v743_v31 = vrot.slane %v9202_v51, 1  ;;  %v744_v43 = vrot.slane %v9199_v47, 1  ;;  %v560_v6 = vrot.slane %v9180_v35, 7  ;;  %v9216_v14 = vsel %vm516_vm0, %v557_v5, 0.0 }
  0x91   : > { %14058 = vst [vmem:[#allocation94_spill] sm:$0xff] %v9199_v47  ;;  %14059 = vst [vmem:[#allocation95_spill] sm:$0xff] %v9202_v51  ;;  %v9213_v40 = vsel %vm675_vm1, %v739_v44, %v741_v61  ;;  %v889_v50 = vrot.slane %v8989_v55, 2  ;;  %v890_v26 = vrot.slane %v8981_v7, 2  ;;  %v9227_v29 = vsel %vm516_vm0, 0.0, %v559_v15 }
  0x92   : > { %14060 = vst [vmem:[#allocation96_spill] sm:$0xff] %v9213_v40  ;;  %v9221_v10 = vsel %vm675_vm1, %v743_v31, %v744_v43  ;;  %v9224_v38 = vsel %vm516_vm0, %v559_v15, %v560_v6  ;;  %14063 = vst [vmem:[#allocation99_spill] sm:$0xff] %v9227_v29  ;;  %v746_v35 = vrot.slane %v9216_v14, 1  ;;  %v748_v5 = vrot.slane %v9227_v29, 1 }
  0x93   : > { %14061 = vst [vmem:[#allocation97_spill] sm:$0xff] %v9221_v10  ;;  %14062 = vst [vmem:[#allocation98_spill] sm:$0xff] %v9224_v38  ;;  %v6929_v44 = vpack.i.bf16 %v9221_v10, %v9213_v40  ;;  %v749_v61 = vrot.slane %v9224_v38, 1  ;;  %v891_v7 = vsel %vm846_vm3, %v889_v50, %v890_v26  ;;  %v892_v55 = vrot.slane %v9032_v59, 2  ;;  %v2382_v10 = vld [vmem:[%s13589_s3 + $0x10] sm:$0xff]  ;;  %v2383_v50 = vld [vmem:[%s13589_s3 + $0x18] sm:$0xff] }
  0x94   : > { %v9236_v31 = vsel %vm675_vm1, %v744_v43, %v746_v35  ;;  %6520 = vmatprep.mubr.msk.f32.mxu1 %vm1439_vm2, %v891_v7  ;;  %v9241_v15 = vsel %vm516_vm0, %v560_v6, 0.0  ;;  %v849_v1 = vrot.slane %v8730_v21, 2  ;;  %v850_v43 = vrot.slane %v8727_v20, 2 }
  0x95   : > { %14064 = vst [vmem:[#allocation100_spill] sm:$0xff] %v9236_v31  ;;  %6930 = vrot.lane.b32.xlu1 %v6929_v44, %s8510_s25  ;;  %v9252_v35 = vsel %vm675_vm1, %v748_v5, %v749_v61  ;;  %v751_v59 = vrot.slane %v9241_v15, 1  ;;  %v894_v6 = vrot.slane %v9022_v24, 2  ;;  %v893_v46 = vsel %vm846_vm3, %v890_v26, %v892_v55 }
  0x96   : > { %14065 = vst [vmem:[#allocation101_spill] sm:$0xff] %v9252_v35  ;;  %v6934_v40 = vpack.i.bf16 %v9252_v35, %v9236_v31  ;;  %v895_v11 = vrot.slane %v9029_v33, 2  ;;  %v897_v2 = vrot.slane %v9049_v45, 2  ;;  %6521 = vmatmul.mubr.msk.f32.gmra.mrb[14].mxu1 %vm1439_vm2, %v893_v46  ;;  %v851_v5 = vsel %vm846_vm3, %v849_v1, %v850_v43  ;;  %v14093_v31 = vld [vmem:[#allocation44_spill] sm:$0xff] }
  0x97   : > { %v9264_v44 = vsel %vm675_vm1, %v749_v61, %v751_v59  ;;  %v6685_v41 = vpack.c.bf16 %v2383_v50, %v2382_v10  ;;  %v852_v19 = vrot.slane %v8790_v63, 2  ;;  %v6944_v55 = vpack.i.bf16 %v851_v5, %v8717_v9 }
  0x98   : > { %14066 = vst [vmem:[#allocation102_spill] sm:$0xff] %v9264_v44  ;;  %6935 = vrot.lane.b32.xlu0 %v6934_v40, %s8510_s25  ;;  %v6939_v35 = vpack.i.bf16 %v851_v5, %v9264_v44  ;;  %v896_v26 = vsel %vm846_vm3, %v894_v6, %v895_v11  ;;  %v898_v45 = vsel %vm846_vm3, %v895_v11, %v897_v2  ;;  %v899_v63 = vrot.slane %v9061_v36, 2 }
  0x99   : > { %6523 = vmatprep.mubr.msk.f32.mxu1 %vm1439_vm2, %v896_v26  ;;  %6686 = vmatprep.subr.bf16.mxu1 %v6685_v41  ;;  %v853_v61 = vsel %vm846_vm3, %v850_v43, %v852_v19  ;;  %v9277_v1 = vpack.i.bf16 %v8829_v23, %v8767_v52  ;;  %v900_v40 = vrot.slane %v9067_v39, 2  ;;  %v902_v2 = vrot.slane %v9091_v62, 2 }
  0x9a   : > { %6940 = vrot.lane.b32.xlu1 %v6939_v35, %s8510_s25  ;;  %6688 = vmatpush3.bf16.msra.mxu1 %v6685_v41  ;;  %v9283_v10 = vpack.i.bf16 %v8758_v42, %v853_v61  ;;  %v9288_v11 = vpack.i.bf16 %v8888_v8, %v8841_v32  ;;  %v9292_v52 = vpack.i.bf16 %v8946_v25, %v8901_v22  ;;  %v904_v23 = vrot.slane %v9110_v37, 2  ;;  %v9348_v61 = vld [vmem:[%s8707_s16 + $0xf8] sm:$0xff] }
  0x9b   : > { %14067 = vst [vmem:[#allocation103_spill] sm:$0xff] %v9277_v1  ;;  %6524 = vmatmul.mubr.msk.f32.gmra.mrb[16].mxu1 %vm1439_vm2, %v898_v45  ;;  %v901_v19 = vsel %vm846_vm3, %v899_v63, %v900_v40  ;;  %v905_v41 = vrot.slane %v9107_v16, 2  ;;  %v907_v42 = vrot.slane %v9137_v3, 2  ;;  %v903_v62 = vsel %vm846_vm3, %v900_v40, %v902_v2 }
  0x9c   : > { %14068 = vst [vmem:[#allocation104_spill] sm:$0xff] %v9283_v10  ;;  %14069 = vst [vmem:[#allocation105_spill] sm:$0xff] %v9288_v11  ;;  %6945 = vrot.lane.b32.xlu0 %v6944_v55, %s8511_s23  ;;  %6526 = vmatprep.mubr.msk.f32.mxu1 %vm1439_vm2, %v901_v19  ;;  %v9304_v32 = vpack.i.bf16 %v9016_v48, %v8966_v28  ;;  %v9308_v8 = vpack.i.bf16 %v9097_v54, %v9019_v34  ;;  %v909_v22 = vrot.slane %v9148_v53, 2 }
  0x9d   : > { %14070 = vst [vmem:[#allocation106_spill] sm:$0xff] %v9292_v52  ;;  %v906_v25 = vsel %vm846_vm3, %v904_v23, %v905_v41  ;;  %v908_v3 = vsel %vm846_vm3, %v905_v41, %v907_v42  ;;  %v910_v50 = vrot.slane %v9145_v57, 2  ;;  %v912_v35 = vrot.slane %v9188_v58, 2  ;;  %v14092_v41 = vld [vmem:[#allocation42_spill] sm:$0xff] }
  0x9e   : > { %14071 = vst [vmem:[#allocation107_spill] sm:$0xff] %v9304_v32  ;;  %14072 = vst [vmem:[#allocation108_spill] sm:$0xff] %v9308_v8  ;;  %6950 = vrot.lane.b32.xlu1 %v9283_v10, %s8511_s23  ;;  %v9319_v28 = vpack.i.bf16 %v9185_v17, %v9104_v4  ;;  %v9322_v54 = vpack.i.bf16 %v891_v7, %v9196_v60  ;;  %v914_v48 = vrot.slane %v9202_v51, 2  ;;  %v915_v34 = vrot.slane %v9199_v47, 2  ;;  %v445_v17 = vld [vmem:[%s8707_s16 + $0xf0] sm:$0xff] }
  0x9f   : > { %6527 = vmatmul.mubr.msk.f32.gmra.mrb[18].mxu1 %vm1439_vm2, %v903_v62  ;;  %v911_v59 = vsel %vm846_vm3, %v909_v22, %v910_v50  ;;  %v913_v58 = vsel %vm846_vm3, %v910_v50, %v912_v35  ;;  %v917_v43 = vrot.slane %v9216_v14, 2  ;;  %v9330_v6 = vpack.i.bf16 %v896_v26, %v893_v46 }
  0xa0   : > { %14073 = vst [vmem:[#allocation109_spill] sm:$0xff] %v9319_v28  ;;  %14074 = vst [vmem:[#allocation110_spill] sm:$0xff] %v9322_v54  ;;  %6955 = vrot.lane.b32.xlu0 %v9277_v1, %s8511_s23  ;;  %6529 = vmatprep.mubr.msk.f32.mxu1 %vm1439_vm2, %v906_v25  ;;  %v916_v7 = vsel %vm846_vm3, %v914_v48, %v915_v34  ;;  %v9337_v4 = vpack.i.bf16 %v901_v19, %v898_v45  ;;  %v919_v60 = vrot.slane %v9227_v29, 2 }
  0xa1   : > { %14075 = vst [vmem:[#allocation111_spill] sm:$0xff] %v9330_v6  ;;  %v920_v5 = vrot.slane %v9224_v38, 2  ;;  %v918_v55 = vsel %vm846_vm3, %v915_v34, %v917_v43  ;;  %v922_v14 = vrot.slane %v9241_v15, 2  ;;  %v9343_v46 = vpack.i.bf16 %v906_v25, %v903_v62 }
  0xa2   : > { %14076 = vst [vmem:[#allocation112_spill] sm:$0xff] %v9337_v4  ;;  %v9345_v26 = vpack.i.bf16 %v911_v59, %v908_v3  ;;  %6960 = vrot.lane.b32.xlu1 %v9288_v11, %s8511_s23  ;;  %v562_v63 = vrot.slane %v445_v17, 7  ;;  %v563_v40 = vrot.slane %v9348_v61, 7  ;;  %v9355_v2 = vsel %vm1439_vm2, %v445_v17, 0.0 }
  0xa3   : > { %14077 = vst [vmem:[#allocation113_spill] sm:$0xff] %v9343_v46  ;;  %v921_v45 = vsel %vm846_vm3, %v919_v60, %v920_v5  ;;  %6530 = vmatmul.mubr.msk.f32.gmra.mrb[20].mxu1 %vm1439_vm2, %v908_v3  ;;  %v9359_v15 = vsel %vm846_vm3, %v920_v5, %v922_v14  ;;  %v9361_v19 = vpack.i.bf16 %v916_v7, %v913_v58  ;;  %v2157_v48 = vrot.slane %v8776_v56, 1 }
  0xa4   : > { %14078 = vst [vmem:[#allocation114_spill] sm:$0xff] %v9345_v26  ;;  %14079 = vst [vmem:[#allocation115_spill] sm:$0xff] %v9359_v15  ;;  %v9363_v23 = vpack.i.bf16 %v921_v45, %v918_v55  ;;  %6965 = vrot.lane.b32.xlu0 %v9292_v52, %s8511_s23  ;;  %6532 = vmatprep.mubr.msk.f32.mxu1 %vm1439_vm2, %v911_v59  ;;  %v9371_v42 = vsel %vm516_vm0, %v562_v63, %v563_v40  ;;  %v9374_v62 = vsel %vm516_vm0, 0.0, %v562_v63  ;;  %v14097_v52 = vld [vmem:[#allocation73_spill] sm:$0xff] }
  0xa5   : > { %14080 = vst [vmem:[#allocation116_spill] sm:$0xff] %v9361_v19  ;;  %14082 = vst [vmem:[#allocation118_spill] sm:$0xff] %v9371_v42  ;;  %v9377_v22 = vsel %vm516_vm0, %v563_v40, 0.0  ;;  %v1152_v3 = vrot.slane %v9374_v62, 2  ;;  %v1153_v50 = vrot.slane %v9371_v42, 2  ;;  %v14085_v34 = vrot.slane %v8763_v49, 2 }
  0xa6   : > { %14081 = vst [vmem:[#allocation117_spill] sm:$0xff] %v9363_v23  ;;  %14083 = vst [vmem:[#allocation119_spill] sm:$0xff] %v9374_v62  ;;  %v1155_v35 = vrot.slane %v9377_v22, 2  ;;  %6970 = vrot.lane.b32.xlu1 %v9304_v32, %s8511_s23  ;;  %v14086_v43 = vrot.slane %v8792_v0, 4  ;;  %v9395_v60 = vsel %vm1439_vm2, %v8806_v12, 0.0  ;;  %v9399_v5 = vsel %vm1439_vm2, %v8809_v13, 0.0 }
  0xa7   : > { %14084 = vst [vmem:[#allocation120_spill] sm:$0xff] %v9377_v22  ;;  %v2165_v59 = vadd.f32 %v14085_v34, %v8763_v49  ;;  %6533 = vmatmul.mubr.msk.f32.gmra.mrb[22].mxu1 %vm1439_vm2, %v913_v58  ;;  %v9403_v14 = vsel %vm846_vm3, %v1152_v3, %v1153_v50  ;;  %v9409_v49 = vadd.f32 %v2157_v48, %v8776_v56  ;;  %v9418_v58 = vsel %vm1439_vm2, %v8821_v18, 0.0  ;;  %v14089_v40 = vld [vmem:[#allocation30_spill] sm:$0xff]  ;;  %v14091_v34 = vld [vmem:[#allocation39_spill] sm:$0xff] }
  0xa8   : > { %v2172_v17 = vadd.f32 %v14086_v43, %v8792_v0  ;;  %14087 = vst [vmem:[#allocation121_spill] sm:$0xff] %v9403_v14  ;;  %v9406_v63 = vsel %vm846_vm3, %v1153_v50, %v1155_v35  ;;  %v2179_v0 = vadd.f32 %v9395_v60, %v8836_v30  ;;  %6975 = vrot.lane.b32.xlu0 %v9308_v8, %s8511_s23  ;;  %v9422_v3 = vsel %vm1439_vm2, %v14089_v40, 0.0  ;;  %v14090_v35 = vld [vmem:[#allocation35_spill] sm:$0xff]  ;;  %v14096_v32 = vld [vmem:[#allocation50_spill] sm:$0xff] }
  0xa9   : > { %14088 = vst [vmem:[#allocation122_spill] sm:$0xff] %v9406_v63  ;;  %6535 = vmatprep.mubr.msk.f32.mxu1 %vm1439_vm2, %v916_v7  ;;  %v2166_v12 = vrot.slane %v2165_v59, 1  ;;  %v2188_v50 = vadd.f32 %v9418_v58, %v9399_v5  ;;  %v9428_v48 = vsel %vm1439_vm2, %v14090_v35, 0.0  ;;  %v9432_v7 = vsel %vm1439_vm2, %v14091_v34, 0.0 }
  0xaa   : > { %v2173_v13 = vrot.slane %v2172_v17, 2  ;;  %v2180_v56 = vrot.slane %v2179_v0, 4  ;;  %6980 = vrot.lane.b32.xlu1 %v9319_v28, %s8511_s23  ;;  %v2197_v40 = vadd.f32 %v9428_v48, %v9422_v3  ;;  %v9442_v25 = vsel %vm1439_vm2, %v14092_v41, 0.0  ;;  %v14094_v41 = vld [vmem:[#allocation48_spill] sm:$0xff] }
  0xab   : > { %v9436_v18 = vadd.f32 %v2166_v12, %v2165_v59  ;;  %6536 = vmatmul.mubr.msk.f32.gmra.mrb[24].mxu1 %vm1439_vm2, %v918_v55  ;;  %v2189_v44 = vrot.slane %v2188_v50, 4  ;;  %v2206_v34 = vadd.f32 %v9442_v25, %v9432_v7  ;;  %v9449_v28 = vsel %vm1439_vm2, %v14093_v31, 0.0  ;;  %v14095_v55 = vld [vmem:[#allocation49_spill] sm:$0xff] }
  0xac   : > { %v2174_v43 = vadd.f32 %v2173_v13, %v2172_v17  ;;  %v2181_v35 = vadd.f32 %v2180_v56, %v2179_v0  ;;  %6985 = vrot.lane.b32.xlu0 %v9322_v54, %s8511_s23  ;;  %6538 = vmatprep.mubr.msk.f32.mxu1 %vm1439_vm2, %v921_v45  ;;  %v2198_v17 = vrot.slane %v2197_v40, 4  ;;  %v9456_v12 = vsel %vm1439_vm2, %v14094_v41, 0.0 }
  0xad   : > { %v9460_v0 = vsel %vm1439_vm2, %v14095_v55, 0.0  ;;  %v2190_v56 = vadd.f32 %v2189_v44, %v2188_v50  ;;  %v2207_v8 = vrot.slane %v2206_v34, 4  ;;  %v2215_v31 = vadd.f32 %v9456_v12, %v9449_v28 }
  0xae   : > { %v2175_v59 = vrot.slane %v2174_v43, 1  ;;  %v2182_v13 = vrot.slane %v2181_v35, 2  ;;  %6990 = vrot.lane.b32.xlu1 %v9330_v6, %s8511_s23  ;;  %v2199_v54 = vadd.f32 %v2198_v17, %v2197_v40  ;;  %v9470_v41 = vsel %vm1439_vm2, %v14096_v32, 0.0 }
  0xaf   : > { %v14098_v55 = vrot.slane %v14097_v52, 2  ;;  %6539 = vmatmul.mubr.msk.f32.gmra.mrb[26].mxu1 %vm1439_vm2, %v9359_v15  ;;  %v2191_v50 = vrot.slane %v2190_v56, 2  ;;  %v2208_v1 = vadd.f32 %v2207_v8, %v2206_v34  ;;  %v2216_v22 = vrot.slane %v2215_v31, 4 }
  0xb0   : > { %v9466_v45 = vadd.f32 %v2175_v59, %v2174_v43  ;;  %v2183_v44 = vadd.f32 %v2182_v13, %v2181_v35  ;;  %6995 = vrot.lane.b32.xlu0 %v9337_v4, %s8511_s23  ;;  %6541 = vmatprep.mubr.msk.f32.mxu1 %vm1439_vm2, %v9403_v14  ;;  %v2200_v43 = vrot.slane %v2199_v54, 2  ;;  %v2224_v32 = vadd.f32 %v9470_v41, %v9460_v0  ;;  %v14099_v59 = vld [vmem:[#allocation77_spill] sm:$0xff] }
  0xb1   : > { %v2237_v11 = vadd.f32 %v14098_v55, %v14097_v52  ;;  %v2245_v52 = vrot.slane %v14099_v59, 2  ;;  %v2192_v55 = vadd.f32 %v2191_v50, %v2190_v56  ;;  %v2209_v6 = vrot.slane %v2208_v1, 2 }
  0xb2   : > { %v2184_v17 = vrot.slane %v2183_v44, 1  ;;  %v2217_v35 = vadd.f32 %v2216_v22, %v2215_v31  ;;  %7000 = vrot.lane.b32.xlu1 %v9343_v46, %s8511_s23  ;;  %v2201_v8 = vadd.f32 %v2200_v43, %v2199_v54  ;;  %v2225_v34 = vrot.slane %v2224_v32, 4 }
  0xb3   : > { %v2238_v40 = vrot.slane %v2237_v11, 1  ;;  %v2246_v14 = vadd.f32 %v2245_v52, %v14099_v59  ;;  %6542 = vmatmul.mubr.msk.f32.gmra.mrb[28].mxu1 %vm1439_vm2, %v9406_v63  ;;  %v2193_v10 = vrot.slane %v2192_v55, 1  ;;  %v2210_v42 = vadd.f32 %v2209_v6, %v2208_v1 }
  0xb4   : > { %v2185_v4 = vadd.f32 %v2184_v17, %v2183_v44  ;;  %v2218_v62 = vrot.slane %v2217_v35, 2  ;;  %7005 = vrot.lane.b32.xlu0 %v9345_v26, %s8511_s23  ;;  %6544 = vmatprep.mubr.msk.f32.mxu1 %vm1439_vm2, %v8717_v9  ;;  %v2202_v22 = vrot.slane %v2201_v8, 1  ;;  %v2226_v54 = vadd.f32 %v2225_v34, %v2224_v32  ;;  %v14102_v44 = vld [vmem:[#allocation89_spill] sm:$0xff] }
  0xb5   : > { %v9486_v13 = vadd.f32 %v2238_v40, %v2237_v11  ;;  %v2247_v56 = vrot.slane %v2246_v14, 1  ;;  %v14100_v11 = vld [vmem:[#allocation82_spill] sm:$0xff]  ;;  %v2194_v43 = vadd.f32 %v2193_v10, %v2192_v55  ;;  %v2211_v40 = vrot.slane %v2210_v42, 1 }
  0xb6   : > { %v14101_v31 = vrot.slane %v14100_v11, 4  ;;  %v2219_v59 = vadd.f32 %v2218_v62, %v2217_v35  ;;  %v2261_v52 = vrot.slane %v14102_v44, 4  ;;  %7010 = vrot.lane.b32.xlu1 %v9361_v19, %s8511_s23  ;;  %v2203_v1 = vadd.f32 %v2202_v22, %v2201_v8  ;;  %v14104_v35 = vld [vmem:[#allocation93_spill] sm:$0xff]  ;;  %v14105_v8 = vld [vmem:[#allocation91_spill] sm:$0xff] }
  0xb7   : > { %v2227_v6 = vrot.slane %v2226_v54, 2  ;;  %v2248_v17 = vadd.f32 %v2247_v56, %v2246_v14  ;;  %6545 = vmatmul.mubr.msk.f32.gmra.mrb[30].mxu1 %vm1439_vm2, %v8717_v9  ;;  %v2212_v32 = vadd.f32 %v2211_v40, %v2210_v42  ;;  %v9514_v22 = vsel %vm1439_vm2, %v14105_v8, 0.0 }
  0xb8   : > { %v2253_v50 = vadd.f32 %v14101_v31, %v14100_v11  ;;  %v2220_v34 = vrot.slane %v2219_v59, 1  ;;  %v2262_v26 = vadd.f32 %v2261_v52, %v14102_v44  ;;  %v14103_v11 = vld [vmem:[#allocation86_spill] sm:$0xff]  ;;  %7015 = vrot.lane.b32.xlu0 %v9363_v23, %s8511_s23  ;;  %v14106_v31 = vld [vmem:[#allocation92_spill] sm:$0xff]  ;;  %v9522_v44 = vsel %vm1439_vm2, %v9348_v61, 0.0 }
  0xb9   : > { %v9506_v10 = vsel %vm1439_vm2, %v14103_v11, 0.0  ;;  %v2228_v62 = vadd.f32 %v2227_v6, %v2226_v54  ;;  %v9518_v40 = vsel %vm1439_vm2, %v14106_v31, 0.0  ;;  %14107 = vst [vmem:[#allocation30_spill] sm:$0xff] %v9522_v44  ;;  %v2295_v11 = vmul.f32 0.0625, %v9409_v49 }
  0xba   : > { %v2254_v63 = vrot.slane %v2253_v50, 2  ;;  %v2269_v14 = vadd.f32 %v9506_v10, %v14104_v35  ;;  %v2221_v42 = vadd.f32 %v2220_v34, %v2219_v59  ;;  %v2263_v56 = vrot.slane %v2262_v26, 2 }
  0xbb   : > { %v2229_v54 = vrot.slane %v2228_v62, 1  ;;  %v2278_v59 = vadd.f32 %v9518_v40, %v9514_v22  ;;  %v2287_v34 = vadd.f32 %v9522_v44, %v9355_v2  ;;  %v2296_v61 = vmul.f32 0.0625, %v9436_v18 }
  0xbc   : > { %v2255_v55 = vadd.f32 %v2254_v63, %v2253_v50  ;;  %v14108_v63 = vpack.i.bf16 %v8739_v27, %v9359_v15  ;;  %v2270_v52 = vrot.slane %v2269_v14, 4  ;;  %v2264_v6 = vadd.f32 %v2263_v56, %v2262_v26 }
  0xbd   : > { %v14109_v8 = vpack.i.bf16 %v8727_v20, %v8730_v21  ;;  %v2230_v31 = vadd.f32 %v2229_v54, %v2228_v62  ;;  %v2279_v15 = vrot.slane %v2278_v59, 4  ;;  %v2288_v26 = vrot.slane %v2287_v34, 4 }
  0xbe   : > { %7020 = vrot.lane.b32.xlu1 %v14108_v63, %s8511_s23  ;;  %v2256_v50 = vrot.slane %v2255_v55, 1  ;;  %v2271_v9 = vadd.f32 %v2270_v52, %v2269_v14  ;;  %v2265_v23 = vrot.slane %v2264_v6, 1  ;;  %v2297_v56 = vmul.f32 0.0625, %v9466_v45 }
  0xbf   : > { %7025 = vrot.lane.b32.xlu0 %v14109_v8, %s8512_s28  ;;  %v2298_v19 = vmul.f32 0.0625, %v2185_v4  ;;  %v2280_v46 = vadd.f32 %v2279_v15, %v2278_v59  ;;  %v2299_v18 = vmul.f32 0.0625, %v2194_v43  ;;  %v2300_v38 = vmul.f32 0.0625, %v2203_v1  ;;  %v14110_v43 = vld [vmem:[#allocation25_spill] sm:$0xff] }
  0xc0   : > { %v2257_v63 = vadd.f32 %v2256_v50, %v2255_v55  ;;  %v2272_v49 = vrot.slane %v2271_v9, 2  ;;  %v2266_v29 = vadd.f32 %v2265_v23, %v2264_v6  ;;  %v2289_v44 = vadd.f32 %v2288_v26, %v2287_v34  ;;  %v14111_v23 = vld [vmem:[#allocation26_spill] sm:$0xff] }
  0xc1   : > { %v2301_v20 = vmul.f32 0.0625, %v2212_v32  ;;  %v2302_v8 = vmul.f32 0.0625, %v2221_v42  ;;  %v2281_v55 = vrot.slane %v2280_v46, 2  ;;  %v2303_v14 = vmul.f32 0.0625, %v2230_v31 }
  0xc2   : > { %v2273_v62 = vadd.f32 %v2272_v49, %v2271_v9  ;;  %v2304_v54 = vmul.f32 0.0625, %v9486_v13  ;;  %v2290_v50 = vrot.slane %v2289_v44, 2  ;;  %v2305_v45 = vmul.f32 0.0625, %v2248_v17  ;;  %v14112_v13 = vld [vmem:[#allocation20_spill] sm:$0xff] }
  0xc3   : > { %v2306_v4 = vmul.f32 0.0625, %v2257_v63  ;;  %v2307_v52 = vmul.f32 0.0625, %v2266_v29  ;;  %v2282_v15 = vadd.f32 %v2281_v55, %v2280_v46  ;;  %v2313_v1 = vadd.f32 %v14110_v43, %v8836_v30  ;;  %v14116_v55 = vld [vmem:[#allocation32_spill] sm:$0xff] }
  0xc4   : > { %v2274_v21 = vrot.slane %v2273_v62, 1  ;;  %v2328_v32 = vadd.f32 %v14111_v23, %v9395_v60  ;;  %v2291_v42 = vadd.f32 %v2290_v50, %v2289_v44  ;;  %v2360_v9 = vsel %vm2359_vm4, %v2296_v61, %v2295_v11  ;;  %v14113_v60 = vld [vmem:[#allocation23_spill] sm:$0xff]  ;;  %v14114_v44 = vld [vmem:[#allocation22_spill] sm:$0xff] }
  0xc5   : > { %v2373_v59 = vsel %vm2359_vm4, %v2304_v54, %v2303_v14  ;;  %v7029_v6 = vpack.i.bf16 %v14112_v13, %v8739_v27  ;;  %v2283_v17 = vrot.slane %v2282_v15, 1  ;;  %v2314_v29 = vadd.f32 %v2313_v1, %v9399_v5 }
  0xc6   : > { %v2275_v34 = vadd.f32 %v2274_v21, %v2273_v62  ;;  %v2329_v46 = vadd.f32 %v2328_v32, %v9418_v58  ;;  %v2292_v31 = vrot.slane %v2291_v42, 1  ;;  %v2362_v30 = vsel %vm2361_vm5, %v2297_v56, %v2360_v9  ;;  %v14115_v56 = vld [vmem:[#allocation33_spill] sm:$0xff] }
  0xc7   : > { %v2374_v63 = vsel %vm2361_vm5, %v2305_v45, %v2373_v59  ;;  %7030 = vrot.lane.b32.xlu1 %v7029_v6, %s8512_s28  ;;  %v7034_v11 = vpack.i.bf16 %v14114_v44, %v14113_v60  ;;  %v2284_v61 = vadd.f32 %v2283_v17, %v2282_v15  ;;  %v2315_v49 = vadd.f32 %v2314_v29, %v9422_v3  ;;  %v14121_v59 = vld [vmem:[#allocation47_spill] sm:$0xff] }
  0xc8   : > { %v2308_v26 = vmul.f32 0.0625, %v2275_v34  ;;  %v2330_v21 = vadd.f32 %v2329_v46, %v9428_v48  ;;  %v2293_v62 = vadd.f32 %v2292_v31, %v2291_v42  ;;  %v2364_v5 = vsel %vm2363_vm6, %v2298_v19, %v2362_v30  ;;  %v14117_v19 = vld [vmem:[#allocation34_spill] sm:$0xff]  ;;  %v14122_v6 = vld [vmem:[#allocation51_spill] sm:$0xff]  ;;  %v14125_v46 = vld [vmem:[#allocation64_spill] sm:$0xff] }
  0xc9   : > { %v2375_v58 = vsel %vm2363_vm6, %v2306_v4, %v2374_v63  ;;  %7035 = vrot.lane.b32.xlu0 %v7034_v11, %s8512_s28  ;;  %v7039_v14 = vpack.i.bf16 %v14116_v55, %v14115_v56  ;;  %v2309_v54 = vmul.f32 0.0625, %v2284_v61  ;;  %v2316_v50 = vadd.f32 %v2315_v49, %v9432_v7  ;;  %v14118_v4 = vld [vmem:[#allocation36_spill] sm:$0xff]  ;;  %v14124_v17 = vld [vmem:[#allocation55_spill] sm:$0xff]  ;;  %v14126_v30 = vld [vmem:[#allocation65_spill] sm:$0xff] }
  0xca   : > { %v2331_v45 = vadd.f32 %v2330_v21, %v9442_v25  ;;  %v2366_v15 = vsel %vm2365_vm7, %v2299_v18, %v2364_v5  ;;  %v2310_v3 = vmul.f32 0.0625, %v2293_v62  ;;  %v2376_v43 = vsel %vm2365_vm7, %v2307_v52, %v2375_v58  ;;  %v14120_v52 = vld [vmem:[#allocation43_spill] sm:$0xff]  ;;  %v14130_v21 = vld [vmem:[#allocation72_spill] sm:$0xff]  ;;  %v14131_v58 = vld [vmem:[#allocation78_spill] sm:$0xff] }
  0xcb   : > { %v2368_v48 = vsel %vm2367_vm8, %v2300_v38, %v2366_v15  ;;  %7040 = vrot.lane.b32.xlu1 %v7039_v14, %s8512_s28  ;;  %v7044_v1 = vpack.i.bf16 %v14118_v4, %v14117_v19  ;;  %v2317_v23 = vadd.f32 %v2316_v50, %v9449_v28  ;;  %v2377_v25 = vsel %vm2367_vm8, %v2308_v26, %v2376_v43  ;;  %v14119_v38 = vld [vmem:[#allocation41_spill] sm:$0xff]  ;;  %v14129_v26 = vld [vmem:[#allocation66_spill] sm:$0xff]  ;;  %v14133_v15 = vld [vmem:[#allocation83_spill] sm:$0xff] }
  0xcc   : > { %v2332_v32 = vadd.f32 %v2331_v45, %v9456_v12  ;;  %v2370_v7 = vsel %vm2369_vm9, %v2301_v20, %v2368_v48  ;;  %v2378_v42 = vsel %vm2369_vm9, %v2309_v54, %v2377_v25  ;;  %v7049_v9 = vpack.i.bf16 %v14120_v52, %v14119_v38  ;;  %v14132_v54 = vld [vmem:[#allocation80_spill] sm:$0xff]  ;;  %v14134_v48 = vld [vmem:[#allocation87_spill] sm:$0xff] }
  0xcd   : > { %v2372_v18 = vsel %vm2371_vm10, %v2302_v8, %v2370_v7  ;;  %7045 = vrot.lane.b32.xlu0 %v7044_v1, %s8512_s28  ;;  %v7054_v34 = vpack.i.bf16 %v14122_v6, %v14121_v59  ;;  %v2318_v28 = vadd.f32 %v2317_v23, %v9460_v0  ;;  %v2379_v20 = vsel %vm2371_vm10, %v2310_v3, %v2378_v42  ;;  %v14123_v8 = vld [vmem:[#allocation54_spill] sm:$0xff]  ;;  %v449_v42 = vld [vmem:[#allocation2 + $0x10] sm:$0xff] }
  0xce   : > { %v2333_v12 = vadd.f32 %v2332_v32, %v9470_v41  ;;  %6555 = vmatprep.mubr.msk.f32.mxu1 %vm1439_vm2, %v2372_v18  ;;  %v7059_v29 = vpack.i.bf16 %v14124_v17, %v14123_v8  ;;  %v13771_v11 = vmov 0.0|0.0   ;;  %v14127_v0 = vld [vmem:[#allocation58_spill] sm:$0xff]  ;;  %v14128_v41 = vld [vmem:[#allocation56_spill] sm:$0xff]  ;;  %v7069_v5 = vpack.i.bf16 %v9029_v33, %v9022_v24  ;;  %v448_v32 = vld [vmem:[#allocation2 + $0x8] sm:$0xff] }
  0xcf   : > { %6556 = vmatmul.mubr.msk.f32.vlgmr.msra.gmra.mrb[32].mxu1 %vm1439_vm2, %v2379_v20  ;;  %7050 = vrot.lane.b32.xlu1 %v7049_v9, %s8512_s28  ;;  %v2319_v31 = vadd.f32 %v2318_v28, %v14125_v46  ;;  %v7064_v61 = vpack.i.bf16 %v14128_v41, %v14127_v0  ;;  %v7074_v45 = vpack.i.bf16 %v9067_v39, %v9061_v36  ;;  %v447_v23 = vld [vmem:[#allocation2] sm:$0xff]  ;;  %v450_v9 = vld [vmem:[#allocation2 + $0x18] sm:$0xff]  ;;  %vm5754_vm4 = vcmask 654336  }
  0xd0   : > { %v2334_v63 = vadd.f32 %v2333_v12, %v14126_v30  ;;  %6625 = vmatprep.subr.bf16.mxu0 %v13771_v11  ;;  %v7079_v1 = vpack.i.bf16 %v9107_v16, %v9110_v37  ;;  %v7084_v18 = vpack.i.bf16 %v9145_v57, %v9148_v53  ;;  %v6626_v12 = vpack.c.bf16 %v448_v32, %v447_v23  ;;  %v14137_v30 = vld [vmem:[#allocation98_spill] sm:$0xff]  ;;  %v456_v32 = vld [vmem:[#allocation2 + $0x48] sm:$0xff] }
  0xd1   : > { %7055 = vrot.lane.b32.xlu0 %v7054_v34, %s8512_s28  ;;  %v2320_v49 = vadd.f32 %v2319_v31, %v14129_v26  ;;  %v7089_v20 = vpack.i.bf16 %v9199_v47, %v9202_v51  ;;  %v6629_v46 = vpack.c.bf16 %v450_v9, %v449_v42  ;;  %v14136_v31 = vld [vmem:[#allocation99_spill] sm:$0xff]  ;;  %v455_v23 = vld [vmem:[#allocation2 + $0x40] sm:$0xff]  ;;  %v7119_v9 = vpack.i.bf16 %v14113_v60, %v14112_v13 }
  0xd2   : > { %v2335_v62 = vadd.f32 %v2334_v63, %v14130_v21  ;;  %6627 = vmatpush1.bf16.msra.mxu0 %v6626_v12  ;;  %v7094_v63 = vpack.i.bf16 %v14137_v30, %v14136_v31  ;;  %v14139_v21 = vld [vmem:[#allocation118_spill] sm:$0xff]  ;;  %v14145_v42 = vld [vmem:[#allocation103_spill] sm:$0xff]  ;;  %vm5819_vm5 = vcmask 916480  }
  0xd3   : > { %7060 = vrot.lane.b32.xlu1 %v7059_v29, %s8512_s28  ;;  %v2321_v14 = vadd.f32 %v2320_v49, %v14131_v58  ;;  %6628 = vmatprep.subr.bf16.mxu0 %v13771_v11  ;;  %v14138_v49 = vld [vmem:[#allocation119_spill] sm:$0xff]  ;;  %v454_v58 = vld [vmem:[#allocation2 + $0x38] sm:$0xff] }
  0xd4   : > { %v2336_v50 = vadd.f32 %v2335_v62, %v14132_v54  ;;  %v1115_v54 = vrot.slane %v14138_v49, 1 }
  0xd5   : > { %7065 = vrot.lane.b32.xlu0 %v7064_v61, %s8512_s28  ;;  %v2322_v3 = vadd.f32 %v2321_v14, %v14133_v15  ;;  %v9632_v14 = vpop.permute.xlu0 %6865  ;;  %v14140_v15 = vld [vmem:[#allocation104_spill] sm:$0xff] }
  0xd6   : > { %v2337_v43 = vadd.f32 %v2336_v50, %v14134_v48  ;;  %6630 = vmatpush1.bf16.msra.mxu0 %v6629_v46  ;;  %v1116_v50 = vrot.slane %v14139_v21, 1  ;;  %v14142_v48 = vld [vmem:[#allocation24_spill] sm:$0xff]  ;;  %v458_v46 = vld [vmem:[#allocation2 + $0x58] sm:$0xff] }
  0xd7   : > { %7070 = vrot.lane.b32.xlu1 %v7069_v5, %s8512_s28  ;;  %v2323_v7 = vadd.f32 %v2322_v3, %v14104_v35  ;;  %v453_v5 = vld [vmem:[#allocation2 + $0x30] sm:$0xff]  ;;  %6631 = vmatprep.subr.bf16.mxu0 %v13771_v11  ;;  %v14141_v3 = vld [vmem:[#allocation29_spill] sm:$0xff] }
  0xd8   : > { %v2338_v25 = vadd.f32 %v2337_v43, %v9506_v10  ;;  %v14135_v10 = vld [vmem:[#allocation30_spill] sm:$0xff]  ;;  %v7114_v43 = vpack.i.bf16 %v14142_v48, %v14141_v3 }
  0xd9   : > { %7075 = vrot.lane.b32.xlu0 %v7074_v45, %s8512_s28  ;;  %v2324_v34 = vadd.f32 %v2323_v7, %v9514_v22  ;;  %v451_v22 = vld [vmem:[#allocation2 + $0x20] sm:$0xff]  ;;  %v6635_v45 = vpack.c.bf16 %v454_v58, %v453_v5  ;;  %v9646_v7 = vsel %vm675_vm1, %v1115_v54, %v1116_v50  ;;  %v460_v5 = vld [vmem:[#allocation2 + $0x68] sm:$0xff] }
  0xda   : > { %v2339_v28 = vadd.f32 %v2338_v25, %v9518_v40  ;;  %v452_v40 = vld [vmem:[#allocation2 + $0x28] sm:$0xff]  ;;  %14143 = vst [vmem:[#allocation35_spill] sm:$0xff] %v9646_v7  ;;  %v14144_v25 = vld [vmem:[#allocation120_spill] sm:$0xff] }
  0xdb   : > { %7080 = vrot.lane.b32.xlu1 %v7079_v1, %s8512_s28  ;;  %v2325_v35 = vadd.f32 %v2324_v34, %v9355_v2  ;;  %v7099_v2 = vpack.i.bf16 %v14139_v21, %v14138_v49  ;;  %v6632_v62 = vpack.c.bf16 %v452_v40, %v451_v22  ;;  %v9642_v1 = vpop.permute.xlu1 %6875 }
  0xdc   : > { %v2340_v29 = vadd.f32 %v2339_v28, %v14135_v10  ;;  %v9653_v34 = vpop.permute.xlu0 %6870  ;;  %v6638_v28 = vpack.c.bf16 %v456_v32, %v455_v23  ;;  %v14151_v23 = vld [vmem:[#allocation105_spill] sm:$0xff]  ;;  %v14152_v32 = vld [vmem:[#allocation40_spill] sm:$0xff] }
  0xdd   : > { %7085 = vrot.lane.b32.xlu0 %v7084_v18, %s8512_s28  ;;  %v2341_v61 = vmul.f32 0.0625, %v2325_v35  ;;  %6633 = vmatpush1.bf16.msra.mxu0 %v6632_v62  ;;  %v1118_v18 = vrot.slane %v14144_v25, 1  ;;  %v14148_v35 = vld [vmem:[#allocation31_spill] sm:$0xff]  ;;  %v459_v62 = vld [vmem:[#allocation2 + $0x60] sm:$0xff]  ;;  %v14153_v25 = vld [vmem:[#allocation45_spill] sm:$0xff] }
  0xde   : > { %v2342_v26 = vmul.f32 0.0625, %v2340_v29  ;;  %6634 = vmatprep.subr.bf16.mxu0 %v13771_v11  ;;  %v457_v29 = vld [vmem:[#allocation2 + $0x50] sm:$0xff]  ;;  %v6644_v54 = vpack.c.bf16 %v460_v5, %v459_v62 }
  0xdf   : > { %7090 = vrot.lane.b32.xlu1 %v7089_v20, %s8512_s28  ;;  %6558 = vmatprep.mubr.msk.f32.mxu1 %vm1439_vm2, %v2341_v61  ;;  %v9656_v12 = vsel %vm675_vm1, %v1116_v50, %v1118_v18  ;;  %v14147_v20 = vld [vmem:[#allocation27_spill] sm:$0xff]  ;;  %v6641_v40 = vpack.c.bf16 %v458_v46, %v457_v29  ;;  %v14149_v61 = vld [vmem:[#allocation37_spill] sm:$0xff]  ;;  %v7144_v50 = vpack.i.bf16 %v14117_v19, %v14116_v55  ;;  %v14157_v62 = vld [vmem:[#allocation52_spill] sm:$0xff] }
  0xe0   : > { %6559 = vmatmul.mubr.msk.f32.gmra.mrb[34].mxu1 %vm1439_vm2, %v2342_v26  ;;  %14146 = vst [vmem:[#allocation39_spill] sm:$0xff] %v9656_v12  ;;  %v7124_v10 = vpack.i.bf16 %v14148_v35, %v14147_v20  ;;  %v14150_v26 = vld [vmem:[#allocation38_spill] sm:$0xff]  ;;  %v7149_v18 = vpack.i.bf16 %v14153_v25, %v14152_v32  ;;  %v7159_v29 = vpack.i.bf16 %v14119_v38, %v14118_v4 }
  0xe1   : > { %7095 = vrot.lane.b32.xlu0 %v7094_v63, %s8512_s28  ;;  %6636 = vmatpush1.bf16.msra.mxu0 %v6635_v45  ;;  %v7129_v63 = vpack.i.bf16 %v14115_v56, %v14114_v44 }
  0xe2   : > { %6637 = vmatprep.subr.bf16.mxu0 %v13771_v11  ;;  %v9665_v22 = vpop.permute.xlu1 %6880 }
  0xe3   : > { %7100 = vrot.lane.b32.xlu1 %v7099_v2, %s8512_s28  ;;  %v7134_v2 = vpack.i.bf16 %v14150_v26, %v14149_v61  ;;  %v9671_v58 = vpop.permute.xlu0 %6885 }
  0xe5   : > { %7105 = vrot.lane.b32.xlu0 %v14140_v15, %s8510_s25  ;;  %6639 = vmatpush1.bf16.msra.mxu0 %v6638_v28  ;;  %v461_v15 = vld [vmem:[#allocation2 + $0x70] sm:$0xff]  ;;  %v463_v28 = vld [vmem:[#allocation2 + $0x80] sm:$0xff] }
  0xe6   : > { %6640 = vmatprep.subr.bf16.mxu0 %v13771_v11 }
  0xe7   : > { %7110 = vrot.lane.b32.xlu1 %v14145_v42, %s8510_s25 }
  0xe8   : > { %v9677_v45 = vpop.permute.xlu1 %6890 }
  0xe9   : > { %7115 = vrot.lane.b32.xlu0 %v7114_v43, %s8512_s28  ;;  %6642 = vmatpush1.bf16.msra.mxu0 %v6641_v40  ;;  %v462_v43 = vld [vmem:[#allocation2 + $0x78] sm:$0xff]  ;;  %v14155_v40 = vld [vmem:[#allocation106_spill] sm:$0xff] }
  0xea   : > { %6643 = vmatprep.subr.bf16.mxu0 %v13771_v11 }
  0xeb   : > { %7120 = vrot.lane.b32.xlu1 %v7119_v9, %s8511_s23  ;;  %v9684_v42 = vpop.permute.xlu0 %6895  ;;  %v6647_v9 = vpack.c.bf16 %v462_v43, %v461_v15 }
  0xed   : > { %7125 = vrot.lane.b32.xlu0 %v7124_v10, %s8512_s28  ;;  %6645 = vmatpush1.bf16.msra.mxu0 %v6644_v54  ;;  %v464_v10 = vld [vmem:[#allocation2 + $0x88] sm:$0xff]  ;;  %v465_v54 = vld [vmem:[#allocation2 + $0x90] sm:$0xff] }
  0xee   : > { %6646 = vmatprep.subr.bf16.mxu0 %v13771_v11 }
  0xef   : > { %7130 = vrot.lane.b32.xlu1 %v7129_v63, %s8511_s23  ;;  %v9691_v46 = vpop.permute.xlu1 %6900  ;;  %v6650_v63 = vpack.c.bf16 %v464_v10, %v463_v28  ;;  %v468_v28 = vld [vmem:[#allocation2 + $0xa8] sm:$0xff] }
  0xf0   : > { %14154 = vst [vmem:[#allocation42_spill] sm:$0xff] %v9691_v46  ;;  %v14160_v10 = vld [vmem:[#allocation107_spill] sm:$0xff] }
  0xf1   : > { %7135 = vrot.lane.b32.xlu0 %v7134_v2, %s8512_s28  ;;  %6648 = vmatpush1.bf16.msra.mxu0 %v6647_v9  ;;  %v14156_v2 = vld [vmem:[#allocation46_spill] sm:$0xff]  ;;  %v9698_v15 = vpop.permute.xlu0 %6905 }
  0xf2   : > { %v7164_v5 = vpack.i.bf16 %v14157_v62, %v14156_v2  ;;  %6649 = vmatprep.subr.bf16.mxu0 %v13771_v11  ;;  %14158 = vst [vmem:[#allocation44_spill] sm:$0xff] %v9698_v15  ;;  %v467_v9 = vld [vmem:[#allocation2 + $0xa0] sm:$0xff]  ;;  %v14162_v15 = vld [vmem:[#allocation57_spill] sm:$0xff] }
  0xf3   : > { %7140 = vrot.lane.b32.xlu1 %v14151_v23, %s8510_s25 }
  0xf5   : > { %7145 = vrot.lane.b32.xlu0 %v7144_v50, %s8511_s23  ;;  %v466_v50 = vld [vmem:[#allocation2 + $0x98] sm:$0xff]  ;;  %6651 = vmatpush1.bf16.msra.mxu0 %v6650_v63  ;;  %v9702_v23 = vpop.permute.xlu1 %6910  ;;  %v6656_v63 = vpack.c.bf16 %v468_v28, %v467_v9  ;;  %v14167_v9 = vld [vmem:[#allocation60_spill] sm:$0xff] }
  0xf6   : > { %v6653_v43 = vpack.c.bf16 %v466_v50, %v465_v54  ;;  %14159 = vst [vmem:[#allocation48_spill] sm:$0xff] %v9702_v23  ;;  %6652 = vmatprep.subr.bf16.mxu0 %v13771_v11  ;;  %v470_v54 = vld [vmem:[#allocation2 + $0xb8] sm:$0xff] }
  0xf7   : > { %7150 = vrot.lane.b32.xlu1 %v7149_v18, %s8512_s28  ;;  %v7174_v18 = vpack.i.bf16 %v14121_v59, %v14120_v52  ;;  %v14165_v59 = vld [vmem:[#allocation108_spill] sm:$0xff] }
  0xf9   : > { %7155 = vrot.lane.b32.xlu0 %v14155_v40, %s8510_s25  ;;  %v14161_v40 = vld [vmem:[#allocation53_spill] sm:$0xff]  ;;  %6654 = vmatpush1.bf16.msra.mxu0 %v6653_v43  ;;  %v14166_v43 = vld [vmem:[#allocation59_spill] sm:$0xff] }
  0xfa   : > { %v7179_v46 = vpack.i.bf16 %v14162_v15, %v14161_v40  ;;  %6655 = vmatprep.subr.bf16.mxu0 %v13771_v11  ;;  %v7194_v28 = vpack.i.bf16 %v14167_v9, %v14166_v43  ;;  %v14234_v43 = vld [vmem:[#allocation19_spill] sm:$0xff] }
  0xfb   : > { %7160 = vrot.lane.b32.xlu1 %v7159_v29, %s8511_s23  ;;  %v9711_v29 = vpop.permute.xlu0 %6915 }
  0xfc   : > { %14163 = vst [vmem:[#allocation49_spill] sm:$0xff] %v9711_v29  ;;  %v472_v29 = vld [vmem:[#allocation2 + $0xc8] sm:$0xff] }
  0xfd   : > { %7165 = vrot.lane.b32.xlu0 %v7164_v5, %s8512_s28  ;;  %v469_v5 = vld [vmem:[#allocation2 + $0xb0] sm:$0xff]  ;;  %6657 = vmatpush1.bf16.msra.mxu0 %v6656_v63 }
  0xfe   : > { %v9715_v50 = vpop.permute.xlu1 %6920  ;;  %v6659_v23 = vpack.c.bf16 %v470_v54, %v469_v5  ;;  %6658 = vmatprep.subr.bf16.mxu0 %v13771_v11  ;;  %v473_v63 = vld [vmem:[#allocation2 + $0xd0] sm:$0xff]  ;;  %v474_v5 = vld [vmem:[#allocation2 + $0xd8] sm:$0xff] }
  0xff   : > { %7170 = vrot.lane.b32.xlu1 %v14160_v10, %s8510_s25  ;;  %14164 = vst [vmem:[#allocation50_spill] sm:$0xff] %v9715_v50  ;;  %v7189_v10 = vpack.i.bf16 %v14123_v8, %v14122_v6  ;;  %v14170_v54 = vld [vmem:[#allocation109_spill] sm:$0xff] }
 0x100   : > { %v14171_v8 = vld [vmem:[#allocation61_spill] sm:$0xff] }
 0x101   : > { %7175 = vrot.lane.b32.xlu0 %v7174_v18, %s8511_s23  ;;  %v471_v18 = vld [vmem:[#allocation2 + $0xc0] sm:$0xff]  ;;  %6660 = vmatpush1.bf16.msra.mxu0 %v6659_v23  ;;  %v6665_v23 = vpack.c.bf16 %v474_v5, %v473_v63  ;;  %v14176_v63 = vld [vmem:[#allocation68_spill] sm:$0xff] }
 0x102   : > { %v9725_v52 = vpop.permute.xlu0 %6925  ;;  %6661 = vmatprep.subr.bf16.mxu0 %v13771_v11 }
 0x103   : > { %7180 = vrot.lane.b32.xlu1 %v7179_v46, %s8512_s28  ;;  %14168 = vst [vmem:[#allocation73_spill] sm:$0xff] %v9725_v52  ;;  %v6662_v46 = vpack.c.bf16 %v472_v29, %v471_v18  ;;  %v14172_v52 = vld [vmem:[#allocation67_spill] sm:$0xff]  ;;  %v475_v29 = vld [vmem:[#allocation2 + $0xe0] sm:$0xff] }
 0x104   : > { %v7209_v6 = vpack.i.bf16 %v14172_v52, %v14171_v8 }
 0x105   : > { %7185 = vrot.lane.b32.xlu0 %v14165_v59, %s8510_s25  ;;  %v7204_v59 = vpack.i.bf16 %v14127_v0, %v14124_v17  ;;  %6663 = vmatpush1.bf16.msra.mxu0 %v6662_v46  ;;  %v14175_v46 = vld [vmem:[#allocation110_spill] sm:$0xff]  ;;  %v478_v17 = vld [vmem:[#allocation2 + $0xf8] sm:$0xff] }
 0x106   : > { %6664 = vmatprep.subr.bf16.mxu0 %v13771_v11 }
 0x107   : > { %7190 = vrot.lane.b32.xlu1 %v7189_v10, %s8511_s23  ;;  %v9728_v50 = vpop.permute.xlu1 %6930 }
 0x108   : > { %14169 = vst [vmem:[#allocation77_spill] sm:$0xff] %v9728_v50 }
 0x109   : > { %7195 = vrot.lane.b32.xlu0 %v7194_v28, %s8512_s28  ;;  %v476_v28 = vld [vmem:[#allocation2 + $0xe8] sm:$0xff]  ;;  %6666 = vmatpush1.bf16.msra.mxu0 %v6665_v23  ;;  %v7234_v23 = vpack.i.bf16 %v9061_v36, %v9029_v33 }
 0x10a   : > { %v9738_v10 = vpop.permute.xlu0 %6935  ;;  %v6668_v0 = vpack.c.bf16 %v476_v28, %v475_v29  ;;  %6667 = vmatprep.subr.bf16.mxu0 %v13771_v11  ;;  %v14178_v28 = vld [vmem:[#allocation111_spill] sm:$0xff] }
 0x10b   : > { %7200 = vrot.lane.b32.xlu1 %v14170_v54, %s8510_s25  ;;  %14173 = vst [vmem:[#allocation82_spill] sm:$0xff] %v9738_v10  ;;  %v7219_v54 = vpack.i.bf16 %v9022_v24, %v14128_v41  ;;  %v477_v10 = vld [vmem:[#allocation2 + $0xf0] sm:$0xff]  ;;  %v14180_v41 = vld [vmem:[#allocation79_spill] sm:$0xff] }
 0x10c   : > { %v9742_v18 = vpop.permute.xlu1 %6940  ;;  %v6671_v24 = vpack.c.bf16 %v478_v17, %v477_v10 }
 0x10d   : > { %7205 = vrot.lane.b32.xlu0 %v7204_v59, %s8511_s23  ;;  %14174 = vst [vmem:[#allocation89_spill] sm:$0xff] %v9742_v18  ;;  %v14177_v59 = vld [vmem:[#allocation71_spill] sm:$0xff]  ;;  %6669 = vmatpush1.bf16.msra.mxu0 %v6668_v0  ;;  %v7249_v0 = vpack.i.bf16 %v9110_v37, %v9067_v39  ;;  %v14188_v37 = vld [vmem:[#allocation113_spill] sm:$0xff]  ;;  %v14190_v39 = vld [vmem:[#allocation96_spill] sm:$0xff] }
 0x10e   : > { %v9747_v50 = vpop.permute.xlu0 %6945  ;;  %v7224_v5 = vpack.i.bf16 %v14177_v59, %v14176_v63  ;;  %6670 = vmatprep.subr.bf16.mxu0 %v13771_v11  ;;  %v14184_v11 = vld [vmem:[#allocation88_spill] sm:$0xff] }
 0x10f   : > { %7210 = vrot.lane.b32.xlu1 %v7209_v6, %s8512_s28 }
 0x110   : > { %v9754_v52 = vpop.permute.xlu1 %6950 }
 0x111   : > { %7215 = vrot.lane.b32.xlu0 %v14175_v46, %s8510_s25  ;;  %v14179_v46 = vld [vmem:[#allocation74_spill] sm:$0xff]  ;;  %6672 = vmatpush1.bf16.msra.mxu0 %v6671_v24 }
 0x112   : > { %v9757_v6 = vpop.permute.xlu0 %6955  ;;  %v7239_v59 = vpack.i.bf16 %v14180_v41, %v14179_v46 }
 0x113   : > { %7220 = vrot.lane.b32.xlu1 %v7219_v54, %s8511_s23 }
 0x114   : > { %v9763_v29 = vpop.permute.xlu1 %6960 }
 0x115   : > { %7225 = vrot.lane.b32.xlu0 %v7224_v5, %s8512_s28  ;;  %v14182_v5 = vld [vmem:[#allocation112_spill] sm:$0xff] }
 0x116   : > { %v9769_v54 = vpop.permute.xlu0 %6965 }
 0x117   : > { %7230 = vrot.lane.b32.xlu1 %v14178_v28, %s8510_s25  ;;  %v14183_v28 = vld [vmem:[#allocation81_spill] sm:$0xff] }
 0x118   : > { %v9772_v17 = vpop.permute.xlu1 %6970  ;;  %v7254_v36 = vpack.i.bf16 %v14184_v11, %v14183_v28  ;;  %v14196_v28 = vld [vmem:[#allocation100_spill] sm:$0xff] }
 0x119   : > { %7235 = vrot.lane.b32.xlu0 %v7234_v23, %s8511_s23 }
 0x11a   : > { %v9777_v10 = vpop.permute.xlu0 %6975 }
 0x11b   : > { %7240 = vrot.lane.b32.xlu1 %v7239_v59, %s8512_s28  ;;  %14181 = vst [vmem:[#allocation86_spill] sm:$0xff] %v9777_v10  ;;  %v7264_v59 = vpack.i.bf16 %v9148_v53, %v9107_v16  ;;  %v14194_v16 = vld [vmem:[#allocation114_spill] sm:$0xff] }
 0x11c   : > { %v9783_v33 = vpop.permute.xlu1 %6980 }
 0x11d   : > { %7245 = vrot.lane.b32.xlu0 %v14182_v5, %s8510_s25  ;;  %14185 = vst [vmem:[#allocation93_spill] sm:$0xff] %v9783_v33  ;;  %v14189_v5 = vld [vmem:[#allocation90_spill] sm:$0xff] }
 0x11e   : > { %v9786_v24 = vpop.permute.xlu0 %6985  ;;  %v7269_v41 = vpack.i.bf16 %v14190_v39, %v14189_v5 }
 0x11f   : > { %7250 = vrot.lane.b32.xlu1 %v7249_v0, %s8511_s23  ;;  %14186 = vst [vmem:[#allocation91_spill] sm:$0xff] %v9786_v24 }
 0x120   : > { %v9791_v23 = vpop.permute.xlu1 %6990 }
 0x121   : > { %7255 = vrot.lane.b32.xlu0 %v7254_v36, %s8512_s28  ;;  %14187 = vst [vmem:[#allocation92_spill] sm:$0xff] %v9791_v23  ;;  %v7279_v36 = vpack.i.bf16 %v9202_v51, %v9145_v57  ;;  %v14199_v51 = vld [vmem:[#allocation116_spill] sm:$0xff]  ;;  %v14200_v57 = vld [vmem:[#allocation101_spill] sm:$0xff] }
 0x122   : > { %v9797_v11 = vpop.permute.xlu0 %6995  ;;  %v14229_v23 = vld [vmem:[#allocation21_spill] sm:$0xff] }
 0x123   : > { %7260 = vrot.lane.b32.xlu1 %v14188_v37, %s8510_s25  ;;  %14191 = vst [vmem:[#allocation25_spill] sm:$0xff] %v9797_v11  ;;  %v14195_v37 = vld [vmem:[#allocation97_spill] sm:$0xff]  ;;  %v6943_v11 = vunpack.i.h.bf16 %v9742_v18 }
 0x124   : > { %v9800_v0 = vpop.permute.xlu1 %7000  ;;  %v7284_v46 = vpack.i.bf16 %v14196_v28, %v14195_v37 }
 0x125   : > { %7265 = vrot.lane.b32.xlu0 %v7264_v59, %s8511_s23  ;;  %14192 = vst [vmem:[#allocation26_spill] sm:$0xff] %v9800_v0 }
 0x126   : > { %v9805_v53 = vpop.permute.xlu0 %7005 }
 0x127   : > { %7270 = vrot.lane.b32.xlu1 %v7269_v41, %s8512_s28  ;;  %14193 = vst [vmem:[#allocation20_spill] sm:$0xff] %v9805_v53  ;;  %v7294_v41 = vpack.i.bf16 %v14136_v31, %v9199_v47  ;;  %v14201_v53 = vld [vmem:[#allocation102_spill] sm:$0xff]  ;;  %v14203_v31 = vld [vmem:[#allocation117_spill] sm:$0xff] }
 0x128   : > { %v9812_v39 = vpop.permute.xlu1 %7010 }
 0x129   : > { %7275 = vrot.lane.b32.xlu0 %v14194_v16, %s8510_s25  ;;  %14197 = vst [vmem:[#allocation23_spill] sm:$0xff] %v9812_v39  ;;  %v7299_v16 = vpack.i.bf16 %v14201_v53, %v14200_v57 }
 0x12a   : > { %v9817_v59 = vpop.permute.xlu0 %7015 }
 0x12b   : > { %7280 = vrot.lane.b32.xlu1 %v7279_v36, %s8511_s23  ;;  %14198 = vst [vmem:[#allocation22_spill] sm:$0xff] %v9817_v59  ;;  %v14206_v59 = vld [vmem:[#allocation121_spill] sm:$0xff] }
 0x12d   : > { %7285 = vrot.lane.b32.xlu0 %v7284_v46, %s8512_s28  ;;  %v7309_v46 = vpack.i.bf16 %v14138_v49, %v14137_v30  ;;  %v14208_v49 = vmov 0.0  }
 0x12e   : > { %v7324_v30 = vpack.i.bf16 %v14208_v49, %v14139_v21  ;;  %v14210_v21 = vld [vmem:[#allocation16_spill] sm:$0xff] }
 0x12f   : > { %7290 = vrot.lane.b32.xlu1 %v14199_v51, %s8510_s25  ;;  %v7314_v51 = vpack.i.bf16 %v9656_v12, %v9646_v7 }
 0x130   : > { %v9824_v28 = vpop.permute.xlu1 %7020 }
 0x131   : > { %7295 = vrot.lane.b32.xlu0 %v7294_v41, %s8511_s23  ;;  %14202 = vst [vmem:[#allocation33_spill] sm:$0xff] %v9824_v28  ;;  %v9829_v36 = vpop.permute.xlu0 %7025  ;;  %v14205_v41 = vld [vmem:[#allocation115_spill] sm:$0xff] }
 0x132   : > { %v7319_v53 = vpack.i.bf16 %v14206_v59, %v14205_v41  ;;  %v14211_v41 = vmov 0.0|0.0  }
 0x133   : > { %7300 = vrot.lane.b32.xlu1 %v7299_v16, %s8512_s28 }
 0x135   : > { %7305 = vrot.lane.b32.xlu0 %v14203_v31, %s8510_s25 }
 0x136   : > { %v9836_v47 = vpop.f32.mrb[0].mxu1 }
 0x137   : > { %7310 = vrot.lane.b32.xlu1 %v7309_v46, %s8511_s23  ;;  %14204 = vst [vmem:[#allocation32_spill] sm:$0xff] %v9836_v47  ;;  %v9840_v57 = vpop.f32.mrb[1].mxu1  ;;  %v2506_v46 = vld [vmem:[%s13591_s5] sm:$0xff] }
 0x138   : > { %14207 = vst [vmem:[#allocation34_spill] sm:$0xff] %v9840_v57  ;;  %6561 = vmatprep.subr.mxu1 %v2506_v46  ;;  %v14213_v57 = vld [vmem:[#allocation122_spill] sm:$0xff] }
 0x139   : > { %v9842_v16 = vpop.permute.xlu1 %7030  ;;  %7315 = vrot.lane.b32.xlu0 %v7314_v51, %s8512_s28  ;;  %6562 = vmatpush3.msra.mxu1 %v2506_v46 }
 0x13a   : > { %6689 = vmatprep.subr.bf16.mxu1 %v14211_v41 }
 0x13b   : > { %v9847_v31 = vpop.permute.xlu0 %7035  ;;  %7320 = vrot.lane.b32.xlu1 %v7319_v53, %s8510_s25 }
 0x13d   : > { %v9853_v47 = vpop.permute.xlu1 %7040  ;;  %7325 = vrot.lane.b32.xlu0 %v7324_v30, %s8511_s23  ;;  %v9858_v51 = vpop.f32.mrb[2].mxu1 }
 0x13e   : > { %14209 = vst [vmem:[#allocation36_spill] sm:$0xff] %v9858_v51  ;;  %v9863_v53 = vpop.f32.mrb[3].mxu1 }
 0x13f   : > { %v9856_v59 = vpop.permute.xlu0 %7045  ;;  %1406 = vrot.lane.b32.xlu1 %v14210_v21, %s8512_s28  ;;  %14212 = vst [vmem:[#allocation41_spill] sm:$0xff] %v9863_v53 }
 0x141   : > { %v9865_v49 = vpop.permute.xlu1 %7050  ;;  %1219 = vrot.lane.b32.xlu0 %v14213_v57, %s8510_s25 }
 0x143   : > { %v9869_v12 = vpop.permute.xlu0 %7055  ;;  %v9873_v46 = vpop.f32.mrb[4].mxu1 }
 0x144   : > { %14215 = vst [vmem:[#allocation65_spill] sm:$0xff] %v9873_v46  ;;  %v9875_v7 = vpop.f32.mrb[5].mxu1  ;;  %v6867_v46 = vunpack.i.l.bf16 %v9632_v14 }
 0x145   : > { %v9871_v30 = vpop.permute.xlu1 %7060  ;;  %14216 = vst [vmem:[#allocation66_spill] sm:$0xff] %v9875_v7 }
 0x146   : > { %14214 = vst [vmem:[#allocation64_spill] sm:$0xff] %v9871_v30  ;;  %v14232_v30 = vld [vmem:[#allocation28_spill] sm:$0xff] }
 0x147   : > { %v9877_v51 = vpop.permute.xlu0 %7065 }
 0x148   : > { %14217 = vst [vmem:[#allocation72_spill] sm:$0xff] %v9877_v51 }
 0x149   : > { %v9879_v21 = vpop.permute.xlu1 %7070 }
 0x14a   : > { %14218 = vst [vmem:[#allocation78_spill] sm:$0xff] %v9879_v21  ;;  %v9883_v53 = vpop.f32.mrb[6].mxu1 }
 0x14b   : > { %v9881_v41 = vpop.permute.xlu0 %7075  ;;  %14220 = vst [vmem:[#allocation83_spill] sm:$0xff] %v9883_v53  ;;  %v9887_v37 = vpop.f32.mrb[7].mxu1  ;;  %v6947_v53 = vunpack.i.l.bf16 %v9747_v50 }
 0x14c   : > { %14219 = vst [vmem:[#allocation80_spill] sm:$0xff] %v9881_v41  ;;  %14222 = vst [vmem:[#allocation30_spill] sm:$0xff] %v9887_v37  ;;  %v1440_v37 = vsel %vm1439_vm2, 0.0, %v6867_v46 }
 0x14d   : > { %v9885_v39 = vpop.permute.xlu1 %7080 }
 0x14e   : > { %14221 = vst [vmem:[#allocation87_spill] sm:$0xff] %v9885_v39  ;;  %v7027_v39 = vunpack.i.l.bf16 %v9829_v36 }
 0x14f   : > { %v9889_v57 = vpop.permute.xlu0 %7085 }
 0x150   : > { %14223 = vst [vmem:[#allocation119_spill] sm:$0xff] %v9889_v57  ;;  %v7023_v57 = vunpack.i.h.bf16 %v9824_v28  ;;  %v7028_v28 = vunpack.i.h.bf16 %v9829_v36 }
 0x151   : > { %v9891_v5 = vpop.permute.xlu1 %7090  ;;  %v9896_v7 = vpop.f32.mrb[8].mxu1 }
 0x152   : > { %14224 = vst [vmem:[#allocation118_spill] sm:$0xff] %v9891_v5  ;;  %14226 = vst [vmem:[#allocation29_spill] sm:$0xff] %v9896_v7  ;;  %v9899_v21 = vpop.f32.mrb[9].mxu1 }
 0x153   : > { %v9894_v0 = vpop.permute.xlu0 %7095  ;;  %14227 = vst [vmem:[#allocation24_spill] sm:$0xff] %v9899_v21  ;;  %v9910_v21 = vsel %vm1471_vm11, %v1440_v37, %v6947_v53 }
 0x154   : > { %14225 = vst [vmem:[#allocation104_spill] sm:$0xff] %v9894_v0  ;;  %v1536_v0 = vsel %vm1439_vm2, %v14229_v23, %v6943_v11  ;;  %14230 = vst [vmem:[#allocation103_spill] sm:$0xff] %v9910_v21  ;;  %v1504_v8 = vsel %vm1503_vm12, %v9910_v21, %v7027_v39  ;;  %v6872_v39 = vunpack.i.l.bf16 %v9653_v34 }
 0x155   : > { %v9902_v41 = vpop.permute.xlu1 %7100  ;;  %v1568_v46 = vsel %vm1471_vm11, %v1536_v0, %v7023_v57  ;;  %v6948_v0 = vunpack.i.h.bf16 %v9747_v50 }
 0x156   : > { %14228 = vst [vmem:[#allocation120_spill] sm:$0xff] %v9902_v41  ;;  %v6868_v41 = vunpack.i.h.bf16 %v9632_v14 }
 0x157   : > { %v7106_v5 = vpop.permute.xlu0 %7105 }
 0x158   : > { %v7108_v7 = vunpack.i.h.bf16 %v7106_v5  ;;  %v7107_v63 = vunpack.i.l.bf16 %v7106_v5 }
 0x159   : > { %v7111_v18 = vpop.permute.xlu1 %7110 }
 0x15a   : > { %v9917_v33 = vpop.f32.mrb[10].mxu1  ;;  %v7112_v11 = vunpack.i.l.bf16 %v7111_v18  ;;  %v1537_v37 = vsel %vm1439_vm2, %v14232_v30, %v7107_v63  ;;  %v1538_v14 = vsel %vm1439_vm2, %v14141_v3, %v7108_v7  ;;  %v1441_v63 = vsel %vm1439_vm2, %v14234_v43, %v6868_v41 }
 0x15b   : > { %v7116_v24 = vpop.permute.xlu0 %7115  ;;  %14231 = vst [vmem:[#allocation27_spill] sm:$0xff] %v9917_v33  ;;  %v9923_v53 = vpop.f32.mrb[11].mxu1  ;;  %v6952_v33 = vunpack.i.l.bf16 %v9754_v52  ;;  %v7113_v30 = vunpack.i.h.bf16 %v7111_v18  ;;  %v1473_v18 = vsel %vm1471_vm11, %v1441_v63, %v6948_v0  ;;  %v6873_v41 = vunpack.i.h.bf16 %v9653_v34 }
 0x15c   : > { %v7117_v51 = vunpack.i.l.bf16 %v7116_v24  ;;  %v7118_v23 = vunpack.i.h.bf16 %v7116_v24  ;;  %14233 = vst [vmem:[#allocation31_spill] sm:$0xff] %v9923_v53 }
 0x15d   : > { %v7121_v5 = vpop.permute.xlu1 %7120 }
 0x15e   : > { %v7123_v36 = vunpack.i.h.bf16 %v7121_v5  ;;  %v7122_v57 = vunpack.i.l.bf16 %v7121_v5  ;;  %v1600_v9 = vsel %vm1503_vm12, %v1568_v46, %v7117_v51  ;;  %v7032_v5 = vunpack.i.l.bf16 %v9842_v16 }
 0x15f   : > { %1764 = vmatprep.mubr.f32.mxu0 %v1600_v9  ;;  %v7126_v24 = vpop.permute.xlu0 %7125  ;;  %v1505_v46 = vsel %vm1503_vm12, %v9910_v21, %v7028_v28  ;;  %v1539_v9 = vsel %vm1439_vm2, %v14142_v48, %v7112_v11  ;;  %v1540_v48 = vsel %vm1439_vm2, %v14147_v20, %v7113_v30  ;;  %v6953_v11 = vunpack.i.h.bf16 %v9754_v52 }
 0x160   : > { %1765 = vmatmul.mubr.f32.vlgmr.msra.gmra.mrb[0].mxu0 %v1504_v8  ;;  %v7127_v3 = vunpack.i.l.bf16 %v7126_v24  ;;  %v1569_v7 = vsel %vm1471_vm11, %v1537_v37, %v7122_v57  ;;  %v1570_v50 = vsel %vm1471_vm11, %v1538_v14, %v7123_v36  ;;  %v7128_v10 = vunpack.i.h.bf16 %v7126_v24  ;;  %v14235_v36 = vld [vmem:[#allocation18_spill] sm:$0xff] }
 0x161   : > { %v1601_v51 = vsel %vm1503_vm12, %v1569_v7, %v7118_v23  ;;  %v7131_v53 = vpop.permute.xlu1 %7130  ;;  %v1442_v23 = vsel %vm1439_vm2, %v14235_v36, %v6872_v39  ;;  %v7033_v57 = vunpack.i.h.bf16 %v9842_v16  ;;  %v1506_v0 = vsel %vm1503_vm12, %v1473_v18, %v7032_v5 }
 0x162   : > { %1769 = vmatprep.mubr.f32.mxu0 %v1601_v51  ;;  %v7132_v43 = vunpack.i.l.bf16 %v7131_v53  ;;  %v1602_v8 = vsel %vm1503_vm12, %v1570_v50, %v7127_v3  ;;  %v7133_v37 = vunpack.i.h.bf16 %v7131_v53  ;;  %v1474_v39 = vsel %vm1471_vm11, %v1442_v23, %v6952_v33 }
 0x163   : > { %v7136_v14 = vpop.permute.xlu0 %7135  ;;  %v9950_v34 = vpop.f32.mrb[12].mxu1  ;;  %v6877_v20 = vunpack.i.l.bf16 %v9642_v1  ;;  %v1443_v16 = vsel %vm1439_vm2, %v8739_v27, %v6873_v41  ;;  %v1507_v33 = vsel %vm1503_vm12, %v1474_v39, %v7033_v57  ;;  %v6878_v27 = vunpack.i.h.bf16 %v9642_v1 }
 0x164   : > { %1770 = vmatmul.mubr.f32.gmra.mrb[2].mxu0 %v1505_v46  ;;  %v1571_v28 = vsel %vm1471_vm11, %v1539_v9, %v7132_v43  ;;  %v7137_v53 = vunpack.i.l.bf16 %v7136_v14  ;;  %v9954_v7 = vpop.f32.mrb[13].mxu1  ;;  %v1572_v52 = vsel %vm1471_vm11, %v1540_v48, %v7133_v37  ;;  %v6957_v9 = vunpack.i.l.bf16 %v9757_v6 }
 0x165   : > { %1774 = vmatprep.mubr.f32.mxu0 %v1602_v8  ;;  %v7141_v24 = vpop.permute.xlu1 %7140  ;;  %v1603_v63 = vsel %vm1503_vm12, %v1571_v28, %v7128_v10  ;;  %v7037_v10 = vunpack.i.l.bf16 %v9847_v31  ;;  %v7138_v43 = vunpack.i.h.bf16 %v7136_v14  ;;  %v1475_v18 = vsel %vm1471_vm11, %v1443_v16, %v6953_v11 }
 0x166   : > { %v7142_v3 = vunpack.i.l.bf16 %v7141_v24  ;;  %v7143_v50 = vunpack.i.h.bf16 %v7141_v24  ;;  %v1604_v8 = vsel %vm1503_vm12, %v1572_v52, %v7137_v53  ;;  %v7038_v48 = vunpack.i.h.bf16 %v9847_v31 }
 0x167   : > { %v7146_v30 = vpop.permute.xlu0 %7145  ;;  %v1508_v11 = vsel %vm1503_vm12, %v1475_v18, %v7037_v10  ;;  %v1445_v31 = vsel %vm1439_vm2, %v14113_v60, %v6878_v27  ;;  %v7042_v52 = vunpack.i.l.bf16 %v9853_v47 }
 0x168   : > { %1775 = vmatmul.mubr.f32.gmra.mrb[4].mxu0 %v1506_v0  ;;  %v7147_v5 = vunpack.i.l.bf16 %v7146_v30  ;;  %v1541_v51 = vsel %vm1439_vm2, %v14148_v35, %v7142_v3  ;;  %v7148_v41 = vunpack.i.h.bf16 %v7146_v30  ;;  %v1444_v35 = vsel %vm1439_vm2, %v14112_v13, %v6877_v20 }
 0x169   : > { %1779 = vmatprep.mubr.f32.mxu0 %v1603_v63  ;;  %v7151_v46 = vpop.permute.xlu1 %7150  ;;  %v9971_v28 = vpop.f32.mrb[14].mxu1  ;;  %v1542_v14 = vsel %vm1439_vm2, %v14149_v61, %v7143_v50  ;;  %v6958_v0 = vunpack.i.h.bf16 %v9757_v6  ;;  %v1476_v53 = vsel %vm1471_vm11, %v1444_v35, %v6957_v9  ;;  %v6882_v63 = vunpack.i.l.bf16 %v9665_v22 }
 0x16a   : > { %v1573_v37 = vsel %vm1471_vm11, %v1541_v51, %v7147_v5  ;;  %v9977_v57 = vpop.f32.mrb[15].mxu1  ;;  %v7152_v24 = vunpack.i.l.bf16 %v7151_v46  ;;  %v1574_v61 = vsel %vm1471_vm11, %v1542_v14, %v7148_v41  ;;  %v1509_v16 = vsel %vm1503_vm12, %v1476_v53, %v7038_v48 }
 0x16b   : > { %v7156_v36 = vpop.permute.xlu0 %7155  ;;  %v1605_v13 = vsel %vm1503_vm12, %v1573_v37, %v7138_v43  ;;  %v6962_v51 = vunpack.i.l.bf16 %v9763_v29  ;;  %v7153_v60 = vunpack.i.h.bf16 %v7151_v46  ;;  %v6883_v9 = vunpack.i.h.bf16 %v9665_v22 }
 0x16c   : > { %1780 = vmatmul.mubr.f32.gmra.mrb[6].mxu0 %v1507_v33  ;;  %v7157_v23 = vunpack.i.l.bf16 %v7156_v36  ;;  %v7158_v20 = vunpack.i.h.bf16 %v7156_v36  ;;  %v1606_v10 = vsel %vm1503_vm12, %v1574_v61, %v7152_v24  ;;  %v1477_v33 = vsel %vm1471_vm11, %v1445_v31, %v6958_v0 }
 0x16d   : > { %1784 = vmatprep.mubr.f32.mxu0 %v1604_v8  ;;  %v7161_v1 = vpop.permute.xlu1 %7160  ;;  %v1446_v8 = vsel %vm1439_vm2, %v14114_v44, %v6882_v63  ;;  %v7043_v37 = vunpack.i.h.bf16 %v9853_v47  ;;  %v1510_v35 = vsel %vm1503_vm12, %v1477_v33, %v7042_v52  ;;  %v6963_v36 = vunpack.i.h.bf16 %v9763_v29 }
 0x16e   : > { %v7162_v39 = vunpack.i.l.bf16 %v7161_v1  ;;  %v9988_v30 = vpop.f32.mrb[16].mxu1  ;;  %v1543_v6 = vsel %vm1439_vm2, %v14150_v26, %v7157_v23  ;;  %v7163_v43 = vunpack.i.h.bf16 %v7161_v1  ;;  %v1544_v46 = vsel %vm1439_vm2, %v14152_v32, %v7158_v20 }
 0x16f   : > { %v9986_v3 = vpop.permute.xlu0 %7165  ;;  %v9994_v50 = vpop.f32.mrb[17].mxu1  ;;  %v1478_v14 = vsel %vm1471_vm11, %v1446_v8, %v6962_v51  ;;  %v1447_v47 = vsel %vm1439_vm2, %v14115_v56, %v6883_v9  ;;  %v7047_v53 = vunpack.i.l.bf16 %v9856_v59  ;;  %v7048_v8 = vunpack.i.h.bf16 %v9856_v59 }
 0x170   : > { %1785 = vmatmul.mubr.f32.gmra.mrb[8].mxu0 %v1508_v11  ;;  %v1575_v26 = vsel %vm1471_vm11, %v1543_v6, %v7162_v39  ;;  %v7167_v23 = vunpack.i.l.bf16 %v9986_v3  ;;  %v1576_v32 = vsel %vm1471_vm11, %v1544_v46, %v7163_v43  ;;  %v1511_v63 = vsel %vm1503_vm12, %v1478_v14, %v7043_v37 }
 0x171   : > { %1789 = vmatprep.mubr.f32.mxu0 %v1605_v13  ;;  %v7171_v5 = vpop.permute.xlu1 %7170  ;;  %v1607_v44 = vsel %vm1503_vm12, %v1575_v26, %v7153_v60  ;;  %v6887_v13 = vunpack.i.l.bf16 %v9671_v58  ;;  %v7168_v61 = vunpack.i.h.bf16 %v9986_v3  ;;  %v1479_v31 = vsel %vm1471_vm11, %v1447_v47, %v6963_v36 }
 0x172   : > { %v7172_v18 = vunpack.i.l.bf16 %v7171_v5  ;;  %v10003_v27 = vpop.f32.mrb[18].mxu1  ;;  %v7173_v1 = vunpack.i.h.bf16 %v7171_v5  ;;  %v1608_v56 = vsel %vm1503_vm12, %v1576_v32, %v7167_v23  ;;  %v6888_v60 = vunpack.i.h.bf16 %v9671_v58 }
 0x173   : > { %v7176_v41 = vpop.permute.xlu0 %7175  ;;  %v10009_v22 = vpop.f32.mrb[19].mxu1  ;;  %v1512_v3 = vsel %vm1503_vm12, %v1479_v31, %v7047_v53  ;;  %v6968_v58 = vunpack.i.h.bf16 %v9769_v54  ;;  %v6892_v36 = vunpack.i.l.bf16 %v9677_v45  ;;  %v7052_v14 = vunpack.i.l.bf16 %v9865_v49 }
 0x174   : > { %1790 = vmatmul.mubr.f32.gmra.mrb[10].mxu0 %v1509_v16  ;;  %v7177_v11 = vunpack.i.l.bf16 %v7176_v41  ;;  %v1545_v29 = vsel %vm1439_vm2, %v14153_v25, %v7172_v18  ;;  %v7178_v20 = vunpack.i.h.bf16 %v7176_v41  ;;  %v6967_v25 = vunpack.i.l.bf16 %v9769_v54 }
 0x175   : > { %1794 = vmatprep.mubr.f32.mxu0 %v1606_v10  ;;  %v10015_v48 = vpop.permute.xlu1 %7180  ;;  %v1546_v51 = vsel %vm1439_vm2, %v14156_v2, %v7173_v1  ;;  %v1448_v10 = vsel %vm1439_vm2, %v14116_v55, %v6887_v13  ;;  %v1449_v59 = vsel %vm1439_vm2, %v14117_v19, %v6888_v60  ;;  %v6972_v47 = vunpack.i.l.bf16 %v9772_v17 }
 0x176   : > { %v10020_v0 = vpop.f32.mrb[20].mxu1  ;;  %v1577_v6 = vsel %vm1471_vm11, %v1545_v29, %v7177_v11  ;;  %v7182_v9 = vunpack.i.l.bf16 %v10015_v48  ;;  %v1578_v2 = vsel %vm1471_vm11, %v1546_v51, %v7178_v20  ;;  %v1480_v41 = vsel %vm1471_vm11, %v1448_v10, %v6967_v25 }
 0x177   : > { %v7186_v24 = vpop.permute.xlu0 %7185  ;;  %v10027_v39 = vpop.f32.mrb[21].mxu1  ;;  %v1609_v43 = vsel %vm1503_vm12, %v1577_v6, %v7168_v61  ;;  %v7183_v54 = vunpack.i.h.bf16 %v10015_v48  ;;  %v1513_v11 = vsel %vm1503_vm12, %v1480_v41, %v7048_v8  ;;  %v1481_v1 = vsel %vm1471_vm11, %v1449_v59, %v6968_v58  ;;  %v14238_v59 = vld [vmem:[#allocation43_spill] sm:$0xff] }
 0x178   : > { %1795 = vmatmul.mubr.f32.gmra.mrb[12].mxu0 %v1510_v35  ;;  %v7187_v52 = vunpack.i.l.bf16 %v7186_v24  ;;  %v7188_v46 = vunpack.i.h.bf16 %v7186_v24  ;;  %v6893_v13 = vunpack.i.h.bf16 %v9677_v45  ;;  %v1450_v53 = vsel %vm1439_vm2, %v14118_v4, %v6892_v36 }
 0x179   : > { %1799 = vmatprep.mubr.f32.mxu0 %v1607_v44  ;;  %v7191_v5 = vpop.permute.xlu1 %7190  ;;  %v1610_v44 = vsel %vm1503_vm12, %v1578_v2, %v7182_v9  ;;  %v7053_v20 = vunpack.i.h.bf16 %v9865_v49  ;;  %v1514_v6 = vsel %vm1503_vm12, %v1481_v1, %v7052_v14  ;;  %v6973_v45 = vunpack.i.h.bf16 %v9772_v17  ;;  %v14236_v2 = vld [vmem:[#allocation86_spill] sm:$0xff] }
 0x17a   : > { %v10034_v16 = vpop.f32.mrb[22].mxu1  ;;  %v7192_v18 = vunpack.i.l.bf16 %v7191_v5  ;;  %v1547_v37 = vsel %vm1439_vm2, %v14157_v62, %v7187_v52  ;;  %v7193_v32 = vunpack.i.h.bf16 %v7191_v5  ;;  %v1548_v48 = vsel %vm1439_vm2, %v14161_v40, %v7188_v46 }
 0x17b   : > { %v10042_v33 = vpop.f32.mrb[23].mxu1  ;;  %v10046_v26 = vpop.permute.xlu0 %7195  ;;  %v1482_v4 = vsel %vm1471_vm11, %v1450_v53, %v6972_v47  ;;  %v1451_v49 = vsel %vm1439_vm2, %v14119_v38, %v6893_v13  ;;  %v6977_v58 = vunpack.i.l.bf16 %v14236_v2  ;;  %v6898_v36 = vunpack.i.h.bf16 %v9684_v42  ;;  %v14239_v13 = vld [vmem:[#allocation60_spill] sm:$0xff] }
 0x17c   : > { %1800 = vmatmul.mubr.f32.gmra.mrb[14].mxu0 %v1511_v63  ;;  %v1579_v62 = vsel %vm1471_vm11, %v1547_v37, %v7192_v18  ;;  %v7197_v61 = vunpack.i.l.bf16 %v10046_v26  ;;  %v1580_v40 = vsel %vm1471_vm11, %v1548_v48, %v7193_v32  ;;  %v7198_v17 = vunpack.i.h.bf16 %v10046_v26 }
 0x17d   : > { %1804 = vmatprep.mubr.f32.mxu0 %v1608_v56  ;;  %v7201_v35 = vpop.permute.xlu1 %7200  ;;  %v1611_v56 = vsel %vm1503_vm12, %v1579_v62, %v7183_v54  ;;  %v1515_v8 = vsel %vm1503_vm12, %v1482_v4, %v7053_v20  ;;  %v1483_v41 = vsel %vm1471_vm11, %v1451_v49, %v6973_v45  ;;  %v7058_v62 = vunpack.i.h.bf16 %v9869_v12  ;;  %v14242_v45 = vld [vmem:[#allocation64_spill] sm:$0xff] }
 0x17e   : > { %v10052_v55 = vpop.f32.mrb[24].mxu1  ;;  %v7202_v29 = vunpack.i.l.bf16 %v7201_v35  ;;  %v7203_v52 = vunpack.i.h.bf16 %v7201_v35  ;;  %v1612_v9 = vsel %vm1503_vm12, %v1580_v40, %v7197_v61  ;;  %v14237_v35 = vld [vmem:[#allocation59_spill] sm:$0xff]  ;;  %v7062_v4 = vunpack.i.l.bf16 %v14242_v45 }
 0x17f   : > { %v10059_v23 = vpop.f32.mrb[25].mxu1  ;;  %v7206_v24 = vpop.permute.xlu0 %7205 }
 0x180   : > { %1805 = vmatmul.mubr.f32.gmra.mrb[16].mxu0 %v1512_v3  ;;  %v7207_v25 = vunpack.i.l.bf16 %v7206_v24  ;;  %v1549_v51 = vsel %vm1439_vm2, %v14162_v15, %v7202_v29  ;;  %v6897_v3 = vunpack.i.l.bf16 %v9684_v42  ;;  %v7208_v18 = vunpack.i.h.bf16 %v7206_v24 }
 0x181   : > { %1809 = vmatprep.mubr.f32.mxu0 %v1609_v43  ;;  %v10079_v31 = vpop.permute.xlu1 %7210  ;;  %v7057_v43 = vunpack.i.l.bf16 %v9869_v12  ;;  %v1550_v26 = vsel %vm1439_vm2, %v14237_v35, %v7203_v52  ;;  %v6978_v42 = vunpack.i.h.bf16 %v14236_v2 }
 0x182   : > { %v10068_v19 = vpop.f32.mrb[26].mxu1  ;;  %v1581_v15 = vsel %vm1471_vm11, %v1549_v51, %v7207_v25  ;;  %v1452_v54 = vsel %vm1439_vm2, %v14238_v59, %v6897_v3  ;;  %v7212_v14 = vunpack.i.l.bf16 %v10079_v31  ;;  %v1582_v29 = vsel %vm1471_vm11, %v1550_v26, %v7208_v18  ;;  %v14243_v3 = vld [vmem:[#allocation93_spill] sm:$0xff] }
 0x183   : > { %v10075_v63 = vpop.f32.mrb[27].mxu1  ;;  %v7216_v60 = vpop.permute.xlu0 %7215  ;;  %v1516_v47 = vsel %vm1503_vm12, %v1483_v41, %v7057_v43  ;;  %v1484_v24 = vsel %vm1471_vm11, %v1452_v54, %v6977_v58  ;;  %v7213_v25 = vunpack.i.h.bf16 %v10079_v31  ;;  %v6982_v49 = vunpack.i.l.bf16 %v14243_v3 }
 0x184   : > { %1810 = vmatmul.mubr.f32.gmra.mrb[18].mxu0 %v1513_v11  ;;  %v7217_v46 = vunpack.i.l.bf16 %v7216_v60  ;;  %v1613_v11 = vsel %vm1503_vm12, %v1581_v15, %v7198_v17  ;;  %v7218_v48 = vunpack.i.h.bf16 %v7216_v60  ;;  %v1614_v40 = vsel %vm1503_vm12, %v1582_v29, %v7212_v14  ;;  %v14245_v15 = vld [vmem:[#allocation51_spill] sm:$0xff] }
 0x185   : > { %1814 = vmatprep.mubr.f32.mxu0 %v1610_v44  ;;  %v7221_v37 = vpop.permute.xlu1 %7220  ;;  %v1517_v52 = vsel %vm1503_vm12, %v1484_v24, %v7058_v62  ;;  %v6983_v59 = vunpack.i.h.bf16 %v14243_v3 }
 0x186   : > { %v10086_v5 = vpop.f32.mrb[28].mxu1  ;;  %v7222_v1 = vunpack.i.l.bf16 %v7221_v37  ;;  %v1551_v53 = vsel %vm1439_vm2, %v14239_v13, %v7217_v46  ;;  %v7223_v51 = vunpack.i.h.bf16 %v7221_v37  ;;  %v7063_v37 = vunpack.i.h.bf16 %v14242_v45 }
 0x187   : > { %v10093_v10 = vpop.f32.mrb[29].mxu1  ;;  %v10113_v32 = vpop.permute.xlu0 %7225 }
 0x188   : > { %1815 = vmatmul.mubr.f32.gmra.mrb[20].mxu0 %v1514_v6  ;;  %v14241_v6 = vld [vmem:[#allocation47_spill] sm:$0xff]  ;;  %v1583_v60 = vsel %vm1471_vm11, %v1551_v53, %v7222_v1  ;;  %v7227_v58 = vunpack.i.l.bf16 %v10113_v32  ;;  %v14247_v1 = vld [vmem:[#allocation44_spill] sm:$0xff] }
 0x189   : > { %1819 = vmatprep.mubr.f32.mxu0 %v1611_v56  ;;  %v7231_v61 = vpop.permute.xlu1 %7230  ;;  %v14240_v56 = vld [vmem:[#allocation42_spill] sm:$0xff]  ;;  %v1453_v12 = vsel %vm1439_vm2, %v14241_v6, %v6898_v36  ;;  %v1615_v41 = vsel %vm1503_vm12, %v1583_v60, %v7213_v25  ;;  %v6907_v29 = vunpack.i.l.bf16 %v14247_v1  ;;  %v14249_v53 = vld [vmem:[#allocation72_spill] sm:$0xff]  ;;  %v14252_v60 = vld [vmem:[#allocation55_spill] sm:$0xff] }
 0x18a   : > { %v10102_v38 = vpop.f32.mrb[30].mxu1  ;;  %v6902_v20 = vunpack.i.l.bf16 %v14240_v56  ;;  %v1485_v17 = vsel %vm1471_vm11, %v1453_v12, %v6978_v42  ;;  %v6903_v31 = vunpack.i.h.bf16 %v14240_v56  ;;  %v7233_v14 = vunpack.i.h.bf16 %v7231_v61  ;;  %v14248_v42 = vld [vmem:[#allocation54_spill] sm:$0xff]  ;;  %v14250_v12 = vld [vmem:[#allocation91_spill] sm:$0xff] }
 0x18b   : > { %v10109_v44 = vpop.f32.mrb[31].mxu1  ;;  %v7236_v43 = vpop.permute.xlu0 %7235  ;;  %v1518_v35 = vsel %vm1503_vm12, %v1485_v17, %v7062_v4  ;;  %v7067_v56 = vunpack.i.l.bf16 %v14249_v53  ;;  %v6987_v25 = vunpack.i.l.bf16 %v14250_v12  ;;  %v1456_v3 = vsel %vm1439_vm2, %v14252_v60, %v6907_v29 }
 0x18c   : > { %1820 = vmatmul.mubr.f32.gmra.mrb[22].mxu0 %v1515_v8  ;;  %v14244_v8 = vld [vmem:[#allocation61_spill] sm:$0xff]  ;;  %v1454_v2 = vsel %vm1439_vm2, %v14245_v15, %v6902_v20  ;;  %v7237_v26 = vunpack.i.l.bf16 %v7236_v43  ;;  %v1455_v24 = vsel %vm1439_vm2, %v14248_v42, %v6903_v31  ;;  %v7238_v6 = vunpack.i.h.bf16 %v7236_v43 }
 0x18d   : > { %1824 = vmatprep.mubr.f32.mxu0 %v1612_v9  ;;  %v7232_v9 = vunpack.i.l.bf16 %v7231_v61  ;;  %v1552_v18 = vsel %vm1439_vm2, %v14244_v8, %v7218_v48  ;;  %v10139_v46 = vpop.permute.xlu1 %7240  ;;  %v1486_v54 = vsel %vm1471_vm11, %v1454_v2, %v6982_v49  ;;  %v7228_v48 = vunpack.i.h.bf16 %v10113_v32  ;;  %v10174_v2 = vld [vmem:[%s13590_s4] ss:$0 sm:$0xff] }
 0x18e   : > { %v1584_v36 = vsel %vm1471_vm11, %v1552_v18, %v7223_v51  ;;  %v1519_v20 = vsel %vm1503_vm12, %v1486_v54, %v7063_v37  ;;  %v6908_v32 = vunpack.i.h.bf16 %v14247_v1  ;;  %v7242_v49 = vunpack.i.l.bf16 %v10139_v46  ;;  %v14253_v37 = vld [vmem:[#allocation71_spill] sm:$0xff]  ;;  %v14255_v54 = vld [vmem:[#allocation58_spill] sm:$0xff] }
 0x18f   : > { %v1616_v13 = vsel %vm1503_vm12, %v1584_v36, %v7227_v58  ;;  %v7068_v43 = vunpack.i.h.bf16 %v14249_v53  ;;  %v6988_v15 = vunpack.i.h.bf16 %v14250_v12  ;;  %v1488_v58 = vsel %vm1471_vm11, %v1456_v3, %v6987_v25  ;;  %v14254_v36 = vld [vmem:[#allocation48_spill] sm:$0xff]  ;;  %v14257_v1 = vld [vmem:[#allocation78_spill] sm:$0xff] }
 0x190   : > { %1825 = vmatmul.mubr.f32.gmra.mrb[24].mxu0 %v1516_v47  ;;  %v7246_v47 = vpop.permute.xlu0 %7245  ;;  %v7072_v29 = vunpack.i.l.bf16 %v14257_v1  ;;  %v7073_v60 = vunpack.i.h.bf16 %v14257_v1 }
 0x191   : > { %1829 = vmatprep.mubr.f32.mxu0 %v1613_v11  ;;  %v14246_v11 = vld [vmem:[#allocation67_spill] sm:$0xff]  ;;  %v7247_v45 = vunpack.i.l.bf16 %v7246_v47  ;;  %v7251_v4 = vpop.permute.xlu1 %7250  ;;  %v1521_v53 = vsel %vm1503_vm12, %v1488_v58, %v7068_v43 }
 0x192   : > { %v1553_v62 = vsel %vm1439_vm2, %v14246_v11, %v7232_v9  ;;  %v7252_v18 = vunpack.i.l.bf16 %v7251_v4  ;;  %v14256_v11 = vld [vmem:[#allocation92_spill] sm:$0xff] }
 0x193   : > { %v1585_v61 = vsel %vm1471_vm11, %v1553_v62, %v7237_v26  ;;  %v6992_v62 = vunpack.i.l.bf16 %v14256_v11 }
 0x194   : > { %1830 = vmatmul.mubr.f32.gmra.mrb[26].mxu0 %v1517_v52  ;;  %v14251_v52 = vld [vmem:[#allocation68_spill] sm:$0xff]  ;;  %v1617_v17 = vsel %vm1503_vm12, %v1585_v61, %v7228_v48  ;;  %v10165_v9 = vpop.permute.xlu0 %7255 }
 0x195   : > { %1834 = vmatprep.mubr.f32.mxu0 %v1614_v40  ;;  %v1487_v40 = vsel %vm1471_vm11, %v1455_v24, %v6983_v59  ;;  %v1554_v51 = vsel %vm1439_vm2, %v14251_v52, %v7233_v14  ;;  %v7261_v26 = vpop.permute.xlu1 %7260  ;;  %v6912_v59 = vunpack.i.l.bf16 %v14254_v36  ;;  %v1457_v14 = vsel %vm1439_vm2, %v14255_v54, %v6908_v32  ;;  %v14259_v32 = vld [vmem:[#allocation56_spill] sm:$0xff]  ;;  %v14261_v54 = vld [vmem:[#allocation49_spill] sm:$0xff] }
 0x196   : > { %v1520_v8 = vsel %vm1503_vm12, %v1487_v40, %v7067_v56  ;;  %v1586_v31 = vsel %vm1471_vm11, %v1554_v51, %v7238_v6  ;;  %v7243_v24 = vunpack.i.h.bf16 %v10139_v46  ;;  %v7253_v56 = vunpack.i.h.bf16 %v7251_v4  ;;  %v14258_v40 = vld [vmem:[#allocation74_spill] sm:$0xff] }
 0x197   : > { %v1618_v48 = vsel %vm1503_vm12, %v1586_v31, %v7242_v49  ;;  %v1489_v61 = vsel %vm1471_vm11, %v1457_v14, %v6988_v15  ;;  %v7262_v12 = vunpack.i.l.bf16 %v7261_v26  ;;  %v6993_v52 = vunpack.i.h.bf16 %v14256_v11  ;;  %v14262_v11 = vld [vmem:[#allocation25_spill] sm:$0xff] }
 0x198   : > { %1835 = vmatmul.mubr.f32.gmra.mrb[28].mxu0 %v1518_v35  ;;  %v1555_v35 = vsel %vm1439_vm2, %v14253_v37, %v7247_v45  ;;  %v7266_v25 = vpop.permute.xlu0 %7265  ;;  %v6913_v45 = vunpack.i.h.bf16 %v14254_v36  ;;  %v1458_v4 = vsel %vm1439_vm2, %v14259_v32, %v6912_v59  ;;  %v7257_v49 = vunpack.i.l.bf16 %v10165_v9 }
 0x199   : > { %1839 = vmatprep.mubr.f32.mxu0 %v1615_v41  ;;  %v7248_v41 = vunpack.i.h.bf16 %v7246_v47  ;;  %v10200_v43 = vpop.permute.xlu1 %7270  ;;  %v7267_v31 = vunpack.i.l.bf16 %v7266_v25  ;;  %v7263_v37 = vunpack.i.h.bf16 %v7261_v26  ;;  %v6917_v14 = vunpack.i.l.bf16 %v14261_v54 }
 0x19a   : > { %v6997_v1 = vunpack.i.l.bf16 %v14262_v11 }
 0x19b   : > { %v1556_v46 = vsel %vm1439_vm2, %v14258_v40, %v7248_v41  ;;  %v1490_v41 = vsel %vm1471_vm11, %v1458_v4, %v6992_v62 }
 0x19c   : > { %1840 = vmatmul.mubr.f32.gmra.mrb[30].mxu0 %v1519_v20  ;;  %v1587_v20 = vsel %vm1471_vm11, %v1555_v35, %v7252_v18  ;;  %v1522_v18 = vsel %vm1503_vm12, %v1489_v61, %v7072_v29  ;;  %v1588_v15 = vsel %vm1471_vm11, %v1556_v46, %v7253_v56  ;;  %v14260_v35 = vld [vmem:[#allocation79_spill] sm:$0xff]  ;;  %v7276_v59 = vpop.permute.xlu0 %7275  ;;  %v7258_v56 = vunpack.i.h.bf16 %v10165_v9 }
 0x19d   : > { %1844 = vmatprep.mubr.f32.mxu0 %v1616_v13  ;;  %v1557_v36 = vsel %vm1439_vm2, %v14260_v35, %v7262_v12  ;;  %v1620_v26 = vsel %vm1503_vm12, %v1588_v15, %v7257_v49  ;;  %v7268_v61 = vunpack.i.h.bf16 %v7266_v25  ;;  %v7281_v32 = vpop.permute.xlu1 %7280  ;;  %v14266_v9 = vld [vmem:[#allocation63_spill] sm:$0xff]  ;;  %v14267_v35 = vld [vmem:[#allocation88_spill] sm:$0xff] }
 0x19e   : > { %v1589_v12 = vsel %vm1471_vm11, %v1557_v36, %v7267_v31  ;;  %v1460_v49 = vsel %vm1439_vm2, %v14266_v9, %v6917_v14  ;;  %v7282_v15 = vunpack.i.l.bf16 %v7281_v32  ;;  %v14268_v14 = vld [vmem:[#allocation50_spill] sm:$0xff] }
 0x1a0   : > { %1845 = vmatmul.mubr.f32.gmra.mrb[32].mxu0 %v1520_v8 }
 0x1a1   : > { %1849 = vmatprep.mubr.f32.mxu0 %v1617_v17  ;;  %v1619_v17 = vsel %vm1503_vm12, %v1587_v20, %v7243_v24  ;;  %v14263_v24 = vld [vmem:[#allocation62_spill] sm:$0xff]  ;;  %v1523_v20 = vsel %vm1503_vm12, %v1490_v41, %v7073_v60  ;;  %v6998_v41 = vunpack.i.h.bf16 %v14262_v11  ;;  %v7273_v11 = vunpack.i.h.bf16 %v10200_v43 }
 0x1a2   : > { %v6557_v42 = vpop.f32.mrb[32].mxu1  ;;  %v1459_v29 = vsel %vm1439_vm2, %v14263_v24, %v6913_v45  ;;  %v14265_v45 = vld [vmem:[#allocation81_spill] sm:$0xff] }
 0x1a3   : > { %v2473_v47 = vadd.f32 %v6557_v42, %v10174_v2  ;;  %v2467_v13 = vpop.f32.mrb[33].mxu1  ;;  %v1491_v46 = vsel %vm1471_vm11, %v1459_v29, %v6993_v52  ;;  %v1558_v4 = vsel %vm1439_vm2, %v14265_v45, %v7263_v37  ;;  %v10225_v52 = vpop.permute.xlu0 %7285  ;;  %v1492_v37 = vsel %vm1471_vm11, %v1460_v49, %v6997_v1 }
 0x1a4   : > { %v2468_v6 = vadd.f32 %v10174_v2, %v2467_v13  ;;  %1850 = vmatmul.mubr.f32.gmra.mrb[34].mxu0 %v1521_v53  ;;  %v7283_v1 = vunpack.i.h.bf16 %v7281_v32 }
 0x1a5   : > { %v2487_v51 = vadd.f32 3.0, %v2473_v47  ;;  %1854 = vmatprep.mubr.f32.mxu0 %v1618_v48  ;;  %v14264_v48 = vld [vmem:[#allocation80_spill] sm:$0xff] }
 0x1a6   : > { %v2486_v3 = vadd.f32 3.0, %v2468_v6  ;;  %v7077_v13 = vunpack.i.l.bf16 %v14264_v48  ;;  %v7078_v25 = vunpack.i.h.bf16 %v14264_v48  ;;  %v14270_v48 = vld [vmem:[#allocation87_spill] sm:$0xff] }
 0x1a7   : > { %v2491_v8 = vmax.f32 %v2487_v51, 0.0  ;;  %v7277_v51 = vunpack.i.l.bf16 %v7276_v59  ;;  %v7083_v9 = vunpack.i.h.bf16 %v14270_v48 }
 0x1a8   : > { %v2490_v58 = vmax.f32 %v2486_v3, 0.0  ;;  %1855 = vmatmul.mubr.f32.gmra.mrb[36].mxu0 %v1522_v18  ;;  %v6918_v3 = vunpack.i.h.bf16 %v14261_v54  ;;  %v1524_v31 = vsel %vm1503_vm12, %v1491_v46, %v7077_v13  ;;  %v7291_v54 = vpop.permute.xlu1 %7290  ;;  %v7082_v13 = vunpack.i.l.bf16 %v14270_v48  ;;  %v14278_v48 = vld [vmem:[#allocation119_spill] sm:$0xff] }
 0x1a9   : > { %v2495_v42 = vmin.f32 %v2491_v8, 6.0  ;;  %1859 = vmatprep.mubr.f32.mxu0 %v1619_v17  ;;  %v7272_v17 = vunpack.i.l.bf16 %v10200_v43  ;;  %v1621_v8 = vsel %vm1503_vm12, %v1589_v12, %v7258_v56  ;;  %v1559_v36 = vsel %vm1439_vm2, %v14267_v35, %v7277_v51  ;;  %v14271_v56 = vld [vmem:[#allocation26_spill] sm:$0xff]  ;;  %v7296_v12 = vpop.permute.xlu0 %7295 }
 0x1aa   : > { %v2494_v53 = vmin.f32 %v2490_v58, 6.0  ;;  %v1590_v58 = vsel %vm1471_vm11, %v1558_v4, %v7268_v61  ;;  %v7292_v61 = vunpack.i.l.bf16 %v7291_v54  ;;  %v6923_v46 = vunpack.i.h.bf16 %v14268_v14  ;;  %v14273_v4 = vld [vmem:[#allocation70_spill] sm:$0xff] }
 0x1ab   : > { %v2499_v62 = vmul.f32 0.16666667, %v2495_v42  ;;  %v6922_v42 = vunpack.i.l.bf16 %v14268_v14  ;;  %v1622_v29 = vsel %vm1503_vm12, %v1590_v58, %v7272_v17  ;;  %v7003_v51 = vunpack.i.h.bf16 %v14271_v56 }
 0x1ac   : > { %v2498_v40 = vmul.f32 0.16666667, %v2494_v53  ;;  %1860 = vmatmul.mubr.f32.gmra.mrb[38].mxu0 %v1523_v20  ;;  %v1591_v53 = vsel %vm1471_vm11, %v1559_v36, %v7282_v15  ;;  %v10256_v17 = vpop.permute.xlu1 %7300  ;;  %v14275_v36 = vld [vmem:[#allocation73_spill] sm:$0xff] }
 0x1ad   : > { %1864 = vmatprep.mubr.f32.mxu0 %v1620_v26  ;;  %v2503_v18 = vmul.f32 %v2499_v62, %v2473_v47  ;;  %v14269_v47 = vld [vmem:[#allocation69_spill] sm:$0xff]  ;;  %v7002_v26 = vunpack.i.l.bf16 %v14271_v56  ;;  %v7306_v35 = vpop.permute.xlu0 %7305  ;;  %v6927_v14 = vunpack.i.l.bf16 %v14275_v36 }
 0x1ae   : > { %v2502_v60 = vmul.f32 %v2498_v40, %v2468_v6  ;;  %v7278_v6 = vunpack.i.h.bf16 %v7276_v59  ;;  %v1461_v24 = vsel %vm1439_vm2, %v14269_v47, %v6918_v3  ;;  %v1525_v59 = vsel %vm1503_vm12, %v1492_v37, %v7078_v25  ;;  %v14272_v40 = vld [vmem:[#allocation90_spill] sm:$0xff] }
 0x1af   : > { %v1493_v20 = vsel %vm1471_vm11, %v1461_v24, %v6998_v41  ;;  %v1462_v3 = vsel %vm1439_vm2, %v14273_v4, %v6922_v42  ;;  %v7287_v25 = vunpack.i.l.bf16 %v10225_v52  ;;  %v7293_v37 = vunpack.i.h.bf16 %v7291_v54  ;;  %v14276_v42 = vld [vmem:[#allocation20_spill] sm:$0xff] }
 0x1b0   : > { %6563 = vmatprep.mubr.msk.f32.mxu1 %vm2514_vm13, %v2502_v60  ;;  %1865 = vmatmul.mubr.f32.gmra.mrb[40].mxu0 %v1524_v31  ;;  %v1560_v43 = vsel %vm1439_vm2, %v14272_v40, %v7278_v6  ;;  %v1623_v60 = vsel %vm1503_vm12, %v1591_v53, %v7273_v11  ;;  %v7297_v31 = vunpack.i.l.bf16 %v7296_v12  ;;  %v1494_v41 = vsel %vm1471_vm11, %v1462_v3, %v7002_v26  ;;  %v14274_v6 = vld [vmem:[#allocation96_spill] sm:$0xff]  ;;  %v14280_v3 = vld [vmem:[#allocation75_spill] sm:$0xff] }
 0x1b1   : > { %6564 = vmatmul.mubr.msk.f32.vlgmr.msra.gmra.mrb[36].mxu1 %vm2514_vm13, %v2503_v18  ;;  %1869 = vmatprep.mubr.f32.mxu0 %v1621_v8  ;;  %v1526_v18 = vsel %vm1503_vm12, %v1493_v20, %v7082_v13  ;;  %v1592_v15 = vsel %vm1471_vm11, %v1560_v43, %v7283_v1  ;;  %v7007_v47 = vunpack.i.l.bf16 %v14276_v42  ;;  %v14277_v11 = vld [vmem:[#allocation76_spill] sm:$0xff]  ;;  %v7087_v13 = vunpack.i.l.bf16 %v14278_v48  ;;  %v7311_v43 = vpop.permute.xlu1 %7310 }
 0x1b2   : > { %v7288_v1 = vunpack.i.h.bf16 %v10225_v52  ;;  %v1624_v54 = vsel %vm1503_vm12, %v1592_v15, %v7287_v25  ;;  %v1527_v56 = vsel %vm1503_vm12, %v1494_v41, %v7083_v9  ;;  %v7298_v26 = vunpack.i.h.bf16 %v7296_v12 }
 0x1b3   : > { %v6560_v62 = vpop.f32.mrb[34].mxu1  ;;  %v7307_v40 = vunpack.i.l.bf16 %v7306_v35  ;;  %v6928_v4 = vunpack.i.h.bf16 %v14275_v36  ;;  %v1464_v25 = vsel %vm1439_vm2, %v14280_v3, %v6927_v14  ;;  %v7008_v12 = vunpack.i.h.bf16 %v14276_v42  ;;  %v14282_v14 = vld [vmem:[#allocation77_spill] sm:$0xff] }
 0x1b4   : > { %1870 = vmatmul.mubr.f32.gmra.mrb[42].mxu0 %v1525_v59  ;;  %v2483_v45 = vadd.f32 %v6560_v62, %v10174_v2  ;;  %v2477_v32 = vpop.f32.mrb[35].mxu1  ;;  %v7312_v15 = vunpack.i.l.bf16 %v7311_v43  ;;  %v6932_v42 = vunpack.i.l.bf16 %v14282_v14 }
 0x1b5   : > { %1874 = vmatprep.mubr.f32.mxu0 %v1622_v29  ;;  %v2478_v49 = vadd.f32 %v10174_v2, %v2477_v32  ;;  %v1561_v2 = vsel %vm1439_vm2, %v14274_v6, %v7292_v61  ;;  %v1463_v29 = vsel %vm1439_vm2, %v14277_v11, %v6923_v46  ;;  %v14279_v46 = vld [vmem:[#allocation97_spill] sm:$0xff]  ;;  %v7308_v6 = vunpack.i.h.bf16 %v7306_v35 }
 0x1b6   : > { %v2489_v8 = vadd.f32 3.0, %v2483_v45  ;;  %v1593_v62 = vsel %vm1471_vm11, %v1561_v2, %v7297_v31  ;;  %v1495_v61 = vsel %vm1471_vm11, %v1463_v29, %v7003_v51  ;;  %v1562_v32 = vsel %vm1439_vm2, %v14279_v46, %v7293_v37  ;;  %v7316_v51 = vpop.permute.xlu0 %7315  ;;  %v14281_v2 = vld [vmem:[#allocation100_spill] sm:$0xff]  ;;  %v14283_v11 = vld [vmem:[#allocation85_spill] sm:$0xff] }
 0x1b7   : > { %v2488_v58 = vadd.f32 3.0, %v2478_v49  ;;  %v1528_v31 = vsel %vm1503_vm12, %v1495_v61, %v7087_v13  ;;  %v1496_v37 = vsel %vm1471_vm11, %v1464_v25, %v7007_v47  ;;  %v1563_v36 = vsel %vm1439_vm2, %v14281_v2, %v7307_v40  ;;  %v14287_v40 = vld [vmem:[#allocation84_spill] sm:$0xff] }
 0x1b8   : > { %1875 = vmatmul.mubr.f32.gmra.mrb[44].mxu0 %v1526_v18  ;;  %v2493_v24 = vmax.f32 %v2489_v8, 0.0  ;;  %v1625_v8 = vsel %vm1503_vm12, %v1593_v62, %v7288_v1  ;;  %v7088_v18 = vunpack.i.h.bf16 %v14278_v48  ;;  %v1465_v29 = vsel %vm1439_vm2, %v14283_v11, %v6928_v4  ;;  %v7321_v48 = vpop.permute.xlu1 %7320  ;;  %v14291_v2 = vld [vmem:[#allocation104_spill] sm:$0xff]  ;;  %v14293_v11 = vld [vmem:[#allocation22_spill] sm:$0xff] }
 0x1b9   : > { %1879 = vmatprep.mubr.f32.mxu0 %v1623_v60  ;;  %v2492_v59 = vmax.f32 %v2488_v58, 0.0  ;;  %v7302_v60 = vunpack.i.l.bf16 %v10256_v17  ;;  %v1594_v58 = vsel %vm1471_vm11, %v1562_v32, %v7298_v26  ;;  %v7303_v13 = vunpack.i.h.bf16 %v10256_v17 }
 0x1ba   : > { %v2497_v53 = vmin.f32 %v2493_v24, 6.0  ;;  %v1529_v35 = vsel %vm1503_vm12, %v1496_v37, %v7088_v18  ;;  %v7313_v1 = vunpack.i.h.bf16 %v7311_v43  ;;  %v7322_v26 = vunpack.i.l.bf16 %v7321_v48  ;;  %v7326_v62 = vpop.permute.xlu0 %7325 }
 0x1bb   : > { %v2496_v20 = vmin.f32 %v2492_v59, 6.0  ;;  %v14284_v59 = vld [vmem:[#allocation118_spill] sm:$0xff]  ;;  %v6933_v61 = vunpack.i.h.bf16 %v14282_v14  ;;  %v1466_v46 = vsel %vm1439_vm2, %v14287_v40, %v6932_v42  ;;  %v7317_v32 = vunpack.i.l.bf16 %v7316_v51 }
 0x1bc   : > { %1880 = vmatmul.mubr.f32.gmra.mrb[46].mxu0 %v1527_v56  ;;  %v2501_v52 = vmul.f32 0.16666667, %v2497_v53  ;;  %v7092_v47 = vunpack.i.l.bf16 %v14284_v59  ;;  %v1497_v56 = vsel %vm1471_vm11, %v1465_v29, %v7008_v12  ;;  %v7093_v4 = vunpack.i.h.bf16 %v14284_v59  ;;  %v14295_v59 = vld [vmem:[#allocation94_spill] sm:$0xff] }
 0x1bd   : > { %1884 = vmatprep.mubr.f32.mxu0 %v1624_v54  ;;  %v2500_v9 = vmul.f32 0.16666667, %v2496_v20  ;;  %v14285_v54 = vld [vmem:[#allocation23_spill] sm:$0xff]  ;;  %v14286_v20 = vld [vmem:[#allocation101_spill] sm:$0xff]  ;;  %v7327_v3 = vunpack.i.l.bf16 %v7326_v62  ;;  %v7318_v37 = vunpack.i.h.bf16 %v7316_v51  ;;  %v10318_v42 = vunpack.i.h.bf16 %v7326_v62 }
 0x1be   : > { %v2505_v24 = vmul.f32 %v2501_v52, %v2483_v45  ;;  %v1595_v45 = vsel %vm1471_vm11, %v1563_v36, %v7312_v15  ;;  %v7012_v53 = vunpack.i.l.bf16 %v14285_v54  ;;  %v1564_v17 = vsel %vm1439_vm2, %v14286_v20, %v7308_v6  ;;  %v14297_v20 = vld [vmem:[#allocation39_spill] sm:$0xff] }
 0x1bf   : > { %v2504_v41 = vmul.f32 %v2500_v9, %v2478_v49  ;;  %v1626_v49 = vsel %vm1503_vm12, %v1594_v58, %v7302_v60  ;;  %v1627_v43 = vsel %vm1503_vm12, %v1595_v45, %v7303_v13  ;;  %v1530_v52 = vsel %vm1503_vm12, %v1497_v56, %v7092_v47  ;;  %v14290_v58 = vld [vmem:[#allocation95_spill] sm:$0xff]  ;;  %14292 = vst [vmem:[#allocation37_spill] sm:$0xff] %v10318_v42 }
 0x1c0   : > { %1885 = vmatmul.mubr.f32.gmra.mrb[48].mxu0 %v1528_v31  ;;  %v1596_v25 = vsel %vm1471_vm11, %v1564_v17, %v7313_v1  ;;  %v7013_v12 = vunpack.i.h.bf16 %v14285_v54  ;;  %v1498_v9 = vsel %vm1471_vm11, %v1466_v46, %v7012_v53  ;;  %v7323_v60 = vunpack.i.h.bf16 %v7321_v48  ;;  %v14289_v31 = vld [vmem:[#allocation82_spill] sm:$0xff]  ;;  %v14294_v13 = vld [vmem:[#allocation35_spill] sm:$0xff]  ;;  %v10331_v53 = vpop.permute.xlu1 %1406 }
 0x1c1   : > { %1889 = vmatprep.mubr.f32.mxu0 %v1625_v8  ;;  %6566 = vmatprep.mubr.msk.f32.mxu1 %vm2514_vm13, %v2504_v41  ;;  %v14288_v8 = vld [vmem:[#allocation102_spill] sm:$0xff]  ;;  %v6937_v15 = vunpack.i.l.bf16 %v14289_v31  ;;  %v1467_v41 = vsel %vm1439_vm2, %v14290_v58, %v6933_v61  ;;  %v1628_v6 = vsel %vm1503_vm12, %v1596_v25, %v7317_v32  ;;  %v7097_v36 = vunpack.i.l.bf16 %v14291_v2  ;;  %14296 = vst [vmem:[#allocation38_spill] sm:$0xff] %v10331_v53  ;;  %v14298_v61 = vld [vmem:[#allocation89_spill] sm:$0xff]  ;;  %v14299_v46 = vld [vmem:[#allocation99_spill] sm:$0xff] }
 0x1c2   : > { %6567 = vmatmul.mubr.msk.f32.gmra.mrb[38].mxu1 %vm2514_vm13, %v2505_v24  ;;  %v1565_v18 = vsel %vm1439_vm2, %v14288_v8, %v7322_v26  ;;  %v1531_v14 = vsel %vm1503_vm12, %v1498_v9, %v7093_v4  ;;  %v7017_v29 = vunpack.i.l.bf16 %v14293_v11  ;;  %v1499_v48 = vsel %vm1471_vm11, %v1467_v41, %v7013_v12  ;;  %v14300_v4 = vld [vmem:[#allocation120_spill] sm:$0xff]  ;;  %v14301_v12 = vld [vmem:[#allocation33_spill] sm:$0xff]  ;;  %v14302_v8 = vld [vmem:[#allocation98_spill] sm:$0xff] }
 0x1c3   : > { %v1597_v24 = vsel %vm1471_vm11, %v1565_v18, %v7327_v3  ;;  %v6938_v51 = vunpack.i.h.bf16 %v14289_v31  ;;  %v1468_v47 = vsel %vm1439_vm2, %v14295_v59, %v6937_v15  ;;  %v7098_v45 = vunpack.i.h.bf16 %v14291_v2 }
 0x1c4   : > { %1890 = vmatmul.mubr.f32.gmra.mrb[50].mxu0 %v1529_v35  ;;  %v1220_v35 = vpop.permute.xlu0 %1219  ;;  %v1629_v1 = vsel %vm1503_vm12, %v1597_v24, %v7318_v37  ;;  %v1532_v54 = vsel %vm1503_vm12, %v1499_v48, %v7097_v36  ;;  %v7018_v26 = vunpack.i.h.bf16 %v14293_v11  ;;  %v1500_v62 = vsel %vm1471_vm11, %v1468_v47, %v7017_v29  ;;  %v14303_v24 = vld [vmem:[#allocation34_spill] sm:$0xff] }
 0x1c5   : > { %1894 = vmatprep.mubr.f32.mxu0 %v1626_v49  ;;  %v1566_v49 = vsel %vm1439_vm2, %v14294_v13, %v7323_v60  ;;  %v1567_v17 = vsel %vm1439_vm2, %v14297_v20, %v1220_v35  ;;  %v6942_v40 = vunpack.i.l.bf16 %v14298_v61  ;;  %v1469_v32 = vsel %vm1439_vm2, %v14299_v46, %v6938_v51  ;;  %v14307_v46 = vld [vmem:[#allocation66_spill] sm:$0xff] }
 0x1c6   : > { %v1598_v56 = vsel %vm1471_vm11, %v1566_v49, %v10318_v42  ;;  %v1533_v3 = vsel %vm1503_vm12, %v1500_v62, %v7098_v45  ;;  %v1599_v25 = vsel %vm1471_vm11, %v1567_v17, %v10318_v42  ;;  %v7022_v9 = vunpack.i.l.bf16 %v14301_v12  ;;  %v14304_v49 = vld [vmem:[#allocation32_spill] sm:$0xff] }
 0x1c7   : > { %v1501_v60 = vsel %vm1471_vm11, %v1469_v32, %v7018_v26  ;;  %v1470_v18 = vsel %vm1439_vm2, %v14302_v8, %v6942_v40  ;;  %v1631_v31 = vsel %vm1503_vm12, %v1599_v25, %v10331_v53  ;;  %v7103_v15 = vunpack.i.h.bf16 %v14300_v4  ;;  %v14306_v62 = vld [vmem:[#allocation36_spill] sm:$0xff]  ;;  %v14309_v8 = vld [vmem:[#allocation30_spill] sm:$0xff] }
 0x1c8   : > { %1895 = vmatmul.mubr.f32.gmra.mrb[52].mxu0 %v1530_v52  ;;  %v7102_v52 = vunpack.i.l.bf16 %v14300_v4  ;;  %v1502_v41 = vsel %vm1471_vm11, %v1470_v18, %v7022_v9 }
 0x1c9   : > { %1899 = vmatprep.mubr.f32.mxu0 %v1627_v43  ;;  %v1630_v43 = vsel %vm1503_vm12, %v1598_v56, %v10331_v53  ;;  %v1535_v37 = vsel %vm1503_vm12, %v1502_v41, %v7103_v15  ;;  %v14310_v41 = vld [vmem:[#allocation83_spill] sm:$0xff] }
 0x1ca   : > { %v1534_v58 = vsel %vm1503_vm12, %v1501_v60, %v7102_v52 }
 0x1cc   : > { %1900 = vmatmul.mubr.f32.gmra.mrb[54].mxu0 %v1531_v14 }
 0x1cd   : > { %1904 = vmatprep.mubr.f32.mxu0 %v1628_v6  ;;  %v10361_v6 = vld [vmem:[%s13588_s2] ss:$0 sm:$0xff] }
 0x1d0   : > { %1905 = vmatmul.mubr.f32.gmra.mrb[56].mxu0 %v1532_v54 }
 0x1d1   : > { %1909 = vmatprep.mubr.f32.mxu0 %v1629_v1  ;;  %v14305_v1 = vld [vmem:[#allocation41_spill] sm:$0xff] }
 0x1d4   : > { %1910 = vmatmul.mubr.f32.gmra.mrb[58].mxu0 %v1533_v3  ;;  %v14308_v3 = vld [vmem:[#allocation65_spill] sm:$0xff] }
 0x1d5   : > { %1914 = vmatprep.mubr.f32.mxu0 %v1630_v43 }
 0x1d8   : > { %1915 = vmatmul.mubr.f32.gmra.mrb[60].mxu0 %v1534_v58 }
 0x1d9   : > { %1919 = vmatprep.mubr.f32.mxu0 %v1631_v31 }
 0x1dc   : > { %1920 = vmatmul.mubr.f32.gmra.mrb[62].mxu0 %v1535_v37 }
 0x233   : > { %v1766_v2 = vpop.f32.mrb[0].mxu0 }
 0x234   : > { %v1767_v36 = vadd.f32 %v10361_v6, %v1766_v2  ;;  %v1768_v14 = vpop.f32.mrb[1].mxu0 }
 0x236   : > { %v10365_v11 = vadd.f32 %v14303_v24, %v1767_v36  ;;  %v14311_v24 = vld [vmem:[#allocation24_spill] sm:$0xff] }
 0x237   : > { %v1771_v29 = vpop.f32.mrb[2].mxu0 }
 0x238   : > { %v1772_v48 = vadd.f32 %v10361_v6, %v1771_v29  ;;  %v1773_v13 = vpop.f32.mrb[3].mxu0 }
 0x23a   : > { %v10369_v51 = vadd.f32 %v14304_v49, %v1772_v48 }
 0x23b   : > { %v1776_v59 = vpop.f32.mrb[4].mxu0 }
 0x23c   : > { %v1777_v47 = vadd.f32 %v10361_v6, %v1776_v59  ;;  %v1778_v35 = vpop.f32.mrb[5].mxu0  ;;  %v14312_v59 = vld [vmem:[#allocation29_spill] sm:$0xff] }
 0x23e   : > { %v10373_v45 = vadd.f32 %v14305_v1, %v1777_v47 }
 0x23f   : > { %v1781_v54 = vpop.f32.mrb[6].mxu0 }
 0x240   : > { %v1782_v56 = vadd.f32 %v10361_v6, %v1781_v54  ;;  %v1783_v26 = vpop.f32.mrb[7].mxu0 }
 0x242   : > { %v10377_v20 = vadd.f32 %v14306_v62, %v1782_v56  ;;  %v14313_v56 = vld [vmem:[#allocation31_spill] sm:$0xff] }
 0x243   : > { %v1786_v17 = vpop.f32.mrb[8].mxu0 }
 0x244   : > { %v1787_v61 = vadd.f32 %v10361_v6, %v1786_v17  ;;  %v1788_v40 = vpop.f32.mrb[9].mxu0 }
 0x245   : > { %v14314_v40 = vld [vmem:[#allocation27_spill] sm:$0xff] }
 0x246   : > { %v10381_v32 = vadd.f32 %v14307_v46, %v1787_v61 }
 0x247   : > { %v1791_v43 = vpop.f32.mrb[10].mxu0 }
 0x248   : > { %v1792_v4 = vadd.f32 %v10361_v6, %v1791_v43  ;;  %v1793_v52 = vpop.f32.mrb[11].mxu0 }
 0x24a   : > { %v10385_v25 = vadd.f32 %v14308_v3, %v1792_v4 }
 0x24b   : > { %v1796_v12 = vpop.f32.mrb[12].mxu0 }
 0x24c   : > { %v1797_v9 = vadd.f32 %v10361_v6, %v1796_v12  ;;  %v1798_v60 = vpop.f32.mrb[13].mxu0 }
 0x24e   : > { %v10389_v18 = vadd.f32 %v14309_v8, %v1797_v9 }
 0x24f   : > { %v1801_v31 = vpop.f32.mrb[14].mxu0 }
 0x250   : > { %v1802_v15 = vadd.f32 %v10361_v6, %v1801_v31  ;;  %v1803_v58 = vpop.f32.mrb[15].mxu0 }
 0x252   : > { %v10393_v37 = vadd.f32 %v14310_v41, %v1802_v15 }
 0x253   : > { %v1806_v2 = vpop.f32.mrb[16].mxu0 }
 0x254   : > { %v1807_v36 = vadd.f32 %v10361_v6, %v1806_v2  ;;  %v1808_v14 = vpop.f32.mrb[17].mxu0 }
 0x256   : > { %v10397_v29 = vadd.f32 %v14311_v24, %v1807_v36 }
 0x257   : > { %v1811_v48 = vpop.f32.mrb[18].mxu0 }
 0x258   : > { %v1812_v13 = vadd.f32 %v10361_v6, %v1811_v48  ;;  %v1813_v49 = vpop.f32.mrb[19].mxu0 }
 0x25a   : > { %v10401_v47 = vadd.f32 %v14312_v59, %v1812_v13 }
 0x25b   : > { %v1816_v35 = vpop.f32.mrb[20].mxu0 }
 0x25c   : > { %v1817_v1 = vadd.f32 %v10361_v6, %v1816_v35  ;;  %v1818_v54 = vpop.f32.mrb[21].mxu0 }
 0x25e   : > { %v10405_v26 = vadd.f32 %v14313_v56, %v1817_v1 }
 0x25f   : > { %v1821_v62 = vpop.f32.mrb[22].mxu0 }
 0x260   : > { %v1822_v17 = vadd.f32 %v10361_v6, %v1821_v62  ;;  %v1823_v61 = vpop.f32.mrb[23].mxu0 }
 0x262   : > { %v10409_v46 = vadd.f32 %v14314_v40, %v1822_v17 }
 0x263   : > { %v1826_v43 = vpop.f32.mrb[24].mxu0 }
 0x264   : > { %v1827_v4 = vadd.f32 %v10361_v6, %v1826_v43  ;;  %v1828_v52 = vpop.f32.mrb[25].mxu0 }
 0x266   : > { %v10413_v3 = vadd.f32 %v9954_v7, %v1827_v4 }
 0x267   : > { %v1831_v12 = vpop.f32.mrb[26].mxu0 }
 0x268   : > { %v1832_v9 = vadd.f32 %v10361_v6, %v1831_v12  ;;  %v1833_v60 = vpop.f32.mrb[27].mxu0 }
 0x26a   : > { %v10417_v8 = vadd.f32 %v9950_v34, %v1832_v9 }
 0x26b   : > { %v1836_v31 = vpop.f32.mrb[28].mxu0 }
 0x26c   : > { %v1837_v15 = vadd.f32 %v10361_v6, %v1836_v31  ;;  %v1838_v58 = vpop.f32.mrb[29].mxu0 }
 0x26e   : > { %v10421_v41 = vadd.f32 %v9977_v57, %v1837_v15 }
 0x26f   : > { %v1841_v2 = vpop.f32.mrb[30].mxu0 }
 0x270   : > { %v1842_v36 = vadd.f32 %v10361_v6, %v1841_v2  ;;  %v1843_v14 = vpop.f32.mrb[31].mxu0 }
 0x272   : > { %v10425_v7 = vadd.f32 %v9971_v28, %v1842_v36 }
 0x273   : > { %v1846_v24 = vpop.f32.mrb[32].mxu0 }
 0x274   : > { %v1847_v48 = vadd.f32 %v10361_v6, %v1846_v24  ;;  %v1848_v13 = vpop.f32.mrb[33].mxu0 }
 0x276   : > { %v10429_v34 = vadd.f32 %v9994_v50, %v1847_v48  ;;  %v6324_v50 = vld [vmem:[%s13592_s6] ss:$0 sm:$0xff] }
 0x277   : > { %v1851_v49 = vpop.f32.mrb[34].mxu0 }
 0x278   : > { %v1852_v59 = vadd.f32 %v10361_v6, %v1851_v49  ;;  %v1853_v35 = vpop.f32.mrb[35].mxu0 }
 0x279   : > { %v8514_v35 = vmov 1966171168  }
 0x27a   : > { %v10433_v57 = vadd.f32 %v9988_v30, %v1852_v59 }
 0x27b   : > { %v1856_v1 = vpop.f32.mrb[36].mxu0 }
 0x27c   : > { %v1857_v54 = vadd.f32 %v10361_v6, %v1856_v1  ;;  %v1858_v56 = vpop.f32.mrb[37].mxu0  ;;  %v2672_v1 = vunpack.c.l.s4 %v8514_v35  ;;  %v8347_v35 = vld [vmem:[%s8707_s16 + $0x10] sm:$0xff] }
 0x27e   : > { %v10437_v28 = vadd.f32 %v10009_v22, %v1857_v54  ;;  %v2674_v54 = vlaneseq }
 0x27f   : > { %v1861_v62 = vpop.f32.mrb[38].mxu0 }
 0x280   : > { %v1862_v17 = vadd.f32 %v10361_v6, %v1861_v62  ;;  %v1863_v61 = vpop.f32.mrb[39].mxu0 }
 0x282   : > { %v10444_v40 = vadd.f32 %v10003_v27, %v1862_v17 }
 0x283   : > { %v1866_v30 = vpop.f32.mrb[40].mxu0 }
 0x284   : > { %v6565_v43 = vpop.f32.mrb[36].mxu1  ;;  %v1867_v4 = vadd.f32 %v10361_v6, %v1866_v30  ;;  %v1868_v52 = vpop.f32.mrb[41].mxu0 }
 0x285   : > { %v2599_v12 = vadd.f32 %v6565_v43, %v6324_v50  ;;  %v2593_v9 = vpop.f32.mrb[37].mxu1  ;;  %v2675_v52 = vshrl.u32 %v2674_v54, 7 }
 0x286   : > { %v2594_v22 = vadd.f32 %v6324_v50, %v2593_v9  ;;  %v10448_v60 = vadd.f32 %v10027_v39, %v1867_v4 }
 0x287   : > { %v6330_v31 = vmul.f32 -1.442695, %v2599_v12  ;;  %v1871_v15 = vpop.f32.mrb[42].mxu0 }
 0x288   : > { %v6329_v58 = vmul.f32 -1.442695, %v2594_v22  ;;  %v1872_v2 = vadd.f32 %v10361_v6, %v1871_v15  ;;  %v1873_v36 = vpop.f32.mrb[43].mxu0 }
 0x289   : > { %8329 = vpow2.f32 %v6330_v31 }
 0x28a   : > { %8331 = vpow2.f32 %v6329_v58  ;;  %v10452_v27 = vadd.f32 %v10020_v0, %v1872_v2 }
 0x28b   : > { %v1876_v14 = vpop.f32.mrb[44].mxu0 }
 0x28c   : > { %v1877_v24 = vadd.f32 %v10361_v6, %v1876_v14  ;;  %v1878_v48 = vpop.f32.mrb[45].mxu0 }
 0x28e   : > { %v10456_v13 = vadd.f32 %v10042_v33, %v1877_v24  ;;  %v2673_v33 = vunpack.c.0.s8 %v2672_v1  ;;  %v10469_v24 = vsub.s32 0, %v2675_v52  ;;  %v10482_v1 = vmul.f32 %v8347_v35, %v10373_v45  ;;  %v8350_v45 = vld [vmem:[%s8707_s16 + $0x28] sm:$0xff]  ;;  %v8363_v35 = vld [vmem:[%s8707_s16 + $0xb0] sm:$0xff] }
 0x28f   : > { %v1881_v39 = vpop.f32.mrb[46].mxu0 }
 0x290   : > { %v1882_v49 = vadd.f32 %v10361_v6, %v1881_v39  ;;  %v1883_v59 = vpop.f32.mrb[47].mxu0  ;;  %v10467_v14 = vsub.s32 %v2673_v33, %v2675_v52  ;;  %v8345_v39 = vld [vmem:[%s8707_s16] sm:$0xff]  ;;  %v8354_v52 = vld [vmem:[%s8707_s16 + $0x48] sm:$0xff] }
 0x292   : > { %v10460_v56 = vadd.f32 %v10034_v16, %v1882_v49  ;;  %v10474_v49 = vmul.f32 %v8345_v39, %v10365_v11  ;;  %v8349_v11 = vld [vmem:[%s8707_s16 + $0x20] sm:$0xff] }
 0x293   : > { %v8330_v62 = vpop.eup %8329  ;;  %v1886_v0 = vpop.f32.mrb[48].mxu0  ;;  %v8361_v39 = vld [vmem:[%s8707_s16 + $0xa0] sm:$0xff] }
 0x294   : > { %v8332_v17 = vpop.eup %8331  ;;  %v2625_v61 = vadd.f32 1.0, %v8330_v62  ;;  %v1887_v30 = vadd.f32 %v10361_v6, %v1886_v0  ;;  %v1888_v43 = vpop.f32.mrb[49].mxu0  ;;  %v10490_v0 = vmul.f32 %v8349_v11, %v10381_v32  ;;  %v8364_v11 = vld [vmem:[%s8707_s16 + $0xb8] sm:$0xff] }
 0x295   : > { %v2624_v4 = vadd.f32 1.0, %v8332_v17  ;;  %v6568_v12 = vpop.f32.mrb[38].mxu1  ;;  %v8352_v43 = vld [vmem:[%s8707_s16 + $0x38] sm:$0xff] }
 0x296   : > { %8333 = vrcp.f32 %v2625_v61  ;;  %v10464_v9 = vadd.f32 %v10059_v23, %v1887_v30  ;;  %v2609_v16 = vadd.f32 %v6568_v12, %v6324_v50  ;;  %v2603_v22 = vpop.f32.mrb[39].mxu1  ;;  %v10495_v61 = vmul.f32 %v8350_v45, %v10385_v25  ;;  %v8351_v30 = vld [vmem:[%s8707_s16 + $0x30] sm:$0xff] }
 0x297   : > { %8335 = vrcp.f32 %v2624_v4  ;;  %v1891_v31 = vpop.f32.mrb[50].mxu0  ;;  %v2604_v15 = vadd.f32 %v6324_v50, %v2603_v22  ;;  %v8346_v50 = vld [vmem:[%s8707_s16 + $0x8] sm:$0xff]  ;;  %v10503_v32 = vmul.f32 %v8352_v43, %v10393_v37  ;;  %v8353_v4 = vld [vmem:[%s8707_s16 + $0x40] sm:$0xff]  ;;  %v10511_v12 = vmul.f32 %v8354_v52, %v10401_v47  ;;  %v8355_v25 = vld [vmem:[%s8707_s16 + $0x50] sm:$0xff] }
 0x298   : > { %v1892_v58 = vadd.f32 %v10361_v6, %v1891_v31  ;;  %v1893_v2 = vpop.f32.mrb[51].mxu0  ;;  %v6332_v36 = vmul.f32 -1.442695, %v2609_v16  ;;  %v10478_v59 = vmul.f32 %v8346_v50, %v10369_v51  ;;  %v10507_v33 = vmul.f32 %v8353_v4, %v10397_v29  ;;  %v8357_v31 = vld [vmem:[%s8707_s16 + $0x80] sm:$0xff] }
 0x299   : > { %v6331_v48 = vmul.f32 -1.442695, %v2604_v15  ;;  %v10515_v16 = vmul.f32 %v8355_v25, %v10405_v26  ;;  %v2652_v29 = vmul.f32 %v8357_v31, %v10429_v34  ;;  %v8358_v15 = vld [vmem:[%s8707_s16 + $0x88] sm:$0xff]  ;;  %v8360_v26 = vld [vmem:[%s8707_s16 + $0x98] sm:$0xff]  ;;  %v2656_v50 = vmul.f32 %v8361_v39, %v10448_v60  ;;  %v8365_v60 = vld [vmem:[%s8707_s16 + $0xc0] sm:$0xff] }
 0x29a   : > { %v2117_v23 = vadd.f32 %v10052_v55, %v1892_v58  ;;  %8337 = vpow2.f32 %v6332_v36  ;;  %v8348_v55 = vld [vmem:[%s8707_s16 + $0x18] sm:$0xff]  ;;  %v2653_v47 = vmul.f32 %v8358_v15, %v10433_v57  ;;  %v8359_v58 = vld [vmem:[%s8707_s16 + $0x90] sm:$0xff]  ;;  %v2655_v36 = vmul.f32 %v8360_v26, %v10444_v40 }
 0x29b   : > { %v1896_v54 = vpop.f32.mrb[52].mxu0  ;;  %v10486_v62 = vmul.f32 %v8348_v55, %v10377_v20  ;;  %8339 = vpow2.f32 %v6331_v48  ;;  %v10499_v20 = vmul.f32 %v8351_v30, %v10389_v18  ;;  %v8356_v18 = vld [vmem:[%s8707_s16 + $0x58] sm:$0xff]  ;;  %v2654_v2 = vmul.f32 %v8359_v58, %v10437_v28  ;;  %v8366_v30 = vld [vmem:[%s8707_s16 + $0xc8] sm:$0xff]  ;;  %v8367_v31 = vld [vmem:[%s8707_s16 + $0xd0] sm:$0xff] }
 0x29c   : > { %v1897_v51 = vadd.f32 %v10361_v6, %v1896_v54  ;;  %v1898_v17 = vpop.f32.mrb[53].mxu0  ;;  %v10519_v22 = vmul.f32 %v8356_v18, %v10409_v46  ;;  %v10536_v57 = vmul.f32 %v8363_v35, %v10456_v13  ;;  %v2661_v43 = vmul.f32 %v8366_v30, %v2117_v23 }
 0x29d   : > { %v2660_v17 = vmul.f32 %v8365_v60, %v10464_v9 }
 0x29e   : > { %v2122_v37 = vadd.f32 %v10075_v63, %v1897_v51  ;;  %v8362_v63 = vld [vmem:[%s8707_s16 + $0xa8] sm:$0xff]  ;;  %v10542_v51 = vmul.f32 %v8364_v11, %v10460_v56 }
 0x29f   : > { %v1901_v48 = vpop.f32.mrb[54].mxu0  ;;  %v2657_v34 = vmul.f32 %v8362_v63, %v10452_v27 }
 0x2a0   : > { %v8334_v46 = vpop.eup %8333  ;;  %v1902_v54 = vadd.f32 %v10361_v6, %v1901_v48  ;;  %v1903_v28 = vpop.f32.mrb[55].mxu0  ;;  %v10552_v56 = vmul.f32 %v8367_v31, %v2122_v37  ;;  %v8368_v48 = vld [vmem:[%s8707_s16 + $0xd8] sm:$0xff] }
 0x2a1   : > { %v8336_v55 = vpop.eup %8335  ;;  %v2726_v40 = vrot.slane %v8334_v46, %v10467_v14  ;;  %v2719_v27 = vcombine.high %v8334_v46, %v8334_v46 }
 0x2a2   : > { %v2670_v45 = vcombine.high %v8336_v55, %v8336_v55  ;;  %v2677_v13 = vrot.slane %v8336_v55, %v10467_v14  ;;  %v2127_v4 = vadd.f32 %v10068_v19, %v1902_v54 }
 0x2a3   : > { %v2734_v52 = vcombine.high %v2726_v40, %v2726_v40  ;;  %v2742_v25 = vrot.slane %v2726_v40, %v10467_v14  ;;  %v2733_v18 = vrot.slane %v2719_v27, %v10467_v14  ;;  %v1906_v15 = vpop.f32.mrb[56].mxu0 }
 0x2a4   : > { %v2684_v9 = vrot.slane %v2670_v45, %v10467_v14  ;;  %v2685_v58 = vcombine.high %v2677_v13, %v2677_v13  ;;  %v10556_v26 = vrot.slane %v2677_v13, %v10467_v14  ;;  %v10559_v46 = vmul.f32 %v8368_v48, %v2127_v4  ;;  %v1908_v23 = vpop.f32.mrb[57].mxu0  ;;  %v8338_v19 = vpop.eup %8337 }
 0x2a5   : > { %v2756_v39 = vrot.slane %v2734_v52, %v10467_v14  ;;  %v2764_v63 = vcombine.high %v2742_v25, %v2742_v25  ;;  %v2803_v35 = vrot.slane %v2742_v25, %v10469_v24  ;;  %v2749_v37 = vrot.slane %v2733_v18, %v10467_v14  ;;  %v8340_v54 = vpop.eup %8339 }
 0x2a6   : > { %v2686_v28 = vcombine.high %v2684_v9, %v2684_v9  ;;  %v10565_v55 = vrot.slane %v2684_v9, %v10467_v14  ;;  %v10568_v40 = vrot.slane %v2685_v58, %v10467_v14  ;;  %v2627_v27 = vadd.f32 1.0, %v8338_v19  ;;  %v2952_v19 = vld [vmem:[%s13593_s7 + $0x100] sm:$0xff] }
 0x2a7   : > { %v2807_v60 = vrot.slane %v2756_v39, %v10469_v24  ;;  %v2626_v45 = vadd.f32 1.0, %v8340_v54  ;;  %v2811_v13 = vrot.slane %v2764_v63, %v10469_v24  ;;  %v1911_v30 = vpop.f32.mrb[58].mxu0  ;;  %v10581_v31 = vmul.f32 %v2803_v35, %v2652_v29  ;;  %v2953_v63 = vld [vmem:[%s13593_s7 + $0x108] sm:$0xff] }
 0x2a8   : > { %v10575_v4 = vrot.slane %v2686_v28, %v10467_v14  ;;  %v2717_v25 = vcombine.high %v10568_v40, %v10568_v40  ;;  %v1913_v9 = vpop.f32.mrb[59].mxu0  ;;  %8341 = vrcp.f32 %v2627_v27  ;;  %v10587_v23 = vmul.f32 %v2803_v35, %v2653_v47 }
 0x2a9   : > { %v10583_v58 = vmul.f32 %v2807_v60, %v2654_v2  ;;  %v10585_v48 = vmul.f32 %v2807_v60, %v2655_v36  ;;  %8343 = vrcp.f32 %v2626_v45  ;;  %v10595_v54 = vmul.f32 %v2811_v13, %v2656_v50 }
 0x2aa   : > { %v10597_v29 = vmul.f32 %v2811_v13, %v2657_v34  ;;  %v2766_v2 = vcombine.high %v2756_v39, %v2756_v39  ;;  %v2819_v36 = vrot.slane %v2749_v37, %v10469_v24  ;;  %v2735_v28 = vcombine.high %v2733_v18, %v2733_v18 }
 0x2ab   : > { %v1907_v47 = vadd.f32 %v10361_v6, %v1906_v15  ;;  %v2765_v35 = vcombine.high %v2749_v37, %v2749_v37  ;;  %v1916_v60 = vpop.f32.mrb[60].mxu0  ;;  %v1912_v9 = vadd.f32 %v10361_v6, %v1911_v30  ;;  %v6737_v50 = vpack.c.bf16 %v2953_v63, %v2952_v19  ;;  %v2954_v15 = vld [vmem:[%s13593_s7 + $0x110] sm:$0xff]  ;;  %v2955_v37 = vld [vmem:[%s13593_s7 + $0x118] sm:$0xff]  ;;  %v8369_v30 = vld [vmem:[%s8707_s16 + $0xe0] sm:$0xff] }
 0x2ac   : > { %v2815_v27 = vrot.slane %v2766_v2, %v10469_v24  ;;  %v1917_v52 = vadd.f32 %v10361_v6, %v1916_v60  ;;  %v1918_v45 = vpop.f32.mrb[61].mxu0  ;;  %v10604_v11 = vmul.f32 %v2819_v36, %v2660_v17  ;;  %v10606_v34 = vmul.f32 %v2819_v36, %v2661_v43 }
 0x2ad   : > { %v2763_v39 = vrot.slane %v2735_v28, %v10467_v14  ;;  %v2132_v18 = vadd.f32 %v10093_v10, %v1907_v47  ;;  %v2827_v43 = vrot.slane %v2765_v35, %v10469_v24  ;;  %v2137_v14 = vadd.f32 %v10086_v5, %v1912_v9  ;;  %6738 = vmatprep.subr.bf16.mxu0 %v6737_v50 }
 0x2ae   : > { %v10617_v13 = vmul.f32 %v2815_v27, %v10536_v57  ;;  %v10620_v17 = vmul.f32 %v2815_v27, %v10542_v51  ;;  %v2142_v63 = vadd.f32 %v10109_v44, %v1917_v52  ;;  %6740 = vmatpush3.bf16.msra.mxu0 %v6737_v50  ;;  %v8370_v57 = vld [vmem:[%s8707_s16 + $0xe8] sm:$0xff]  ;;  %v6741_v60 = vpack.c.bf16 %v2955_v37, %v2954_v15  ;;  %v8371_v44 = vld [vmem:[%s8707_s16 + $0xf0] sm:$0xff] }
 0x2af   : > { %v2823_v10 = vrot.slane %v2763_v39, %v10469_v24  ;;  %v2664_v19 = vmul.f32 %v8369_v30, %v2132_v18  ;;  %v2767_v2 = vcombine.high %v2763_v39, %v2763_v39  ;;  %v1921_v36 = vpop.f32.mrb[62].mxu0  ;;  %v2665_v28 = vmul.f32 %v8370_v57, %v2137_v14 }
 0x2b0   : > { %v1922_v51 = vadd.f32 %v10361_v6, %v1921_v36  ;;  %v1923_v47 = vpop.f32.mrb[63].mxu0  ;;  %v2775_v5 = vrot.slane %v10568_v40, %v10469_v24  ;;  %v2666_v52 = vmul.f32 %v8371_v44, %v2142_v63  ;;  %6742 = vmatprep.subr.bf16.mxu0 %v6741_v60  ;;  %v2771_v15 = vrot.slane %v10556_v26, %v10469_v24 }
 0x2b1   : > { %v10632_v35 = vmul.f32 %v2823_v10, %v10552_v56  ;;  %v10635_v27 = vmul.f32 %v2823_v10, %v10559_v46  ;;  %v10637_v9 = vmul.f32 %v2827_v43, %v2664_v19  ;;  %v10640_v45 = vmul.f32 %v2827_v43, %v2665_v28 }
 0x2b2   : > { %v2831_v6 = vrot.slane %v2767_v2, %v10469_v24  ;;  %v2147_v50 = vadd.f32 %v10102_v38, %v1922_v51  ;;  %v2850_v40 = vmul.f32 %v2775_v5, %v10482_v1  ;;  %v8342_v39 = vpop.eup %8341  ;;  %6744 = vmatpush3.bf16.msra.mxu0 %v6741_v60  ;;  %v2851_v56 = vmul.f32 %v2775_v5, %v10486_v62  ;;  %v8372_v1 = vld [vmem:[%s8707_s16 + $0xf8] sm:$0xff]  ;;  %v8374_v51 = vld [vmem:[%s8707_s16 + $0x68] sm:$0xff]  ;;  %v8375_v60 = vld [vmem:[%s8707_s16 + $0x70] sm:$0xff] }
 0x2b3   : > { %v14315_v46 = vcombine.high %v10556_v26, %v10556_v26  ;;  %v2783_v37 = vrot.slane %v2717_v25, %v10469_v24  ;;  %v8344_v43 = vpop.eup %8343  ;;  %2884 = vrot.lane.b32.xlu0 %v8342_v39, %s8512_s28  ;;  %v2787_v62 = vrot.slane %v10565_v55, %v10469_v24  ;;  %v2791_v10 = vrot.slane %v10575_v4, %v10469_v24  ;;  %v8376_v5 = vld [vmem:[%s8707_s16 + $0x78] sm:$0xff] }
 0x2b4   : > { %v10654_v38 = vmul.f32 %v2831_v6, %v2666_v52  ;;  %v2667_v14 = vmul.f32 %v8372_v1, %v2147_v50  ;;  %2882 = vrot.lane.b32.xlu1 %v8344_v43, %s8512_s28  ;;  %v2848_v30 = vmul.f32 %v2771_v15, %v10474_v49  ;;  %v2849_v19 = vmul.f32 %v2771_v15, %v10478_v59 }
 0x2b5   : > { %v2779_v18 = vrot.slane %v14315_v46, %v10469_v24  ;;  %v2854_v2 = vmul.f32 %v2783_v37, %v10499_v20  ;;  %v2855_v36 = vmul.f32 %v2783_v37, %v10503_v32  ;;  %v10671_v57 = vmul.f32 %v2787_v62, %v10507_v33  ;;  %v8373_v20 = vld [vmem:[%s8707_s16 + $0x60] sm:$0xff]  ;;  %s6405_s16 = sshll.u32 %s8603_s21, 12 }
 0x2b6   : > { %v10666_v63 = vmul.f32 %v2831_v6, %v2667_v14  ;;  %v14316_v28 = vmov 0.0|0.0   ;;  %v10678_v49 = vmul.f32 %v2791_v10, %v10515_v16  ;;  %v10681_v59 = vmul.f32 %v2791_v10, %v10519_v22  ;;  %s13534_s14 = scalar_lea.hbm %s13597_s11, %s6405_s16 }
 0x2b7   : > { %v2852_v26 = vmul.f32 %v2779_v18, %v10490_v0  ;;  %v2853_v25 = vmul.f32 %v2779_v18, %v10495_v61  ;;  %6745 = vmatprep.subr.bf16.mxu0 %v14316_v28  ;;  %v10675_v0 = vmul.f32 %v2787_v62, %v10511_v12  ;;  %v2718_v61 = vcombine.high %v10575_v4, %v10575_v4 }
 0x2b8   : > { %v2648_v32 = vmul.f32 %v8373_v20, %v10413_v3  ;;  %v2649_v33 = vmul.f32 %v8374_v51, %v10417_v8  ;;  %v14317_v12 = vcombine.high %v10565_v55, %v10565_v55  ;;  %v2650_v16 = vmul.f32 %v8375_v60, %v10421_v41 }
 0x2b9   : > { %v2651_v22 = vmul.f32 %v8376_v5, %v10425_v7  ;;  %v2799_v44 = vrot.slane %v2718_v61, %v10469_v24 }
 0x2ba   : > { %v2795_v47 = vrot.slane %v14317_v12, %v10469_v24 }
 0x2bb   : > { %v10702_v3 = vmul.f32 %v2799_v44, %v2650_v16  ;;  %v10704_v8 = vmul.f32 %v2799_v44, %v2651_v22 }
 0x2bc   : > { %v10698_v4 = vmul.f32 %v2795_v47, %v2648_v32  ;;  %v10700_v52 = vmul.f32 %v2795_v47, %v2649_v33 }
 0x325   : > { %v10706_v6 = vpop.permute.xlu0 %2884 }
 0x326   : > { %v10708_v55 = vpop.permute.xlu1 %2882  ;;  %v2891_v50 = vmul.f32 %v10706_v6, %v2851_v56  ;;  %v2893_v41 = vmul.f32 %v10706_v6, %v2853_v25  ;;  %v2889_v7 = vmul.f32 %v10706_v6, %v2849_v19  ;;  %v2895_v24 = vmul.f32 %v10706_v6, %v2855_v36 }
 0x327   : > { %v2890_v39 = vmul.f32 %v10708_v55, %v2850_v40  ;;  %v2892_v46 = vmul.f32 %v10708_v55, %v2852_v26  ;;  %v2888_v18 = vmul.f32 %v10708_v55, %v2848_v30  ;;  %v2894_v15 = vmul.f32 %v10708_v55, %v2854_v2 }
 0x328   : > { %v2993_v37 = vrot.slane %v2891_v50, 7  ;;  %v2996_v43 = vrot.slane %v2893_v41, 7  ;;  %v2990_v1 = vrot.slane %v2889_v7, 7  ;;  %v2999_v10 = vrot.slane %v2895_v24, 7 }
 0x329   : > { %v2992_v14 = vrot.slane %v2890_v39, 7  ;;  %v2995_v62 = vrot.slane %v2892_v46, 7  ;;  %v2989_v56 = vrot.slane %v2888_v18, 7  ;;  %v2998_v36 = vrot.slane %v2894_v15, 7 }
 0x32a   : > { %v3101_v25 = vsel %vm516_vm0, %v2993_v37, 0.0  ;;  %v10720_v19 = vsel %vm516_vm0, %v2990_v1, 0.0  ;;  %v3102_v40 = vsel %vm516_vm0, %v2996_v43, 0.0 }
 0x32b   : > { %v10724_v26 = vsel %vm516_vm0, %v2992_v14, %v2993_v37  ;;  %v10727_v30 = vsel %vm516_vm0, 0.0, %v2992_v14  ;;  %v3319_v2 = vrot.slane %v3101_v25, 2  ;;  %v10730_v61 = vsel %vm516_vm0, %v2995_v62, %v2996_v43 }
 0x32c   : > { %v3316_v20 = vrot.slane %v10727_v30, 2  ;;  %v3317_v32 = vrot.slane %v10724_v26, 2  ;;  %v10735_v51 = vsel %vm516_vm0, 0.0, %v2995_v62  ;;  %v3322_v33 = vrot.slane %v10730_v61, 2 }
 0x32d   : > { %v3321_v12 = vrot.slane %v10735_v51, 2  ;;  %v3151_v47 = vrot.slane %v10727_v30, 1  ;;  %v3152_v60 = vrot.slane %v10724_v26, 1  ;;  %v3154_v16 = vrot.slane %v3101_v25, 1 }
 0x32e   : > { %v3318_v5 = vsel %vm846_vm3, %v3316_v20, %v3317_v32  ;;  %v3320_v22 = vsel %vm846_vm3, %v3317_v32, %v3319_v2  ;;  %v10744_v44 = vsel %vm516_vm0, %v2989_v56, %v2990_v1  ;;  %v10747_v50 = vsel %vm516_vm0, 0.0, %v2989_v56 }
 0x32f   : > { %v10749_v41 = vpack.i.bf16 %v3320_v22, %v3318_v5  ;;  %6577 = vmatprep.mubr.msk.f32.mxu0 %vm1439_vm2, %v3318_v5  ;;  %v3323_v7 = vsel %vm846_vm3, %v3321_v12, %v3322_v33  ;;  %v10754_v24 = vsel %vm675_vm1, %v3151_v47, %v3152_v60  ;;  %v10758_v39 = vsel %vm675_vm1, %v3152_v60, %v3154_v16 }
 0x330   : > { %6578 = vmatmul.mubr.msk.f32.vlgmr.msra.gmra.mrb[64].mxu0 %vm1439_vm2, %v3320_v22  ;;  %v3146_v46 = vrot.slane %v10747_v50, 1  ;;  %v3147_v18 = vrot.slane %v10744_v44, 1  ;;  %v3149_v15 = vrot.slane %v10720_v19, 1  ;;  %v7334_v37 = vpack.i.bf16 %v10758_v39, %v10754_v24 }
 0x331   : > { %6580 = vmatprep.mubr.msk.f32.mxu0 %vm1439_vm2, %v3323_v7  ;;  %v3159_v43 = vrot.slane %v3102_v40, 1  ;;  %v3324_v1 = vrot.slane %v3102_v40, 2  ;;  %v3103_v14 = vsel %vm516_vm0, %v2999_v10, 0.0  ;;  %v10774_v25 = vsel %vm516_vm0, %v2998_v36, %v2999_v10 }
 0x332   : > { %v10768_v62 = vsel %vm675_vm1, %v3146_v46, %v3147_v18  ;;  %v10771_v56 = vsel %vm675_vm1, %v3147_v18, %v3149_v15  ;;  %v10777_v2 = vsel %vm516_vm0, 0.0, %v2998_v36  ;;  %7335 = vrot.lane.b32.xlu0 %v7334_v37, %s8510_s25  ;;  %v3327_v12 = vrot.slane %v10774_v25, 2 }
 0x333   : > { %14318 = vst [vmem:[#allocation105_spill] sm:$0xff] %v10768_v62  ;;  %14319 = vst [vmem:[#allocation40_spill] sm:$0xff] %v10771_v56  ;;  %v7329_v20 = vpack.i.bf16 %v10771_v56, %v10768_v62  ;;  %v3325_v40 = vsel %vm846_vm3, %v3322_v33, %v3324_v1  ;;  %v3326_v32 = vrot.slane %v10777_v2, 2  ;;  %v3161_v10 = vrot.slane %v10777_v2, 1 }
 0x334   : > { %v10785_v47 = vpack.i.bf16 %v3325_v40, %v3323_v7  ;;  %6581 = vmatmul.mubr.msk.f32.gmra.mrb[66].mxu0 %vm1439_vm2, %v3325_v40  ;;  %v3162_v36 = vrot.slane %v10774_v25, 1  ;;  %v3164_v16 = vrot.slane %v3103_v14, 1  ;;  %v3156_v5 = vrot.slane %v10735_v51, 1 }
 0x335   : > { %7330 = vrot.lane.b32.xlu1 %v7329_v20, %s8510_s25  ;;  %v3328_v60 = vsel %vm846_vm3, %v3326_v32, %v3327_v12  ;;  %v3157_v33 = vrot.slane %v10730_v61, 1  ;;  %v3329_v7 = vrot.slane %v3103_v14, 2  ;;  %v2896_v46 = vmul.f32 %v10708_v55, %v10671_v57 }
 0x336   : > { %6583 = vmatprep.mubr.msk.f32.mxu0 %vm1439_vm2, %v3328_v60  ;;  %v10796_v22 = vsel %vm675_vm1, %v3161_v10, %v3162_v36  ;;  %v2897_v18 = vmul.f32 %v10706_v6, %v10675_v0  ;;  %v10803_v15 = vsel %vm675_vm1, %v3162_v36, %v3164_v16  ;;  %v2898_v20 = vmul.f32 %v10708_v55, %v10678_v49 }
 0x337   : > { %v10806_v37 = vsel %vm675_vm1, %v3156_v5, %v3157_v33  ;;  %v10809_v1 = vsel %vm675_vm1, %v3157_v33, %v3159_v43  ;;  %v7344_v14 = vpack.i.bf16 %v10803_v15, %v10796_v22  ;;  %v3330_v0 = vsel %vm846_vm3, %v3327_v12, %v3329_v7 }
 0x338   : > { %v7339_v57 = vpack.i.bf16 %v10809_v1, %v10806_v37  ;;  %v3001_v40 = vrot.slane %v2896_v46, 7  ;;  %v10818_v32 = vpack.i.bf16 %v3330_v0, %v3328_v60  ;;  %6584 = vmatmul.mubr.msk.f32.gmra.mrb[68].mxu0 %vm1439_vm2, %v3330_v0  ;;  %v3002_v10 = vrot.slane %v2897_v18, 7 }
 0x339   : > { %v2899_v43 = vmul.f32 %v10706_v6, %v10681_v59  ;;  %7345 = vrot.lane.b32.xlu0 %v7344_v14, %s8510_s25  ;;  %v3004_v36 = vrot.slane %v2898_v20, 7  ;;  %v2902_v12 = vmul.f32 %v10708_v55, %v10702_v3  ;;  %v2903_v60 = vmul.f32 %v10706_v6, %v10704_v8 }
 0x33a   : > { %7340 = vrot.lane.b32.xlu1 %v7339_v57, %s8510_s25  ;;  %v10826_v49 = vsel %vm516_vm0, 0.0, %v3001_v40  ;;  %v10833_v16 = vsel %vm516_vm0, %v3001_v40, %v3002_v10  ;;  %v3104_v33 = vsel %vm516_vm0, %v3002_v10, 0.0 }
 0x33b   : > { %14320 = vst [vmem:[#allocation45_spill] sm:$0xff] %v10826_v49  ;;  %14321 = vst [vmem:[#allocation106_spill] sm:$0xff] %v10833_v16  ;;  %v3331_v5 = vrot.slane %v10826_v49, 2  ;;  %v3005_v59 = vrot.slane %v2899_v43, 7  ;;  %v3332_v7 = vrot.slane %v10833_v16, 2  ;;  %v10839_v46 = vsel %vm516_vm0, 0.0, %v3004_v36 }
 0x33c   : > { %14322 = vst [vmem:[#allocation46_spill] sm:$0xff] %v10839_v46  ;;  %v3166_v18 = vrot.slane %v10826_v49, 1  ;;  %v3167_v3 = vrot.slane %v10833_v16, 1  ;;  %v3171_v14 = vrot.slane %v10839_v46, 1  ;;  %v3169_v57 = vrot.slane %v3104_v33, 1 }
 0x33d   : > { %v10844_v20 = vsel %vm516_vm0, %v3004_v36, %v3005_v59  ;;  %v3105_v8 = vsel %vm516_vm0, %v3005_v59, 0.0  ;;  %v3333_v0 = vsel %vm846_vm3, %v3331_v5, %v3332_v7  ;;  %v3334_v36 = vrot.slane %v3104_v33, 2 }
 0x33e   : > { %14323 = vst [vmem:[#allocation52_spill] sm:$0xff] %v10844_v20  ;;  %v3172_v40 = vrot.slane %v10844_v20, 1  ;;  %v3174_v10 = vrot.slane %v3105_v8, 1  ;;  %v10851_v43 = vsel %vm675_vm1, %v3166_v18, %v3167_v3  ;;  %6586 = vmatprep.mubr.msk.f32.mxu0 %vm1439_vm2, %v3333_v0  ;;  %v10855_v53 = vsel %vm675_vm1, %v3167_v3, %v3169_v57 }
 0x33f   : > { %14324 = vst [vmem:[#allocation107_spill] sm:$0xff] %v10855_v53  ;;  %v3336_v42 = vrot.slane %v10839_v46, 2  ;;  %v3337_v59 = vrot.slane %v10844_v20, 2  ;;  %v7349_v18 = vpack.i.bf16 %v10855_v53, %v10851_v43  ;;  %v3010_v21 = vrot.slane %v2902_v12, 7 }
 0x340   : > { %v10860_v56 = vsel %vm675_vm1, %v3171_v14, %v3172_v40  ;;  %v10863_v5 = vsel %vm675_vm1, %v3172_v40, %v3174_v10  ;;  %v3335_v3 = vsel %vm846_vm3, %v3332_v7, %v3334_v36  ;;  %v3011_v33 = vrot.slane %v2903_v60, 7 }
 0x341   : > { %14325 = vst [vmem:[#allocation53_spill] sm:$0xff] %v10860_v56  ;;  %14326 = vst [vmem:[#allocation57_spill] sm:$0xff] %v10863_v5  ;;  %v7354_v62 = vpack.i.bf16 %v10863_v5, %v10860_v56  ;;  %7350 = vrot.lane.b32.xlu1 %v7349_v18, %s8510_s25  ;;  %v10871_v57 = vpack.i.bf16 %v3335_v3, %v3333_v0  ;;  %6587 = vmatmul.mubr.msk.f32.gmra.mrb[70].mxu0 %vm1439_vm2, %v3335_v3  ;;  %v10876_v40 = vsel %vm516_vm0, 0.0, %v3010_v21 }
 0x342   : > { %v3338_v14 = vsel %vm846_vm3, %v3336_v42, %v3337_v59  ;;  %14327 = vst [vmem:[#allocation108_spill] sm:$0xff] %v10876_v40  ;;  %v2900_v12 = vmul.f32 %v10708_v55, %v10698_v4  ;;  %v10883_v60 = vsel %vm516_vm0, %v3010_v21, %v3011_v33  ;;  %v10886_v7 = vsel %vm516_vm0, %v3011_v33, 0.0 }
 0x343   : > { %7355 = vrot.lane.b32.xlu0 %v7354_v62, %s8510_s25  ;;  %6589 = vmatprep.mubr.msk.f32.mxu0 %vm1439_vm2, %v3338_v14  ;;  %14328 = vst [vmem:[#allocation109_spill] sm:$0xff] %v10883_v60  ;;  %v3181_v0 = vrot.slane %v10876_v40, 1  ;;  %v2901_v42 = vmul.f32 %v10706_v6, %v10700_v52  ;;  %v3182_v10 = vrot.slane %v10883_v60, 1  ;;  %v3184_v36 = vrot.slane %v10886_v7, 1 }
 0x344   : > { %v3007_v4 = vrot.slane %v2900_v12, 7  ;;  %v3339_v18 = vrot.slane %v3105_v8, 2  ;;  %v2906_v3 = vmul.f32 %v10708_v55, %v10583_v58  ;;  %v2907_v21 = vmul.f32 %v10706_v6, %v10585_v48 }
 0x345   : > { %v3008_v62 = vrot.slane %v2901_v42, 7  ;;  %v2904_v33 = vmul.f32 %v10708_v55, %v10581_v31  ;;  %v10900_v5 = vsel %vm675_vm1, %v3181_v0, %v3182_v10  ;;  %v10903_v52 = vsel %vm675_vm1, %v3182_v10, %v3184_v36 }
 0x346   : > { %14329 = vst [vmem:[#allocation110_spill] sm:$0xff] %v10900_v5  ;;  %14330 = vst [vmem:[#allocation111_spill] sm:$0xff] %v10903_v52  ;;  %v10906_v56 = vsel %vm516_vm0, 0.0, %v3007_v4  ;;  %v3340_v8 = vsel %vm846_vm3, %v3337_v59, %v3339_v18  ;;  %v7364_v58 = vpack.i.bf16 %v10903_v52, %v10900_v5  ;;  %v3016_v18 = vrot.slane %v2906_v3, 7 }
 0x347   : > { %14331 = vst [vmem:[#allocation112_spill] sm:$0xff] %v10906_v56  ;;  %v10912_v12 = vsel %vm516_vm0, %v3007_v4, %v3008_v62  ;;  %v3106_v48 = vsel %vm516_vm0, %v3008_v62, 0.0  ;;  %v3176_v31 = vrot.slane %v10906_v56, 1  ;;  %6590 = vmatmul.mubr.msk.f32.gmra.mrb[72].mxu0 %vm1439_vm2, %v3340_v8  ;;  %v10918_v10 = vpack.i.bf16 %v3340_v8, %v3338_v14 }
 0x348   : > { %14332 = vst [vmem:[#allocation113_spill] sm:$0xff] %v10912_v12  ;;  %v3177_v0 = vrot.slane %v10912_v12, 1  ;;  %v3179_v42 = vrot.slane %v3106_v48, 1  ;;  %7365 = vrot.lane.b32.xlu0 %v7364_v58, %s8510_s25  ;;  %v3341_v59 = vrot.slane %v10906_v56, 2  ;;  %v3342_v36 = vrot.slane %v10912_v12, 2 }
 0x349   : > { %v3017_v4 = vrot.slane %v2907_v21, 7  ;;  %v2905_v5 = vmul.f32 %v10706_v6, %v10587_v23  ;;  %v3013_v53 = vrot.slane %v2904_v33, 7  ;;  %v10938_v3 = vsel %vm516_vm0, 0.0, %v3016_v18 }
 0x34a   : > { %v10924_v52 = vsel %vm675_vm1, %v3176_v31, %v3177_v0  ;;  %v10927_v62 = vsel %vm675_vm1, %v3177_v0, %v3179_v42  ;;  %v3343_v8 = vsel %vm846_vm3, %v3341_v59, %v3342_v36  ;;  %14336 = vst [vmem:[#allocation115_spill] sm:$0xff] %v10938_v3  ;;  %v3191_v31 = vrot.slane %v10938_v3, 1 }
 0x34b   : > { %14333 = vst [vmem:[#allocation114_spill] sm:$0xff] %v10924_v52  ;;  %14334 = vst [vmem:[#allocation116_spill] sm:$0xff] %v10927_v62  ;;  %v7359_v14 = vpack.i.bf16 %v10927_v62, %v10924_v52  ;;  %v10935_v58 = vsel %vm516_vm0, %v3016_v18, %v3017_v4  ;;  %6592 = vmatprep.mubr.msk.f32.mxu0 %vm1439_vm2, %v3343_v8  ;;  %v10942_v21 = vsel %vm516_vm0, %v3017_v4, 0.0  ;;  %v3014_v33 = vrot.slane %v2905_v5, 7 }
 0x34c   : > { %14335 = vst [vmem:[#allocation117_spill] sm:$0xff] %v10935_v58  ;;  %v3192_v23 = vrot.slane %v10935_v58, 1  ;;  %v3194_v0 = vrot.slane %v10942_v21, 1  ;;  %v10949_v42 = vsel %vm516_vm0, 0.0, %v3013_v53  ;;  %v3344_v59 = vrot.slane %v3106_v48, 2 }
 0x34d   : > { %7360 = vrot.lane.b32.xlu1 %v7359_v14, %s8510_s25  ;;  %14337 = vst [vmem:[#allocation121_spill] sm:$0xff] %v10949_v42  ;;  %v3346_v18 = vrot.slane %v10876_v40, 2  ;;  %v10956_v4 = vsel %vm516_vm0, %v3013_v53, %v3014_v33  ;;  %v10959_v52 = vsel %vm516_vm0, %v3014_v33, 0.0  ;;  %v3186_v5 = vrot.slane %v10949_v42, 1 }
 0x34e   : > { %v10953_v62 = vsel %vm675_vm1, %v3191_v31, %v3192_v23  ;;  %14339 = vst [vmem:[#allocation21_spill] sm:$0xff] %v10956_v4  ;;  %v10963_v14 = vsel %vm675_vm1, %v3192_v23, %v3194_v0  ;;  %v3187_v12 = vrot.slane %v10956_v4, 1  ;;  %v3189_v48 = vrot.slane %v10959_v52, 1 }
 0x34f   : > { %14338 = vst [vmem:[#allocation122_spill] sm:$0xff] %v10953_v62  ;;  %14340 = vst [vmem:[#allocation28_spill] sm:$0xff] %v10963_v14  ;;  %v3345_v40 = vsel %vm846_vm3, %v3342_v36, %v3344_v59  ;;  %v7374_v31 = vpack.i.bf16 %v10963_v14, %v10953_v62  ;;  %v3347_v53 = vrot.slane %v10883_v60, 2  ;;  %v2910_v0 = vmul.f32 %v10708_v55, %v10617_v13 }
 0x350   : > { %v10970_v56 = vpack.i.bf16 %v3345_v40, %v3343_v8  ;;  %6593 = vmatmul.mubr.msk.f32.gmra.mrb[74].mxu0 %vm1439_vm2, %v3345_v40  ;;  %v10975_v33 = vsel %vm675_vm1, %v3186_v5, %v3187_v12  ;;  %v10978_v23 = vsel %vm675_vm1, %v3187_v12, %v3189_v48  ;;  %v2911_v36 = vmul.f32 %v10706_v6, %v10620_v17 }
 0x351   : > { %14341 = vst [vmem:[#allocation19_spill] sm:$0xff] %v10975_v33  ;;  %14342 = vst [vmem:[#allocation18_spill] sm:$0xff] %v10978_v23  ;;  %7375 = vrot.lane.b32.xlu0 %v7374_v31, %s8510_s25  ;;  %v7369_v8 = vpack.i.bf16 %v10978_v23, %v10975_v33  ;;  %v3348_v40 = vsel %vm846_vm3, %v3346_v18, %v3347_v53  ;;  %v2908_v59 = vmul.f32 %v10708_v55, %v10595_v54 }
 0x352   : > { %v2909_v12 = vmul.f32 %v10706_v6, %v10597_v29  ;;  %6595 = vmatprep.mubr.msk.f32.mxu0 %vm1439_vm2, %v3348_v40  ;;  %v3022_v5 = vrot.slane %v2910_v0, 7  ;;  %v3023_v13 = vrot.slane %v2911_v36, 7  ;;  %v3349_v48 = vrot.slane %v10886_v7, 2 }
 0x353   : > { %v3351_v17 = vrot.slane %v10949_v42, 2  ;;  %7370 = vrot.lane.b32.xlu1 %v7369_v8, %s8510_s25  ;;  %v3019_v31 = vrot.slane %v2908_v59, 7  ;;  %v3352_v18 = vrot.slane %v10956_v4, 2  ;;  %v2914_v54 = vmul.f32 %v10708_v55, %v10632_v35 }
 0x354   : > { %v3020_v14 = vrot.slane %v2909_v12, 7  ;;  %v11000_v62 = vsel %vm516_vm0, %v3022_v5, %v3023_v13  ;;  %v11003_v29 = vsel %vm516_vm0, 0.0, %v3022_v5  ;;  %v11006_v0 = vsel %vm516_vm0, %v3023_v13, 0.0 }
 0x355   : > { %14343 = vst [vmem:[#allocation86_spill] sm:$0xff] %v11000_v62  ;;  %14344 = vst [vmem:[#allocation59_spill] sm:$0xff] %v11003_v29  ;;  %v3350_v7 = vsel %vm846_vm3, %v3347_v53, %v3349_v48  ;;  %v3201_v36 = vrot.slane %v11003_v29, 1  ;;  %v3202_v8 = vrot.slane %v11000_v62, 1  ;;  %v3204_v59 = vrot.slane %v11006_v0, 1 }
 0x356   : > { %v11013_v12 = vsel %vm516_vm0, %v3019_v31, %v3020_v14  ;;  %6596 = vmatmul.mubr.msk.f32.gmra.mrb[76].mxu0 %vm1439_vm2, %v3350_v7  ;;  %v11017_v35 = vsel %vm516_vm0, 0.0, %v3019_v31  ;;  %v11020_v5 = vsel %vm516_vm0, %v3020_v14, 0.0  ;;  %v11023_v53 = vpack.i.bf16 %v3350_v7, %v3348_v40 }
 0x357   : > { %14345 = vst [vmem:[#allocation43_spill] sm:$0xff] %v11013_v12  ;;  %14346 = vst [vmem:[#allocation60_spill] sm:$0xff] %v11017_v35  ;;  %v3197_v13 = vrot.slane %v11013_v12, 1  ;;  %v11026_v48 = vsel %vm675_vm1, %v3201_v36, %v3202_v8  ;;  %v11029_v23 = vsel %vm675_vm1, %v3202_v8, %v3204_v59  ;;  %v3196_v33 = vrot.slane %v11017_v35, 1 }
 0x358   : > { %14347 = vst [vmem:[#allocation42_spill] sm:$0xff] %v11026_v48  ;;  %14348 = vst [vmem:[#allocation47_spill] sm:$0xff] %v11029_v23  ;;  %v3199_v4 = vrot.slane %v11020_v5, 1  ;;  %v3314_v31 = vrot.slane %v10720_v19, 2  ;;  %v7384_v14 = vpack.i.bf16 %v11029_v23, %v11026_v48  ;;  %v3353_v42 = vsel %vm846_vm3, %v3351_v17, %v3352_v18 }
 0x359   : > { %v2915_v40 = vmul.f32 %v10706_v6, %v10635_v27  ;;  %v11040_v7 = vsel %vm675_vm1, %v3196_v33, %v3197_v13  ;;  %6598 = vmatprep.mubr.msk.f32.mxu0 %vm1439_vm2, %v3353_v42  ;;  %v3028_v8 = vrot.slane %v2914_v54, 7  ;;  %v2912_v19 = vmul.f32 %v10708_v55, %v10604_v11 }
 0x35a   : > { %14349 = vst [vmem:[#allocation64_spill] sm:$0xff] %v11040_v7  ;;  %v11043_v36 = vsel %vm675_vm1, %v3197_v13, %v3199_v4  ;;  %7385 = vrot.lane.b32.xlu0 %v7384_v14, %s8510_s25  ;;  %v2913_v27 = vmul.f32 %v10706_v6, %v10606_v34  ;;  %v3354_v33 = vrot.slane %v10959_v52, 2  ;;  %v3356_v54 = vrot.slane %v10938_v3, 2 }
 0x35b   : > { %14350 = vst [vmem:[#allocation93_spill] sm:$0xff] %v11043_v36  ;;  %v7379_v17 = vpack.i.bf16 %v11043_v36, %v11040_v7  ;;  %v3029_v59 = vrot.slane %v2915_v40, 7  ;;  %v11055_v4 = vsel %vm516_vm0, 0.0, %v3028_v8  ;;  %v3025_v13 = vrot.slane %v2912_v19, 7 }
 0x35c   : > { %14351 = vst [vmem:[#allocation61_spill] sm:$0xff] %v11055_v4  ;;  %v3357_v23 = vrot.slane %v10935_v58, 2  ;;  %v3211_v34 = vrot.slane %v11055_v4, 1  ;;  %v3026_v40 = vrot.slane %v2913_v27, 7  ;;  %v3355_v36 = vsel %vm846_vm3, %v3352_v18, %v3354_v33 }
 0x35d   : > { %7380 = vrot.lane.b32.xlu1 %v7379_v17, %s8510_s25  ;;  %v11061_v11 = vsel %vm516_vm0, %v3028_v8, %v3029_v59  ;;  %v11064_v14 = vsel %vm516_vm0, %v3029_v59, 0.0  ;;  %v11070_v19 = vsel %vm516_vm0, 0.0, %v3025_v13  ;;  %v11078_v7 = vpack.i.bf16 %v3355_v36, %v3353_v42  ;;  %6599 = vmatmul.mubr.msk.f32.gmra.mrb[78].mxu0 %vm1439_vm2, %v3355_v36 }
 0x35e   : > { %14352 = vst [vmem:[#allocation51_spill] sm:$0xff] %v11061_v11  ;;  %v3212_v52 = vrot.slane %v11061_v11, 1  ;;  %v3214_v48 = vrot.slane %v11064_v14, 1  ;;  %14353 = vst [vmem:[#allocation67_spill] sm:$0xff] %v11070_v19  ;;  %v11074_v17 = vsel %vm516_vm0, %v3025_v13, %v3026_v40  ;;  %v3112_v8 = vsel %vm516_vm0, %v3026_v40, 0.0 }
 0x35f   : > { %14354 = vst [vmem:[#allocation44_spill] sm:$0xff] %v11074_v17  ;;  %v3206_v59 = vrot.slane %v11070_v19, 1  ;;  %v3207_v3 = vrot.slane %v11074_v17, 1  ;;  %v3209_v18 = vrot.slane %v3112_v8, 1  ;;  %v3358_v13 = vsel %vm846_vm3, %v3356_v54, %v3357_v23 }
 0x360   : > { %v11082_v27 = vsel %vm675_vm1, %v3211_v34, %v3212_v52  ;;  %v11085_v58 = vsel %vm675_vm1, %v3212_v52, %v3214_v48  ;;  %v3311_v40 = vrot.slane %v10747_v50, 2  ;;  %6601 = vmatprep.mubr.msk.f32.mxu0 %vm1439_vm2, %v3358_v13  ;;  %v3312_v48 = vrot.slane %v10744_v44, 2 }
 0x361   : > { %14355 = vst [vmem:[#allocation54_spill] sm:$0xff] %v11082_v27  ;;  %14356 = vst [vmem:[#allocation72_spill] sm:$0xff] %v11085_v58  ;;  %v7394_v33 = vpack.i.bf16 %v11085_v58, %v11082_v27  ;;  %v11093_v42 = vsel %vm675_vm1, %v3206_v59, %v3207_v3  ;;  %v11096_v36 = vsel %vm675_vm1, %v3207_v3, %v3209_v18  ;;  %v3359_v59 = vrot.slane %v10942_v21, 2 }
 0x362   : > { %14357 = vst [vmem:[#allocation91_spill] sm:$0xff] %v11093_v42  ;;  %14358 = vst [vmem:[#allocation68_spill] sm:$0xff] %v11096_v36  ;;  %v2916_v34 = vmul.f32 %v10708_v55, %v10637_v9  ;;  %v7389_v54 = vpack.i.bf16 %v11096_v36, %v11093_v42  ;;  %v2917_v52 = vmul.f32 %v10706_v6, %v10640_v45  ;;  %v3361_v3 = vrot.slane %v11017_v35, 2 }
 0x363   : > { %7395 = vrot.lane.b32.xlu0 %v7394_v33, %s8510_s25  ;;  %v3313_v18 = vsel %vm846_vm3, %v3311_v40, %v3312_v48  ;;  %v3315_v58 = vsel %vm846_vm3, %v3312_v48, %v3314_v31  ;;  %v3362_v60 = vrot.slane %v11013_v12, 2  ;;  %v3360_v36 = vsel %vm846_vm3, %v3357_v23, %v3359_v59 }
 0x364   : > { %v3031_v27 = vrot.slane %v2916_v34, 7  ;;  %7390 = vrot.lane.b32.xlu1 %v7389_v54, %s8510_s25  ;;  %v11113_v9 = vpack.i.bf16 %v3315_v58, %v3313_v18  ;;  %v3032_v33 = vrot.slane %v2917_v52, 7  ;;  %v3364_v45 = vrot.slane %v11020_v5, 2  ;;  %6602 = vmatmul.mubr.msk.f32.gmra.mrb[80].mxu0 %vm1439_vm2, %v3360_v36 }
 0x365   : > { %v11120_v42 = vpack.i.bf16 %v3360_v36, %v3358_v13  ;;  %v3363_v31 = vsel %vm846_vm3, %v3361_v3, %v3362_v60  ;;  %v3366_v34 = vrot.slane %v11003_v29, 2  ;;  %v3367_v54 = vrot.slane %v11000_v62, 2 }
 0x366   : > { %v11118_v21 = vsel %vm516_vm0, 0.0, %v3031_v27  ;;  %v11127_v58 = vsel %vm516_vm0, %v3031_v27, %v3032_v33  ;;  %v3114_v40 = vsel %vm516_vm0, %v3032_v33, 0.0  ;;  %6604 = vmatprep.mubr.msk.f32.mxu0 %vm1439_vm2, %v3363_v31  ;;  %v3365_v5 = vsel %vm846_vm3, %v3362_v60, %v3364_v45 }
 0x367   : > { %14359 = vst [vmem:[#allocation55_spill] sm:$0xff] %v11118_v21  ;;  %7405 = vrot.lane.b32.xlu0 %v11113_v9, %s8511_s23  ;;  %14360 = vst [vmem:[#allocation71_spill] sm:$0xff] %v11127_v58  ;;  %v3216_v23 = vrot.slane %v11118_v21, 1  ;;  %v3217_v13 = vrot.slane %v11127_v58, 1  ;;  %v3219_v48 = vrot.slane %v3114_v40, 1  ;;  %v11134_v36 = vpack.i.bf16 %v3365_v5, %v3363_v31 }
 0x368   : > { %v3369_v27 = vrot.slane %v11006_v0, 2  ;;  %v3371_v52 = vrot.slane %v11070_v19, 2  ;;  %6605 = vmatmul.mubr.msk.f32.gmra.mrb[82].mxu0 %vm1439_vm2, %v3365_v5  ;;  %v3372_v60 = vrot.slane %v11074_v17, 2  ;;  %v3374_v18 = vrot.slane %v3112_v8, 2 }
 0x369   : > { %v11141_v59 = vsel %vm675_vm1, %v3216_v23, %v3217_v13  ;;  %v11144_v3 = vsel %vm675_vm1, %v3217_v13, %v3219_v48  ;;  %v3368_v0 = vsel %vm846_vm3, %v3366_v34, %v3367_v54  ;;  %v3376_v31 = vrot.slane %v11055_v4, 2 }
 0x36a   : > { %14361 = vst [vmem:[#allocation48_spill] sm:$0xff] %v11141_v59  ;;  %14362 = vst [vmem:[#allocation58_spill] sm:$0xff] %v11144_v3  ;;  %v7399_v33 = vpack.i.bf16 %v11144_v3, %v11141_v59  ;;  %v3370_v45 = vsel %vm846_vm3, %v3367_v54, %v3369_v27  ;;  %6607 = vmatprep.mubr.msk.f32.mxu0 %vm1439_vm2, %v3368_v0  ;;  %v3373_v5 = vsel %vm846_vm3, %v3371_v52, %v3372_v60 }
 0x36b   : > { %7415 = vrot.lane.b32.xlu0 %v10785_v47, %s8511_s23  ;;  %v11156_v23 = vpack.i.bf16 %v3370_v45, %v3368_v0  ;;  %v3375_v8 = vsel %vm846_vm3, %v3372_v60, %v3374_v18  ;;  %v3377_v48 = vrot.slane %v11061_v11, 2  ;;  %v2918_v34 = vmul.f32 %v10708_v55, %v10654_v38 }
 0x36c   : > { %7400 = vrot.lane.b32.xlu1 %v7399_v33, %s8510_s25  ;;  %v11161_v13 = vpack.i.bf16 %v3375_v8, %v3373_v5  ;;  %6608 = vmatmul.mubr.msk.f32.gmra.mrb[84].mxu0 %vm1439_vm2, %v3370_v45  ;;  %v2919_v54 = vmul.f32 %v10706_v6, %v10666_v63  ;;  %v3379_v27 = vrot.slane %v11064_v14, 2  ;;  %v3381_v52 = vrot.slane %v11118_v21, 2 }
 0x36d   : > { %v3382_v60 = vrot.slane %v11127_v58, 2  ;;  %6610 = vmatprep.mubr.msk.f32.mxu0 %vm1439_vm2, %v3373_v5  ;;  %v11176_v18 = vsel %vm846_vm3, %v3376_v31, %v3377_v48  ;;  %v3034_v38 = vrot.slane %v2918_v34, 7  ;;  %v3384_v55 = vrot.slane %v3114_v40, 2 }
 0x36e   : > { %v3035_v33 = vrot.slane %v2919_v54, 7  ;;  %v11179_v0 = vsel %vm846_vm3, %v3377_v48, %v3379_v27  ;;  %v7479_v6 = vpack.i.bf16 %v10735_v51, %v10724_v26  ;;  %v14371_v48 = vld [vmem:[#allocation57_spill] sm:$0xff] }
 0x36f   : > { %7425 = vrot.lane.b32.xlu0 %v10871_v57, %s8511_s23  ;;  %v3383_v63 = vsel %vm846_vm3, %v3381_v52, %v3382_v60  ;;  %v3385_v14 = vsel %vm846_vm3, %v3382_v60, %v3384_v55  ;;  %v11188_v45 = vsel %vm516_vm0, 0.0, %v3034_v38  ;;  %v2921_v55 = vld [vmem:[%s13593_s7 + $0x8] sm:$0xff]  ;;  %v2927_v60 = vld [vmem:[%s13593_s7 + $0x38] sm:$0xff] }
 0x370   : > { %7410 = vrot.lane.b32.xlu1 %v10749_v41, %s8511_s23  ;;  %6611 = vmatmul.mubr.msk.f32.gmra.mrb[86].mxu0 %vm1439_vm2, %v3375_v8  ;;  %v11192_v40 = vsel %vm516_vm0, %v3034_v38, %v3035_v33  ;;  %v11194_v31 = vpack.i.bf16 %v3385_v14, %v3383_v63  ;;  %v3611_v5 = vrot.slane %v11188_v45, 2  ;;  %v3115_v8 = vsel %vm516_vm0, %v3035_v33, 0.0  ;;  %v2920_v38 = vld [vmem:[%s13593_s7] sm:$0xff]  ;;  %v2922_v33 = vld [vmem:[%s13593_s7 + $0x10] sm:$0xff] }
 0x371   : > { %6613 = vmatprep.mubr.msk.f32.mxu0 %vm1439_vm2, %v11176_v18  ;;  %v3612_v34 = vrot.slane %v11192_v40, 2  ;;  %v3614_v54 = vrot.slane %v3115_v8, 2 }
 0x373   : > { %7435 = vrot.lane.b32.xlu0 %v10970_v56, %s8511_s23  ;;  %v11208_v27 = vsel %vm846_vm3, %v3611_v5, %v3612_v34  ;;  %v11213_v52 = vsel %vm846_vm3, %v3612_v34, %v3614_v54  ;;  %v6690_v5 = vpack.c.bf16 %v2921_v55, %v2920_v38  ;;  %v2924_v54 = vld [vmem:[%s13593_s7 + $0x20] sm:$0xff]  ;;  %v3577_v38 = vrot.slane %v3115_v8, 1  ;;  %v14363_v8 = vld [vmem:[#allocation17_spill] sm:$0xff] }
 0x374   : > { %7420 = vrot.lane.b32.xlu1 %v10818_v32, %s8511_s23  ;;  %6614 = vmatmul.mubr.msk.f32.gmra.mrb[88].mxu0 %vm1439_vm2, %v11179_v0 }
 0x375   : > { %6616 = vmatprep.mubr.msk.f32.mxu0 %vm1439_vm2, %v3383_v63  ;;  %v2923_v63 = vld [vmem:[%s13593_s7 + $0x18] sm:$0xff]  ;;  %6691 = vmatpush1.bf16.msra.mxu1 %v6690_v5  ;;  %v2926_v5 = vld [vmem:[%s13593_s7 + $0x30] sm:$0xff] }
 0x376   : > { %v6693_v34 = vpack.c.bf16 %v2923_v63, %v2922_v33  ;;  %6692 = vmatprep.subr.bf16.mxu1 %v14316_v28  ;;  %v3574_v33 = vrot.slane %v11188_v45, 1  ;;  %v3575_v63 = vrot.slane %v11192_v40, 1 }
 0x377   : > { %7445 = vrot.lane.b32.xlu0 %v11078_v7, %s8511_s23 }
 0x378   : > { %7430 = vrot.lane.b32.xlu1 %v10918_v10, %s8511_s23  ;;  %6617 = vmatmul.mubr.msk.f32.gmra.mrb[90].mxu0 %vm1439_vm2, %v3385_v14  ;;  %v2925_v14 = vld [vmem:[%s13593_s7 + $0x28] sm:$0xff] }
 0x379   : > { %6619 = vmatprep.mubr.msk.f32.mxu0 %vm1439_vm2, %v11208_v27  ;;  %6694 = vmatpush1.bf16.msra.mxu1 %v6693_v34  ;;  %v6696_v55 = vpack.c.bf16 %v2925_v14, %v2924_v54  ;;  %v6699_v34 = vpack.c.bf16 %v2927_v60, %v2926_v5  ;;  %v11268_v54 = vsel %vm675_vm1, %v3574_v33, %v3575_v63  ;;  %v2929_v60 = vld [vmem:[%s13593_s7 + $0x48] sm:$0xff]  ;;  %v2930_v33 = vld [vmem:[%s13593_s7 + $0x50] sm:$0xff] }
 0x37a   : > { %6695 = vmatprep.subr.bf16.mxu1 %v14316_v28  ;;  %14364 = vst [vmem:[#allocation92_spill] sm:$0xff] %v11268_v54  ;;  %v11271_v14 = vsel %vm675_vm1, %v3575_v63, %v3577_v38  ;;  %v7469_v38 = vpack.i.bf16 %v10727_v30, %v11176_v18  ;;  %v2931_v63 = vld [vmem:[%s13593_s7 + $0x58] sm:$0xff]  ;;  %v7484_v5 = vpack.i.bf16 %v10747_v50, %v10754_v24 }
 0x37b   : > { %7455 = vrot.lane.b32.xlu0 %v11134_v36, %s8511_s23  ;;  %14365 = vst [vmem:[#allocation78_spill] sm:$0xff] %v11271_v14 }
 0x37c   : > { %7440 = vrot.lane.b32.xlu1 %v11023_v53, %s8511_s23  ;;  %6620 = vmatmul.mubr.msk.f32.gmra.mrb[92].mxu0 %vm1439_vm2, %v11213_v52 }
 0x37d   : > { %6622 = vmatprep.mubr.msk.f32.mxu0 %vm1439_vm2, %v14363_v8  ;;  %6697 = vmatpush1.bf16.msra.mxu1 %v6696_v55 }
 0x37e   : > { %6698 = vmatprep.subr.bf16.mxu1 %v14316_v28 }
 0x37f   : > { %7465 = vrot.lane.b32.xlu0 %v11161_v13, %s8511_s23 }
 0x380   : > { %7450 = vrot.lane.b32.xlu1 %v11120_v42, %s8511_s23  ;;  %6623 = vmatmul.mubr.msk.f32.gmra.mrb[94].mxu0 %vm1439_vm2, %v14363_v8  ;;  %v14372_v8 = vld [vmem:[#allocation114_spill] sm:$0xff] }
 0x381   : > { %6700 = vmatpush1.bf16.msra.mxu1 %v6699_v34  ;;  %v7499_v34 = vpack.i.bf16 %v10777_v2, %v10730_v61 }
 0x382   : > { %6701 = vmatprep.subr.bf16.mxu1 %v14316_v28 }
 0x383   : > { %7475 = vrot.lane.b32.xlu0 %v11113_v9, %s8510_s25  ;;  %v2928_v9 = vld [vmem:[%s13593_s7 + $0x40] sm:$0xff] }
 0x384   : > { %7460 = vrot.lane.b32.xlu1 %v11156_v23, %s8511_s23  ;;  %v6702_v55 = vpack.c.bf16 %v2929_v60, %v2928_v9  ;;  %v2932_v9 = vld [vmem:[%s13593_s7 + $0x60] sm:$0xff]  ;;  %v2933_v60 = vld [vmem:[%s13593_s7 + $0x68] sm:$0xff] }
 0x386   : > { %6703 = vmatpush1.bf16.msra.mxu1 %v6702_v55  ;;  %v2934_v55 = vld [vmem:[%s13593_s7 + $0x70] sm:$0xff] }
 0x387   : > { %7480 = vrot.lane.b32.xlu0 %v7479_v6, %s8511_s23  ;;  %v6705_v6 = vpack.c.bf16 %v2931_v63, %v2930_v33  ;;  %6704 = vmatprep.subr.bf16.mxu1 %v14316_v28  ;;  %v2935_v33 = vld [vmem:[%s13593_s7 + $0x78] sm:$0xff]  ;;  %v7504_v63 = vpack.i.bf16 %v10727_v30, %v10806_v37 }
 0x388   : > { %7470 = vrot.lane.b32.xlu1 %v7469_v38, %s8511_s23  ;;  %v6708_v38 = vpack.c.bf16 %v2933_v60, %v2932_v9  ;;  %v2937_v9 = vld [vmem:[%s13593_s7 + $0x88] sm:$0xff] }
 0x38a   : > { %6706 = vmatpush1.bf16.msra.mxu1 %v6705_v6  ;;  %v7519_v6 = vpack.i.bf16 %v10826_v49, %v10774_v25 }
 0x38b   : > { %7495 = vrot.lane.b32.xlu0 %v10749_v41, %s8510_s25  ;;  %v7489_v41 = vpack.i.bf16 %v10744_v44, %v10758_v39  ;;  %6707 = vmatprep.subr.bf16.mxu1 %v14316_v28 }
 0x38c   : > { %7485 = vrot.lane.b32.xlu1 %v7484_v5, %s8512_s28  ;;  %v6711_v5 = vpack.c.bf16 %v2935_v33, %v2934_v55  ;;  %v7524_v55 = vpack.i.bf16 %v10735_v51, %v10796_v22 }
 0x38e   : > { %6709 = vmatpush1.bf16.msra.mxu1 %v6708_v38  ;;  %v2939_v38 = vld [vmem:[%s13593_s7 + $0x98] sm:$0xff] }
 0x38f   : > { %7500 = vrot.lane.b32.xlu0 %v7499_v34, %s8511_s23  ;;  %6710 = vmatprep.subr.bf16.mxu1 %v14316_v28  ;;  %v2936_v34 = vld [vmem:[%s13593_s7 + $0x80] sm:$0xff] }
 0x390   : > { %7490 = vrot.lane.b32.xlu1 %v7489_v41, %s8512_s28  ;;  %v6714_v60 = vpack.c.bf16 %v2937_v9, %v2936_v34  ;;  %v2938_v41 = vld [vmem:[%s13593_s7 + $0x90] sm:$0xff] }
 0x391   : > { %v6717_v33 = vpack.c.bf16 %v2939_v38, %v2938_v41  ;;  %v2942_v9 = vld [vmem:[%s13593_s7 + $0xb0] sm:$0xff] }
 0x392   : > { %6712 = vmatpush1.bf16.msra.mxu1 %v6711_v5  ;;  %v2940_v5 = vld [vmem:[%s13593_s7 + $0xa0] sm:$0xff]  ;;  %v14366_v38 = vld [vmem:[#allocation112_spill] sm:$0xff] }
 0x393   : > { %7515 = vrot.lane.b32.xlu0 %v10785_v47, %s8510_s25  ;;  %v7509_v47 = vpack.i.bf16 %v10724_v26, %v10809_v1  ;;  %6713 = vmatprep.subr.bf16.mxu1 %v14316_v28 }
 0x394   : > { %7505 = vrot.lane.b32.xlu1 %v7504_v63, %s8512_s28  ;;  %v7539_v63 = vpack.i.bf16 %v10839_v46, %v10833_v16 }
 0x396   : > { %6715 = vmatpush1.bf16.msra.mxu1 %v6714_v60  ;;  %v7544_v60 = vpack.i.bf16 %v10777_v2, %v10851_v43 }
 0x397   : > { %7520 = vrot.lane.b32.xlu0 %v7519_v6, %s8511_s23  ;;  %6716 = vmatprep.subr.bf16.mxu1 %v14316_v28  ;;  %v2941_v6 = vld [vmem:[%s13593_s7 + $0xa8] sm:$0xff] }
 0x398   : > { %7510 = vrot.lane.b32.xlu1 %v7509_v47, %s8512_s28  ;;  %v6720_v34 = vpack.c.bf16 %v2941_v6, %v2940_v5  ;;  %v2943_v47 = vld [vmem:[%s13593_s7 + $0xb8] sm:$0xff]  ;;  %v14367_v5 = vld [vmem:[#allocation107_spill] sm:$0xff] }
 0x399   : > { %v6723_v41 = vpack.c.bf16 %v2943_v47, %v2942_v9  ;;  %v14368_v9 = vld [vmem:[#allocation53_spill] sm:$0xff] }
 0x39a   : > { %6718 = vmatpush1.bf16.msra.mxu1 %v6717_v33  ;;  %v2944_v33 = vld [vmem:[%s13593_s7 + $0xc0] sm:$0xff]  ;;  %v7564_v47 = vpack.i.bf16 %v10826_v49, %v14368_v9 }
 0x39b   : > { %7535 = vrot.lane.b32.xlu0 %v10818_v32, %s8510_s25  ;;  %v7529_v32 = vpack.i.bf16 %v10730_v61, %v10803_v15  ;;  %6719 = vmatprep.subr.bf16.mxu1 %v14316_v28 }
 0x39c   : > { %7525 = vrot.lane.b32.xlu1 %v7524_v55, %s8512_s28  ;;  %v7559_v55 = vpack.i.bf16 %v14366_v38, %v10844_v20 }
 0x39e   : > { %6721 = vmatpush1.bf16.msra.mxu1 %v6720_v34  ;;  %v2947_v34 = vld [vmem:[%s13593_s7 + $0xd8] sm:$0xff] }
 0x39f   : > { %7540 = vrot.lane.b32.xlu0 %v7539_v63, %s8511_s23  ;;  %6722 = vmatprep.subr.bf16.mxu1 %v14316_v28  ;;  %v2945_v63 = vld [vmem:[%s13593_s7 + $0xc8] sm:$0xff] }
 0x3a0   : > { %7530 = vrot.lane.b32.xlu1 %v7529_v32, %s8512_s28  ;;  %v6726_v6 = vpack.c.bf16 %v2945_v63, %v2944_v33  ;;  %v2946_v32 = vld [vmem:[%s13593_s7 + $0xd0] sm:$0xff]  ;;  %v2948_v63 = vld [vmem:[%s13593_s7 + $0xe0] sm:$0xff] }
 0x3a2   : > { %6724 = vmatpush1.bf16.msra.mxu1 %v6723_v41  ;;  %v14369_v41 = vld [vmem:[#allocation113_spill] sm:$0xff] }
 0x3a3   : > { %7555 = vrot.lane.b32.xlu0 %v10871_v57, %s8510_s25  ;;  %v7549_v57 = vpack.i.bf16 %v10774_v25, %v14367_v5  ;;  %6725 = vmatprep.subr.bf16.mxu1 %v14316_v28 }
 0x3a4   : > { %7545 = vrot.lane.b32.xlu1 %v7544_v60, %s8512_s28  ;;  %v6729_v60 = vpack.c.bf16 %v2947_v34, %v2946_v32  ;;  %v11417_v32 = vpop.permute.xlu0 %7335  ;;  %v2950_v34 = vld [vmem:[%s13593_s7 + $0xf0] sm:$0xff] }
 0x3a6   : > { %6727 = vmatpush1.bf16.msra.mxu1 %v6726_v6 }
 0x3a7   : > { %7560 = vrot.lane.b32.xlu0 %v7559_v55, %s8511_s23  ;;  %v14370_v55 = vld [vmem:[#allocation108_spill] sm:$0xff]  ;;  %6728 = vmatprep.subr.bf16.mxu1 %v14316_v28 }
 0x3a8   : > { %7550 = vrot.lane.b32.xlu1 %v7549_v57, %s8512_s28  ;;  %v7579_v33 = vpack.i.bf16 %v14370_v55, %v14369_v41  ;;  %v2949_v57 = vld [vmem:[%s13593_s7 + $0xe8] sm:$0xff] }
 0x3a9   : > { %v6732_v6 = vpack.c.bf16 %v2949_v57, %v2948_v63  ;;  %v14374_v63 = vld [vmem:[#allocation121_spill] sm:$0xff] }
 0x3aa   : > { %6730 = vmatpush1.bf16.msra.mxu1 %v6729_v60 }
 0x3ab   : > { %7575 = vrot.lane.b32.xlu0 %v10918_v10, %s8510_s25  ;;  %v7569_v10 = vpack.i.bf16 %v10833_v16, %v14371_v48  ;;  %6731 = vmatprep.subr.bf16.mxu1 %v14316_v28  ;;  %v7584_v16 = vpack.i.bf16 %v10839_v46, %v14372_v8  ;;  %v14375_v48 = vld [vmem:[#allocation116_spill] sm:$0xff]  ;;  %v11439_v46 = vpop.permute.xlu0 %7345 }
 0x3ac   : > { %7565 = vrot.lane.b32.xlu1 %v7564_v47, %s8512_s28  ;;  %v2951_v47 = vld [vmem:[%s13593_s7 + $0xf8] sm:$0xff]  ;;  %v7589_v49 = vpack.i.bf16 %v10844_v20, %v14375_v48 }
 0x3ad   : > { %v6735_v60 = vpack.c.bf16 %v2951_v47, %v2950_v34  ;;  %v14377_v34 = vld [vmem:[#allocation21_spill] sm:$0xff]  ;;  %v14378_v47 = vld [vmem:[#allocation115_spill] sm:$0xff] }
 0x3ae   : > { %6733 = vmatpush1.bf16.msra.mxu1 %v6732_v6 }
 0x3af   : > { %7580 = vrot.lane.b32.xlu0 %v7579_v33, %s8511_s23  ;;  %v14373_v33 = vld [vmem:[#allocation109_spill] sm:$0xff]  ;;  %6734 = vmatprep.subr.bf16.mxu1 %v14316_v28 }
 0x3b0   : > { %7570 = vrot.lane.b32.xlu1 %v7569_v10, %s8512_s28  ;;  %v7599_v57 = vpack.i.bf16 %v14374_v63, %v14373_v33  ;;  %v11433_v10 = vpop.permute.xlu1 %7330 }
 0x3b2   : > { %6736 = vmatpush1.bf16.msra.mxu1 %v6735_v60  ;;  %v14379_v60 = vld [vmem:[#allocation111_spill] sm:$0xff] }
 0x3b3   : > { %7595 = vrot.lane.b32.xlu0 %v10970_v56, %s8510_s25  ;;  %6772 = vmatprep.subr.bf16.mxu1 %v14316_v28  ;;  %v14376_v56 = vld [vmem:[#allocation110_spill] sm:$0xff] }
 0x3b4   : > { %7585 = vrot.lane.b32.xlu1 %v7584_v16, %s8512_s28  ;;  %v7604_v16 = vpack.i.bf16 %v14366_v38, %v14376_v56  ;;  %v11447_v6 = vpop.permute.xlu1 %7340  ;;  %v14380_v38 = vld [vmem:[#allocation19_spill] sm:$0xff]  ;;  %v14381_v56 = vld [vmem:[#allocation117_spill] sm:$0xff] }
 0x3b5   : > { %v11452_v48 = vpop.permute.xlu0 %7355  ;;  %v7639_v20 = vpack.i.bf16 %v11017_v35, %v14381_v56 }
 0x3b7   : > { %7600 = vrot.lane.b32.xlu0 %v7599_v57, %s8511_s23  ;;  %v7619_v57 = vpack.i.bf16 %v14378_v47, %v14377_v34 }
 0x3b8   : > { %7590 = vrot.lane.b32.xlu1 %v7589_v49, %s8512_s28  ;;  %v7609_v49 = vpack.i.bf16 %v14369_v41, %v14379_v60  ;;  %v11458_v28 = vpop.permute.xlu1 %7350  ;;  %v14382_v41 = vld [vmem:[#allocation18_spill] sm:$0xff] }
 0x3bb   : > { %7615 = vrot.lane.b32.xlu0 %v11023_v53, %s8510_s25  ;;  %v7624_v53 = vpack.i.bf16 %v14370_v55, %v14380_v38  ;;  %v14384_v38 = vld [vmem:[#allocation122_spill] sm:$0xff] }
 0x3bc   : > { %7605 = vrot.lane.b32.xlu1 %v7604_v16, %s8512_s28  ;;  %v11464_v16 = vpop.permute.xlu0 %7365 }
 0x3bf   : > { %7620 = vrot.lane.b32.xlu0 %v7619_v57, %s8511_s23  ;;  %v7629_v57 = vpack.i.bf16 %v14373_v33, %v14382_v41  ;;  %v7659_v41 = vpack.i.bf16 %v11003_v29, %v11013_v12 }
 0x3c0   : > { %7610 = vrot.lane.b32.xlu1 %v7609_v49, %s8512_s28  ;;  %v11472_v49 = vpop.permute.xlu1 %7360 }
 0x3c3   : > { %7635 = vrot.lane.b32.xlu0 %v11078_v7, %s8510_s25  ;;  %v11475_v55 = vpop.permute.xlu0 %7375  ;;  %v7644_v7 = vpack.i.bf16 %v14374_v63, %v14384_v38 }
 0x3c4   : > { %7625 = vrot.lane.b32.xlu1 %v7624_v53, %s8512_s28  ;;  %14383 = vst [vmem:[#allocation74_spill] sm:$0xff] %v11475_v55  ;;  %v14387_v55 = vld [vmem:[#allocation64_spill] sm:$0xff] }
 0x3c5   : > { %v11482_v53 = vpop.permute.xlu1 %7370  ;;  %v7664_v63 = vpack.i.bf16 %v14378_v47, %v14387_v55  ;;  %v14392_v47 = vld [vmem:[#allocation42_spill] sm:$0xff] }
 0x3c7   : > { %7640 = vrot.lane.b32.xlu0 %v7639_v20, %s8511_s23  ;;  %v14385_v20 = vld [vmem:[#allocation28_spill] sm:$0xff] }
 0x3c8   : > { %7630 = vrot.lane.b32.xlu1 %v7629_v57, %s8512_s28  ;;  %v7649_v33 = vpack.i.bf16 %v14377_v34, %v14385_v20  ;;  %v7679_v34 = vpack.i.bf16 %v11070_v19, %v11000_v62 }
 0x3cb   : > { %7655 = vrot.lane.b32.xlu0 %v11120_v42, %s8510_s25 }
 0x3cc   : > { %7645 = vrot.lane.b32.xlu1 %v7644_v7, %s8512_s28  ;;  %v11489_v57 = vpop.permute.xlu0 %7385 }
 0x3cd   : > { %14386 = vst [vmem:[#allocation56_spill] sm:$0xff] %v11489_v57 }
 0x3cf   : > { %7660 = vrot.lane.b32.xlu0 %v7659_v41, %s8511_s23  ;;  %v11494_v42 = vpop.permute.xlu1 %7380  ;;  %v14390_v41 = vld [vmem:[#allocation93_spill] sm:$0xff] }
 0x3d0   : > { %7650 = vrot.lane.b32.xlu1 %v7649_v33, %s8512_s28  ;;  %14388 = vst [vmem:[#allocation79_spill] sm:$0xff] %v11494_v42  ;;  %v7669_v57 = vpack.i.bf16 %v14381_v56, %v14390_v41  ;;  %v14398_v41 = vpack.i.bf16 %v11179_v0, %v11176_v18 }
 0x3d3   : > { %7675 = vrot.lane.b32.xlu0 %v11134_v36, %s8510_s25  ;;  %v7684_v36 = vpack.i.bf16 %v11017_v35, %v14392_v47 }
 0x3d4   : > { %7665 = vrot.lane.b32.xlu1 %v7664_v63, %s8512_s28 }
 0x3d5   : > { %v11499_v7 = vpop.permute.xlu0 %7395 }
 0x3d6   : > { %14389 = vst [vmem:[#allocation49_spill] sm:$0xff] %v11499_v7  ;;  %v11507_v33 = vpop.permute.xlu1 %7390  ;;  %v7699_v7 = vpack.i.bf16 %v11055_v4, %v11074_v17 }
 0x3d7   : > { %7680 = vrot.lane.b32.xlu0 %v7679_v34, %s8511_s23  ;;  %14391 = vst [vmem:[#allocation25_spill] sm:$0xff] %v11507_v33 }
 0x3d8   : > { %7670 = vrot.lane.b32.xlu1 %v7669_v57, %s8512_s28  ;;  %v14394_v57 = vld [vmem:[#allocation47_spill] sm:$0xff] }
 0x3d9   : > { %v11509_v42 = vpop.permute.xlu0 %7405  ;;  %v7689_v33 = vpack.i.bf16 %v11013_v12, %v14394_v57  ;;  %v7719_v12 = vpack.i.bf16 %v11118_v21, %v11061_v11 }
 0x3db   : > { %7695 = vrot.lane.b32.xlu0 %v11156_v23, %s8510_s25  ;;  %v14395_v23 = vld [vmem:[#allocation91_spill] sm:$0xff] }
 0x3dc   : > { %7685 = vrot.lane.b32.xlu1 %v7684_v36, %s8512_s28  ;;  %v7704_v36 = vpack.i.bf16 %v11003_v29, %v14395_v23 }
 0x3dd   : > { %v11516_v63 = vpop.permute.xlu0 %7415 }
 0x3de   : > { %v11520_v34 = vpop.permute.xlu1 %7400 }
 0x3df   : > { %14393 = vst [vmem:[#allocation62_spill] sm:$0xff] %v11520_v34  ;;  %7700 = vrot.lane.b32.xlu0 %v7699_v7, %s8511_s23 }
 0x3e0   : > { %7690 = vrot.lane.b32.xlu1 %v7689_v33, %s8512_s28  ;;  %v14396_v33 = vld [vmem:[#allocation68_spill] sm:$0xff] }
 0x3e1   : > { %v11526_v35 = vpop.permute.xlu0 %7425  ;;  %v7709_v57 = vpack.i.bf16 %v11000_v62, %v14396_v33  ;;  %v14399_v33 = vld [vmem:[#allocation72_spill] sm:$0xff] }
 0x3e2   : > { %v11528_v47 = vpop.permute.xlu1 %7410  ;;  %v7729_v62 = vpack.i.bf16 %v11074_v17, %v14399_v33  ;;  %v14404_v33 = vpack.i.bf16 %v11213_v52, %v11208_v27 }
 0x3e3   : > { %7715 = vrot.lane.b32.xlu0 %v11161_v13, %s8510_s25  ;;  %v14397_v13 = vld [vmem:[#allocation54_spill] sm:$0xff] }
 0x3e4   : > { %7705 = vrot.lane.b32.xlu1 %v7704_v36, %s8512_s28  ;;  %v7724_v36 = vpack.i.bf16 %v11070_v19, %v14397_v13 }
 0x3e5   : > { %v11535_v34 = vpop.permute.xlu0 %7435 }
 0x3e6   : > { %v11539_v7 = vpop.permute.xlu1 %7420 }
 0x3e7   : > { %7720 = vrot.lane.b32.xlu0 %v7719_v12, %s8511_s23  ;;  %v7739_v12 = vpack.i.bf16 %v11188_v45, %v11127_v58 }
 0x3e8   : > { %7710 = vrot.lane.b32.xlu1 %v7709_v57, %s8512_s28 }
 0x3e9   : > { %v11545_v29 = vpop.permute.xlu0 %7445 }
 0x3ea   : > { %v11547_v23 = vpop.permute.xlu1 %7430 }
 0x3eb   : > { %7735 = vrot.lane.b32.xlu0 %v14398_v41, %s8510_s25  ;;  %v7744_v41 = vpack.i.bf16 %v11055_v4, %v11141_v59 }
 0x3ec   : > { %7725 = vrot.lane.b32.xlu1 %v7724_v36, %s8512_s28 }
 0x3ed   : > { %v11556_v56 = vpop.permute.xlu0 %7455 }
 0x3ee   : > { %v11560_v57 = vpop.permute.xlu1 %7440 }
 0x3ef   : > { %7740 = vrot.lane.b32.xlu0 %v7739_v12, %s8511_s23  ;;  %v7749_v12 = vpack.i.bf16 %v11061_v11, %v11144_v3 }
 0x3f0   : > { %7730 = vrot.lane.b32.xlu1 %v7729_v62, %s8512_s28  ;;  %v14402_v62 = vpack.i.bf16 %v11179_v0, %v11192_v40 }
 0x3f1   : > { %v11566_v19 = vpop.permute.xlu0 %7465 }
 0x3f2   : > { %14400 = vst [vmem:[#allocation80_spill] sm:$0xff] %v11566_v19  ;;  %v11568_v18 = vpop.permute.xlu1 %7450  ;;  %v7769_v19 = vpack.i.bf16 %v11127_v58, %v11271_v14 }
 0x3f3   : > { %7755 = vrot.lane.b32.xlu0 %v11194_v31, %s8510_s25 }
 0x3f4   : > { %7745 = vrot.lane.b32.xlu1 %v7744_v41, %s8512_s28  ;;  %v7759_v41 = vpack.i.bf16 %v11118_v21, %v11268_v54  ;;  %v14406_v21 = vpack.i.bf16 %v11192_v40, %v11188_v45 }
 0x3f5   : > { %v7476_v36 = vpop.permute.xlu0 %7475 }
 0x3f6   : > { %v11575_v13 = vpop.permute.xlu1 %7460  ;;  %v7477_v4 = vunpack.i.l.bf16 %v7476_v36  ;;  %v7478_v54 = vunpack.i.h.bf16 %v7476_v36 }
 0x3f7   : > { %14401 = vst [vmem:[#allocation81_spill] sm:$0xff] %v11575_v13  ;;  %7765 = vrot.lane.b32.xlu0 %v14402_v62, %s8511_s23  ;;  %v14405_v62 = vld [vmem:[#allocation105_spill] sm:$0xff]  ;;  %v14407_v13 = vld [vmem:[#allocation103_spill] sm:$0xff] }
 0x3f8   : > { %7750 = vrot.lane.b32.xlu1 %v7749_v12, %s8512_s28  ;;  %v3984_v12 = vsel %vm1439_vm2, %v14405_v62, %v7477_v4 }
 0x3f9   : > { %v7481_v17 = vpop.permute.xlu0 %7480 }
 0x3fa   : > { %v11584_v59 = vpop.permute.xlu1 %7470 }
 0x3fb   : > { %14403 = vst [vmem:[#allocation63_spill] sm:$0xff] %v11584_v59  ;;  %7775 = vrot.lane.b32.xlu0 %v14404_v33, %s8510_s25  ;;  %v7473_v11 = vunpack.i.h.bf16 %v11584_v59  ;;  %v7482_v33 = vunpack.i.l.bf16 %v7481_v17 }
 0x3fc   : > { %7760 = vrot.lane.b32.xlu1 %v7759_v41, %s8512_s28 }
 0x3fd   : > { %v7496_v0 = vpop.permute.xlu0 %7495  ;;  %v4016_v41 = vsel %vm1471_vm11, %v3984_v12, %v7473_v11  ;;  %v7407_v12 = vunpack.i.l.bf16 %v11509_v42 }
 0x3fe   : > { %v7486_v3 = vpop.permute.xlu1 %7485  ;;  %v7497_v4 = vunpack.i.l.bf16 %v7496_v0 }
 0x3ff   : > { %7785 = vrot.lane.b32.xlu0 %v14406_v21, %s8512_s28  ;;  %v7488_v27 = vunpack.i.h.bf16 %v7486_v3  ;;  %v7487_v52 = vunpack.i.l.bf16 %v7486_v3  ;;  %v7332_v21 = vunpack.i.l.bf16 %v11433_v10 }
 0x400   : > { %7770 = vrot.lane.b32.xlu1 %v7769_v19, %s8512_s28  ;;  %v14409_v19 = vld [vmem:[#allocation40_spill] sm:$0xff] }
 0x401   : > { %v11604_v59 = vpop.permute.xlu0 %7500  ;;  %v4048_v62 = vsel %vm1503_vm12, %v4016_v41, %v7487_v52  ;;  %v3952_v58 = vsel %vm1503_vm12, %v14407_v13, %v7488_v27  ;;  %v3985_v11 = vsel %vm1439_vm2, %v14409_v19, %v7478_v54  ;;  %v7333_v54 = vunpack.i.h.bf16 %v11433_v10 }
 0x402   : > { %v7491_v14 = vpop.permute.xlu1 %7490  ;;  %4210 = vmatprep.mubr.f32.mxu1 %v4048_v62  ;;  %v4017_v27 = vsel %vm1471_vm11, %v3985_v11, %v7482_v33  ;;  %v7483_v62 = vunpack.i.h.bf16 %v7481_v17 }
 0x403   : > { %v11609_v45 = vpop.f32.mrb[64].mxu0  ;;  %v7493_v3 = vunpack.i.h.bf16 %v7491_v14  ;;  %v7492_v40 = vunpack.i.l.bf16 %v7491_v14  ;;  %4211 = vmatmul.mubr.f32.vlgmr.msra.gmra.mrb[40].mxu1 %v3952_v58  ;;  %v3986_v58 = vsel %vm1439_vm2, %v10754_v24, %v7497_v4  ;;  %v7502_v24 = vunpack.i.l.bf16 %v11604_v59 }
 0x404   : > { %14408 = vst [vmem:[#allocation88_spill] sm:$0xff] %v11609_v45  ;;  %v11614_v36 = vpop.f32.mrb[65].mxu0  ;;  %7780 = vrot.lane.b32.xlu1 %v11194_v31, %s8511_s23  ;;  %v7498_v31 = vunpack.i.h.bf16 %v7496_v0  ;;  %v4018_v10 = vsel %vm1471_vm11, %v3986_v58, %v7483_v62  ;;  %v7412_v62 = vunpack.i.l.bf16 %v11528_v47 }
 0x405   : > { %14410 = vst [vmem:[#allocation50_spill] sm:$0xff] %v11614_v36  ;;  %v11620_v52 = vpop.permute.xlu0 %7515  ;;  %v4049_v41 = vsel %vm1503_vm12, %v4017_v27, %v7492_v40  ;;  %v3953_v14 = vsel %vm1503_vm12, %v14407_v13, %v7493_v3  ;;  %v3892_v40 = vsel %vm1439_vm2, %v10747_v50, %v7332_v21  ;;  %v7408_v13 = vunpack.i.h.bf16 %v11509_v42 }
 0x406   : > { %v7506_v19 = vpop.permute.xlu1 %7505  ;;  %4215 = vmatprep.mubr.f32.mxu1 %v4049_v41  ;;  %v3922_v17 = vsel %vm1471_vm11, %v3892_v40, %v7407_v12  ;;  %v7517_v0 = vunpack.i.l.bf16 %v11620_v52  ;;  %v7337_v50 = vunpack.i.l.bf16 %v11417_v32  ;;  %v3893_v12 = vsel %vm1439_vm2, %v10744_v44, %v7333_v54 }
 0x407   : > { %v11628_v45 = vpop.f32.mrb[66].mxu0  ;;  %v7508_v36 = vunpack.i.h.bf16 %v7506_v19  ;;  %v7507_v33 = vunpack.i.l.bf16 %v7506_v19  ;;  %4216 = vmatmul.mubr.f32.gmra.mrb[42].mxu1 %v3953_v14  ;;  %v3987_v14 = vsel %vm1439_vm2, %v10758_v39, %v7498_v31  ;;  %v7338_v44 = vunpack.i.h.bf16 %v11417_v32 }
 0x408   : > { %v11632_v11 = vpop.f32.mrb[67].mxu0  ;;  %v4019_v19 = vsel %vm1471_vm11, %v3987_v14, %v7502_v24  ;;  %v3988_v39 = vsel %vm1439_vm2, %v10806_v37, %v7517_v0  ;;  %v7503_v54 = vunpack.i.h.bf16 %v11604_v59  ;;  %v7518_v24 = vunpack.i.h.bf16 %v11620_v52 }
 0x409   : > { %v11638_v4 = vpop.permute.xlu0 %7520  ;;  %v4050_v3 = vsel %vm1503_vm12, %v4018_v10, %v7507_v33  ;;  %v3954_v27 = vsel %vm1503_vm12, %v3922_v17, %v7508_v36  ;;  %v3923_v36 = vsel %vm1471_vm11, %v3893_v12, %v7408_v13 }
 0x40a   : > { %v7511_v21 = vpop.permute.xlu1 %7510  ;;  %4220 = vmatprep.mubr.f32.mxu1 %v4050_v3  ;;  %v4020_v37 = vsel %vm1471_vm11, %v3988_v39, %v7503_v54 }
 0x40b   : > { %v7513_v41 = vunpack.i.h.bf16 %v7511_v21  ;;  %v7512_v42 = vunpack.i.l.bf16 %v7511_v21  ;;  %4221 = vmatmul.mubr.f32.gmra.mrb[44].mxu1 %v3954_v27  ;;  %v11648_v58 = vpop.f32.mrb[68].mxu0  ;;  %v3894_v27 = vsel %vm1439_vm2, %v10727_v30, %v7337_v50  ;;  %v7413_v21 = vunpack.i.h.bf16 %v11528_v47 }
 0x40c   : > { %v11655_v40 = vpop.f32.mrb[69].mxu0  ;;  %v3924_v32 = vsel %vm1471_vm11, %v3894_v27, %v7412_v62  ;;  %v3895_v30 = vsel %vm1439_vm2, %v10724_v26, %v7338_v44  ;;  %v7342_v47 = vunpack.i.l.bf16 %v11447_v6  ;;  %v3989_v62 = vsel %vm1439_vm2, %v10809_v1, %v7518_v24 }
 0x40d   : > { %v11653_v33 = vpop.permute.xlu0 %7535  ;;  %v4051_v10 = vsel %vm1503_vm12, %v4019_v19, %v7512_v42  ;;  %v3955_v17 = vsel %vm1503_vm12, %v3923_v36, %v7513_v41  ;;  %v7522_v41 = vunpack.i.l.bf16 %v11638_v4  ;;  %v7417_v19 = vunpack.i.l.bf16 %v11516_v63 }
 0x40e   : > { %v7526_v31 = vpop.permute.xlu1 %7525  ;;  %4225 = vmatprep.mubr.f32.mxu1 %v4051_v10  ;;  %v7537_v59 = vunpack.i.l.bf16 %v11653_v33  ;;  %v3925_v10 = vsel %vm1471_vm11, %v3895_v30, %v7413_v21  ;;  %v7343_v1 = vunpack.i.h.bf16 %v11447_v6  ;;  %v7523_v24 = vunpack.i.h.bf16 %v11638_v4 }
 0x40f   : > { %v7528_v13 = vunpack.i.h.bf16 %v7526_v31  ;;  %v7527_v3 = vunpack.i.l.bf16 %v7526_v31  ;;  %4226 = vmatmul.mubr.f32.gmra.mrb[46].mxu1 %v3955_v17  ;;  %v4021_v36 = vsel %vm1471_vm11, %v3989_v62, %v7522_v41  ;;  %v3896_v41 = vsel %vm1439_vm2, %v10735_v51, %v7342_v47 }
 0x410   : > { %v3990_v54 = vsel %vm1439_vm2, %v10796_v22, %v7537_v59  ;;  %v3926_v6 = vsel %vm1471_vm11, %v3896_v41, %v7417_v19  ;;  %v7347_v51 = vunpack.i.l.bf16 %v11439_v46  ;;  %v7422_v62 = vunpack.i.l.bf16 %v11539_v7 }
 0x411   : > { %v11670_v0 = vpop.permute.xlu0 %7540  ;;  %v4052_v52 = vsel %vm1503_vm12, %v4020_v37, %v7527_v3  ;;  %v3956_v42 = vsel %vm1503_vm12, %v3924_v32, %v7528_v13  ;;  %v7538_v3 = vunpack.i.h.bf16 %v11653_v33  ;;  %v7418_v37 = vunpack.i.h.bf16 %v11516_v63 }
 0x412   : > { %v7531_v14 = vpop.permute.xlu1 %7530  ;;  %4230 = vmatprep.mubr.f32.mxu1 %v4052_v52  ;;  %v7542_v22 = vunpack.i.l.bf16 %v11670_v0  ;;  %v4022_v32 = vsel %vm1471_vm11, %v3990_v54, %v7523_v24  ;;  %v7543_v24 = vunpack.i.h.bf16 %v11670_v0 }
 0x413   : > { %v7533_v50 = vunpack.i.h.bf16 %v7531_v14  ;;  %v7532_v12 = vunpack.i.l.bf16 %v7531_v14  ;;  %4231 = vmatmul.mubr.f32.gmra.mrb[48].mxu1 %v3956_v42 }
 0x414   : > { %v11685_v39 = vpop.f32.mrb[70].mxu0 }
 0x415   : > { %v11683_v17 = vpop.permute.xlu0 %7555  ;;  %v4053_v26 = vsel %vm1503_vm12, %v4021_v36, %v7532_v12  ;;  %v3957_v44 = vsel %vm1503_vm12, %v3925_v10, %v7533_v50  ;;  %v11691_v31 = vpop.f32.mrb[71].mxu0  ;;  %v3991_v50 = vsel %vm1439_vm2, %v10803_v15, %v7538_v3  ;;  %v3897_v12 = vsel %vm1439_vm2, %v10730_v61, %v7343_v1 }
 0x416   : > { %v7546_v13 = vpop.permute.xlu1 %7545  ;;  %4235 = vmatprep.mubr.f32.mxu1 %v4053_v26  ;;  %v7557_v4 = vunpack.i.l.bf16 %v11683_v17  ;;  %v4023_v19 = vsel %vm1471_vm11, %v3991_v50, %v7542_v22  ;;  %v3927_v36 = vsel %vm1471_vm11, %v3897_v12, %v7418_v37  ;;  %v7348_v15 = vunpack.i.h.bf16 %v11439_v46 }
 0x417   : > { %v7548_v27 = vunpack.i.h.bf16 %v7546_v13  ;;  %v7547_v21 = vunpack.i.l.bf16 %v7546_v13  ;;  %4236 = vmatmul.mubr.f32.gmra.mrb[50].mxu1 %v3957_v44  ;;  %v7558_v1 = vunpack.i.h.bf16 %v11683_v17 }
 0x418   : > { %v3992_v54 = vsel %vm1439_vm2, %v10851_v43, %v7557_v4 }
 0x419   : > { %v11702_v59 = vpop.permute.xlu0 %7560  ;;  %v4054_v33 = vsel %vm1503_vm12, %v4022_v32, %v7547_v21  ;;  %v3958_v52 = vsel %vm1503_vm12, %v3926_v6, %v7548_v27  ;;  %v3898_v27 = vsel %vm1439_vm2, %v10777_v2, %v7347_v51  ;;  %v7423_v21 = vunpack.i.h.bf16 %v11539_v7 }
 0x41a   : > { %v11707_v42 = vpop.f32.mrb[72].mxu0  ;;  %v7551_v14 = vpop.permute.xlu1 %7550  ;;  %4240 = vmatprep.mubr.f32.mxu1 %v4054_v33  ;;  %v7562_v41 = vunpack.i.l.bf16 %v11702_v59  ;;  %v4024_v43 = vsel %vm1471_vm11, %v3992_v54, %v7543_v24  ;;  %v3928_v46 = vsel %vm1471_vm11, %v3898_v27, %v7422_v62  ;;  %v3899_v2 = vsel %vm1439_vm2, %v10774_v25, %v7348_v15  ;;  %v14411_v15 = vld [vmem:[#allocation45_spill] sm:$0xff] }
 0x41b   : > { %v11710_v63 = vpop.f32.mrb[73].mxu0  ;;  %v7553_v30 = vunpack.i.h.bf16 %v7551_v14  ;;  %v7552_v47 = vunpack.i.l.bf16 %v7551_v14  ;;  %4241 = vmatmul.mubr.f32.gmra.mrb[52].mxu1 %v3958_v52  ;;  %v7352_v6 = vunpack.i.l.bf16 %v11458_v28  ;;  %v3993_v52 = vsel %vm1439_vm2, %v14367_v5, %v7558_v1 }
 0x41c   : > { %v7427_v14 = vunpack.i.l.bf16 %v11526_v35  ;;  %v7563_v5 = vunpack.i.h.bf16 %v11702_v59 }
 0x41d   : > { %v11719_v10 = vpop.permute.xlu0 %7575  ;;  %v4055_v26 = vsel %vm1503_vm12, %v4023_v19, %v7552_v47  ;;  %v3959_v44 = vsel %vm1503_vm12, %v3927_v36, %v7553_v30  ;;  %v4025_v30 = vsel %vm1471_vm11, %v3993_v52, %v7562_v41  ;;  %v3929_v47 = vsel %vm1471_vm11, %v3899_v2, %v7423_v21 }
 0x41e   : > { %v7566_v61 = vpop.permute.xlu1 %7565  ;;  %4245 = vmatprep.mubr.f32.mxu1 %v4055_v26  ;;  %v7577_v0 = vunpack.i.l.bf16 %v11719_v10  ;;  %v7353_v19 = vunpack.i.h.bf16 %v11458_v28  ;;  %v7578_v26 = vunpack.i.h.bf16 %v11719_v10  ;;  %v3900_v24 = vsel %vm1439_vm2, %v14411_v15, %v7352_v6 }
 0x41f   : > { %v7568_v13 = vunpack.i.h.bf16 %v7566_v61  ;;  %v7567_v3 = vunpack.i.l.bf16 %v7566_v61  ;;  %4246 = vmatmul.mubr.f32.gmra.mrb[54].mxu1 %v3959_v44  ;;  %v7428_v61 = vunpack.i.h.bf16 %v11526_v35  ;;  %v3930_v28 = vsel %vm1471_vm11, %v3900_v24, %v7427_v14 }
 0x420   : > { %v3994_v62 = vsel %vm1439_vm2, %v14368_v9, %v7577_v0  ;;  %v7357_v35 = vunpack.i.l.bf16 %v11452_v48  ;;  %v14412_v0 = vld [vmem:[#allocation57_spill] sm:$0xff]  ;;  %v7432_v2 = vunpack.i.l.bf16 %v11547_v23 }
 0x421   : > { %v11734_v37 = vpop.permute.xlu0 %7580  ;;  %v4056_v17 = vsel %vm1503_vm12, %v4024_v43, %v7567_v3  ;;  %v3960_v22 = vsel %vm1503_vm12, %v3928_v46, %v7568_v13  ;;  %v4026_v9 = vsel %vm1471_vm11, %v3994_v62, %v7563_v5 }
 0x422   : > { %v7571_v32 = vpop.permute.xlu1 %7570  ;;  %4250 = vmatprep.mubr.f32.mxu1 %v4056_v17  ;;  %v7582_v1 = vunpack.i.l.bf16 %v11734_v37  ;;  %v3995_v17 = vsel %vm1439_vm2, %v14412_v0, %v7578_v26 }
 0x423   : > { %v11741_v7 = vpop.f32.mrb[74].mxu0  ;;  %v7573_v4 = vunpack.i.h.bf16 %v7571_v32  ;;  %v7572_v33 = vunpack.i.l.bf16 %v7571_v32  ;;  %4251 = vmatmul.mubr.f32.gmra.mrb[56].mxu1 %v3960_v22  ;;  %v14413_v22 = vld [vmem:[#allocation106_spill] sm:$0xff] }
 0x424   : > { %v11746_v51 = vpop.f32.mrb[75].mxu0  ;;  %v3901_v32 = vsel %vm1439_vm2, %v14413_v22, %v7353_v19  ;;  %v4027_v6 = vsel %vm1471_vm11, %v3995_v17, %v7582_v1 }
 0x425   : > { %v11751_v50 = vpop.permute.xlu0 %7595  ;;  %v4057_v25 = vsel %vm1503_vm12, %v4025_v30, %v7572_v33  ;;  %v3961_v12 = vsel %vm1503_vm12, %v3929_v47, %v7573_v4  ;;  %v3931_v4 = vsel %vm1471_vm11, %v3901_v32, %v7428_v61  ;;  %v7358_v47 = vunpack.i.h.bf16 %v11452_v48 }
 0x426   : > { %v7586_v36 = vpop.permute.xlu1 %7585  ;;  %4255 = vmatprep.mubr.f32.mxu1 %v4057_v25  ;;  %v7597_v10 = vunpack.i.l.bf16 %v11751_v50  ;;  %v7583_v25 = vunpack.i.h.bf16 %v11734_v37  ;;  %v7598_v62 = vunpack.i.h.bf16 %v11751_v50 }
 0x427   : > { %v7588_v44 = vunpack.i.h.bf16 %v7586_v36  ;;  %v7587_v54 = vunpack.i.l.bf16 %v7586_v36  ;;  %4256 = vmatmul.mubr.f32.gmra.mrb[58].mxu1 %v3961_v12  ;;  %v14414_v36 = vld [vmem:[#allocation46_spill] sm:$0xff] }
 0x428   : > { %v3996_v30 = vsel %vm1439_vm2, %v14372_v8, %v7597_v10  ;;  %v3902_v26 = vsel %vm1439_vm2, %v14414_v36, %v7357_v35  ;;  %v7362_v10 = vunpack.i.l.bf16 %v11472_v49  ;;  %v14416_v35 = vld [vmem:[#allocation116_spill] sm:$0xff] }
 0x429   : > { %v11766_v13 = vpop.permute.xlu0 %7600  ;;  %v11768_v59 = vpop.f32.mrb[76].mxu0  ;;  %v4058_v3 = vsel %vm1503_vm12, %v4026_v9, %v7587_v54  ;;  %v3962_v27 = vsel %vm1503_vm12, %v3930_v28, %v7588_v44  ;;  %v7433_v44 = vunpack.i.h.bf16 %v11547_v23  ;;  %v4028_v8 = vsel %vm1471_vm11, %v3996_v30, %v7583_v25  ;;  %v14415_v9 = vld [vmem:[#allocation52_spill] sm:$0xff] }
 0x42a   : > { %v11773_v21 = vpop.f32.mrb[77].mxu0  ;;  %v7591_v41 = vpop.permute.xlu1 %7590  ;;  %4260 = vmatprep.mubr.f32.mxu1 %v4058_v3  ;;  %v7602_v54 = vunpack.i.l.bf16 %v11766_v13  ;;  %v3932_v48 = vsel %vm1471_vm11, %v3902_v26, %v7432_v2  ;;  %v3903_v23 = vsel %vm1439_vm2, %v14415_v9, %v7358_v47  ;;  %v14417_v2 = vld [vmem:[#allocation110_spill] sm:$0xff] }
 0x42b   : > { %v7593_v43 = vunpack.i.h.bf16 %v7591_v41  ;;  %v7592_v46 = vunpack.i.l.bf16 %v7591_v41  ;;  %4261 = vmatmul.mubr.f32.gmra.mrb[60].mxu1 %v3962_v27  ;;  %v3997_v41 = vsel %vm1439_vm2, %v14416_v35, %v7598_v62  ;;  %v3933_v0 = vsel %vm1471_vm11, %v3903_v23, %v7433_v44 }
 0x42c   : > { %v7442_v23 = vunpack.i.l.bf16 %v11560_v57 }
 0x42d   : > { %v11783_v33 = vpop.permute.xlu0 %7615  ;;  %v4059_v52 = vsel %vm1503_vm12, %v4027_v6, %v7592_v46  ;;  %v3963_v14 = vsel %vm1503_vm12, %v3931_v4, %v7593_v43  ;;  %v7437_v43 = vunpack.i.l.bf16 %v11535_v34  ;;  %v4029_v46 = vsel %vm1471_vm11, %v3997_v41, %v7602_v54 }
 0x42e   : > { %v7606_v12 = vpop.permute.xlu1 %7605  ;;  %4265 = vmatprep.mubr.f32.mxu1 %v4059_v52  ;;  %v7617_v37 = vunpack.i.l.bf16 %v11783_v33  ;;  %v7363_v4 = vunpack.i.h.bf16 %v11472_v49  ;;  %v7603_v52 = vunpack.i.h.bf16 %v11766_v13  ;;  %v7618_v30 = vunpack.i.h.bf16 %v11783_v33 }
 0x42f   : > { %v7608_v19 = vunpack.i.h.bf16 %v7606_v12  ;;  %v7607_v5 = vunpack.i.l.bf16 %v7606_v12  ;;  %4266 = vmatmul.mubr.f32.gmra.mrb[62].mxu1 %v3963_v14  ;;  %v14418_v12 = vld [vmem:[#allocation112_spill] sm:$0xff] }
 0x430   : > { %v11803_v61 = vpop.f32.mrb[78].mxu0  ;;  %v3998_v6 = vsel %vm1439_vm2, %v14417_v2, %v7617_v37  ;;  %v3904_v62 = vsel %vm1439_vm2, %v14418_v12, %v7362_v10 }
 0x431   : > { %v11798_v15 = vpop.permute.xlu0 %7620  ;;  %v4060_v50 = vsel %vm1503_vm12, %v4028_v8, %v7607_v5  ;;  %v3964_v24 = vsel %vm1503_vm12, %v3932_v48, %v7608_v19  ;;  %v11807_v28 = vpop.f32.mrb[79].mxu0  ;;  %v7438_v19 = vunpack.i.h.bf16 %v11535_v34  ;;  %v4030_v36 = vsel %vm1471_vm11, %v3998_v6, %v7603_v52 }
 0x432   : > { %v7611_v1 = vpop.permute.xlu1 %7610  ;;  %4270 = vmatprep.mubr.f32.mxu1 %v4060_v50  ;;  %v7622_v5 = vunpack.i.l.bf16 %v11798_v15  ;;  %v3934_v49 = vsel %vm1471_vm11, %v3904_v62, %v7437_v43  ;;  %v7367_v34 = vunpack.i.l.bf16 %v11464_v16 }
 0x433   : > { %v7613_v3 = vunpack.i.h.bf16 %v7611_v1  ;;  %v7612_v27 = vunpack.i.l.bf16 %v7611_v1  ;;  %4271 = vmatmul.mubr.f32.gmra.mrb[64].mxu1 %v3964_v24  ;;  %v3999_v24 = vsel %vm1439_vm2, %v14379_v60, %v7618_v30  ;;  %v14419_v1 = vld [vmem:[#allocation113_spill] sm:$0xff] }
 0x434   : > { %v3905_v9 = vsel %vm1439_vm2, %v14419_v1, %v7363_v4  ;;  %v4031_v10 = vsel %vm1471_vm11, %v3999_v24, %v7622_v5 }
 0x435   : > { %v11815_v17 = vpop.permute.xlu0 %7635  ;;  %v4061_v22 = vsel %vm1503_vm12, %v4029_v46, %v7612_v27  ;;  %v3965_v32 = vsel %vm1503_vm12, %v3933_v0, %v7613_v3  ;;  %v3935_v3 = vsel %vm1471_vm11, %v3905_v9, %v7438_v19  ;;  %v14420_v46 = vld [vmem:[#allocation19_spill] sm:$0xff] }
 0x436   : > { %v7626_v14 = vpop.permute.xlu1 %7625  ;;  %4275 = vmatprep.mubr.f32.mxu1 %v4061_v22  ;;  %v7637_v33 = vunpack.i.l.bf16 %v11815_v17  ;;  %v7368_v22 = vunpack.i.h.bf16 %v11464_v16  ;;  %v7638_v6 = vunpack.i.h.bf16 %v11815_v17 }
 0x437   : > { %v7628_v47 = vunpack.i.h.bf16 %v7626_v14  ;;  %v7627_v25 = vunpack.i.l.bf16 %v7626_v14  ;;  %4276 = vmatmul.mubr.f32.gmra.mrb[66].mxu1 %v3965_v32  ;;  %v11832_v13 = vpop.f32.mrb[80].mxu0  ;;  %v7623_v32 = vunpack.i.h.bf16 %v11798_v15  ;;  %v14421_v14 = vld [vmem:[#allocation108_spill] sm:$0xff] }
 0x438   : > { %v11837_v8 = vpop.f32.mrb[81].mxu0  ;;  %v4000_v60 = vsel %vm1439_vm2, %v14420_v46, %v7637_v33  ;;  %v3906_v30 = vsel %vm1439_vm2, %v14421_v14, %v7367_v34  ;;  %v7373_v46 = vunpack.i.h.bf16 %v11482_v53  ;;  %v7448_v14 = vunpack.i.h.bf16 %v11545_v29 }
 0x439   : > { %v11830_v26 = vpop.permute.xlu0 %7640  ;;  %v4062_v44 = vsel %vm1503_vm12, %v4030_v36, %v7627_v25  ;;  %v3966_v54 = vsel %vm1503_vm12, %v3934_v49, %v7628_v47  ;;  %v7443_v47 = vunpack.i.h.bf16 %v11560_v57  ;;  %v4032_v12 = vsel %vm1471_vm11, %v4000_v60, %v7623_v32  ;;  %v14422_v57 = vld [vmem:[#allocation109_spill] sm:$0xff] }
 0x43a   : > { %v7631_v48 = vpop.permute.xlu1 %7630  ;;  %4280 = vmatprep.mubr.f32.mxu1 %v4062_v44  ;;  %v7642_v25 = vunpack.i.l.bf16 %v11830_v26  ;;  %v3936_v16 = vsel %vm1471_vm11, %v3906_v30, %v7442_v23  ;;  %v3907_v33 = vsel %vm1439_vm2, %v14422_v57, %v7368_v22  ;;  %v7372_v44 = vunpack.i.l.bf16 %v11482_v53 }
 0x43b   : > { %v7633_v37 = vunpack.i.h.bf16 %v7631_v48  ;;  %v7632_v50 = vunpack.i.l.bf16 %v7631_v48  ;;  %4281 = vmatmul.mubr.f32.gmra.mrb[68].mxu1 %v3966_v54  ;;  %v11849_v35 = vpop.f32.mrb[82].mxu0  ;;  %v14423_v48 = vld [vmem:[#allocation18_spill] sm:$0xff]  ;;  %v3937_v1 = vsel %vm1471_vm11, %v3907_v33, %v7443_v47  ;;  %v7643_v60 = vunpack.i.h.bf16 %v11830_v26  ;;  %v14426_v33 = vld [vmem:[#allocation21_spill] sm:$0xff] }
 0x43c   : > { %v11855_v0 = vpop.f32.mrb[83].mxu0 }
 0x43d   : > { %v11847_v27 = vpop.permute.xlu0 %7655  ;;  %v4063_v41 = vsel %vm1503_vm12, %v4031_v10, %v7632_v50  ;;  %v3967_v43 = vsel %vm1503_vm12, %v3935_v3, %v7633_v37  ;;  %v4001_v37 = vsel %vm1439_vm2, %v14423_v48, %v7638_v6  ;;  %v7447_v50 = vunpack.i.l.bf16 %v11545_v29 }
 0x43e   : > { %v7646_v2 = vpop.permute.xlu1 %7645  ;;  %4285 = vmatprep.mubr.f32.mxu1 %v4063_v41  ;;  %v7657_v17 = vunpack.i.l.bf16 %v11847_v27  ;;  %v4033_v24 = vsel %vm1471_vm11, %v4001_v37, %v7642_v25  ;;  %v7658_v32 = vunpack.i.h.bf16 %v11847_v27 }
 0x43f   : > { %v7648_v4 = vunpack.i.h.bf16 %v7646_v2  ;;  %v7647_v52 = vunpack.i.l.bf16 %v7646_v2  ;;  %4286 = vmatmul.mubr.f32.gmra.mrb[70].mxu1 %v3967_v43  ;;  %v11868_v15 = vpop.f32.mrb[84].mxu0 }
 0x440   : > { %v11873_v36 = vpop.f32.mrb[85].mxu0  ;;  %v4002_v41 = vsel %vm1439_vm2, %v14384_v38, %v7657_v17  ;;  %v14425_v17 = vld [vmem:[#allocation74_spill] sm:$0xff]  ;;  %v4003_v57 = vsel %vm1439_vm2, %v14385_v20, %v7658_v32 }
 0x441   : > { %v11866_v62 = vpop.permute.xlu0 %7660  ;;  %v4064_v19 = vsel %vm1503_vm12, %v4032_v12, %v7647_v52  ;;  %v3968_v5 = vsel %vm1503_vm12, %v3936_v16, %v7648_v4  ;;  %v14424_v4 = vld [vmem:[#allocation121_spill] sm:$0xff]  ;;  %v4034_v30 = vsel %vm1471_vm11, %v4002_v41, %v7643_v60  ;;  %v7377_v29 = vunpack.i.l.bf16 %v14425_v17 }
 0x442   : > { %v7651_v49 = vpop.permute.xlu1 %7650  ;;  %4290 = vmatprep.mubr.f32.mxu1 %v4064_v19  ;;  %v3908_v52 = vsel %vm1439_vm2, %v14424_v4, %v7372_v44  ;;  %v7662_v38 = vunpack.i.l.bf16 %v11866_v62  ;;  %v3909_v44 = vsel %vm1439_vm2, %v14426_v33, %v7373_v46  ;;  %v7663_v41 = vunpack.i.h.bf16 %v11866_v62 }
 0x443   : > { %v7653_v54 = vunpack.i.h.bf16 %v7651_v49  ;;  %v7652_v34 = vunpack.i.l.bf16 %v7651_v49  ;;  %4291 = vmatmul.mubr.f32.gmra.mrb[72].mxu1 %v3968_v5  ;;  %v11885_v23 = vpop.f32.mrb[86].mxu0  ;;  %v3938_v53 = vsel %vm1471_vm11, %v3908_v52, %v7447_v50  ;;  %v3939_v48 = vsel %vm1471_vm11, %v3909_v44, %v7448_v14 }
 0x444   : > { %v11891_v43 = vpop.f32.mrb[87].mxu0  ;;  %v7453_v4 = vunpack.i.h.bf16 %v11568_v18  ;;  %v7457_v33 = vunpack.i.l.bf16 %v11556_v56 }
 0x445   : > { %v11883_v9 = vpop.permute.xlu0 %7675  ;;  %v4065_v10 = vsel %vm1503_vm12, %v4033_v24, %v7652_v34  ;;  %v3969_v3 = vsel %vm1503_vm12, %v3937_v1, %v7653_v54  ;;  %v7452_v54 = vunpack.i.l.bf16 %v11568_v18  ;;  %v4035_v34 = vsel %vm1471_vm11, %v4003_v57, %v7662_v38  ;;  %v14428_v18 = vld [vmem:[#allocation117_spill] sm:$0xff] }
 0x446   : > { %v7666_v22 = vpop.permute.xlu1 %7665  ;;  %4295 = vmatprep.mubr.f32.mxu1 %v4065_v10  ;;  %v7677_v27 = vunpack.i.l.bf16 %v11883_v9  ;;  %v7678_v60 = vunpack.i.h.bf16 %v11883_v9 }
 0x447   : > { %v7668_v2 = vunpack.i.h.bf16 %v7666_v22  ;;  %v7667_v6 = vunpack.i.l.bf16 %v7666_v22  ;;  %4296 = vmatmul.mubr.f32.gmra.mrb[74].mxu1 %v3969_v3  ;;  %v11904_v26 = vpop.f32.mrb[88].mxu0  ;;  %v7378_v3 = vunpack.i.h.bf16 %v14425_v17  ;;  %v14429_v17 = vld [vmem:[#allocation79_spill] sm:$0xff] }
 0x448   : > { %v11909_v16 = vpop.f32.mrb[89].mxu0  ;;  %v4004_v20 = vsel %vm1439_vm2, %v14387_v55, %v7677_v27 }
 0x449   : > { %v11902_v47 = vpop.permute.xlu0 %7680  ;;  %v4066_v25 = vsel %vm1503_vm12, %v4034_v30, %v7667_v6  ;;  %v3970_v12 = vsel %vm1503_vm12, %v3938_v53, %v7668_v2  ;;  %v14427_v2 = vld [vmem:[#allocation115_spill] sm:$0xff]  ;;  %v4036_v52 = vsel %vm1471_vm11, %v4004_v20, %v7663_v41 }
 0x44a   : > { %v7671_v19 = vpop.permute.xlu1 %7670  ;;  %4300 = vmatprep.mubr.f32.mxu1 %v4066_v25  ;;  %v3910_v6 = vsel %vm1439_vm2, %v14427_v2, %v7377_v29  ;;  %v7682_v55 = vunpack.i.l.bf16 %v11902_v47  ;;  %v7382_v29 = vunpack.i.l.bf16 %v14429_v17  ;;  %v7683_v41 = vunpack.i.h.bf16 %v11902_v47  ;;  %v14432_v2 = vld [vmem:[#allocation60_spill] sm:$0xff] }
 0x44b   : > { %v7673_v5 = vunpack.i.h.bf16 %v7671_v19  ;;  %v7672_v49 = vunpack.i.l.bf16 %v7671_v19  ;;  %4301 = vmatmul.mubr.f32.gmra.mrb[76].mxu1 %v3970_v12  ;;  %v11921_v50 = vpop.f32.mrb[90].mxu0  ;;  %v3940_v14 = vsel %vm1471_vm11, %v3910_v6, %v7452_v54  ;;  %v3911_v12 = vsel %vm1439_vm2, %v14428_v18, %v7378_v3 }
 0x44c   : > { %v11927_v10 = vpop.f32.mrb[91].mxu0  ;;  %v3941_v54 = vsel %vm1471_vm11, %v3911_v12, %v7453_v4  ;;  %v7383_v3 = vunpack.i.h.bf16 %v14429_v17  ;;  %v3912_v6 = vsel %vm1439_vm2, %v14432_v2, %v7382_v29  ;;  %v7458_v4 = vunpack.i.h.bf16 %v11556_v56  ;;  %v14434_v56 = vld [vmem:[#allocation47_spill] sm:$0xff] }
 0x44d   : > { %v11919_v37 = vpop.permute.xlu0 %7695  ;;  %v4067_v24 = vsel %vm1503_vm12, %v4035_v34, %v7672_v49  ;;  %v3971_v1 = vsel %vm1503_vm12, %v3939_v48, %v7673_v5  ;;  %v14430_v49 = vld [vmem:[#allocation93_spill] sm:$0xff]  ;;  %v14438_v2 = vld [vmem:[#allocation59_spill] sm:$0xff] }
 0x44e   : > { %v7686_v46 = vpop.permute.xlu1 %7685  ;;  %4305 = vmatprep.mubr.f32.mxu1 %v4067_v24  ;;  %v7697_v9 = vunpack.i.l.bf16 %v11919_v37  ;;  %v4005_v57 = vsel %vm1439_vm2, %v14430_v49, %v7678_v60  ;;  %v7698_v60 = vunpack.i.h.bf16 %v11919_v37  ;;  %v14436_v49 = vld [vmem:[#allocation81_spill] sm:$0xff] }
 0x44f   : > { %v7688_v22 = vunpack.i.h.bf16 %v7686_v46  ;;  %v7687_v32 = vunpack.i.l.bf16 %v7686_v46  ;;  %4306 = vmatmul.mubr.f32.gmra.mrb[78].mxu1 %v3971_v1  ;;  %v11940_v62 = vpop.f32.mrb[92].mxu0  ;;  %v4037_v44 = vsel %vm1471_vm11, %v4005_v57, %v7682_v55  ;;  %v14431_v1 = vld [vmem:[#allocation42_spill] sm:$0xff]  ;;  %v7462_v57 = vunpack.i.l.bf16 %v14436_v49 }
 0x450   : > { %v11945_v27 = vpop.f32.mrb[93].mxu0  ;;  %v4006_v20 = vsel %vm1439_vm2, %v14431_v1, %v7697_v9  ;;  %v4007_v29 = vsel %vm1439_vm2, %v14434_v56, %v7698_v60  ;;  %v14437_v1 = vld [vmem:[#allocation91_spill] sm:$0xff] }
 0x451   : > { %v11938_v38 = vpop.permute.xlu0 %7700  ;;  %v4068_v30 = vsel %vm1503_vm12, %v4036_v52, %v7687_v32  ;;  %v3972_v53 = vsel %vm1503_vm12, %v3940_v14, %v7688_v22  ;;  %v4038_v52 = vsel %vm1471_vm11, %v4006_v20, %v7683_v41  ;;  %v3942_v14 = vsel %vm1471_vm11, %v3912_v6, %v7457_v33 }
 0x452   : > { %v7691_v25 = vpop.permute.xlu1 %7690  ;;  %4310 = vmatprep.mubr.f32.mxu1 %v4068_v30  ;;  %v7702_v55 = vunpack.i.l.bf16 %v11938_v38 }
 0x453   : > { %v7693_v19 = vunpack.i.h.bf16 %v7691_v25  ;;  %v7692_v5 = vunpack.i.l.bf16 %v7691_v25  ;;  %4311 = vmatmul.mubr.f32.gmra.mrb[80].mxu1 %v3972_v53  ;;  %v14433_v53 = vld [vmem:[#allocation56_spill] sm:$0xff] }
 0x454   : > { %v7387_v25 = vunpack.i.l.bf16 %v14433_v53  ;;  %v4039_v33 = vsel %vm1471_vm11, %v4007_v29, %v7702_v55  ;;  %v7388_v41 = vunpack.i.h.bf16 %v14433_v53  ;;  %v14439_v53 = vld [vmem:[#allocation86_spill] sm:$0xff]  ;;  %v14441_v29 = vld [vmem:[#allocation68_spill] sm:$0xff] }
 0x455   : > { %v7716_v34 = vpop.permute.xlu0 %7715  ;;  %v4069_v48 = vsel %vm1503_vm12, %v4037_v44, %v7692_v5  ;;  %v3973_v24 = vsel %vm1503_vm12, %v3941_v54, %v7693_v19  ;;  %v14435_v19 = vld [vmem:[#allocation43_spill] sm:$0xff] }
 0x456   : > { %v7706_v46 = vpop.permute.xlu1 %7705  ;;  %4315 = vmatprep.mubr.f32.mxu1 %v4069_v48  ;;  %v7717_v47 = vunpack.i.l.bf16 %v7716_v34  ;;  %v3913_v5 = vsel %vm1439_vm2, %v14435_v19, %v7383_v3  ;;  %v7718_v3 = vunpack.i.h.bf16 %v7716_v34  ;;  %v3914_v6 = vsel %vm1439_vm2, %v14438_v2, %v7387_v25  ;;  %v14444_v2 = vld [vmem:[#allocation67_spill] sm:$0xff] }
 0x457   : > { %v7708_v22 = vunpack.i.h.bf16 %v7706_v46  ;;  %v7707_v32 = vunpack.i.l.bf16 %v7706_v46  ;;  %4316 = vmatmul.mubr.f32.gmra.mrb[82].mxu1 %v3973_v24  ;;  %v3943_v44 = vsel %vm1471_vm11, %v3913_v5, %v7458_v4  ;;  %v7703_v46 = vunpack.i.h.bf16 %v11938_v38  ;;  %v14442_v5 = vld [vmem:[#allocation80_spill] sm:$0xff] }
 0x458   : > { %v4008_v20 = vsel %vm1439_vm2, %v14437_v1, %v7717_v47  ;;  %v7463_v4 = vunpack.i.h.bf16 %v14436_v49  ;;  %v3915_v25 = vsel %vm1439_vm2, %v14439_v53, %v7388_v41  ;;  %v4009_v19 = vsel %vm1439_vm2, %v14441_v29, %v7718_v3  ;;  %v14443_v1 = vld [vmem:[#allocation54_spill] sm:$0xff] }
 0x459   : > { %v11968_v9 = vpop.permute.xlu0 %7720  ;;  %v4070_v30 = vsel %vm1503_vm12, %v4038_v52, %v7707_v32  ;;  %v3974_v37 = vsel %vm1503_vm12, %v3942_v14, %v7708_v22  ;;  %v4040_v52 = vsel %vm1471_vm11, %v4008_v20, %v7703_v46  ;;  %v3944_v14 = vsel %vm1471_vm11, %v3914_v6, %v7462_v57 }
 0x45a   : > { %v7711_v18 = vpop.permute.xlu1 %7710  ;;  %4320 = vmatprep.mubr.f32.mxu1 %v4070_v30  ;;  %v7722_v55 = vunpack.i.l.bf16 %v11968_v9  ;;  %v7467_v49 = vunpack.i.l.bf16 %v14442_v5  ;;  %v7723_v46 = vunpack.i.h.bf16 %v11968_v9 }
 0x45b   : > { %v7713_v12 = vunpack.i.h.bf16 %v7711_v18  ;;  %v7712_v17 = vunpack.i.l.bf16 %v7711_v18  ;;  %4321 = vmatmul.mubr.f32.gmra.mrb[84].mxu1 %v3974_v37  ;;  %v14440_v18 = vld [vmem:[#allocation25_spill] sm:$0xff] }
 0x45c   : > { %v4041_v57 = vsel %vm1471_vm11, %v4009_v19, %v7722_v55  ;;  %v7393_v41 = vunpack.i.h.bf16 %v14440_v18  ;;  %v14448_v19 = vld [vmem:[#allocation63_spill] sm:$0xff] }
 0x45d   : > { %v7736_v54 = vpop.permute.xlu0 %7735  ;;  %v4071_v48 = vsel %vm1503_vm12, %v4039_v33, %v7712_v17  ;;  %v3975_v24 = vsel %vm1503_vm12, %v3943_v44, %v7713_v12  ;;  %v7392_v12 = vunpack.i.l.bf16 %v14440_v18  ;;  %v3945_v33 = vsel %vm1471_vm11, %v3915_v25, %v7463_v4 }
 0x45e   : > { %v7726_v60 = vpop.permute.xlu1 %7725  ;;  %4325 = vmatprep.mubr.f32.mxu1 %v4071_v48  ;;  %v7737_v38 = vunpack.i.l.bf16 %v7736_v54  ;;  %v7738_v3 = vunpack.i.h.bf16 %v7736_v54  ;;  %v7468_v4 = vunpack.i.h.bf16 %v14442_v5  ;;  %v7472_v5 = vunpack.i.l.bf16 %v14448_v19 }
 0x45f   : > { %v7728_v22 = vunpack.i.h.bf16 %v7726_v60  ;;  %v7727_v32 = vunpack.i.l.bf16 %v7726_v60  ;;  %4326 = vmatmul.mubr.f32.gmra.mrb[86].mxu1 %v3975_v24  ;;  %v3916_v6 = vsel %vm1439_vm2, %v14444_v2, %v7392_v12  ;;  %v14446_v12 = vld [vmem:[#allocation72_spill] sm:$0xff] }
 0x460   : > { %v4010_v20 = vsel %vm1439_vm2, %v14443_v1, %v7737_v38 }
 0x461   : > { %v11992_v47 = vpop.permute.xlu0 %7740  ;;  %v4072_v30 = vsel %vm1503_vm12, %v4040_v52, %v7727_v32  ;;  %v3976_v34 = vsel %vm1503_vm12, %v3944_v14, %v7728_v22  ;;  %v4042_v52 = vsel %vm1471_vm11, %v4010_v20, %v7723_v46  ;;  %v3946_v14 = vsel %vm1471_vm11, %v3916_v6, %v7467_v49  ;;  %v14449_v20 = vld [vmem:[#allocation48_spill] sm:$0xff] }
 0x462   : > { %v7731_v37 = vpop.permute.xlu1 %7730  ;;  %4330 = vmatprep.mubr.f32.mxu1 %v4072_v30  ;;  %v7742_v55 = vunpack.i.l.bf16 %v11992_v47 }
 0x463   : > { %v7733_v17 = vunpack.i.h.bf16 %v7731_v37  ;;  %v7732_v56 = vunpack.i.l.bf16 %v7731_v37  ;;  %4331 = vmatmul.mubr.f32.gmra.mrb[88].mxu1 %v3976_v34  ;;  %v14445_v34 = vld [vmem:[#allocation49_spill] sm:$0xff] }
 0x464   : > { %v7397_v37 = vunpack.i.l.bf16 %v14445_v34 }
 0x465   : > { %v12004_v44 = vpop.permute.xlu0 %7755  ;;  %v4073_v48 = vsel %vm1503_vm12, %v4041_v57, %v7732_v56  ;;  %v3977_v24 = vsel %vm1503_vm12, %v3945_v33, %v7733_v17  ;;  %v4011_v17 = vsel %vm1439_vm2, %v14446_v12, %v7738_v3  ;;  %v14447_v56 = vld [vmem:[#allocation44_spill] sm:$0xff]  ;;  %v7743_v3 = vunpack.i.h.bf16 %v11992_v47 }
 0x466   : > { %v7746_v60 = vpop.permute.xlu1 %7745  ;;  %4335 = vmatprep.mubr.f32.mxu1 %v4073_v48  ;;  %v7757_v9 = vunpack.i.l.bf16 %v12004_v44  ;;  %v3917_v29 = vsel %vm1439_vm2, %v14447_v56, %v7393_v41  ;;  %v4043_v49 = vsel %vm1471_vm11, %v4011_v17, %v7742_v55  ;;  %v7758_v2 = vunpack.i.h.bf16 %v12004_v44  ;;  %v14451_v55 = vld [vmem:[#allocation92_spill] sm:$0xff]  ;;  %v14452_v44 = vld [vmem:[#allocation37_spill] sm:$0xff]  ;;  %v14453_v56 = vld [vmem:[#allocation58_spill] sm:$0xff] }
 0x467   : > { %v7748_v22 = vunpack.i.h.bf16 %v7746_v60  ;;  %v7747_v32 = vunpack.i.l.bf16 %v7746_v60  ;;  %4336 = vmatmul.mubr.f32.gmra.mrb[90].mxu1 %v3977_v24  ;;  %v3947_v57 = vsel %vm1471_vm11, %v3917_v29, %v7468_v4  ;;  %v7398_v60 = vunpack.i.h.bf16 %v14445_v34  ;;  %v14454_v29 = vld [vmem:[#allocation51_spill] sm:$0xff] }
 0x468   : > { %v4012_v46 = vsel %vm1439_vm2, %v14449_v20, %v7757_v9 }
 0x469   : > { %v7766_v38 = vpop.permute.xlu0 %7765  ;;  %v4074_v30 = vsel %vm1503_vm12, %v4042_v52, %v7747_v32  ;;  %v3978_v54 = vsel %vm1503_vm12, %v3946_v14, %v7748_v22  ;;  %v14450_v22 = vld [vmem:[#allocation61_spill] sm:$0xff]  ;;  %v4044_v9 = vsel %vm1471_vm11, %v4012_v46, %v7743_v3  ;;  %v3919_v19 = vsel %vm1439_vm2, %v14454_v29, %v7398_v60  ;;  %v14457_v46 = vld [vmem:[#allocation78_spill] sm:$0xff] }
 0x46a   : > { %v7751_v53 = vpop.permute.xlu1 %7750  ;;  %4340 = vmatprep.mubr.f32.mxu1 %v4074_v30  ;;  %v3918_v32 = vsel %vm1439_vm2, %v14450_v22, %v7397_v37  ;;  %v7768_v14 = vunpack.i.h.bf16 %v7766_v38  ;;  %v7767_v30 = vunpack.i.l.bf16 %v7766_v38  ;;  %v4013_v38 = vsel %vm1439_vm2, %v14453_v56, %v7758_v2  ;;  %v12073_v56 = vpop.f32.mrb[94].mxu0 }
 0x46b   : > { %v7753_v25 = vunpack.i.h.bf16 %v7751_v53  ;;  %v7752_v18 = vunpack.i.l.bf16 %v7751_v53  ;;  %4341 = vmatmul.mubr.f32.gmra.mrb[92].mxu1 %v3978_v54  ;;  %v3948_v54 = vsel %vm1471_vm11, %v3918_v32, %v7472_v5  ;;  %v14455_v5 = vld [vmem:[#allocation62_spill] sm:$0xff] }
 0x46d   : > { %v7776_v33 = vpop.permute.xlu0 %7775  ;;  %v4075_v48 = vsel %vm1503_vm12, %v4043_v49, %v7752_v18  ;;  %v3979_v24 = vsel %vm1503_vm12, %v3947_v57, %v7753_v25  ;;  %v7402_v49 = vunpack.i.l.bf16 %v14455_v5  ;;  %v4045_v57 = vsel %vm1471_vm11, %v4013_v38, %v7767_v30  ;;  %v4600_v38 = vld [vmem:[#allocation5 + $0x20] sm:$0xff] }
 0x46e   : > { %v7777_v1 = vunpack.i.l.bf16 %v7776_v33  ;;  %v7761_v41 = vpop.permute.xlu1 %7760  ;;  %4345 = vmatprep.mubr.f32.mxu1 %v4075_v48  ;;  %v7778_v47 = vunpack.i.h.bf16 %v7776_v33  ;;  %v3949_v33 = vsel %vm1471_vm11, %v3919_v19, %v7768_v14  ;;  %v4601_v19 = vld [vmem:[#allocation5 + $0x28] sm:$0xff] }
 0x46f   : > { %v7763_v6 = vunpack.i.h.bf16 %v7761_v41  ;;  %v7762_v4 = vunpack.i.l.bf16 %v7761_v41  ;;  %4346 = vmatmul.mubr.f32.gmra.mrb[94].mxu1 %v3979_v24  ;;  %v7403_v41 = vunpack.i.h.bf16 %v14455_v5  ;;  %v12076_v5 = vpop.f32.mrb[95].mxu0 }
 0x470   : > { %v4014_v52 = vsel %vm1439_vm2, %v14451_v55, %v7777_v1  ;;  %v14456_v1 = vld [vmem:[#allocation38_spill] sm:$0xff]  ;;  %v4015_v3 = vsel %vm1439_vm2, %v14457_v46, %v7778_v47 }
 0x471   : > { %v4076_v34 = vsel %vm1503_vm12, %v4044_v9, %v7762_v4  ;;  %v3980_v53 = vsel %vm1503_vm12, %v3948_v54, %v7763_v6  ;;  %v4046_v25 = vsel %vm1471_vm11, %v4014_v52, %v14452_v44  ;;  %v7786_v17 = vpop.permute.xlu0 %7785  ;;  %v14458_v6 = vld [vmem:[#allocation55_spill] sm:$0xff]  ;;  %v4047_v55 = vsel %vm1471_vm11, %v4015_v3, %v14452_v44  ;;  %v4602_v3 = vld [vmem:[#allocation5 + $0x30] sm:$0xff] }
 0x472   : > { %v7771_v37 = vpop.permute.xlu1 %7770  ;;  %4350 = vmatprep.mubr.f32.mxu1 %v4076_v34  ;;  %v4078_v20 = vsel %vm1503_vm12, %v4046_v25, %v14456_v1  ;;  %v7787_v22 = vunpack.i.l.bf16 %v7786_v17  ;;  %v3920_v4 = vsel %vm1439_vm2, %v14458_v6, %v7402_v49  ;;  %v7788_v14 = vunpack.i.h.bf16 %v7786_v17  ;;  %v14459_v9 = vld [vmem:[#allocation71_spill] sm:$0xff]  ;;  %v4599_v17 = vld [vmem:[#allocation5 + $0x18] sm:$0xff]  ;;  %v12081_v49 = vld [vmem:[%s13594_s8] ss:$0 sm:$0xff] }
 0x473   : > { %v7773_v18 = vunpack.i.h.bf16 %v7771_v37  ;;  %v7772_v12 = vunpack.i.l.bf16 %v7771_v37  ;;  %4351 = vmatmul.mubr.f32.gmra.mrb[96].mxu1 %v3980_v53  ;;  %v3921_v54 = vsel %vm1439_vm2, %v14459_v9, %v7403_v41  ;;  %v4079_v47 = vsel %vm1503_vm12, %v4047_v55, %v14456_v1  ;;  %v4596_v37 = vld [vmem:[#allocation5] sm:$0xff]  ;;  %v4597_v44 = vld [vmem:[#allocation5 + $0x8] sm:$0xff]  ;;  %v4603_v41 = vld [vmem:[#allocation5 + $0x38] sm:$0xff] }
 0x474   : > { %v6746_v25 = vpack.c.bf16 %v4597_v44, %v4596_v37  ;;  %v14461_v1 = vld [vmem:[#allocation50_spill] sm:$0xff]  ;;  %v6755_v6 = vpack.c.bf16 %v4603_v41, %v4602_v3  ;;  %v14462_v55 = vld [vmem:[#allocation88_spill] sm:$0xff]  ;;  %v4609_v41 = vld [vmem:[#allocation5 + $0x68] sm:$0xff] }
 0x475   : > { %v4077_v48 = vsel %vm1503_vm12, %v4045_v57, %v7772_v12  ;;  %v3981_v24 = vsel %vm1503_vm12, %v3949_v33, %v7773_v18  ;;  %v14460_v18 = vmov 0.0|0.0   ;;  %v4598_v12 = vld [vmem:[#allocation5 + $0x10] sm:$0xff]  ;;  %v6752_v57 = vpack.c.bf16 %v4601_v19, %v4600_v38  ;;  %v4608_v3 = vld [vmem:[#allocation5 + $0x60] sm:$0xff] }
 0x476   : > { %v7781_v60 = vpop.permute.xlu1 %7780  ;;  %4355 = vmatprep.mubr.f32.mxu1 %v4077_v48  ;;  %6747 = vmatpush1.bf16.msra.mxu0 %v6746_v25  ;;  %v6749_v29 = vpack.c.bf16 %v4599_v17, %v4598_v12  ;;  %v4606_v9 = vld [vmem:[#allocation5 + $0x50] sm:$0xff] }
 0x477   : > { %v7783_v32 = vunpack.i.h.bf16 %v7781_v60  ;;  %v7782_v2 = vunpack.i.l.bf16 %v7781_v60  ;;  %4356 = vmatmul.mubr.f32.gmra.mrb[98].mxu1 %v3981_v24  ;;  %6748 = vmatprep.subr.bf16.mxu0 %v14460_v18 }
 0x478   : > { %4360 = vmatprep.mubr.f32.mxu1 %v4078_v20  ;;  %6781 = vmatpush1.bf16.msra.mxu1 %v6746_v25 }
 0x479   : > { %v3950_v52 = vsel %vm1471_vm11, %v3920_v4, %v7782_v2  ;;  %v3951_v34 = vsel %vm1471_vm11, %v3921_v54, %v7783_v32  ;;  %6773 = vmatprep.subr.bf16.mxu1 %v14460_v18  ;;  %v4605_v4 = vld [vmem:[#allocation5 + $0x48] sm:$0xff]  ;;  %v4607_v54 = vld [vmem:[#allocation5 + $0x58] sm:$0xff] }
 0x47a   : > { %v3982_v30 = vsel %vm1503_vm12, %v3950_v52, %v7787_v22  ;;  %v3983_v53 = vsel %vm1503_vm12, %v3951_v34, %v7788_v14  ;;  %6750 = vmatpush1.bf16.msra.mxu0 %v6749_v29  ;;  %v4604_v22 = vld [vmem:[#allocation5 + $0x40] sm:$0xff]  ;;  %v6761_v17 = vpack.c.bf16 %v4607_v54, %v4606_v9 }
 0x47b   : > { %4361 = vmatmul.mubr.f32.gmra.mrb[100].mxu1 %v3982_v30  ;;  %6751 = vmatprep.subr.bf16.mxu0 %v14460_v18  ;;  %v6758_v14 = vpack.c.bf16 %v4605_v4, %v4604_v22 }
 0x47c   : > { %4365 = vmatprep.mubr.f32.mxu1 %v4079_v47  ;;  %6782 = vmatpush1.bf16.msra.mxu1 %v6749_v29 }
 0x47d   : > { %6774 = vmatprep.subr.bf16.mxu1 %v14460_v18 }
 0x47e   : > { %6753 = vmatpush1.bf16.msra.mxu0 %v6752_v57 }
 0x47f   : > { %4366 = vmatmul.mubr.f32.gmra.mrb[102].mxu1 %v3983_v53  ;;  %6754 = vmatprep.subr.bf16.mxu0 %v14460_v18 }
 0x480   : > { %6783 = vmatpush1.bf16.msra.mxu1 %v6752_v57 }
 0x481   : > { %6775 = vmatprep.subr.bf16.mxu1 %v14460_v18 }
 0x482   : > { %6756 = vmatpush1.bf16.msra.mxu0 %v6755_v6 }
 0x483   : > { %6757 = vmatprep.subr.bf16.mxu0 %v14460_v18 }
 0x484   : > { %6784 = vmatpush1.bf16.msra.mxu1 %v6755_v6 }
 0x485   : > { %6776 = vmatprep.subr.bf16.mxu1 %v14460_v18 }
 0x486   : > { %6759 = vmatpush1.bf16.msra.mxu0 %v6758_v14 }
 0x487   : > { %6760 = vmatprep.subr.bf16.mxu0 %v14460_v18 }
 0x488   : > { %6785 = vmatpush1.bf16.msra.mxu1 %v6758_v14  ;;  %v4611_v14 = vld [vmem:[#allocation5 + $0x78] sm:$0xff] }
 0x489   : > { %6777 = vmatprep.subr.bf16.mxu1 %v14460_v18 }
 0x48a   : > { %6762 = vmatpush1.bf16.msra.mxu0 %v6761_v17 }
 0x48b   : > { %6763 = vmatprep.subr.bf16.mxu0 %v14460_v18 }
 0x48c   : > { %6786 = vmatpush1.bf16.msra.mxu1 %v6761_v17 }
 0x48d   : > { %6778 = vmatprep.subr.bf16.mxu1 %v14460_v18 }
 0x4d6   : > { %v4212_v33 = vpop.f32.mrb[40].mxu1 }
 0x4d7   : > { %v4213_v48 = vadd.f32 %v12081_v49, %v4212_v33  ;;  %v4214_v24 = vpop.f32.mrb[41].mxu1 }
 0x4d9   : > { %v4438_v20 = vadd.f32 %v14461_v1, %v4213_v48 }
 0x4da   : > { %v4217_v46 = vpop.f32.mrb[42].mxu1 }
 0x4db   : > { %v4647_v60 = vrot.slane %v4438_v20, 7  ;;  %v4218_v32 = vadd.f32 %v12081_v49, %v4217_v46  ;;  %v4219_v2 = vpop.f32.mrb[43].mxu1 }
 0x4dc   : > { %v14463_v2 = vld [vmem:[#allocation16_spill] sm:$0xff] }
 0x4dd   : > { %v4443_v52 = vadd.f32 %v14462_v55, %v4218_v32  ;;  %v12094_v47 = vsel %vm516_vm0, 0.0, %v4647_v60 }
 0x4de   : > { %v4222_v30 = vpop.f32.mrb[44].mxu1  ;;  %v4804_v38 = vrot.slane %v12094_v47, 1  ;;  %v4972_v22 = vrot.slane %v12094_v47, 2 }
 0x4df   : > { %v4648_v34 = vrot.slane %v4443_v52, 7  ;;  %v4223_v53 = vadd.f32 %v12081_v49, %v4222_v30  ;;  %v4224_v37 = vpop.f32.mrb[45].mxu1  ;;  %v4610_v52 = vld [vmem:[#allocation5 + $0x70] sm:$0xff] }
 0x4e0   : > { %v6767_v17 = vpack.c.bf16 %v4611_v14, %v4610_v52 }
 0x4e1   : > { %v12098_v44 = vsel %vm516_vm0, %v4647_v60, %v4648_v34  ;;  %v4758_v25 = vsel %vm516_vm0, %v4648_v34, 0.0  ;;  %v4448_v12 = vadd.f32 %v11632_v11, %v4223_v53  ;;  %v6764_v34 = vpack.c.bf16 %v4609_v41, %v4608_v3 }
 0x4e2   : > { %v4805_v29 = vrot.slane %v12098_v44, 1  ;;  %v4807_v19 = vrot.slane %v4758_v25, 1  ;;  %v4227_v57 = vpop.f32.mrb[46].mxu1  ;;  %v4973_v33 = vrot.slane %v12098_v44, 2  ;;  %v7789_v11 = vpack.i.bf16 %v12098_v44, %v12094_v47 }
 0x4e3   : > { %v4228_v48 = vadd.f32 %v12081_v49, %v4227_v57  ;;  %v4229_v24 = vpop.f32.mrb[47].mxu1  ;;  %v4650_v1 = vrot.slane %v4448_v12, 7  ;;  %v4975_v4 = vrot.slane %v4758_v25, 2  ;;  %6765 = vmatpush1.bf16.msra.mxu0 %v6764_v34  ;;  %6787 = vmatpush1.bf16.msra.mxu1 %v6764_v34 }
 0x4e4   : > { %v4806_v20 = vsel %vm675_vm1, %v4804_v38, %v4805_v29  ;;  %v12112_v46 = vsel %vm675_vm1, %v4805_v29, %v4807_v19  ;;  %7790 = vrot.lane.b32.xlu1 %v7789_v11, %s8515_s17  ;;  %v14466_v19 = vld [vmem:[#allocation17_spill] sm:$0xff]  ;;  %6766 = vmatprep.subr.bf16.mxu0 %v14460_v18  ;;  %v4612_v24 = vld [vmem:[#allocation5 + $0x80] sm:$0xff]  ;;  %v4613_v11 = vld [vmem:[#allocation5 + $0x88] sm:$0xff] }
 0x4e5   : > { %v4453_v60 = vadd.f32 %v11628_v45, %v4228_v48  ;;  %v7804_v32 = vpack.i.bf16 %v12112_v46, %v4806_v20  ;;  %v7794_v6 = vpack.i.bf16 %v4806_v20, %v14463_v2  ;;  %v4974_v45 = vsel %vm846_vm3, %v4972_v22, %v4973_v33  ;;  %6779 = vmatprep.subr.bf16.mxu1 %v14460_v18 }
 0x4e6   : > { %v4232_v55 = vpop.f32.mrb[48].mxu1  ;;  %v12125_v53 = vsel %vm516_vm0, 0.0, %v4650_v1  ;;  %v7799_v57 = vpack.i.bf16 %v4974_v45, %v14466_v19  ;;  %v4976_v48 = vsel %vm846_vm3, %v4973_v33, %v4975_v4 }
 0x4e7   : > { %v4651_v30 = vrot.slane %v4453_v60, 7  ;;  %v4233_v9 = vadd.f32 %v12081_v49, %v4232_v55  ;;  %v4234_v54 = vpop.f32.mrb[49].mxu1  ;;  %7805 = vrot.lane.b32.xlu0 %v7804_v32, %s8511_s23  ;;  %14464 = vst [vmem:[#allocation69_spill] sm:$0xff] %v12125_v53  ;;  %v4977_v3 = vrot.slane %v12125_v53, 2  ;;  %v4809_v33 = vrot.slane %v12125_v53, 1  ;;  %6768 = vmatpush1.bf16.msra.mxu0 %v6767_v17 }
 0x4e8   : > { %7795 = vrot.lane.b32.xlu1 %v7794_v6, %s8516_s13  ;;  %v6770_v6 = vpack.c.bf16 %v4613_v11, %v4612_v24  ;;  %v7809_v55 = vpack.i.bf16 %v4976_v48, %v4974_v45  ;;  %6769 = vmatprep.subr.bf16.mxu0 %v14460_v18 }
 0x4e9   : > { %v12128_v37 = vsel %vm516_vm0, %v4650_v1, %v4651_v30  ;;  %v12131_v25 = vsel %vm516_vm0, %v4651_v30, 0.0  ;;  %v4458_v12 = vadd.f32 %v11655_v40, %v4233_v9  ;;  %6788 = vmatpush1.bf16.msra.mxu1 %v6767_v17 }
 0x4ea   : > { %14465 = vst [vmem:[#allocation87_spill] sm:$0xff] %v12128_v37  ;;  %v4237_v38 = vpop.f32.mrb[50].mxu1  ;;  %v7814_v29 = vpack.i.bf16 %v12128_v37, %v12125_v53  ;;  %v4810_v40 = vrot.slane %v12128_v37, 1  ;;  %v4978_v41 = vrot.slane %v12128_v37, 2  ;;  %v4812_v22 = vrot.slane %v12131_v25, 1  ;;  %6780 = vmatprep.subr.bf16.mxu1 %v14460_v18 }
 0x4eb   : > { %v4238_v1 = vadd.f32 %v12081_v49, %v4237_v38  ;;  %v4239_v20 = vpop.f32.mrb[51].mxu1  ;;  %v4653_v52 = vrot.slane %v4458_v12, 7  ;;  %6771 = vmatpush1.bf16.msra.mxu0 %v6770_v6  ;;  %v4980_v12 = vrot.slane %v12131_v25, 2 }
 0x4ec   : > { %7815 = vrot.lane.b32.xlu0 %v7814_v29, %s8512_s28  ;;  %7800 = vrot.lane.b32.xlu1 %v7799_v57, %s8510_s25  ;;  %v4979_v32 = vsel %vm846_vm3, %v4977_v3, %v4978_v41  ;;  %v4811_v54 = vsel %vm675_vm1, %v4809_v33, %v4810_v40 }
 0x4ed   : > { %v4463_v60 = vadd.f32 %v11648_v58, %v4238_v1  ;;  %6367 = vmatprep.mubr.msk.f32.mxu0 %vm5626_vm14, %v4979_v32  ;;  %v12157_v58 = vsel %vm675_vm1, %v4810_v40, %v4812_v22  ;;  %v7824_v17 = vpack.i.bf16 %v4811_v54, %v12112_v46  ;;  %6789 = vmatpush1.bf16.msra.mxu1 %v6770_v6 }
 0x4ee   : > { %v4242_v4 = vpop.f32.mrb[52].mxu1  ;;  %v7834_v24 = vpack.i.bf16 %v12157_v58, %v4811_v54  ;;  %v12180_v25 = vsel %vm846_vm3, %v4978_v41, %v4980_v12  ;;  %v7829_v40 = vpack.i.bf16 %v4979_v32, %v4976_v48 }
 0x4ef   : > { %v4654_v14 = vrot.slane %v4463_v60, 7  ;;  %v4243_v30 = vadd.f32 %v12081_v49, %v4242_v4  ;;  %v4244_v9 = vpop.f32.mrb[53].mxu1  ;;  %v7844_v48 = vpack.i.bf16 %v12180_v25, %v4979_v32 }
 0x4f0   : > { %7820 = vrot.lane.b32.xlu0 %v7814_v29, %s8515_s17  ;;  %7810 = vrot.lane.b32.xlu1 %v7809_v55, %s8517_s15 }
 0x4f1   : > { %v12161_v34 = vsel %vm516_vm0, %v4653_v52, %v4654_v14  ;;  %v4468_v45 = vadd.f32 %v11691_v31, %v4243_v30  ;;  %v12170_v18 = vsel %vm516_vm0, %v4654_v14, 0.0  ;;  %v12174_v31 = vsel %vm516_vm0, 0.0, %v4653_v52 }
 0x4f2   : > { %v4247_v38 = vpop.f32.mrb[54].mxu1  ;;  %v4815_v46 = vrot.slane %v12161_v34, 1  ;;  %v4817_v3 = vrot.slane %v12170_v18, 1  ;;  %v4814_v6 = vrot.slane %v12174_v31, 1  ;;  %v7849_v52 = vpack.i.bf16 %v12161_v34, %v12174_v31 }
 0x4f3   : > { %v4248_v29 = vadd.f32 %v12081_v49, %v4247_v38  ;;  %v4249_v57 = vpop.f32.mrb[55].mxu1  ;;  %v4656_v1 = vrot.slane %v4468_v45, 7  ;;  %v4983_v32 = vrot.slane %v12161_v34, 2 }
 0x4f4   : > { %7825 = vrot.lane.b32.xlu0 %v7824_v17, %s8516_s13  ;;  %7835 = vrot.lane.b32.xlu1 %v7834_v24, %s8518_s29  ;;  %v12198_v14 = vsel %vm675_vm1, %v4814_v6, %v4815_v46  ;;  %v12203_v45 = vsel %vm675_vm1, %v4815_v46, %v4817_v3 }
 0x4f5   : > { %v4473_v11 = vadd.f32 %v11685_v39, %v4248_v29  ;;  %v12193_v41 = vsel %vm516_vm0, 0.0, %v4656_v1  ;;  %v4982_v29 = vrot.slane %v12174_v31, 2  ;;  %v7854_v46 = vpack.i.bf16 %v12198_v14, %v12157_v58 }
 0x4f6   : > { %v4252_v20 = vpop.f32.mrb[56].mxu1  ;;  %v4819_v12 = vrot.slane %v12193_v41, 1  ;;  %v4987_v58 = vrot.slane %v12193_v41, 2 }
 0x4f7   : > { %v4657_v22 = vrot.slane %v4473_v11, 7  ;;  %v4253_v33 = vadd.f32 %v12081_v49, %v4252_v20  ;;  %v4254_v60 = vpop.f32.mrb[57].mxu1  ;;  %v7864_v11 = vpack.i.bf16 %v12203_v45, %v12198_v14 }
 0x4f8   : > { %7830 = vrot.lane.b32.xlu0 %v7829_v40, %s8510_s25  ;;  %7840 = vrot.lane.b32.xlu1 %v7834_v24, %s8511_s23  ;;  %v4985_v60 = vrot.slane %v12170_v18, 2 }
 0x4f9   : > { %v12187_v39 = vsel %vm516_vm0, %v4656_v1, %v4657_v22  ;;  %v4478_v4 = vadd.f32 %v11710_v63, %v4253_v33  ;;  %v4761_v38 = vsel %vm516_vm0, %v4657_v22, 0.0  ;;  %v12226_v33 = vsel %vm846_vm3, %v4982_v29, %v4983_v32 }
 0x4fa   : > { %14467 = vst [vmem:[#allocation26_spill] sm:$0xff] %v12187_v39  ;;  %v4257_v55 = vpop.f32.mrb[58].mxu1  ;;  %v4820_v30 = vrot.slane %v12187_v39, 1  ;;  %v4988_v57 = vrot.slane %v12187_v39, 2  ;;  %v4822_v22 = vrot.slane %v4761_v38, 1 }
 0x4fb   : > { %v4659_v9 = vrot.slane %v4478_v4, 7  ;;  %v4258_v54 = vadd.f32 %v12081_v49, %v4257_v55  ;;  %v4259_v63 = vpop.f32.mrb[59].mxu1 }
 0x4fc   : > { %7845 = vrot.lane.b32.xlu0 %v7844_v48, %s8517_s15  ;;  %7850 = vrot.lane.b32.xlu1 %v7849_v52, %s8512_s28  ;;  %v12222_v3 = vsel %vm675_vm1, %v4819_v12, %v4820_v30  ;;  %v12248_v29 = vsel %vm675_vm1, %v4820_v30, %v4822_v22 }
 0x4fd   : > { %v4483_v17 = vadd.f32 %v11707_v42, %v4258_v54  ;;  %v12218_v40 = vsel %vm516_vm0, 0.0, %v4659_v9  ;;  %v7869_v54 = vpack.i.bf16 %v12222_v3, %v12203_v45 }
 0x4fe   : > { %v4262_v24 = vpop.f32.mrb[60].mxu1  ;;  %v4824_v48 = vrot.slane %v12218_v40, 1 }
 0x4ff   : > { %v4660_v1 = vrot.slane %v4483_v17, 7  ;;  %v4263_v20 = vadd.f32 %v12081_v49, %v4262_v24  ;;  %v4264_v42 = vpop.f32.mrb[61].mxu1  ;;  %v12243_v17 = vsel %vm846_vm3, %v4987_v58, %v4988_v57  ;;  %v4990_v58 = vrot.slane %v4761_v38, 2 }
 0x500   : > { %7865 = vrot.lane.b32.xlu0 %v7864_v11, %s8518_s29  ;;  %7855 = vrot.lane.b32.xlu1 %v7854_v46, %s8516_s13 }
 0x501   : > { %v12231_v6 = vsel %vm516_vm0, %v4659_v9, %v4660_v1  ;;  %v4488_v4 = vadd.f32 %v11746_v51, %v4263_v20  ;;  %v7859_v9 = vpack.i.bf16 %v12226_v33, %v12180_v25  ;;  %v4762_v11 = vsel %vm516_vm0, %v4660_v1, 0.0 }
 0x502   : > { %v4825_v55 = vrot.slane %v12231_v6, 1  ;;  %v4267_v52 = vpop.f32.mrb[62].mxu1  ;;  %v4993_v51 = vrot.slane %v12231_v6, 2  ;;  %v12257_v20 = vsel %vm846_vm3, %v4983_v32, %v4985_v60 }
 0x503   : > { %v4662_v63 = vrot.slane %v4488_v4, 7  ;;  %v4268_v18 = vadd.f32 %v12081_v49, %v4267_v52  ;;  %v4269_v12 = vpop.f32.mrb[63].mxu1  ;;  %v4992_v4 = vrot.slane %v12218_v40, 2  ;;  %v7874_v22 = vpack.i.bf16 %v12243_v17, %v12257_v20 }
 0x504   : > { %7870 = vrot.lane.b32.xlu0 %v7869_v54, %s8516_s13  ;;  %v12251_v24 = vsel %vm675_vm1, %v4824_v48, %v4825_v55  ;;  %7860 = vrot.lane.b32.xlu1 %v7859_v9, %s8510_s25  ;;  %v4827_v54 = vrot.slane %v4762_v11, 1 }
 0x505   : > { %v4493_v46 = vadd.f32 %v11741_v7, %v4268_v18  ;;  %v7879_v42 = vpack.i.bf16 %v12251_v24, %v12248_v29  ;;  %v12265_v48 = vsel %vm516_vm0, 0.0, %v4662_v63  ;;  %v12270_v32 = vsel %vm846_vm3, %v4992_v4, %v4993_v51 }
 0x506   : > { %v4272_v30 = vpop.f32.mrb[64].mxu1  ;;  %14468 = vst [vmem:[#allocation90_spill] sm:$0xff] %v12270_v32  ;;  %v4829_v18 = vrot.slane %v12265_v48, 1 }
 0x507   : > { %v4663_v1 = vrot.slane %v4493_v46, 7  ;;  %v4273_v7 = vadd.f32 %v12081_v49, %v4272_v30  ;;  %v4274_v52 = vpop.f32.mrb[65].mxu1  ;;  %v12281_v30 = vsel %vm846_vm3, %v4988_v57, %v4990_v58 }
 0x508   : > { %7875 = vrot.lane.b32.xlu0 %v7874_v22, %s8510_s25  ;;  %7880 = vrot.lane.b32.xlu1 %v7879_v42, %s8516_s13  ;;  %v4997_v42 = vrot.slane %v12265_v48, 2 }
 0x509   : > { %v12273_v38 = vsel %vm516_vm0, %v4662_v63, %v4663_v1  ;;  %v4498_v60 = vadd.f32 %v11773_v21, %v4273_v7  ;;  %v7884_v63 = vpack.i.bf16 %v12270_v32, %v12281_v30  ;;  %v4995_v21 = vrot.slane %v4762_v11, 2 }
 0x50a   : > { %v4830_v12 = vrot.slane %v12273_v38, 1  ;;  %v4998_v9 = vrot.slane %v12273_v38, 2  ;;  %v4277_v46 = vpop.f32.mrb[66].mxu1  ;;  %v12288_v7 = vsel %vm675_vm1, %v4825_v55, %v4827_v54  ;;  %v4763_v37 = vsel %vm516_vm0, %v4663_v1, 0.0 }
 0x50b   : > { %v4665_v22 = vrot.slane %v4498_v60, 7  ;;  %v4278_v4 = vadd.f32 %v12081_v49, %v4277_v46  ;;  %v4279_v52 = vpop.f32.mrb[67].mxu1  ;;  %v4832_v1 = vrot.slane %v4763_v37, 1 }
 0x50c   : > { %v12291_v19 = vsel %vm675_vm1, %v4829_v18, %v4830_v12  ;;  %7885 = vrot.lane.b32.xlu1 %v7884_v63, %s8510_s25  ;;  %v12299_v11 = vsel %vm846_vm3, %v4997_v42, %v4998_v9 }
 0x50d   : > { %14469 = vst [vmem:[#allocation70_spill] sm:$0xff] %v12291_v19  ;;  %v4503_v57 = vadd.f32 %v11768_v59, %v4278_v4  ;;  %v7889_v58 = vpack.i.bf16 %v12291_v19, %v12288_v7  ;;  %14470 = vst [vmem:[#allocation96_spill] sm:$0xff] %v12299_v11  ;;  %v12302_v46 = vsel %vm516_vm0, 0.0, %v4665_v22  ;;  %v12307_v59 = vsel %vm846_vm3, %v4993_v51, %v4995_v21 }
 0x50e   : > { %v4282_v60 = vpop.f32.mrb[68].mxu1  ;;  %14471 = vst [vmem:[#allocation73_spill] sm:$0xff] %v12302_v46  ;;  %14472 = vst [vmem:[#allocation20_spill] sm:$0xff] %v12307_v59  ;;  %v7894_v63 = vpack.i.bf16 %v12299_v11, %v12307_v59  ;;  %v4834_v42 = vrot.slane %v12302_v46, 1  ;;  %v5002_v21 = vrot.slane %v12302_v46, 2 }
 0x50f   : > { %v4666_v55 = vrot.slane %v4503_v57, 7  ;;  %v4283_v54 = vadd.f32 %v12081_v49, %v4282_v60  ;;  %v4284_v18 = vpop.f32.mrb[69].mxu1  ;;  %7890 = vrot.lane.b32.xlu0 %v7889_v58, %s8516_s13 }
 0x511   : > { %v12310_v4 = vsel %vm516_vm0, %v4665_v22, %v4666_v55  ;;  %v4508_v52 = vadd.f32 %v11807_v28, %v4283_v54  ;;  %v5000_v22 = vrot.slane %v4763_v37, 2  ;;  %v12322_v28 = vsel %vm675_vm1, %v4830_v12, %v4832_v1 }
 0x512   : > { %14473 = vst [vmem:[#allocation76_spill] sm:$0xff] %v12310_v4  ;;  %v4835_v57 = vrot.slane %v12310_v4, 1  ;;  %v5003_v60 = vrot.slane %v12310_v4, 2  ;;  %v4287_v18 = vpop.f32.mrb[70].mxu1  ;;  %v4764_v11 = vsel %vm516_vm0, %v4666_v55, 0.0 }
 0x513   : > { %v4668_v58 = vrot.slane %v4508_v52, 7  ;;  %v4288_v53 = vadd.f32 %v12081_v49, %v4287_v18  ;;  %v4289_v51 = vpop.f32.mrb[71].mxu1  ;;  %7895 = vrot.lane.b32.xlu0 %v7894_v63, %s8510_s25  ;;  %v12340_v55 = vsel %vm846_vm3, %v4998_v9, %v5000_v22  ;;  %v5005_v9 = vrot.slane %v4764_v11, 2 }
 0x514   : > { %v12325_v54 = vsel %vm675_vm1, %v4834_v42, %v4835_v57  ;;  %v12332_v51 = vsel %vm846_vm3, %v5002_v21, %v5003_v60  ;;  %v4837_v42 = vrot.slane %v4764_v11, 1 }
 0x515   : > { %14474 = vst [vmem:[#allocation119_spill] sm:$0xff] %v12325_v54  ;;  %v4513_v4 = vadd.f32 %v11803_v61, %v4288_v53  ;;  %v7899_v52 = vpack.i.bf16 %v12325_v54, %v12322_v28  ;;  %14475 = vst [vmem:[#allocation97_spill] sm:$0xff] %v12332_v51  ;;  %v12335_v37 = vsel %vm516_vm0, 0.0, %v4668_v58  ;;  %v7904_v54 = vpack.i.bf16 %v12332_v51, %v12340_v55 }
 0x516   : > { %v4292_v18 = vpop.f32.mrb[72].mxu1  ;;  %14476 = vst [vmem:[#allocation75_spill] sm:$0xff] %v12335_v37  ;;  %v5007_v22 = vrot.slane %v12335_v37, 2 }
 0x517   : > { %v4669_v63 = vrot.slane %v4513_v4, 7  ;;  %v4293_v12 = vadd.f32 %v12081_v49, %v4292_v18  ;;  %v4294_v1 = vpop.f32.mrb[73].mxu1  ;;  %7900 = vrot.lane.b32.xlu1 %v7899_v52, %s8516_s13  ;;  %v4839_v4 = vrot.slane %v12335_v37, 1 }
 0x519   : > { %v12343_v61 = vsel %vm516_vm0, %v4668_v58, %v4669_v63  ;;  %v4765_v53 = vsel %vm516_vm0, %v4669_v63, 0.0  ;;  %v4518_v21 = vadd.f32 %v11837_v8, %v4293_v12  ;;  %v12356_v8 = vsel %vm675_vm1, %v4835_v57, %v4837_v42 }
 0x51a   : > { %14477 = vst [vmem:[#allocation100_spill] sm:$0xff] %v12343_v61  ;;  %v4840_v18 = vrot.slane %v12343_v61, 1  ;;  %v5008_v52 = vrot.slane %v12343_v61, 2  ;;  %v5010_v1 = vrot.slane %v4765_v53, 2  ;;  %v4297_v46 = vpop.f32.mrb[74].mxu1 }
 0x51b   : > { %v4671_v58 = vrot.slane %v4518_v21, 7  ;;  %v4298_v19 = vadd.f32 %v12081_v49, %v4297_v46  ;;  %v4299_v63 = vpop.f32.mrb[75].mxu1  ;;  %7905 = vrot.lane.b32.xlu1 %v7904_v54, %s8510_s25 }
 0x51c   : > { %v12359_v12 = vsel %vm675_vm1, %v4839_v4, %v4840_v18  ;;  %v12362_v51 = vsel %vm846_vm3, %v5008_v52, %v5010_v1  ;;  %v12368_v21 = vsel %vm846_vm3, %v5007_v22, %v5008_v52  ;;  %v12376_v1 = vsel %vm846_vm3, %v5003_v60, %v5005_v9 }
 0x51d   : > { %14478 = vst [vmem:[#allocation77_spill] sm:$0xff] %v12359_v12  ;;  %14479 = vst [vmem:[#allocation85_spill] sm:$0xff] %v12362_v51  ;;  %v4523_v61 = vadd.f32 %v11832_v13, %v4298_v19  ;;  %v7909_v11 = vpack.i.bf16 %v12359_v12, %v12356_v8  ;;  %v12371_v46 = vsel %vm516_vm0, 0.0, %v4671_v58  ;;  %v4842_v13 = vrot.slane %v4765_v53, 1 }
 0x51e   : > { %14480 = vst [vmem:[#allocation118_spill] sm:$0xff] %v12368_v21  ;;  %14481 = vst [vmem:[#allocation23_spill] sm:$0xff] %v12371_v46  ;;  %v4302_v54 = vpop.f32.mrb[76].mxu1  ;;  %v7914_v19 = vpack.i.bf16 %v12368_v21, %v12376_v1  ;;  %v4844_v52 = vrot.slane %v12371_v46, 1 }
 0x51f   : > { %v4672_v57 = vrot.slane %v4523_v61, 7  ;;  %v4303_v42 = vadd.f32 %v12081_v49, %v4302_v54  ;;  %v4304_v4 = vpop.f32.mrb[77].mxu1  ;;  %7910 = vrot.lane.b32.xlu0 %v7909_v11, %s8516_s13  ;;  %14482 = vst [vmem:[#allocation101_spill] sm:$0xff] %v12376_v1  ;;  %v5012_v54 = vrot.slane %v12371_v46, 2 }
 0x521   : > { %v12382_v22 = vsel %vm516_vm0, %v4671_v58, %v4672_v57  ;;  %v4766_v63 = vsel %vm516_vm0, %v4672_v57, 0.0  ;;  %v4528_v61 = vadd.f32 %v11855_v0, %v4303_v42  ;;  %v12392_v58 = vsel %vm675_vm1, %v4840_v18, %v4842_v13 }
 0x522   : > { %14483 = vst [vmem:[#allocation84_spill] sm:$0xff] %v12382_v22  ;;  %v4845_v11 = vrot.slane %v12382_v22, 1  ;;  %v5013_v60 = vrot.slane %v12382_v22, 2  ;;  %v5015_v9 = vrot.slane %v4766_v63, 2  ;;  %v4307_v53 = vpop.f32.mrb[78].mxu1 }
 0x523   : > { %v4674_v4 = vrot.slane %v4528_v61, 7  ;;  %v4308_v51 = vadd.f32 %v12081_v49, %v4307_v53  ;;  %v4309_v21 = vpop.f32.mrb[79].mxu1  ;;  %7915 = vrot.lane.b32.xlu0 %v7914_v19, %s8510_s25 }
 0x524   : > { %v12395_v57 = vsel %vm675_vm1, %v4844_v52, %v4845_v11  ;;  %v12398_v0 = vsel %vm846_vm3, %v5012_v54, %v5013_v60  ;;  %v12407_v21 = vsel %vm846_vm3, %v5013_v60, %v5015_v9 }
 0x525   : > { %14484 = vst [vmem:[#allocation102_spill] sm:$0xff] %v12398_v0  ;;  %v12401_v42 = vsel %vm516_vm0, 0.0, %v4674_v4  ;;  %v4533_v22 = vadd.f32 %v11849_v35, %v4308_v51  ;;  %v7919_v61 = vpack.i.bf16 %v12395_v57, %v12392_v58  ;;  %14486 = vst [vmem:[#allocation95_spill] sm:$0xff] %v12407_v21  ;;  %v7924_v35 = vpack.i.bf16 %v12407_v21, %v12398_v0 }
 0x526   : > { %14485 = vst [vmem:[#allocation82_spill] sm:$0xff] %v12401_v42  ;;  %v4312_v19 = vpop.f32.mrb[80].mxu1  ;;  %v7929_v18 = vpack.i.bf16 %v12401_v42, %v12174_v31  ;;  %v4849_v51 = vrot.slane %v12401_v42, 1 }
 0x527   : > { %v4675_v13 = vrot.slane %v4533_v22, 7  ;;  %v4313_v52 = vadd.f32 %v12081_v49, %v4312_v19  ;;  %v4314_v54 = vpop.f32.mrb[81].mxu1  ;;  %7920 = vrot.lane.b32.xlu1 %v7919_v61, %s8516_s13 }
 0x528   : > { %7930 = vrot.lane.b32.xlu0 %v7929_v18, %s8515_s17  ;;  %v14488_v18 = vmov 0.0  }
 0x529   : > { %v12418_v60 = vsel %vm516_vm0, %v4674_v4, %v4675_v13  ;;  %v4767_v9 = vsel %vm516_vm0, %v4675_v13, 0.0  ;;  %v4538_v53 = vadd.f32 %v11873_v36, %v4313_v52  ;;  %v7934_v46 = vpack.i.bf16 %v14488_v18, %v12401_v42 }
 0x52a   : > { %14487 = vst [vmem:[#allocation104_spill] sm:$0xff] %v12418_v60  ;;  %v4850_v22 = vrot.slane %v12418_v60, 1  ;;  %v5018_v19 = vrot.slane %v12418_v60, 2  ;;  %v5020_v54 = vrot.slane %v4767_v9, 2  ;;  %v4317_v61 = vpop.f32.mrb[82].mxu1  ;;  %v4847_v4 = vrot.slane %v4766_v63, 1 }
 0x52b   : > { %v4677_v12 = vrot.slane %v4538_v53, 7  ;;  %v4318_v21 = vadd.f32 %v12081_v49, %v4317_v61  ;;  %v4319_v0 = vpop.f32.mrb[83].mxu1  ;;  %7925 = vrot.lane.b32.xlu1 %v7924_v35, %s8510_s25 }
 0x52c   : > { %7935 = vrot.lane.b32.xlu0 %v7934_v46, %s8512_s28  ;;  %v12430_v36 = vsel %vm675_vm1, %v4849_v51, %v4850_v22  ;;  %v12436_v37 = vsel %vm846_vm3, %v5018_v19, %v5020_v54  ;;  %v7939_v0 = vpack.i.bf16 %v12418_v60, %v12161_v34  ;;  %v12450_v54 = vsel %vm675_vm1, %v4845_v11, %v4847_v4 }
 0x52d   : > { %v4543_v13 = vadd.f32 %v11868_v15, %v4318_v21  ;;  %v7949_v52 = vpack.i.bf16 %v12430_v36, %v12198_v14  ;;  %14489 = vst [vmem:[#allocation22_spill] sm:$0xff] %v12436_v37  ;;  %v12441_v35 = vsel %vm516_vm0, 0.0, %v4677_v12  ;;  %v5017_v15 = vrot.slane %v12401_v42, 2 }
 0x52e   : > { %v4322_v53 = vpop.f32.mrb[84].mxu1  ;;  %14490 = vst [vmem:[#allocation35_spill] sm:$0xff] %v12441_v35  ;;  %v4852_v21 = vrot.slane %v4767_v9, 1  ;;  %v7964_v14 = vpack.i.bf16 %v12436_v37, %v12257_v20  ;;  %v7944_v9 = vpack.i.bf16 %v12430_v36, %v12450_v54  ;;  %v5022_v11 = vrot.slane %v12441_v35, 2 }
 0x52f   : > { %v4678_v63 = vrot.slane %v4543_v13, 7  ;;  %v4323_v46 = vadd.f32 %v12081_v49, %v4322_v53  ;;  %v4324_v51 = vpop.f32.mrb[85].mxu1  ;;  %7950 = vrot.lane.b32.xlu1 %v7949_v52, %s8511_s23 }
 0x530   : > { %7940 = vrot.lane.b32.xlu0 %v7939_v0, %s8515_s17 }
 0x531   : > { %v12453_v61 = vsel %vm516_vm0, %v4677_v12, %v4678_v63  ;;  %v12456_v18 = vsel %vm516_vm0, %v4678_v63, 0.0  ;;  %v12459_v13 = vadd.f32 %v11891_v43, %v4323_v46  ;;  %v12470_v43 = vsel %vm846_vm3, %v5017_v15, %v5018_v19 }
 0x532   : > { %14491 = vst [vmem:[#allocation94_spill] sm:$0xff] %v12453_v61  ;;  %v4855_v52 = vrot.slane %v12453_v61, 1  ;;  %v4857_v53 = vrot.slane %v12456_v18, 1  ;;  %v4327_v0 = vpop.f32.mrb[86].mxu1  ;;  %v13935_v4 = vrot.slane %v12453_v61, 2  ;;  %14492 = vst [vmem:[#allocation39_spill] sm:$0xff] %v12470_v43  ;;  %v7954_v15 = vpack.i.bf16 %v12470_v43, %v12226_v33 }
 0x533   : > { %v4328_v12 = vadd.f32 %v12081_v49, %v4327_v0  ;;  %v4329_v51 = vpop.f32.mrb[87].mxu1  ;;  %7965 = vrot.lane.b32.xlu1 %v7964_v14, %s8517_s15  ;;  %v7979_v14 = vpack.i.bf16 %v12441_v35, %v12193_v41  ;;  %v13934_v0 = vrot.slane %v12459_v13, 7 }
 0x534   : > { %7945 = vrot.lane.b32.xlu0 %v7944_v9, %s8516_s13  ;;  %v12476_v63 = vsel %vm846_vm3, %v5022_v11, %v13935_v4  ;;  %v12479_v46 = vsel %vm675_vm1, %v4855_v52, %v4857_v53  ;;  %v12489_v9 = vsel %vm675_vm1, %v4850_v22, %v4852_v21  ;;  %v7989_v21 = vpack.i.bf16 %v12453_v61, %v12187_v39 }
 0x535   : > { %v4553_v42 = vadd.f32 %v11885_v23, %v4328_v12  ;;  %6385 = vmatprep.mubr.msk.f32.mxu1 %vm5626_vm14, %v12476_v63  ;;  %14493 = vst [vmem:[#allocation89_spill] sm:$0xff] %v12489_v9  ;;  %v12496_v23 = vpack.i.bf16 %v12479_v46, %v12248_v29 }
 0x536   : > { %v4332_v19 = vpop.f32.mrb[88].mxu1 }
 0x537   : > { %v4681_v11 = vrot.slane %v4553_v42, 7  ;;  %v4333_v53 = vadd.f32 %v12081_v49, %v4332_v19  ;;  %v4334_v51 = vpop.f32.mrb[89].mxu1  ;;  %7980 = vrot.lane.b32.xlu1 %v7979_v14, %s8512_s28 }
 0x538   : > { %7955 = vrot.lane.b32.xlu0 %v7954_v15, %s8517_s15  ;;  %v7959_v15 = vpack.i.bf16 %v12489_v9, %v12203_v45  ;;  %v7969_v45 = vpack.i.bf16 %v12436_v37, %v12470_v43 }
 0x539   : > { %v12502_v12 = vsel %vm516_vm0, %v13934_v0, %v4681_v11  ;;  %v12505_v22 = vsel %vm516_vm0, %v4681_v11, 0.0  ;;  %v12508_v42 = vadd.f32 %v11909_v16, %v4333_v53  ;;  %v4854_v11 = vrot.slane %v12441_v35, 1 }
 0x53a   : > { %14494 = vst [vmem:[#allocation99_spill] sm:$0xff] %v12502_v12  ;;  %v4860_v19 = vrot.slane %v12502_v12, 1  ;;  %v4862_v29 = vrot.slane %v12505_v22, 1  ;;  %v4337_v51 = vpop.f32.mrb[90].mxu1 }
 0x53b   : > { %v4338_v0 = vadd.f32 %v12081_v49, %v4337_v51  ;;  %v4339_v4 = vpop.f32.mrb[91].mxu1  ;;  %7990 = vrot.lane.b32.xlu1 %v7989_v21, %s8512_s28  ;;  %v4856_v51 = vsel %vm675_vm1, %v4854_v11, %v4855_v52 }
 0x53c   : > { %7960 = vrot.lane.b32.xlu0 %v7959_v15, %s8511_s23  ;;  %v12523_v16 = vsel %vm675_vm1, %v4860_v19, %v4862_v29  ;;  %v13947_v4 = vrot.slane %v12508_v42, 7  ;;  %v7974_v15 = vpack.i.bf16 %v14463_v2, %v12430_v36  ;;  %v5025_v36 = vrot.slane %v12456_v18, 2 }
 0x53d   : > { %v4563_v53 = vadd.f32 %v11904_v26, %v4338_v0  ;;  %v12534_v29 = vpack.i.bf16 %v12523_v16, %v12288_v7 }
 0x53e   : > { %v4342_v60 = vpop.f32.mrb[92].mxu1 }
 0x53f   : > { %v4684_v1 = vrot.slane %v4563_v53, 7  ;;  %v4343_v35 = vadd.f32 %v12081_v49, %v4342_v60  ;;  %v4344_v39 = vpop.f32.mrb[93].mxu1  ;;  %7995 = vrot.lane.b32.xlu1 %v7989_v21, %s8515_s17 }
 0x540   : > { %7970 = vrot.lane.b32.xlu0 %v7969_v45, %s8510_s25  ;;  %v7999_v39 = vpack.i.bf16 %v4856_v51, %v12489_v9 }
 0x541   : > { %v12540_v26 = vsel %vm516_vm0, %v13947_v4, %v4684_v1  ;;  %v12543_v52 = vsel %vm516_vm0, %v4684_v1, 0.0  ;;  %v12546_v0 = vadd.f32 %v11927_v10, %v4343_v35  ;;  %v8004_v35 = vpack.i.bf16 %v4856_v51, %v12222_v3 }
 0x542   : > { %v13946_v60 = vrot.slane %v12540_v26, 1  ;;  %v4867_v7 = vrot.slane %v12543_v52, 1  ;;  %v4347_v21 = vpop.f32.mrb[94].mxu1 }
 0x543   : > { %v4348_v11 = vadd.f32 %v12081_v49, %v4347_v21  ;;  %v4349_v53 = vpop.f32.mrb[95].mxu1  ;;  %8000 = vrot.lane.b32.xlu1 %v7999_v39, %s8516_s13  ;;  %v13943_v39 = vrot.slane %v12546_v0, 7 }
 0x544   : > { %7975 = vrot.lane.b32.xlu0 %v7974_v15, %s8518_s29  ;;  %v12559_v10 = vsel %vm675_vm1, %v13946_v60, %v4867_v7 }
 0x545   : > { %v4573_v1 = vadd.f32 %v11921_v50, %v4348_v11  ;;  %v12565_v2 = vpack.i.bf16 %v12559_v10, %v12322_v28  ;;  %v14496_v11 = vrot.slane %v12453_v61, 2 }
 0x546   : > { %v4352_v45 = vpop.f32.mrb[96].mxu1 }
 0x547   : > { %v4687_v21 = vrot.slane %v4573_v1, 7  ;;  %v4353_v15 = vadd.f32 %v12081_v49, %v4352_v45  ;;  %v4354_v53 = vpop.f32.mrb[97].mxu1  ;;  %8005 = vrot.lane.b32.xlu1 %v8004_v35, %s8518_s29 }
 0x548   : > { %7985 = vrot.lane.b32.xlu0 %v7979_v14, %s8515_s17  ;;  %v12588_v14 = vsel %vm846_vm3, %v14496_v11, %v5025_v36  ;;  %v14497_v36 = vrot.slane %v12459_v13, 7 }
 0x549   : > { %v12575_v50 = vsel %vm516_vm0, %v13943_v39, %v4687_v21  ;;  %v12578_v3 = vsel %vm516_vm0, %v4687_v21, 0.0  ;;  %v12581_v28 = vadd.f32 %v11945_v27, %v4353_v15  ;;  %v8019_v21 = vpack.i.bf16 %v12476_v63, %v12243_v17 }
 0x54a   : > { %14495 = vst [vmem:[#allocation120_spill] sm:$0xff] %v12575_v50  ;;  %v13942_v18 = vrot.slane %v12575_v50, 1  ;;  %v4872_v51 = vrot.slane %v12578_v3, 1  ;;  %v4357_v7 = vpop.f32.mrb[98].mxu1  ;;  %v12605_v53 = vsel %vm516_vm0, 0.0, %v14497_v36  ;;  %v8029_v11 = vpack.i.bf16 %v12588_v14, %v12281_v30 }
 0x54b   : > { %v4358_v1 = vadd.f32 %v12081_v49, %v4357_v7  ;;  %v4359_v45 = vpop.f32.mrb[99].mxu1  ;;  %8010 = vrot.lane.b32.xlu1 %v12496_v23, %s8518_s29  ;;  %14498 = vst [vmem:[#allocation33_spill] sm:$0xff] %v12605_v53 }
 0x54c   : > { %8015 = vrot.lane.b32.xlu0 %v8004_v35, %s8511_s23  ;;  %v12597_v27 = vsel %vm675_vm1, %v13942_v18, %v4872_v51  ;;  %v13945_v35 = vrot.slane %v12581_v28, 7 }
 0x54d   : > { %v4583_v15 = vadd.f32 %v11940_v62, %v4358_v1  ;;  %v12614_v62 = vpack.i.bf16 %v12597_v27, %v12356_v8  ;;  %v8039_v8 = vpack.i.bf16 %v12605_v53, %v12218_v40 }
 0x54e   : > { %v4362_v7 = vpop.f32.mrb[100].mxu1 }
 0x54f   : > { %v4690_v45 = vrot.slane %v4583_v15, 7  ;;  %v4363_v51 = vadd.f32 %v12081_v49, %v4362_v7  ;;  %v4364_v18 = vpop.f32.mrb[101].mxu1  ;;  %8020 = vrot.lane.b32.xlu1 %v8019_v21, %s8517_s15 }
 0x550   : > { %8030 = vrot.lane.b32.xlu0 %v8029_v11, %s8517_s15 }
 0x551   : > { %v12620_v13 = vsel %vm516_vm0, %v13945_v35, %v4690_v45  ;;  %v12623_v1 = vsel %vm516_vm0, %v4690_v45, 0.0  ;;  %v4588_v15 = vadd.f32 %v12076_v5, %v4363_v51  ;;  %v8034_v45 = vpack.i.bf16 %v12588_v14, %v12476_v63 }
 0x552   : > { %14499 = vst [vmem:[#allocation98_spill] sm:$0xff] %v12620_v13  ;;  %v13944_v18 = vrot.slane %v12620_v13, 1  ;;  %v4877_v21 = vrot.slane %v12623_v1, 1  ;;  %v4367_v36 = vpop.f32.mrb[102].mxu1  ;;  %v5028_v63 = vrot.slane %v12502_v12, 2 }
 0x553   : > { %v4692_v7 = vrot.slane %v4588_v15, 7  ;;  %v4368_v11 = vadd.f32 %v12081_v49, %v4367_v36  ;;  %v4369_v39 = vpop.f32.mrb[103].mxu1  ;;  %8025 = vrot.lane.b32.xlu1 %v12496_v23, %s8511_s23  ;;  %v8049_v15 = vpack.i.bf16 %v12502_v12, %v12231_v6  ;;  %v4859_v49 = vrot.slane %v12605_v53, 1 }
 0x554   : > { %8040 = vrot.lane.b32.xlu0 %v8039_v8, %s8512_s28  ;;  %v12637_v5 = vsel %vm675_vm1, %v13944_v18, %v4877_v21 }
 0x555   : > { %v4593_v51 = vadd.f32 %v12073_v56, %v4368_v11  ;;  %v12646_v39 = vsel %vm516_vm0, 0.0, %v4692_v7  ;;  %v12651_v21 = vpack.i.bf16 %v12637_v5, %v12392_v58  ;;  %v5030_v56 = vrot.slane %v12505_v22, 2 }
 0x556   : > { %v7791_v36 = vpop.permute.xlu1 %7790  ;;  %v5339_v22 = vrot.slane %v12646_v39, 2 }
 0x557   : > { %v4693_v23 = vrot.slane %v4593_v51, 7  ;;  %8035 = vrot.lane.b32.xlu1 %v8034_v45, %s8510_s25  ;;  %v4861_v45 = vsel %vm675_vm1, %v4859_v49, %v4860_v19  ;;  %v5238_v51 = vrot.slane %v12646_v39, 1 }
 0x558   : > { %8050 = vrot.lane.b32.xlu0 %v8049_v15, %s8512_s28  ;;  %v8074_v19 = vpack.i.bf16 %v4861_v45, %v12251_v24  ;;  %v8059_v9 = vpack.i.bf16 %v4861_v45, %v12479_v46  ;;  %v7792_v46 = vunpack.i.l.bf16 %v7791_v36 }
 0x559   : > { %v12657_v11 = vsel %vm516_vm0, %v4692_v7, %v4693_v23  ;;  %v4773_v18 = vsel %vm516_vm0, %v4693_v23, 0.0  ;;  %v7806_v35 = vpop.permute.xlu0 %7805 }
 0x55a   : > { %v5239_v58 = vrot.slane %v12657_v11, 1  ;;  %v5241_v60 = vrot.slane %v4773_v18, 1  ;;  %v5340_v4 = vrot.slane %v12657_v11, 2  ;;  %v5342_v37 = vrot.slane %v4773_v18, 2  ;;  %v12667_v43 = vpop.permute.xlu1 %7795 }
 0x55b   : > { %8045 = vrot.lane.b32.xlu1 %v8039_v8, %s8515_s17  ;;  %v7797_v7 = vunpack.i.l.bf16 %v12667_v43 }
 0x55c   : > { %8055 = vrot.lane.b32.xlu0 %v8049_v15, %s8515_s17  ;;  %v5240_v49 = vsel %vm675_vm1, %v5238_v51, %v5239_v58  ;;  %v5242_v23 = vsel %vm675_vm1, %v5239_v58, %v5241_v60  ;;  %v12682_v18 = vsel %vm846_vm3, %v5339_v22, %v5340_v4  ;;  %v12688_v15 = vsel %vm846_vm3, %v5028_v63, %v5030_v56 }
 0x55d   : > { %v12676_v12 = vpack.i.bf16 %v5240_v49, %v12395_v57  ;;  %v12679_v61 = vpack.i.bf16 %v5242_v23, %v12450_v54  ;;  %14501 = vst [vmem:[#allocation32_spill] sm:$0xff] %v12682_v18  ;;  %v12694_v57 = vsel %vm846_vm3, %v5340_v4, %v5342_v37  ;;  %v14503_v60 = vrot.slane %v12508_v42, 7 }
 0x55e   : > { %v12684_v8 = vpop.permute.xlu0 %7815  ;;  %v12690_v24 = vpop.permute.xlu1 %7800  ;;  %14502 = vst [vmem:[#allocation41_spill] sm:$0xff] %v12694_v57  ;;  %v5627_v56 = vsel %vm5626_vm14, 0.0, %v7797_v7  ;;  %v8089_v45 = vpack.i.bf16 %v12688_v15, %v12307_v59  ;;  %v7793_v58 = vunpack.i.h.bf16 %v7791_v36  ;;  %v7807_v22 = vunpack.i.l.bf16 %v7806_v35 }
 0x55f   : > { %14500 = vst [vmem:[#allocation34_spill] sm:$0xff] %v12679_v61  ;;  %8075 = vrot.lane.b32.xlu1 %v8074_v19, %s8511_s23  ;;  %v7802_v54 = vunpack.i.l.bf16 %v12690_v24  ;;  %v12701_v51 = vsel %vm516_vm0, 0.0, %v14503_v60  ;;  %v5027_v42 = vrot.slane %v12605_v53, 2  ;;  %v7808_v36 = vunpack.i.h.bf16 %v7806_v35 }
 0x560   : > { %8060 = vrot.lane.b32.xlu0 %v8059_v9, %s8516_s13  ;;  %v7818_v57 = vunpack.i.h.bf16 %v12684_v8  ;;  %v4864_v18 = vrot.slane %v12701_v51, 1 }
 0x561   : > { %v5658_v37 = vsel %vm1439_vm2, %v5627_v56, %v7802_v54  ;;  %v12715_v54 = vpack.i.bf16 %v12701_v51, %v12265_v48 }
 0x562   : > { %v7821_v4 = vpop.permute.xlu0 %7820  ;;  %v5690_v49 = vsel %vm5689_vm15, %v5658_v37, %v7792_v46  ;;  %v7811_v9 = vpop.permute.xlu1 %7810  ;;  %v5691_v23 = vsel %vm5689_vm15, %v5658_v37, %v7793_v58  ;;  %v7817_v58 = vunpack.i.l.bf16 %v12684_v8 }
 0x563   : > { %8090 = vrot.lane.b32.xlu1 %v8089_v45, %s8517_s15  ;;  %v7812_v60 = vunpack.i.l.bf16 %v7811_v9  ;;  %v5722_v7 = vsel %vm1471_vm11, %v5690_v49, %v7807_v22  ;;  %v7813_v56 = vunpack.i.h.bf16 %v7811_v9  ;;  %v12721_v45 = vsel %vm846_vm3, %v5027_v42, %v5028_v63 }
 0x564   : > { %8065 = vrot.lane.b32.xlu0 %v8074_v19, %s8518_s29  ;;  %v5723_v35 = vsel %vm1471_vm11, %v5691_v23, %v7808_v36  ;;  %v7798_v49 = vunpack.i.h.bf16 %v12667_v43  ;;  %v8109_v9 = vpack.i.bf16 %v12540_v26, %v12273_v38  ;;  %v8079_v42 = vpack.i.bf16 %v12721_v45, %v12270_v32 }
 0x565   : > { %v5755_v46 = vsel %vm5754_vm4, %v5722_v7, %v7812_v60  ;;  %v7803_v60 = vunpack.i.h.bf16 %v12690_v24  ;;  %v5756_v53 = vsel %vm5754_vm4, %v5723_v35, %v7813_v56  ;;  %v7822_v43 = vunpack.i.l.bf16 %v7821_v4 }
 0x566   : > { %v12718_v59 = vpop.permute.xlu0 %7825  ;;  %v7836_v37 = vpop.permute.xlu1 %7835  ;;  %v5787_v63 = vsel %vm1503_vm12, %v5755_v46, %v7817_v58  ;;  %v5628_v8 = vsel %vm5626_vm14, %v12094_v47, %v7798_v49  ;;  %v7823_v56 = vunpack.i.h.bf16 %v7821_v4 }
 0x567   : > { %8100 = vrot.lane.b32.xlu1 %v12715_v54, %s8512_s28  ;;  %v7827_v19 = vunpack.i.l.bf16 %v12718_v59  ;;  %v7837_v22 = vunpack.i.l.bf16 %v7836_v37  ;;  %v7838_v7 = vunpack.i.h.bf16 %v7836_v37 }
 0x568   : > { %8070 = vrot.lane.b32.xlu0 %v12534_v29, %s8518_s29 }
 0x569   : > { %v5820_v36 = vsel %vm5819_vm5, %v5787_v63, %v7837_v22  ;;  %v5629_v24 = vsel %vm5626_vm14, %v12098_v44, %v7827_v19  ;;  %v5788_v22 = vsel %vm1503_vm12, %v5756_v53, %v7818_v57  ;;  %v5659_v63 = vsel %vm1439_vm2, %v5628_v8, %v7803_v60 }
 0x56a   : > { %v12737_v23 = vpop.permute.xlu0 %7830  ;;  %v7841_v58 = vpop.permute.xlu1 %7840  ;;  %5985 = vmatmul.mubr.f32.vlgmr.msra.gmra.mrb[96].mxu0 %v5820_v36  ;;  %v5821_v61 = vsel %vm5819_vm5, %v5788_v22, %v7838_v7  ;;  %v14504_v44 = vrot.slane %v12540_v26, 1  ;;  %v5032_v22 = vrot.slane %v12701_v51, 2 }
 0x56b   : > { %v7832_v46 = vunpack.i.l.bf16 %v12737_v23  ;;  %8110 = vrot.lane.b32.xlu1 %v8109_v9, %s8512_s28  ;;  %v7842_v37 = vunpack.i.l.bf16 %v7841_v58  ;;  %6368 = vmatprep.mubr.msk.f32.mxu0 %vm5626_vm14, %v12180_v25  ;;  %v5692_v25 = vsel %vm5689_vm15, %v5659_v63, %v7822_v43  ;;  %v7843_v4 = vunpack.i.h.bf16 %v7841_v58 }
 0x56c   : > { %8080 = vrot.lane.b32.xlu0 %v8079_v42, %s8517_s15  ;;  %v4866_v19 = vsel %vm675_vm1, %v4864_v18, %v14504_v44  ;;  %v5035_v63 = vrot.slane %v12543_v52, 2 }
 0x56d   : > { %v5660_v35 = vsel %vm1439_vm2, %v5629_v24, %v7832_v46  ;;  %v5724_v53 = vsel %vm1471_vm11, %v5692_v25, %v7842_v37  ;;  %v8119_v49 = vpack.i.bf16 %v4866_v19, %v12523_v16 }
 0x56e   : > { %v7846_v36 = vpop.permute.xlu0 %7845  ;;  %v5693_v42 = vsel %vm5689_vm15, %v5660_v35, %v7823_v56  ;;  %v7851_v47 = vpop.permute.xlu1 %7850  ;;  %5990 = vmatmul.mubr.f32.gmra.mrb[98].mxu0 %v5821_v61 }
 0x56f   : > { %v7847_v32 = vunpack.i.l.bf16 %v7846_v36  ;;  %8115 = vrot.lane.b32.xlu1 %v8109_v9, %s8515_s17  ;;  %v7852_v57 = vunpack.i.l.bf16 %v7851_v47  ;;  %6369 = vmatprep.mubr.msk.f32.mxu0 %vm5626_vm14, %v12226_v33  ;;  %v7848_v18 = vunpack.i.h.bf16 %v7846_v36  ;;  %v5725_v7 = vsel %vm1471_vm11, %v5693_v42, %v7843_v4 }
 0x570   : > { %8085 = vrot.lane.b32.xlu0 %v12534_v29, %s8511_s23  ;;  %v8094_v9 = vpack.i.bf16 %v12688_v15, %v12721_v45  ;;  %v5033_v33 = vrot.slane %v12540_v26, 2  ;;  %v7853_v58 = vunpack.i.h.bf16 %v7851_v47  ;;  %v14505_v29 = vld [vmem:[#allocation70_spill] sm:$0xff] }
 0x571   : > { %v5757_v60 = vsel %vm5754_vm4, %v5724_v53, %v7847_v32  ;;  %v8124_v32 = vpack.i.bf16 %v4866_v19, %v14505_v29  ;;  %v5758_v56 = vsel %vm5754_vm4, %v5725_v7, %v7848_v18  ;;  %v14506_v7 = vld [vmem:[#allocation96_spill] sm:$0xff] }
 0x572   : > { %v7866_v61 = vpop.permute.xlu0 %7865  ;;  %v12772_v46 = vpop.permute.xlu1 %7855  ;;  %v5789_v16 = vsel %vm1503_vm12, %v5757_v60, %v7852_v57  ;;  %v5790_v42 = vsel %vm1503_vm12, %v5758_v56, %v7853_v58  ;;  %v12797_v4 = vsel %vm846_vm3, %v5032_v22, %v5033_v33  ;;  %v14510_v22 = vld [vmem:[#allocation73_spill] sm:$0xff] }
 0x573   : > { %v7867_v43 = vunpack.i.l.bf16 %v7866_v61  ;;  %8120 = vrot.lane.b32.xlu1 %v8119_v49, %s8516_s13  ;;  %v7868_v24 = vunpack.i.h.bf16 %v7866_v61  ;;  %v7858_v37 = vunpack.i.h.bf16 %v12772_v46  ;;  %v8139_v61 = vpack.i.bf16 %v12797_v4, %v14506_v7 }
 0x574   : > { %8095 = vrot.lane.b32.xlu0 %v8094_v9, %s8510_s25 }
 0x575   : > { %v5822_v8 = vsel %vm5819_vm5, %v5789_v16, %v7867_v43  ;;  %v5632_v47 = vsel %vm5626_vm14, %v12174_v31, %v7858_v37  ;;  %v5823_v52 = vsel %vm5819_vm5, %v5790_v42, %v7868_v24  ;;  %v12807_v31 = vsel %vm846_vm3, %v5033_v33, %v5035_v63  ;;  %v14509_v37 = vld [vmem:[#allocation26_spill] sm:$0xff] }
 0x576   : > { %v7871_v35 = vpop.permute.xlu0 %7870  ;;  %5995 = vmatmul.mubr.f32.gmra.mrb[100].mxu0 %v5822_v8  ;;  %v12784_v36 = vpop.permute.xlu1 %7860  ;;  %v8149_v58 = vpack.i.bf16 %v12807_v31, %v12340_v55 }
 0x577   : > { %8125 = vrot.lane.b32.xlu1 %v8124_v32, %s8518_s29  ;;  %6370 = vmatprep.mubr.msk.f32.mxu0 %vm5626_vm14, %v12257_v20  ;;  %v7873_v44 = vunpack.i.h.bf16 %v7871_v35  ;;  %v7872_v19 = vunpack.i.l.bf16 %v7871_v35  ;;  %v7863_v25 = vunpack.i.h.bf16 %v12784_v36 }
 0x578   : > { %8105 = vrot.lane.b32.xlu0 %v12715_v54, %s8515_s17 }
 0x579   : > { %v12800_v53 = vsel %vm1439_vm2, %v5632_v47, %v7863_v25  ;;  %v5634_v54 = vsel %vm5626_vm14, %v12193_v41, %v7873_v44  ;;  %v5633_v60 = vsel %vm5626_vm14, %v12161_v34, %v7872_v19  ;;  %v14507_v41 = vrot.slane %v12546_v0, 7 }
 0x57a   : > { %v7876_v20 = vpop.permute.xlu0 %7875  ;;  %6000 = vmatmul.mubr.f32.gmra.mrb[102].mxu0 %v5823_v52  ;;  %v7881_v49 = vpop.permute.xlu1 %7880  ;;  %v8154_v25 = vpack.i.bf16 %v12807_v31, %v12797_v4  ;;  %v14511_v52 = vld [vmem:[#allocation76_spill] sm:$0xff] }
 0x57b   : > { %v7878_v57 = vunpack.i.h.bf16 %v7876_v20  ;;  %v7877_v18 = vunpack.i.l.bf16 %v7876_v20  ;;  %8130 = vrot.lane.b32.xlu1 %v12565_v2, %s8518_s29  ;;  %6371 = vmatprep.mubr.msk.f32.mxu0 %vm5626_vm14, %v12243_v17  ;;  %v7883_v17 = vunpack.i.h.bf16 %v7881_v49  ;;  %v7882_v33 = vunpack.i.l.bf16 %v7881_v49 }
 0x57c   : > { %8135 = vrot.lane.b32.xlu0 %v8124_v32, %s8511_s23  ;;  %v12827_v34 = vsel %vm516_vm0, 0.0, %v14507_v41  ;;  %v8169_v20 = vpack.i.bf16 %v12575_v50, %v14511_v52 }
 0x57d   : > { %v12817_v9 = vsel %vm1439_vm2, %v5633_v60, %v7877_v18  ;;  %v12820_v43 = vsel %vm1439_vm2, %v5634_v54, %v7878_v57  ;;  %14508 = vst [vmem:[#allocation36_spill] sm:$0xff] %v12827_v34  ;;  %v5636_v24 = vsel %vm5626_vm14, %v12218_v40, %v7883_v17  ;;  %v5635_v8 = vsel %vm5626_vm14, %v14509_v37, %v7882_v33 }
 0x57e   : > { %v7886_v16 = vpop.permute.xlu1 %7885  ;;  %v8159_v63 = vpack.i.bf16 %v12827_v34, %v14510_v22  ;;  %v14512_v17 = vrot.slane %v12575_v50, 1 }
 0x57f   : > { %8140 = vrot.lane.b32.xlu1 %v8139_v61, %s8517_s15  ;;  %v7888_v29 = vunpack.i.h.bf16 %v7886_v16  ;;  %v7887_v32 = vunpack.i.l.bf16 %v7886_v16  ;;  %v5038_v61 = vrot.slane %v12575_v50, 2  ;;  %v14513_v16 = vld [vmem:[#allocation119_spill] sm:$0xff] }
 0x580   : > { %8150 = vrot.lane.b32.xlu0 %v8149_v58, %s8517_s15 }
 0x581   : > { %v7891_v56 = vpop.permute.xlu0 %7890  ;;  %v12836_v35 = vsel %vm1439_vm2, %v5635_v8, %v7887_v32  ;;  %v12839_v0 = vsel %vm1439_vm2, %v5636_v24, %v7888_v29 }
 0x582   : > { %v7893_v44 = vunpack.i.h.bf16 %v7891_v56  ;;  %v7892_v19 = vunpack.i.l.bf16 %v7891_v56 }
 0x583   : > { %8145 = vrot.lane.b32.xlu1 %v12565_v2, %s8511_s23  ;;  %v4869_v2 = vrot.slane %v12827_v34, 1 }
 0x584   : > { %8160 = vrot.lane.b32.xlu0 %v8159_v63, %s8512_s28  ;;  %v5638_v57 = vsel %vm5626_vm14, %v12265_v48, %v7893_v44  ;;  %v5637_v18 = vsel %vm5626_vm14, %v12231_v6, %v7892_v19  ;;  %v5040_v48 = vrot.slane %v12578_v3, 2  ;;  %v14515_v19 = vld [vmem:[#allocation101_spill] sm:$0xff] }
 0x585   : > { %v7896_v40 = vpop.permute.xlu0 %7895  ;;  %v4871_v6 = vsel %vm675_vm1, %v4869_v2, %v14512_v17 }
 0x586   : > { %v7898_v42 = vunpack.i.h.bf16 %v7896_v40  ;;  %v7897_v47 = vunpack.i.l.bf16 %v7896_v40  ;;  %v8194_v29 = vpack.i.bf16 %v4871_v6, %v14513_v16  ;;  %v8179_v37 = vpack.i.bf16 %v4871_v6, %v12559_v10 }
 0x587   : > { %8155 = vrot.lane.b32.xlu1 %v8154_v25, %s8510_s25  ;;  %v12873_v8 = vsel %vm846_vm3, %v5038_v61, %v5040_v48  ;;  %v14516_v25 = vrot.slane %v12581_v28, 7 }
 0x588   : > { %v12857_v49 = vsel %vm1439_vm2, %v5637_v18, %v7897_v47  ;;  %v12860_v54 = vsel %vm1439_vm2, %v5638_v57, %v7898_v42  ;;  %8170 = vrot.lane.b32.xlu0 %v8169_v20, %s8512_s28  ;;  %v8209_v40 = vpack.i.bf16 %v12873_v8, %v14515_v19  ;;  %v5037_v47 = vrot.slane %v12827_v34, 2  ;;  %v14518_v57 = vld [vmem:[#allocation75_spill] sm:$0xff] }
 0x589   : > { %v7901_v60 = vpop.permute.xlu1 %7900 }
 0x58a   : > { %v7903_v33 = vunpack.i.h.bf16 %v7901_v60  ;;  %v7902_v58 = vunpack.i.l.bf16 %v7901_v60  ;;  %v12905_v17 = vsel %vm846_vm3, %v5037_v47, %v5038_v61  ;;  %v14526_v47 = vld [vmem:[#allocation77_spill] sm:$0xff] }
 0x58b   : > { %8165 = vrot.lane.b32.xlu1 %v8159_v63, %s8515_s17 }
 0x58c   : > { %8175 = vrot.lane.b32.xlu0 %v8169_v20, %s8515_s17  ;;  %v5640_v3 = vsel %vm5626_vm14, %v14510_v22, %v7903_v33  ;;  %v5639_v56 = vsel %vm5626_vm14, %v12273_v38, %v7902_v58  ;;  %v12892_v22 = vsel %vm516_vm0, 0.0, %v14516_v25 }
 0x58d   : > { %v7906_v41 = vpop.permute.xlu1 %7905  ;;  %14517 = vst [vmem:[#allocation65_spill] sm:$0xff] %v12892_v22  ;;  %v8219_v18 = vpack.i.bf16 %v12892_v22, %v14518_v57 }
 0x58e   : > { %v7908_v32 = vunpack.i.h.bf16 %v7906_v41  ;;  %v7907_v24 = vunpack.i.l.bf16 %v7906_v41  ;;  %v14522_v41 = vld [vmem:[#allocation100_spill] sm:$0xff] }
 0x58f   : > { %8195 = vrot.lane.b32.xlu1 %v8194_v29, %s8511_s23  ;;  %v8229_v16 = vpack.i.bf16 %v12620_v13, %v14522_v41 }
 0x590   : > { %v12881_v63 = vsel %vm1439_vm2, %v5639_v56, %v7907_v24  ;;  %v12884_v44 = vsel %vm1439_vm2, %v5640_v3, %v7908_v32  ;;  %8180 = vrot.lane.b32.xlu0 %v8179_v37, %s8516_s13  ;;  %v4874_v32 = vrot.slane %v12892_v22, 1  ;;  %v14525_v3 = vrot.slane %v12620_v13, 1 }
 0x591   : > { %14514 = vst [vmem:[#allocation66_spill] sm:$0xff] %v12884_v44  ;;  %v7911_v10 = vpop.permute.xlu0 %7910 }
 0x592   : > { %v7913_v38 = vunpack.i.h.bf16 %v7911_v10  ;;  %v7912_v42 = vunpack.i.l.bf16 %v7911_v10  ;;  %v4876_v56 = vsel %vm675_vm1, %v4874_v32, %v14525_v3  ;;  %v14527_v32 = vld [vmem:[#allocation118_spill] sm:$0xff] }
 0x593   : > { %8210 = vrot.lane.b32.xlu1 %v8209_v40, %s8517_s15  ;;  %v8239_v40 = vpack.i.bf16 %v4876_v56, %v12597_v27  ;;  %v5042_v27 = vrot.slane %v12892_v22, 2 }
 0x594   : > { %8185 = vrot.lane.b32.xlu0 %v8194_v29, %s8518_s29  ;;  %v5642_v28 = vsel %vm5626_vm14, %v14518_v57, %v7913_v38  ;;  %v5641_v48 = vsel %vm5626_vm14, %v14511_v52, %v7912_v42  ;;  %v14523_v29 = vld [vmem:[#allocation97_spill] sm:$0xff]  ;;  %v8214_v38 = vpack.i.bf16 %v12873_v8, %v12905_v17  ;;  %v5043_v57 = vrot.slane %v12620_v13, 2 }
 0x595   : > { %v7916_v20 = vpop.permute.xlu0 %7915  ;;  %v8199_v61 = vpack.i.bf16 %v12905_v17, %v14523_v29  ;;  %v7857_v13 = vunpack.i.l.bf16 %v12772_v46 }
 0x596   : > { %v7918_v2 = vunpack.i.h.bf16 %v7916_v20  ;;  %v7917_v60 = vunpack.i.l.bf16 %v7916_v20  ;;  %v8244_v20 = vpack.i.bf16 %v4876_v56, %v14526_v47  ;;  %v14528_v47 = vld [vmem:[#allocation23_spill] sm:$0xff] }
 0x597   : > { %8220 = vrot.lane.b32.xlu1 %v8219_v18, %s8512_s28 }
 0x598   : > { %v12908_v6 = vsel %vm1439_vm2, %v5641_v48, %v7917_v60  ;;  %v12911_v33 = vsel %vm1439_vm2, %v5642_v28, %v7918_v2  ;;  %8190 = vrot.lane.b32.xlu0 %v12614_v62, %s8518_s29  ;;  %v5045_v2 = vrot.slane %v12623_v1, 2  ;;  %v12956_v48 = vsel %vm846_vm3, %v5042_v27, %v5043_v57 }
 0x599   : > { %14519 = vst [vmem:[#allocation30_spill] sm:$0xff] %v12908_v6  ;;  %14520 = vst [vmem:[#allocation83_spill] sm:$0xff] %v12911_v33  ;;  %v12915_v58 = vpop.permute.xlu1 %7920  ;;  %v14530_v33 = vld [vmem:[#allocation69_spill] sm:$0xff] }
 0x59a   : > { %14521 = vst [vmem:[#allocation24_spill] sm:$0xff] %v12915_v58  ;;  %v12919_v52 = vpop.permute.xlu0 %7930  ;;  %v12968_v1 = vsel %vm846_vm3, %v5043_v57, %v5045_v2  ;;  %v7923_v3 = vunpack.i.h.bf16 %v12915_v58  ;;  %v7833_v2 = vunpack.i.h.bf16 %v12737_v23 }
 0x59b   : > { %8230 = vrot.lane.b32.xlu1 %v8229_v16, %s8512_s28  ;;  %v7932_v6 = vunpack.i.l.bf16 %v12919_v52 }
 0x59c   : > { %8200 = vrot.lane.b32.xlu0 %v8199_v61, %s8517_s15 }
 0x59d   : > { %v7926_v24 = vpop.permute.xlu1 %7925 }
 0x59e   : > { %v12926_v37 = vpop.permute.xlu0 %7935  ;;  %v7928_v23 = vunpack.i.h.bf16 %v7926_v24 }
 0x59f   : > { %14524 = vst [vmem:[#allocation29_spill] sm:$0xff] %v12926_v37  ;;  %8235 = vrot.lane.b32.xlu1 %v8229_v16, %s8515_s17  ;;  %v7828_v16 = vunpack.i.h.bf16 %v12718_v59  ;;  %v14529_v59 = vld [vmem:[#allocation85_spill] sm:$0xff]  ;;  %v14531_v37 = vld [vmem:[#allocation84_spill] sm:$0xff] }
 0x5a0   : > { %8205 = vrot.lane.b32.xlu0 %v12614_v62, %s8511_s23  ;;  %v8269_v27 = vpack.i.bf16 %v12968_v1, %v14529_v59 }
 0x5a1   : > { %v12934_v10 = vpop.permute.xlu1 %7950  ;;  %v5630_v57 = vsel %vm5626_vm14, %v14530_v33, %v7828_v16 }
 0x5a2   : > { %v12937_v25 = vpop.permute.xlu0 %7940  ;;  %v7953_v16 = vunpack.i.h.bf16 %v12934_v10  ;;  %v7952_v41 = vunpack.i.l.bf16 %v12934_v10  ;;  %v14532_v10 = vld [vmem:[#allocation87_spill] sm:$0xff] }
 0x5a3   : > { %8240 = vrot.lane.b32.xlu1 %v8239_v40, %s8516_s13  ;;  %v5631_v58 = vsel %vm5626_vm14, %v14532_v10, %v7857_v13 }
 0x5a4   : > { %8215 = vrot.lane.b32.xlu0 %v8214_v38, %s8510_s25  ;;  %v7927_v38 = vunpack.i.l.bf16 %v7926_v24 }
 0x5a5   : > { %v12943_v42 = vpop.permute.xlu1 %7965 }
 0x5a6   : > { %v12947_v62 = vpop.permute.xlu0 %7945 }
 0x5a7   : > { %8245 = vrot.lane.b32.xlu1 %v8244_v20, %s8518_s29  ;;  %v7947_v56 = vunpack.i.l.bf16 %v12947_v62 }
 0x5a8   : > { %8225 = vrot.lane.b32.xlu0 %v8219_v18, %s8515_s17  ;;  %v8259_v18 = vpack.i.bf16 %v12956_v48, %v14527_v32 }
 0x5a9   : > { %v12953_v60 = vpop.permute.xlu1 %7980  ;;  %v5645_v44 = vsel %vm5626_vm14, %v14531_v37, %v7947_v56  ;;  %v5661_v56 = vsel %vm1439_vm2, %v5630_v57, %v7833_v2 }
 0x5aa   : > { %v7956_v28 = vpop.permute.xlu0 %7955  ;;  %v5676_v24 = vsel %vm1439_vm2, %v5645_v44, %v7928_v23  ;;  %v7967_v23 = vunpack.i.l.bf16 %v12943_v42 }
 0x5ab   : > { %8250 = vrot.lane.b32.xlu1 %v12651_v21, %s8518_s29  ;;  %v7957_v34 = vunpack.i.l.bf16 %v7956_v28 }
 0x5ac   : > { %4939 = vrot.lane.b32.xlu0 %v12637_v5, %s8516_s13  ;;  %v12975_v5 = vpack.i.bf16 %v12646_v39, %v14528_v47  ;;  %v7862_v39 = vunpack.i.l.bf16 %v12784_v36  ;;  %v7933_v36 = vunpack.i.h.bf16 %v12919_v52 }
 0x5ad   : > { %v12963_v61 = vpop.permute.xlu1 %7990 }
 0x5ae   : > { %v7961_v40 = vpop.permute.xlu0 %7960 }
 0x5af   : > { %8260 = vrot.lane.b32.xlu1 %v8259_v18, %s8517_s15  ;;  %v8274_v18 = vpack.i.bf16 %v14529_v59, %v12956_v48  ;;  %v7943_v59 = vunpack.i.h.bf16 %v12937_v25 }
 0x5b0   : > { %8255 = vrot.lane.b32.xlu0 %v8244_v20, %s8511_s23  ;;  %v5644_v20 = vsel %vm5626_vm14, %v14528_v47, %v7923_v3  ;;  %v7942_v3 = vunpack.i.l.bf16 %v12937_v25  ;;  %v7958_v47 = vunpack.i.h.bf16 %v7956_v28  ;;  %v7982_v25 = vunpack.i.l.bf16 %v12953_v60 }
 0x5b1   : > { %v12984_v22 = vpop.permute.xlu1 %7995  ;;  %v5675_v46 = vsel %vm1439_vm2, %v5644_v20, %v7927_v38  ;;  %v7963_v38 = vunpack.i.h.bf16 %v7961_v40  ;;  %v7962_v20 = vunpack.i.l.bf16 %v7961_v40  ;;  %v8289_v40 = vpack.i.bf16 %v12657_v11, %v14531_v37 }
 0x5b2   : > { %v12994_v33 = vpop.permute.xlu0 %7970  ;;  %v5708_v52 = vsel %vm5689_vm15, %v5675_v46, %v7933_v36  ;;  %v5709_v2 = vsel %vm5689_vm15, %v5676_v24, %v7943_v59  ;;  %v7968_v37 = vunpack.i.h.bf16 %v12943_v42  ;;  %v7992_v24 = vunpack.i.l.bf16 %v12963_v61 }
 0x5b3   : > { %8265 = vrot.lane.b32.xlu1 %v12651_v21, %s8511_s23  ;;  %v5694_v21 = vsel %vm5689_vm15, %v5661_v56, %v7932_v6  ;;  %v5740_v44 = vsel %vm1471_vm11, %v5708_v52, %v7953_v16  ;;  %v7993_v56 = vunpack.i.h.bf16 %v12963_v61 }
 0x5b4   : > { %8270 = vrot.lane.b32.xlu0 %v8269_v27, %s8517_s15  ;;  %v5662_v27 = vsel %vm1439_vm2, %v5631_v58, %v7862_v39  ;;  %v5726_v57 = vsel %vm1471_vm11, %v5694_v21, %v7952_v41  ;;  %v5773_v6 = vsel %vm5754_vm4, %v5740_v44, %v7958_v47  ;;  %v7983_v41 = vunpack.i.h.bf16 %v12953_v60 }
 0x5b5   : > { %v13006_v50 = vpop.permute.xlu1 %8000  ;;  %v5695_v13 = vsel %vm5689_vm15, %v5662_v27, %v7942_v3  ;;  %v5759_v58 = vsel %vm5754_vm4, %v5726_v57, %v7957_v34  ;;  %v5741_v39 = vsel %vm1471_vm11, %v5709_v2, %v7963_v38  ;;  %v14535_v2 = vld [vmem:[#allocation102_spill] sm:$0xff] }
 0x5b6   : > { %v13013_v28 = vpop.permute.xlu0 %7975  ;;  %v5791_v34 = vsel %vm1503_vm12, %v5759_v58, %v7982_v25  ;;  %v5805_v60 = vsel %vm1503_vm12, %v5773_v6, %v7983_v41  ;;  %v5774_v42 = vsel %vm5754_vm4, %v5741_v39, %v7968_v37  ;;  %v14536_v58 = vld [vmem:[#allocation32_spill] sm:$0xff]  ;;  %v14538_v39 = vld [vmem:[#allocation41_spill] sm:$0xff]  ;;  %v7948_v37 = vunpack.i.h.bf16 %v12947_v62  ;;  %v14541_v62 = vld [vmem:[#allocation82_spill] sm:$0xff] }
 0x5b7   : > { %8275 = vrot.lane.b32.xlu1 %v8274_v18, %s8510_s25  ;;  %v5727_v18 = vsel %vm1471_vm11, %v5695_v13, %v7962_v20  ;;  %v5806_v27 = vsel %vm1503_vm12, %v5774_v42, %v7993_v56  ;;  %v8314_v41 = vpack.i.bf16 %v14536_v58, %v14535_v2  ;;  %v7973_v42 = vunpack.i.h.bf16 %v12994_v33 }
 0x5b8   : > { %8280 = vrot.lane.b32.xlu0 %v12975_v5, %s8512_s28  ;;  %v5760_v47 = vsel %vm5754_vm4, %v5727_v18, %v7967_v23 }
 0x5b9   : > { %v8006_v11 = vpop.permute.xlu1 %8005  ;;  %v5792_v52 = vsel %vm1503_vm12, %v5760_v47, %v7992_v24  ;;  %v5646_v47 = vsel %vm5626_vm14, %v14541_v62, %v7948_v37 }
 0x5ba   : > { %v8008_v46 = vunpack.i.h.bf16 %v8006_v11  ;;  %v8007_v59 = vunpack.i.l.bf16 %v8006_v11  ;;  %v13033_v16 = vpop.permute.xlu0 %7985  ;;  %v8002_v11 = vunpack.i.l.bf16 %v13006_v50 }
 0x5bb   : > { %5107 = vrot.lane.b32.xlu1 %v12968_v1, %s8510_s25  ;;  %s407_s25 = sand.u32 1, %s8495_s18  }
 0x5bc   : > { %8290 = vrot.lane.b32.xlu0 %v8289_v40, %s8512_s28  ;;  %v5824_v36 = vsel %vm5819_vm5, %v5791_v34, %v8007_v59  ;;  %v5838_v3 = vsel %vm5819_vm5, %v5805_v60, %v8008_v46  ;;  %v7972_v46 = vunpack.i.l.bf16 %v12994_v33  ;;  %v14539_v59 = vld [vmem:[#allocation104_spill] sm:$0xff]  ;;  %v7988_v60 = vunpack.i.h.bf16 %v13033_v16  ;;  %s13545_s21 = scalar_lea.sflag [#allocation4], %s407_s25 }
 0x5bd   : > { %v8011_v38 = vpop.permute.xlu1 %8010  ;;  %6005 = vmatmul.mubr.f32.gmra.mrb[104].mxu0 %v5824_v36  ;;  %6075 = vmatmul.mubr.f32.vlgmr.msra.gmra.mrb[104].mxu1 %v5838_v3  ;;  %v5647_v34 = vsel %vm5626_vm14, %v14539_v59, %v8002_v11  ;;  %v7987_v36 = vunpack.i.l.bf16 %v13033_v16  ;;  %v14540_v3 = vld [vmem:[#allocation89_spill] sm:$0xff] }
 0x5be   : > { %v8013_v20 = vunpack.i.h.bf16 %v8011_v38  ;;  %v8012_v10 = vunpack.i.l.bf16 %v8011_v38  ;;  %v8016_v21 = vpop.permute.xlu0 %8015  ;;  %6372 = vmatprep.mubr.msk.f32.mxu0 %vm5626_vm14, %v12281_v30  ;;  %6386 = vmatprep.mubr.msk.f32.mxu1 %vm5626_vm14, %v12588_v14  ;;  %v14533_v14 = vld [vmem:[#allocation90_spill] sm:$0xff]  ;;  %v5677_v16 = vsel %vm1439_vm2, %v5646_v47, %v7972_v46 }
 0x5bf   : > { %8285 = vrot.lane.b32.xlu1 %v12975_v5, %s8515_s17  ;;  %v14534_v5 = vld [vmem:[#allocation34_spill] sm:$0xff]  ;;  %v8018_v56 = vunpack.i.h.bf16 %v8016_v21  ;;  %v8017_v24 = vunpack.i.l.bf16 %v8016_v21  ;;  %v5696_v33 = vsel %vm5689_vm15, %v12800_v53, %v7987_v36  ;;  %v5710_v21 = vsel %vm5689_vm15, %v5677_v16, %v7988_v60 }
 0x5c0   : > { %8300 = vrot.lane.b32.xlu0 %v12676_v12, %s8518_s29  ;;  %v5825_v61 = vsel %vm5819_vm5, %v5792_v52, %v8012_v10  ;;  %v5839_v57 = vsel %vm5819_vm5, %v5806_v27, %v8013_v20  ;;  %v7998_v20 = vunpack.i.h.bf16 %v12984_v22  ;;  %v7997_v10 = vunpack.i.l.bf16 %v12984_v22 }
 0x5c1   : > { %v8021_v44 = vpop.permute.xlu1 %8020  ;;  %6010 = vmatmul.mubr.f32.gmra.mrb[106].mxu0 %v5825_v61  ;;  %6080 = vmatmul.mubr.f32.gmra.mrb[106].mxu1 %v5839_v57  ;;  %v5678_v57 = vsel %vm1439_vm2, %v5647_v34, %v7973_v42  ;;  %v5728_v11 = vsel %vm1471_vm11, %v5696_v33, %v8017_v24  ;;  %v5742_v22 = vsel %vm1471_vm11, %v5710_v21, %v8018_v56 }
 0x5c2   : > { %v13058_v30 = vpop.permute.xlu0 %8030  ;;  %6373 = vmatprep.mubr.msk.f32.mxu0 %vm5626_vm14, %v14533_v14  ;;  %6387 = vmatprep.mubr.msk.f32.mxu1 %vm5626_vm14, %v12721_v45  ;;  %v14537_v45 = vld [vmem:[#allocation95_spill] sm:$0xff]  ;;  %v8023_v52 = vunpack.i.h.bf16 %v8021_v44  ;;  %v8022_v27 = vunpack.i.l.bf16 %v8021_v44  ;;  %v5697_v37 = vsel %vm5689_vm15, %v12817_v9, %v7997_v10  ;;  %v5711_v46 = vsel %vm5689_vm15, %v5678_v57, %v7998_v20 }
 0x5c3   : > { %8295 = vrot.lane.b32.xlu1 %v8289_v40, %s8515_s17  ;;  %v8324_v40 = vpack.i.bf16 %v14538_v39, %v14537_v45  ;;  %v8033_v42 = vunpack.i.h.bf16 %v13058_v30  ;;  %v8032_v56 = vunpack.i.l.bf16 %v13058_v30  ;;  %s8519_s17 = smov [#allocation7]  }
 0x5c4   : > { %8305 = vrot.lane.b32.xlu0 %v14534_v5, %s8518_s29  ;;  %v5775_v53 = vsel %vm5754_vm4, %v5742_v22, %v8023_v52  ;;  %s8437_s13 = sshll.u32 %s8519_s17, 4  ;;  %s8438_s13 = int_to_ptr.vmem [resolvable:$false] %s8437_s13 }
 0x5c5   : > { %v8026_v13 = vpop.permute.xlu1 %8025 }
 0x5c6   : > { %v8041_v6 = vpop.permute.xlu0 %8040  ;;  %v8028_v14 = vunpack.i.h.bf16 %v8026_v13 }
 0x5c7   : > { %8310 = vrot.lane.b32.xlu1 %v12676_v12, %s8511_s23 }
 0x5c8   : > { %8315 = vrot.lane.b32.xlu0 %v8314_v41, %s8517_s15  ;;  %v8043_v41 = vunpack.i.h.bf16 %v8041_v6 }
 0x5c9   : > { %v13072_v25 = vpop.permute.xlu1 %8035 }
 0x5ca   : > { %v13074_v18 = vpop.permute.xlu0 %8050  ;;  %v5807_v9 = vsel %vm1503_vm12, %v5775_v53, %v8043_v41  ;;  %v8037_v22 = vunpack.i.l.bf16 %v13072_v25 }
 0x5cb   : > { %8320 = vrot.lane.b32.xlu1 %v14534_v5, %s8511_s23  ;;  %v8027_v5 = vunpack.i.l.bf16 %v8026_v13  ;;  %v5761_v13 = vsel %vm5754_vm4, %v5728_v11, %v8022_v27  ;;  %v8052_v62 = vunpack.i.l.bf16 %v13074_v18  ;;  %s6283_s23 = sshll.u32 %s407_s25, 8 }
 0x5cc   : > { %8325 = vrot.lane.b32.xlu0 %v8324_v40, %s8517_s15  ;;  %v8042_v40 = vunpack.i.l.bf16 %v8041_v6  ;;  %v5743_v6 = vsel %vm1471_vm11, %v5711_v46, %v8028_v14  ;;  %s13423_s19 = scalar_lea.vmem [#allocation7], %s6283_s23  ;;  %s8439_s15 = scalar_lea.vmem %s8438_s13, 8192 }
 0x5cd   : > { %v13083_v23 = vpop.permute.xlu1 %8045  ;;  %v5729_v34 = vsel %vm1471_vm11, %v5697_v37, %v8027_v5  ;;  %v5776_v30 = vsel %vm5754_vm4, %v5743_v6, %v8033_v42  ;;  %v8038_v6 = vunpack.i.h.bf16 %v13072_v25  ;;  %s6191_s26 = sshll.u32 %s13423_s19, 4  ;;  %s13536_s26 = int_to_ptr.vmem [resolvable:$true] %s6191_s26 }
 0x5ce   : > { %v13085_v12 = vpop.permute.xlu0 %8055  ;;  %v5793_v47 = vsel %vm1503_vm12, %v5761_v13, %v8042_v40  ;;  %v5762_v57 = vsel %vm5754_vm4, %v5729_v34, %v8032_v56  ;;  %v8048_v46 = vunpack.i.h.bf16 %v13083_v23  ;;  %v14543_v13 = vld [vmem:[#allocation94_spill] sm:$0xff]  ;;  %s8433_s12 = scalar_lea.vmem %s13536_s26, 4096  ;;  %p8440_p4 = scmp.lt.s32.totalorder %s13536_s26, %s8438_s13 }
 0x5cf   : > { %5474 = vrot.lane.b32.xlu1 %v14539_v59, %s8512_s28  ;;  %v5794_v14 = vsel %vm1503_vm12, %v5762_v57, %v8052_v62  ;;  %p8434_p12 = scmp.ne.s32.totalorder %s13536_s26, %s8433_s12  ;;  %p8441_p7 = scmp.lt.s32.totalorder %s8439_s15, %s8433_s12 }
 0x5d0   : > { %5567 = vrot.lane.b32.xlu0 %v14540_v3, %s8518_s29  ;;  %v8053_v3 = vunpack.i.h.bf16 %v13074_v18  ;;  %v14542_v18 = vld [vmem:[#allocation20_spill] sm:$0xff] }
 0x5d1   : > { %v13099_v38 = vpop.permute.xlu1 %8075  ;;  %p8435_p2 = pnand %p8434_p12, %p14561_p1  ;;  %p8442_p8 = por %p8441_p7, %p8440_p4 }
 0x5d2   : > { %v13103_v61 = vpop.permute.xlu0 %8060  ;;  %v5808_v5 = vsel %vm1503_vm12, %v5776_v30, %v8053_v3 }
 0x5d3   : > { %v8062_v40 = vunpack.i.l.bf16 %v13103_v61  ;;  %p8436_p3 = pneg %p8435_p2 }
 0x5d5   : > { %v13112_v44 = vpop.permute.xlu1 %8090  ;;  %v5649_v53 = vsel %vm5626_vm14, %v14543_v13, %v8062_v40  ;;  %p8443_p11 = pnand %p8442_p8, %p8436_p3 }
 0x5d6   : > { %v8066_v59 = vpop.permute.xlu0 %8065  ;;  %v8092_v40 = vunpack.i.l.bf16 %v13112_v44 }
 0x5d7   : > { %v8068_v60 = vunpack.i.h.bf16 %v8066_v59  ;;  %v8067_v36 = vunpack.i.l.bf16 %v8066_v59  ;;  %v8047_v59 = vunpack.i.l.bf16 %v13083_v23  ;;  %v5680_v23 = vsel %vm1439_vm2, %v5649_v53, %v8038_v6 }
 0x5d9   : > { %v13127_v24 = vpop.permute.xlu1 %8100  ;;  %v5826_v20 = vsel %vm5819_vm5, %v5793_v47, %v8067_v36  ;;  %v5840_v10 = vsel %vm5819_vm5, %v5807_v9, %v8068_v60  ;;  %v14544_v60 = vld [vmem:[#allocation35_spill] sm:$0xff]  ;;  %v8057_v36 = vunpack.i.l.bf16 %v13085_v12  ;;  %v5698_v25 = vsel %vm5689_vm15, %v12820_v43, %v8047_v59 }
 0x5da   : > { %v8071_v52 = vpop.permute.xlu0 %8070  ;;  %6015 = vmatmul.mubr.f32.gmra.mrb[108].mxu0 %v5826_v20  ;;  %6085 = vmatmul.mubr.f32.gmra.mrb[108].mxu1 %v5840_v10  ;;  %v8058_v20 = vunpack.i.h.bf16 %v13085_v12  ;;  %v8103_v43 = vunpack.i.h.bf16 %v13127_v24 }
 0x5db   : > { %v8073_v27 = vunpack.i.h.bf16 %v8071_v52  ;;  %v8072_v16 = vunpack.i.l.bf16 %v8071_v52  ;;  %6374 = vmatprep.mubr.msk.f32.mxu0 %vm5626_vm14, %v14542_v18  ;;  %6388 = vmatprep.mubr.msk.f32.mxu1 %vm5626_vm14, %v12688_v15  ;;  %v8003_v15 = vunpack.i.h.bf16 %v13006_v50 }
 0x5dc   : > { %v5713_v18 = vsel %vm5689_vm15, %v5680_v23, %v8058_v20 }
 0x5dd   : > { %v13139_v33 = vpop.permute.xlu1 %8110  ;;  %v5827_v21 = vsel %vm5819_vm5, %v5794_v14, %v8072_v16  ;;  %v5841_v41 = vsel %vm5819_vm5, %v5808_v5, %v8073_v27  ;;  %v5648_v50 = vsel %vm5626_vm14, %v14544_v60, %v8003_v15  ;;  %v5699_v16 = vsel %vm5689_vm15, %v12836_v35, %v8057_v36 }
 0x5de   : > { %v8081_v11 = vpop.permute.xlu0 %8080  ;;  %6020 = vmatmul.mubr.f32.gmra.mrb[110].mxu0 %v5827_v21  ;;  %6090 = vmatmul.mubr.f32.gmra.mrb[110].mxu1 %v5841_v41  ;;  %v5679_v47 = vsel %vm1439_vm2, %v5648_v50, %v8037_v22  ;;  %v8102_v14 = vunpack.i.l.bf16 %v13127_v24  ;;  %v8093_v41 = vunpack.i.h.bf16 %v13112_v44  ;;  %v8112_v6 = vunpack.i.l.bf16 %v13139_v33 }
 0x5df   : > { %6375 = vmatprep.mubr.msk.f32.mxu0 %vm5626_vm14, %v14506_v7  ;;  %6389 = vmatprep.mubr.msk.f32.mxu1 %vm5626_vm14, %v12797_v4  ;;  %v8078_v7 = vunpack.i.h.bf16 %v13099_v38  ;;  %v8077_v4 = vunpack.i.l.bf16 %v13099_v38  ;;  %v8083_v3 = vunpack.i.h.bf16 %v8081_v11  ;;  %v8082_v62 = vunpack.i.l.bf16 %v8081_v11 }
 0x5e0   : > { %v5712_v38 = vsel %vm5689_vm15, %v5679_v47, %v8048_v46 }
 0x5e1   : > { %v13150_v37 = vpop.permute.xlu1 %8115  ;;  %v5730_v52 = vsel %vm1471_vm11, %v5698_v25, %v8077_v4  ;;  %v5744_v27 = vsel %vm1471_vm11, %v5712_v38, %v8078_v7  ;;  %v8063_v25 = vunpack.i.h.bf16 %v13103_v61 }
 0x5e2   : > { %v8086_v34 = vpop.permute.xlu0 %8085  ;;  %v5763_v57 = vsel %vm5754_vm4, %v5730_v52, %v8082_v62  ;;  %v5777_v30 = vsel %vm5754_vm4, %v5744_v27, %v8083_v3  ;;  %v14545_v27 = vld [vmem:[#allocation99_spill] sm:$0xff]  ;;  %v8118_v61 = vunpack.i.h.bf16 %v13150_v37 }
 0x5e3   : > { %v8088_v9 = vunpack.i.h.bf16 %v8086_v34  ;;  %v8087_v42 = vunpack.i.l.bf16 %v8086_v34  ;;  %v5795_v22 = vsel %vm1503_vm12, %v5763_v57, %v8102_v14  ;;  %v5809_v46 = vsel %vm1503_vm12, %v5777_v30, %v8103_v43  ;;  %v14546_v57 = vld [vmem:[#allocation33_spill] sm:$0xff] }
 0x5e4   : > { %v8113_v34 = vunpack.i.h.bf16 %v13139_v33  ;;  %v5650_v30 = vsel %vm5626_vm14, %v14546_v57, %v8063_v25 }
 0x5e5   : > { %v13164_v56 = vpop.permute.xlu1 %8120  ;;  %v5731_v12 = vsel %vm1471_vm11, %v5699_v16, %v8087_v42  ;;  %v5745_v5 = vsel %vm1471_vm11, %v5713_v18, %v8088_v9 }
 0x5e6   : > { %v13170_v10 = vpop.permute.xlu0 %8095  ;;  %v5764_v13 = vsel %vm5754_vm4, %v5731_v12, %v8092_v40  ;;  %v5778_v53 = vsel %vm5754_vm4, %v5745_v5, %v8093_v41  ;;  %v8122_v42 = vunpack.i.l.bf16 %v13164_v56  ;;  %v8117_v5 = vunpack.i.l.bf16 %v13150_v37 }
 0x5e7   : > { %v5796_v50 = vsel %vm1503_vm12, %v5764_v13, %v8112_v6  ;;  %v5810_v36 = vsel %vm1503_vm12, %v5778_v53, %v8113_v34  ;;  %v8098_v52 = vunpack.i.h.bf16 %v13170_v10 }
 0x5e8   : > { %v5701_v34 = vsel %vm5689_vm15, %v12857_v49, %v8117_v5 }
 0x5e9   : > { %v8126_v21 = vpop.permute.xlu1 %8125 }
 0x5ea   : > { %v8128_v35 = vunpack.i.h.bf16 %v8126_v21  ;;  %v8127_v11 = vunpack.i.l.bf16 %v8126_v21  ;;  %v8106_v15 = vpop.permute.xlu0 %8105 }
 0x5eb   : > { %v8108_v16 = vunpack.i.h.bf16 %v8106_v15  ;;  %v8107_v18 = vunpack.i.l.bf16 %v8106_v15 }
 0x5ec   : > { %v5828_v59 = vsel %vm5819_vm5, %v5795_v22, %v8127_v11  ;;  %v5842_v24 = vsel %vm5819_vm5, %v5809_v46, %v8128_v35 }
 0x5ed   : > { %v8131_v44 = vpop.permute.xlu1 %8130  ;;  %6025 = vmatmul.mubr.f32.gmra.mrb[112].mxu0 %v5828_v59  ;;  %6095 = vmatmul.mubr.f32.gmra.mrb[112].mxu1 %v5842_v24  ;;  %v5700_v22 = vsel %vm5689_vm15, %v12839_v0, %v8107_v18 }
 0x5ee   : > { %v8133_v7 = vunpack.i.h.bf16 %v8131_v44  ;;  %v8132_v4 = vunpack.i.l.bf16 %v8131_v44  ;;  %v8136_v60 = vpop.permute.xlu0 %8135  ;;  %6376 = vmatprep.mubr.msk.f32.mxu0 %vm5626_vm14, %v12340_v55  ;;  %6390 = vmatprep.mubr.msk.f32.mxu1 %vm5626_vm14, %v12807_v31 }
 0x5ef   : > { %v8138_v43 = vunpack.i.h.bf16 %v8136_v60  ;;  %v8137_v14 = vunpack.i.l.bf16 %v8136_v60 }
 0x5f0   : > { %v5829_v3 = vsel %vm5819_vm5, %v5796_v50, %v8132_v4  ;;  %v5843_v33 = vsel %vm5819_vm5, %v5810_v36, %v8133_v7 }
 0x5f1   : > { %v8141_v62 = vpop.permute.xlu1 %8140  ;;  %6030 = vmatmul.mubr.f32.gmra.mrb[114].mxu0 %v5829_v3  ;;  %6100 = vmatmul.mubr.f32.gmra.mrb[114].mxu1 %v5843_v33  ;;  %v5732_v13 = vsel %vm1471_vm11, %v5700_v22, %v8137_v14 }
 0x5f2   : > { %v13201_v47 = vpop.permute.xlu0 %8150  ;;  %6377 = vmatprep.mubr.msk.f32.mxu0 %vm5626_vm14, %v14523_v29  ;;  %6391 = vmatprep.mubr.msk.f32.mxu1 %vm5626_vm14, %v12905_v17  ;;  %v8097_v29 = vunpack.i.l.bf16 %v13170_v10  ;;  %v5651_v17 = vsel %vm5626_vm14, %v14545_v27, %v8122_v42  ;;  %v8143_v21 = vunpack.i.h.bf16 %v8141_v62  ;;  %v8142_v41 = vunpack.i.l.bf16 %v8141_v62 }
 0x5f3   : > { %v5682_v35 = vsel %vm1439_vm2, %v5651_v17, %v8098_v52  ;;  %v8153_v49 = vunpack.i.h.bf16 %v13201_v47 }
 0x5f4   : > { %v5681_v10 = vsel %vm1439_vm2, %v5650_v30, %v8097_v29  ;;  %v5715_v6 = vsel %vm5689_vm15, %v5682_v35, %v8118_v61  ;;  %v5765_v7 = vsel %vm5754_vm4, %v5732_v13, %v8142_v41 }
 0x5f5   : > { %v8146_v55 = vpop.permute.xlu1 %8145  ;;  %v5714_v46 = vsel %vm5689_vm15, %v5681_v10, %v8108_v16 }
 0x5f6   : > { %v8161_v31 = vpop.permute.xlu0 %8160  ;;  %v8148_v11 = vunpack.i.h.bf16 %v8146_v55  ;;  %v8147_v15 = vunpack.i.l.bf16 %v8146_v55  ;;  %v5746_v37 = vsel %vm1471_vm11, %v5714_v46, %v8138_v43 }
 0x5f7   : > { %v8163_v59 = vunpack.i.h.bf16 %v8161_v31  ;;  %v8162_v24 = vunpack.i.l.bf16 %v8161_v31  ;;  %v5779_v0 = vsel %vm5754_vm4, %v5746_v37, %v8143_v21  ;;  %v8152_v31 = vunpack.i.l.bf16 %v13201_v47 }
 0x5f8   : > { %v5733_v4 = vsel %vm1471_vm11, %v5701_v34, %v8147_v15  ;;  %v5747_v60 = vsel %vm1471_vm11, %v5715_v6, %v8148_v11 }
 0x5f9   : > { %v13207_v23 = vpop.permute.xlu1 %8155  ;;  %v5797_v62 = vsel %vm1503_vm12, %v5765_v7, %v8162_v24  ;;  %v5811_v55 = vsel %vm1503_vm12, %v5779_v0, %v8163_v59  ;;  %v5780_v47 = vsel %vm5754_vm4, %v5747_v60, %v8153_v49 }
 0x5fa   : > { %v8171_v9 = vpop.permute.xlu0 %8170  ;;  %v8157_v61 = vunpack.i.l.bf16 %v13207_v23  ;;  %v8158_v11 = vunpack.i.h.bf16 %v13207_v23 }
 0x5fb   : > { %v8173_v3 = vunpack.i.h.bf16 %v8171_v9  ;;  %v8172_v33 = vunpack.i.l.bf16 %v8171_v9  ;;  %v5766_v9 = vsel %vm5754_vm4, %v5733_v4, %v8152_v31 }
 0x5fd   : > { %v13211_v38 = vpop.permute.xlu1 %8165  ;;  %v5798_v16 = vsel %vm1503_vm12, %v5766_v9, %v8172_v33  ;;  %v5812_v18 = vsel %vm1503_vm12, %v5780_v47, %v8173_v3 }
 0x5fe   : > { %v13213_v20 = vpop.permute.xlu0 %8175  ;;  %v8168_v21 = vunpack.i.h.bf16 %v13211_v38  ;;  %v8167_v41 = vunpack.i.l.bf16 %v13211_v38 }
 0x5ff   : > { %v8177_v15 = vunpack.i.l.bf16 %v13213_v20  ;;  %v8178_v37 = vunpack.i.h.bf16 %v13213_v20 }
 0x600   : > { %v5702_v23 = vsel %vm5689_vm15, %v12860_v54, %v8167_v41 }
 0x601   : > { %v13221_v12 = vpop.permute.xlu1 %8195 }
 0x602   : > { %v13225_v40 = vpop.permute.xlu0 %8180 }
 0x603   : > { %v8182_v14 = vunpack.i.l.bf16 %v13225_v40  ;;  %v8183_v41 = vunpack.i.h.bf16 %v13225_v40  ;;  %v14551_v40 = vld [vmem:[#allocation100_spill] sm:$0xff] }
 0x605   : > { %v13234_v53 = vpop.permute.xlu1 %8210  ;;  %v5653_v10 = vsel %vm5626_vm14, %v12540_v26, %v8182_v14 }
 0x606   : > { %v8186_v44 = vpop.permute.xlu0 %8185  ;;  %v5684_v38 = vsel %vm1439_vm2, %v5653_v10, %v8158_v11  ;;  %v8213_v3 = vunpack.i.h.bf16 %v13234_v53  ;;  %v8212_v33 = vunpack.i.l.bf16 %v13234_v53  ;;  %v14548_v10 = vld [vmem:[#allocation24_spill] sm:$0xff] }
 0x607   : > { %v8188_v50 = vunpack.i.h.bf16 %v8186_v44  ;;  %v8187_v36 = vunpack.i.l.bf16 %v8186_v44  ;;  %v5703_v44 = vsel %vm5689_vm15, %v12881_v63, %v8177_v15  ;;  %v5717_v7 = vsel %vm5689_vm15, %v5684_v38, %v8178_v37  ;;  %v14550_v38 = vld [vmem:[#allocation36_spill] sm:$0xff] }
 0x609   : > { %v13247_v42 = vpop.permute.xlu1 %8220  ;;  %v5830_v25 = vsel %vm5819_vm5, %v5797_v62, %v8187_v36  ;;  %v5844_v52 = vsel %vm5819_vm5, %v5811_v55, %v8188_v50 }
 0x60a   : > { %v8191_v29 = vpop.permute.xlu0 %8190  ;;  %6035 = vmatmul.mubr.f32.gmra.mrb[116].mxu0 %v5830_v25  ;;  %6105 = vmatmul.mubr.f32.gmra.mrb[116].mxu1 %v5844_v52  ;;  %v8223_v54 = vunpack.i.h.bf16 %v13247_v42  ;;  %v8222_v60 = vunpack.i.l.bf16 %v13247_v42 }
 0x60b   : > { %v8193_v27 = vunpack.i.h.bf16 %v8191_v29  ;;  %v8192_v17 = vunpack.i.l.bf16 %v8191_v29  ;;  %6378 = vmatprep.mubr.msk.f32.mxu0 %vm5626_vm14, %v14515_v19  ;;  %6392 = vmatprep.mubr.msk.f32.mxu1 %vm5626_vm14, %v12873_v8  ;;  %v8123_v8 = vunpack.i.h.bf16 %v13164_v56 }
 0x60d   : > { %v13259_v57 = vpop.permute.xlu1 %8230  ;;  %v5831_v30 = vsel %vm5819_vm5, %v5798_v16, %v8192_v17  ;;  %v5845_v43 = vsel %vm5819_vm5, %v5812_v18, %v8193_v27  ;;  %v5652_v56 = vsel %vm5626_vm14, %v12701_v51, %v8123_v8  ;;  %v14547_v18 = vld [vmem:[#allocation85_spill] sm:$0xff] }
 0x60e   : > { %v8201_v19 = vpop.permute.xlu0 %8200  ;;  %6040 = vmatmul.mubr.f32.gmra.mrb[118].mxu0 %v5831_v30  ;;  %6110 = vmatmul.mubr.f32.gmra.mrb[118].mxu1 %v5845_v43  ;;  %v5683_v59 = vsel %vm1439_vm2, %v5652_v56, %v8157_v61  ;;  %v8233_v27 = vunpack.i.h.bf16 %v13259_v57  ;;  %v8232_v17 = vunpack.i.l.bf16 %v13259_v57 }
 0x60f   : > { %6379 = vmatprep.mubr.msk.f32.mxu0 %vm5626_vm14, %v14527_v32  ;;  %6393 = vmatprep.mubr.msk.f32.mxu1 %vm5626_vm14, %v12956_v48  ;;  %v8198_v32 = vunpack.i.h.bf16 %v13221_v12  ;;  %v8197_v48 = vunpack.i.l.bf16 %v13221_v12  ;;  %v8203_v22 = vunpack.i.h.bf16 %v8201_v19  ;;  %v8202_v46 = vunpack.i.l.bf16 %v8201_v19 }
 0x610   : > { %v5716_v12 = vsel %vm5689_vm15, %v5683_v59, %v8168_v21 }
 0x611   : > { %v13270_v5 = vpop.permute.xlu1 %8235  ;;  %v5734_v34 = vsel %vm1471_vm11, %v5702_v23, %v8197_v48  ;;  %v5748_v6 = vsel %vm1471_vm11, %v5716_v12, %v8198_v32 }
 0x612   : > { %v8206_v35 = vpop.permute.xlu0 %8205  ;;  %v5767_v0 = vsel %vm5754_vm4, %v5734_v34, %v8202_v46  ;;  %v5781_v4 = vsel %vm5754_vm4, %v5748_v6, %v8203_v22  ;;  %v14549_v22 = vld [vmem:[#allocation120_spill] sm:$0xff]  ;;  %v8237_v23 = vunpack.i.l.bf16 %v13270_v5  ;;  %v14552_v6 = vld [vmem:[#allocation66_spill] sm:$0xff] }
 0x613   : > { %v8208_v24 = vunpack.i.h.bf16 %v8206_v35  ;;  %v8207_v26 = vunpack.i.l.bf16 %v8206_v35  ;;  %v5799_v49 = vsel %vm1503_vm12, %v5767_v0, %v8222_v60  ;;  %v5813_v31 = vsel %vm1503_vm12, %v5781_v4, %v8223_v54 }
 0x614   : > { %v7922_v35 = vunpack.i.l.bf16 %v14548_v10 }
 0x615   : > { %v13284_v13 = vpop.permute.xlu1 %8240  ;;  %v5735_v20 = vsel %vm1471_vm11, %v5703_v44, %v8207_v26  ;;  %v5749_v50 = vsel %vm1471_vm11, %v5717_v7, %v8208_v24  ;;  %v5654_v24 = vsel %vm5626_vm14, %v14550_v38, %v8183_v41 }
 0x616   : > { %v13290_v51 = vpop.permute.xlu0 %8215  ;;  %v5768_v52 = vsel %vm5754_vm4, %v5735_v20, %v8212_v33  ;;  %v5782_v29 = vsel %vm5754_vm4, %v5749_v50, %v8213_v3  ;;  %v8242_v21 = vunpack.i.l.bf16 %v13284_v13  ;;  %v13340_v26 = vsel %vm5626_vm14, %v14551_v40, %v7922_v35 }
 0x617   : > { %v5800_v30 = vsel %vm1503_vm12, %v5768_v52, %v8232_v17  ;;  %v5814_v43 = vsel %vm1503_vm12, %v5782_v29, %v8233_v27  ;;  %v8217_v11 = vunpack.i.l.bf16 %v13290_v51  ;;  %v8218_v48 = vunpack.i.h.bf16 %v13290_v51 }
 0x618   : > { %v8238_v51 = vunpack.i.h.bf16 %v13270_v5 }
 0x619   : > { %v8246_v36 = vpop.permute.xlu1 %8245  ;;  %v5685_v12 = vsel %vm1439_vm2, %v5654_v24, %v8217_v11 }
 0x61a   : > { %v8248_v63 = vunpack.i.h.bf16 %v8246_v36  ;;  %v8247_v62 = vunpack.i.l.bf16 %v8246_v36  ;;  %v8226_v55 = vpop.permute.xlu0 %8225 }
 0x61b   : > { %v8228_v56 = vunpack.i.h.bf16 %v8226_v55  ;;  %v8227_v15 = vunpack.i.l.bf16 %v8226_v55 }
 0x61c   : > { %v5832_v25 = vsel %vm5819_vm5, %v5799_v49, %v8247_v62  ;;  %v5846_v42 = vsel %vm5819_vm5, %v5813_v31, %v8248_v63  ;;  %v14553_v63 = vld [vmem:[#allocation29_spill] sm:$0xff]  ;;  %v14554_v62 = vld [vmem:[#allocation30_spill] sm:$0xff]  ;;  %v8243_v49 = vunpack.i.h.bf16 %v13284_v13 }
 0x61d   : > { %v8251_v53 = vpop.permute.xlu1 %8250  ;;  %6045 = vmatmul.mubr.f32.gmra.mrb[120].mxu0 %v5832_v25  ;;  %6115 = vmatmul.mubr.f32.gmra.mrb[120].mxu1 %v5846_v42  ;;  %v5704_v44 = vsel %vm5689_vm15, %v14552_v6, %v8227_v15  ;;  %v5718_v7 = vsel %vm5689_vm15, %v5685_v12, %v8228_v56  ;;  %v7938_v5 = vunpack.i.h.bf16 %v14553_v63  ;;  %v5705_v55 = vsel %vm5689_vm15, %v14554_v62, %v8237_v23  ;;  %v13406_v62 = vld [vmem:[%s13596_s10] ss:$0 sm:$0xff] }
 0x61e   : > { %v8253_v9 = vunpack.i.h.bf16 %v8251_v53  ;;  %v8252_v47 = vunpack.i.l.bf16 %v8251_v53  ;;  %v13313_v16 = vpop.permute.xlu0 %4939  ;;  %6380 = vmatprep.mubr.msk.f32.mxu0 %vm5626_vm14, %v14547_v18  ;;  %6394 = vmatprep.mubr.msk.f32.mxu1 %vm5626_vm14, %v12968_v1 }
 0x620   : > { %v5833_v14 = vsel %vm5819_vm5, %v5800_v30, %v8252_v47  ;;  %v5847_v57 = vsel %vm5819_vm5, %v5814_v43, %v8253_v9 }
 0x621   : > { %v8261_v19 = vpop.permute.xlu1 %8260  ;;  %6050 = vmatmul.mubr.f32.gmra.mrb[122].mxu0 %v5833_v14  ;;  %6120 = vmatmul.mubr.f32.gmra.mrb[122].mxu1 %v5847_v57  ;;  %v7937_v57 = vunpack.i.l.bf16 %v14553_v63 }
 0x622   : > { %v8256_v8 = vpop.permute.xlu0 %8255  ;;  %6381 = vmatprep.mubr.msk.f32.mxu0 %vm5626_vm14, %v14535_v2  ;;  %6395 = vmatprep.mubr.msk.f32.mxu1 %vm5626_vm14, %v14536_v58  ;;  %v5655_v58 = vsel %vm5626_vm14, %v14549_v22, %v8242_v21  ;;  %v8263_v50 = vunpack.i.h.bf16 %v8261_v19  ;;  %v8262_v36 = vunpack.i.l.bf16 %v8261_v19  ;;  %v7978_v19 = vunpack.i.h.bf16 %v13013_v28  ;;  %v14555_v22 = vld [vmem:[#allocation65_spill] sm:$0xff] }
 0x623   : > { %v8258_v46 = vunpack.i.h.bf16 %v8256_v8  ;;  %v8257_v59 = vunpack.i.l.bf16 %v8256_v8  ;;  %v5686_v34 = vsel %vm1439_vm2, %v5655_v58, %v8218_v48  ;;  %v7977_v21 = vunpack.i.l.bf16 %v13013_v28 }
 0x624   : > { %v5719_v31 = vsel %vm5689_vm15, %v5686_v34, %v8238_v51  ;;  %v5656_v58 = vsel %vm5626_vm14, %v14555_v22, %v8243_v49 }
 0x625   : > { %v8266_v61 = vpop.permute.xlu1 %8265  ;;  %v5736_v4 = vsel %vm1471_vm11, %v5704_v44, %v8257_v59  ;;  %v5750_v54 = vsel %vm1471_vm11, %v5718_v7, %v8258_v46  ;;  %v14557_v7 = vld [vmem:[#allocation83_spill] sm:$0xff] }
 0x626   : > { %v8271_v1 = vpop.permute.xlu0 %8270  ;;  %v8268_v60 = vunpack.i.h.bf16 %v8266_v61  ;;  %v8267_v20 = vunpack.i.l.bf16 %v8266_v61  ;;  %v5769_v27 = vsel %vm5754_vm4, %v5736_v4, %v8262_v36  ;;  %v5783_v17 = vsel %vm5754_vm4, %v5750_v54, %v8263_v50 }
 0x627   : > { %v8273_v42 = vunpack.i.h.bf16 %v8271_v1  ;;  %v8272_v52 = vunpack.i.l.bf16 %v8271_v1 }
 0x628   : > { %v5737_v53 = vsel %vm1471_vm11, %v5705_v55, %v8267_v20  ;;  %v5751_v9 = vsel %vm1471_vm11, %v5719_v31, %v8268_v60  ;;  %v14558_v20 = vld [vmem:[#allocation39_spill] sm:$0xff] }
 0x629   : > { %v13331_v32 = vpop.permute.xlu1 %8275  ;;  %v5770_v35 = vsel %vm5754_vm4, %v5737_v53, %v8272_v52  ;;  %v5784_v11 = vsel %vm5754_vm4, %v5751_v9, %v8273_v42 }
 0x62a   : > { %v8281_v2 = vpop.permute.xlu0 %8280  ;;  %v8277_v41 = vunpack.i.l.bf16 %v13331_v32  ;;  %v8278_v46 = vunpack.i.h.bf16 %v13331_v32 }
 0x62b   : > { %v8283_v3 = vunpack.i.h.bf16 %v8281_v2  ;;  %v8282_v33 = vunpack.i.l.bf16 %v8281_v2 }
 0x62c   : > { %v5687_v34 = vsel %vm1439_vm2, %v5656_v58, %v8277_v41  ;;  %v5674_v50 = vsel %vm1439_vm2, %v13340_v26, %v8278_v46 }
 0x62d   : > { %v13344_v37 = vpop.permute.xlu1 %5107  ;;  %v5801_v13 = vsel %vm1503_vm12, %v5769_v27, %v8282_v33  ;;  %v5815_v14 = vsel %vm1503_vm12, %v5783_v17, %v8283_v3 }
 0x62e   : > { %v8291_v0 = vpop.permute.xlu0 %8290 }
 0x62f   : > { %v8293_v30 = vunpack.i.h.bf16 %v8291_v0  ;;  %v8292_v43 = vunpack.i.l.bf16 %v8291_v0 }
 0x631   : > { %v8286_v25 = vpop.permute.xlu1 %8285  ;;  %v5802_v59 = vsel %vm1503_vm12, %v5770_v35, %v8292_v43  ;;  %v5816_v38 = vsel %vm1503_vm12, %v5784_v11, %v8293_v30 }
 0x632   : > { %v8301_v29 = vpop.permute.xlu0 %8300  ;;  %v8288_v48 = vunpack.i.h.bf16 %v8286_v25  ;;  %v8287_v56 = vunpack.i.l.bf16 %v8286_v25 }
 0x633   : > { %v8303_v47 = vunpack.i.h.bf16 %v8301_v29  ;;  %v8302_v18 = vunpack.i.l.bf16 %v8301_v29 }
 0x634   : > { %v5706_v0 = vsel %vm5689_vm15, %v14557_v7, %v8287_v56  ;;  %v5720_v4 = vsel %vm5689_vm15, %v5687_v34, %v8288_v48 }
 0x635   : > { %v8296_v8 = vpop.permute.xlu1 %8295  ;;  %v5834_v61 = vsel %vm5819_vm5, %v5801_v13, %v8302_v18  ;;  %v5848_v1 = vsel %vm5819_vm5, %v5815_v14, %v8303_v47 }
 0x636   : > { %v8306_v10 = vpop.permute.xlu0 %8305  ;;  %6055 = vmatmul.mubr.f32.gmra.mrb[124].mxu0 %v5834_v61  ;;  %6125 = vmatmul.mubr.f32.gmra.mrb[124].mxu1 %v5848_v1  ;;  %v8298_v24 = vunpack.i.h.bf16 %v8296_v8  ;;  %v8297_v40 = vunpack.i.l.bf16 %v8296_v8  ;;  %v14560_v61 = vld [vmem:[#allocation22_spill] sm:$0xff] }
 0x637   : > { %v8308_v15 = vunpack.i.h.bf16 %v8306_v10  ;;  %v8307_v2 = vunpack.i.l.bf16 %v8306_v10  ;;  %6382 = vmatprep.mubr.msk.f32.mxu0 %vm5626_vm14, %v14537_v45  ;;  %6396 = vmatprep.mubr.msk.f32.mxu1 %vm5626_vm14, %v14538_v39  ;;  %v14556_v39 = vld [vmem:[#allocation98_spill] sm:$0xff] }
 0x638   : > { %v5657_v51 = vsel %vm5626_vm14, %v14556_v39, %v13313_v16  ;;  %v14559_v16 = vld [vmem:[#allocation17_spill] sm:$0xff]  ;;  %v5707_v49 = vsel %vm5689_vm15, %v5674_v50, %v8297_v40 }
 0x639   : > { %v8311_v23 = vpop.permute.xlu1 %8310  ;;  %v5835_v12 = vsel %vm5819_vm5, %v5802_v59, %v8307_v2  ;;  %v5849_v45 = vsel %vm5819_vm5, %v5816_v38, %v8308_v15  ;;  %v5688_v36 = vsel %vm1439_vm2, %v5657_v51, %v13344_v37 }
 0x63a   : > { %v8313_v32 = vunpack.i.h.bf16 %v8311_v23  ;;  %v8312_v6 = vunpack.i.l.bf16 %v8311_v23  ;;  %v8316_v44 = vpop.permute.xlu0 %8315  ;;  %6060 = vmatmul.mubr.f32.gmra.mrb[126].mxu0 %v5835_v12  ;;  %6130 = vmatmul.mubr.f32.gmra.mrb[126].mxu1 %v5849_v45  ;;  %v5721_v55 = vsel %vm5689_vm15, %v5688_v36, %v8298_v24 }
 0x63b   : > { %v8318_v54 = vunpack.i.h.bf16 %v8316_v44  ;;  %v8317_v60 = vunpack.i.l.bf16 %v8316_v44  ;;  %6383 = vmatprep.mubr.msk.f32.mxu0 %vm5626_vm14, %v14558_v20  ;;  %6397 = vmatprep.mubr.msk.f32.mxu1 %vm5626_vm14, %v14559_v16 }
 0x63c   : > { %v5738_v3 = vsel %vm1471_vm11, %v5706_v0, %v8312_v6  ;;  %v5752_v33 = vsel %vm1471_vm11, %v5720_v4, %v8313_v32 }
 0x63d   : > { %v8321_v31 = vpop.permute.xlu1 %8320  ;;  %v5771_v25 = vsel %vm5754_vm4, %v5738_v3, %v8317_v60  ;;  %v5785_v26 = vsel %vm5754_vm4, %v5752_v33, %v8318_v54  ;;  %v5986_v52 = vpop.f32.mrb[96].mxu0 }
 0x63e   : > { %v8323_v42 = vunpack.i.h.bf16 %v8321_v31  ;;  %v8322_v37 = vunpack.i.l.bf16 %v8321_v31  ;;  %v8326_v29 = vpop.permute.xlu0 %8325  ;;  %v5803_v27 = vsel %vm1503_vm12, %v5771_v25, %v7937_v57  ;;  %v5817_v17 = vsel %vm1503_vm12, %v5785_v26, %v7938_v5  ;;  %v5988_v18 = vpop.f32.mrb[97].mxu0 }
 0x63f   : > { %v5987_v53 = vadd.f32 %v13406_v62, %v5986_v52  ;;  %v8328_v9 = vunpack.i.h.bf16 %v8326_v29  ;;  %v8327_v47 = vunpack.i.l.bf16 %v8326_v29  ;;  %v5836_v30 = vsel %vm5819_vm5, %v5803_v27, %v7977_v21 }
 0x640   : > { %v5753_v43 = vsel %vm1471_vm11, %v5721_v55, %v8323_v42  ;;  %6065 = vmatmul.mubr.f32.gmra.mrb[128].mxu0 %v5836_v30  ;;  %v5850_v13 = vsel %vm5819_vm5, %v5817_v17, %v7978_v19  ;;  %v5739_v14 = vsel %vm1471_vm11, %v5707_v49, %v8322_v37 }
 0x641   : > { %6145 = vst.msk [vmem:[%s13423_s19] sm:$0xff] %vm5626_vm14, %v5987_v53  ;;  %6135 = vmatmul.mubr.f32.gmra.mrb[128].mxu1 %v5850_v13  ;;  %v5475_v57 = vpop.permute.xlu1 %5474  ;;  %v5772_v8 = vsel %vm5754_vm4, %v5739_v14, %v8327_v47  ;;  %6384 = vmatprep.mubr.msk.f32.mxu0 %vm5626_vm14, %v14560_v61  ;;  %v5786_v1 = vsel %vm5754_vm4, %v5753_v43, %v8328_v9  ;;  %v5991_v41 = vpop.f32.mrb[98].mxu0 }
 0x642   : > { %v5804_v21 = vsel %vm1503_vm12, %v5772_v8, %v5475_v57  ;;  %v5568_v10 = vpop.permute.xlu0 %5567  ;;  %6398 = vmatprep.mubr.msk.f32.mxu1 %vm5626_vm14, %v14559_v16  ;;  %v5818_v35 = vsel %vm1503_vm12, %v5786_v1, %v7938_v5  ;;  %v5992_v11 = vadd.f32 %v13406_v62, %v5991_v41  ;;  %v5993_v48 = vpop.f32.mrb[99].mxu0 }
 0x643   : > { %v5837_v56 = vsel %vm5819_vm5, %v5804_v21, %v5568_v10  ;;  %v5851_v15 = vsel %vm5819_vm5, %v5818_v35, %v7978_v19 }
 0x644   : > { %6070 = vmatmul.mubr.f32.gmra.mrb[130].mxu0 %v5837_v56  ;;  %6146 = vst.msk [vmem:[%s13423_s19 + $0x8] sm:$0xff] %vm5626_vm14, %v5992_v11 }
 0x645   : > { %6140 = vmatmul.mubr.f32.gmra.mrb[130].mxu1 %v5851_v15 }
 0x649   : > { %v5996_v2 = vpop.f32.mrb[100].mxu0 }
 0x64a   : > { %v5997_v63 = vadd.f32 %v13406_v62, %v5996_v2  ;;  %v5998_v22 = vpop.f32.mrb[101].mxu0 }
 0x64c   : > { %6147 = vst.msk [vmem:[%s13423_s19 + $0x10] sm:$0xff] %vm5626_vm14, %v5997_v63 }
 0x64d   : > { %v6001_v5 = vpop.f32.mrb[102].mxu0 }
 0x64e   : > { %v6002_v58 = vadd.f32 %v13406_v62, %v6001_v5  ;;  %v6003_v46 = vpop.f32.mrb[103].mxu0 }
 0x650   : > { %6148 = vst.msk [vmem:[%s13423_s19 + $0x18] sm:$0xff] %vm5626_vm14, %v6002_v58 }
 0x690   : > { %v6006_v28 = vpop.f32.mrb[104].mxu0  ;;  %v6076_v19 = vpop.f32.mrb[104].mxu1 }
 0x691   : > { %v6007_v59 = vadd.f32 %v13406_v62, %v6006_v28  ;;  %v6077_v38 = vadd.f32 %v13406_v62, %v6076_v19  ;;  %v6008_v24 = vpop.f32.mrb[105].mxu0  ;;  %v6078_v40 = vpop.f32.mrb[105].mxu1 }
 0x693   : > { %6149 = vst.msk [vmem:[%s13423_s19 + $0x20] sm:$0xff] %vm5626_vm14, %v6007_v59  ;;  %6163 = vst.msk [vmem:[%s13423_s19 + $0x90] sm:$0xff] %vm5626_vm14, %v6077_v38 }
 0x694   : > { %v6011_v23 = vpop.f32.mrb[106].mxu0  ;;  %v6081_v12 = vpop.f32.mrb[106].mxu1 }
 0x695   : > { %v6012_v45 = vadd.f32 %v13406_v62, %v6011_v23  ;;  %v6082_v39 = vadd.f32 %v13406_v62, %v6081_v12  ;;  %v6013_v51 = vpop.f32.mrb[107].mxu0  ;;  %v6083_v34 = vpop.f32.mrb[107].mxu1 }
 0x697   : > { %6150 = vst.msk [vmem:[%s13423_s19 + $0x28] sm:$0xff] %vm5626_vm14, %v6012_v45  ;;  %6164 = vst.msk [vmem:[%s13423_s19 + $0x98] sm:$0xff] %vm5626_vm14, %v6082_v39 }
 0x6ad   : > { %v6016_v32 = vpop.f32.mrb[108].mxu0  ;;  %v6086_v6 = vpop.f32.mrb[108].mxu1 }
 0x6ae   : > { %v6017_v44 = vadd.f32 %v13406_v62, %v6016_v32  ;;  %v6087_v7 = vadd.f32 %v13406_v62, %v6086_v6  ;;  %v6018_v0 = vpop.f32.mrb[109].mxu0  ;;  %v6088_v4 = vpop.f32.mrb[109].mxu1 }
 0x6b0   : > { %6151 = vst.msk [vmem:[%s13423_s19 + $0x30] sm:$0xff] %vm5626_vm14, %v6017_v44  ;;  %6165 = vst.msk [vmem:[%s13423_s19 + $0xa0] sm:$0xff] %vm5626_vm14, %v6087_v7 }
 0x6b1   : > { %v6021_v54 = vpop.f32.mrb[110].mxu0  ;;  %v6091_v60 = vpop.f32.mrb[110].mxu1 }
 0x6b2   : > { %v6022_v20 = vadd.f32 %v13406_v62, %v6021_v54  ;;  %v6092_v16 = vadd.f32 %v13406_v62, %v6091_v60  ;;  %v6023_v50 = vpop.f32.mrb[111].mxu0  ;;  %v6093_v36 = vpop.f32.mrb[111].mxu1 }
 0x6b4   : > { %6152 = vst.msk [vmem:[%s13423_s19 + $0x38] sm:$0xff] %vm5626_vm14, %v6022_v20  ;;  %6166 = vst.msk [vmem:[%s13423_s19 + $0xa8] sm:$0xff] %vm5626_vm14, %v6092_v16 }
 0x6c0   : > { %v6026_v3 = vpop.f32.mrb[112].mxu0  ;;  %v6096_v33 = vpop.f32.mrb[112].mxu1 }
 0x6c1   : > { %v6027_v55 = vadd.f32 %v13406_v62, %v6026_v3  ;;  %v6097_v49 = vadd.f32 %v13406_v62, %v6096_v33  ;;  %v6028_v31 = vpop.f32.mrb[113].mxu0  ;;  %v6098_v25 = vpop.f32.mrb[113].mxu1 }
 0x6c3   : > { %6153 = vst.msk [vmem:[%s13423_s19 + $0x40] sm:$0xff] %vm5626_vm14, %v6027_v55  ;;  %6167 = vst.msk [vmem:[%s13423_s19 + $0xb0] sm:$0xff] %vm5626_vm14, %v6097_v49 }
 0x6c4   : > { %v6031_v26 = vpop.f32.mrb[114].mxu0  ;;  %v6101_v42 = vpop.f32.mrb[114].mxu1 }
 0x6c5   : > { %v6032_v37 = vadd.f32 %v13406_v62, %v6031_v26  ;;  %v6102_v52 = vadd.f32 %v13406_v62, %v6101_v42  ;;  %v6033_v29 = vpop.f32.mrb[115].mxu0  ;;  %v6103_v27 = vpop.f32.mrb[115].mxu1 }
 0x6c7   : > { %6154 = vst.msk [vmem:[%s13423_s19 + $0x48] sm:$0xff] %vm5626_vm14, %v6032_v37  ;;  %6168 = vst.msk [vmem:[%s13423_s19 + $0xb8] sm:$0xff] %vm5626_vm14, %v6102_v52 }
 0x6dd   : > { %v6036_v17 = vpop.f32.mrb[116].mxu0  ;;  %v6106_v53 = vpop.f32.mrb[116].mxu1 }
 0x6de   : > { %v6037_v9 = vadd.f32 %v13406_v62, %v6036_v17  ;;  %v6107_v47 = vadd.f32 %v13406_v62, %v6106_v53  ;;  %v6038_v18 = vpop.f32.mrb[117].mxu0  ;;  %v6108_v30 = vpop.f32.mrb[117].mxu1 }
 0x6e0   : > { %6155 = vst.msk [vmem:[%s13423_s19 + $0x50] sm:$0xff] %vm5626_vm14, %v6037_v9  ;;  %6169 = vst.msk [vmem:[%s13423_s19 + $0xc0] sm:$0xff] %vm5626_vm14, %v6107_v47 }
 0x6e1   : > { %v6041_v43 = vpop.f32.mrb[118].mxu0  ;;  %v6111_v13 = vpop.f32.mrb[118].mxu1 }
 0x6e2   : > { %v6042_v14 = vadd.f32 %v13406_v62, %v6041_v43  ;;  %v6112_v57 = vadd.f32 %v13406_v62, %v6111_v13  ;;  %v6043_v8 = vpop.f32.mrb[119].mxu0  ;;  %v6113_v61 = vpop.f32.mrb[119].mxu1 }
 0x6e4   : > { %6156 = vst.msk [vmem:[%s13423_s19 + $0x58] sm:$0xff] %vm5626_vm14, %v6042_v14  ;;  %6170 = vst.msk [vmem:[%s13423_s19 + $0xc8] sm:$0xff] %vm5626_vm14, %v6112_v57 }
 0x6f0   : > { %v6046_v1 = vpop.f32.mrb[120].mxu0  ;;  %v6116_v21 = vpop.f32.mrb[120].mxu1 }
 0x6f1   : > { %v6047_v41 = vadd.f32 %v13406_v62, %v6046_v1  ;;  %v6117_v10 = vadd.f32 %v13406_v62, %v6116_v21  ;;  %v6048_v35 = vpop.f32.mrb[121].mxu0  ;;  %v6118_v11 = vpop.f32.mrb[121].mxu1 }
 0x6f3   : > { %6157 = vst.msk [vmem:[%s13423_s19 + $0x60] sm:$0xff] %vm5626_vm14, %v6047_v41  ;;  %6171 = vst.msk [vmem:[%s13423_s19 + $0xd0] sm:$0xff] %vm5626_vm14, %v6117_v10 }
 0x6f4   : > { %v6051_v48 = vpop.f32.mrb[122].mxu0  ;;  %v6121_v56 = vpop.f32.mrb[122].mxu1 }
 0x6f5   : > { %v6052_v15 = vadd.f32 %v13406_v62, %v6051_v48  ;;  %v6122_v2 = vadd.f32 %v13406_v62, %v6121_v56  ;;  %v6053_v63 = vpop.f32.mrb[123].mxu0  ;;  %v6123_v22 = vpop.f32.mrb[123].mxu1 }
 0x6f7   : > { %6158 = vst.msk [vmem:[%s13423_s19 + $0x68] sm:$0xff] %vm5626_vm14, %v6052_v15  ;;  %6172 = vst.msk [vmem:[%s13423_s19 + $0xd8] sm:$0xff] %vm5626_vm14, %v6122_v2 }
 0x709   : > { %v6056_v5 = vpop.f32.mrb[124].mxu0  ;;  %v6126_v58 = vpop.f32.mrb[124].mxu1 }
 0x70a   : > { %v6057_v46 = vadd.f32 %v13406_v62, %v6056_v5  ;;  %v6127_v28 = vadd.f32 %v13406_v62, %v6126_v58  ;;  %v6058_v19 = vpop.f32.mrb[125].mxu0  ;;  %v6128_v59 = vpop.f32.mrb[125].mxu1 }
 0x70c   : > { %6159 = vst.msk [vmem:[%s13423_s19 + $0x70] sm:$0xff] %vm5626_vm14, %v6057_v46  ;;  %6173 = vst.msk [vmem:[%s13423_s19 + $0xe0] sm:$0xff] %vm5626_vm14, %v6127_v28 }
 0x70d   : > { %v6061_v38 = vpop.f32.mrb[126].mxu0  ;;  %v6131_v24 = vpop.f32.mrb[126].mxu1 }
 0x70e   : > { %v6062_v40 = vadd.f32 %v13406_v62, %v6061_v38  ;;  %v6132_v23 = vadd.f32 %v13406_v62, %v6131_v24  ;;  %v6063_v12 = vpop.f32.mrb[127].mxu0  ;;  %v6133_v45 = vpop.f32.mrb[127].mxu1 }
 0x710   : > { %6160 = vst.msk [vmem:[%s13423_s19 + $0x78] sm:$0xff] %vm5626_vm14, %v6062_v40  ;;  %6174 = vst.msk [vmem:[%s13423_s19 + $0xe8] sm:$0xff] %vm5626_vm14, %v6132_v23 }
 0x713   : > { %v6066_v39 = vpop.f32.mrb[128].mxu0 }
 0x714   : > { %v6067_v51 = vadd.f32 %v13406_v62, %v6066_v39  ;;  %v6136_v34 = vpop.f32.mrb[128].mxu1  ;;  %v6068_v32 = vpop.f32.mrb[129].mxu0 }
 0x715   : > { %v6137_v6 = vadd.f32 %v13406_v62, %v6136_v34  ;;  %v6138_v44 = vpop.f32.mrb[129].mxu1 }
 0x716   : > { %6161 = vst.msk [vmem:[%s13423_s19 + $0x80] sm:$0xff] %vm5626_vm14, %v6067_v51 }
 0x717   : > { %6175 = vst.msk [vmem:[%s13423_s19 + $0xf0] sm:$0xff] %vm5626_vm14, %v6137_v6  ;;  %v6071_v7 = vpop.f32.mrb[130].mxu0 }
 0x718   : > { %v6072_v0 = vadd.f32 %v13406_v62, %v6071_v7  ;;  %v6141_v4 = vpop.f32.mrb[130].mxu1  ;;  %v6073_v54 = vpop.f32.mrb[131].mxu0 }
 0x719   : > { %v6142_v60 = vadd.f32 %v13406_v62, %v6141_v4  ;;  %v6143_v20 = vpop.f32.mrb[131].mxu1 }
 0x71a   : > { %6162 = vst.msk [vmem:[%s13423_s19 + $0x88] sm:$0xff] %vm5626_vm14, %v6072_v0 }
 0x71b   : > { %6176 = vst.msk [vmem:[%s13423_s19 + $0xf8] sm:$0xff] %vm5626_vm14, %v6142_v60 }
 0x71c   : > { %8446 = shalt.err (!%p8443_p11)
}
 0x71d   : > { %s8447_s29 = scalar_lea.hbm %s13534_s14, 4096  ;;  %s8451_s28 = scalar_lea.hbm %s13597_s11, 8192 }
 0x71e   : > { %p8448_p13 = scmp.ne.s32.totalorder %s13534_s14, %s8447_s29  ;;  %p8452_p6 = scmp.lt.u32.totalorder %s13534_s14, %s13597_s11 }
 0x71f   : > { %p8453_p9 = scmp.lt.u32.totalorder %s8451_s28, %s8447_s29  ;;  %p8455_p12 = scmp.lt.u32.totalorder %s8447_s29, %s13534_s14 }
 0x720   : > { %p8449_p5 = pnand %p8448_p13, %p14561_p1 }
 0x721   : > { %p8454_p10 = por %p8453_p9, %p8452_p6 }
 0x722   : > { %p8450_p0 = pneg %p8449_p5 }
 0x723   : > { %p8456_p2 = por %p8455_p12, %p8454_p10 }
 0x725   : > { %p8457_p3 = pnand %p8456_p2, %p8450_p0 }
 0x727   : > { %8460 = shalt.err (!%p8457_p3)
}
 0x728   : > { %s8520_s16 = smov 128   ;;  %s8521_s24 = smov 8  }
 0x729   : > { %6798 = dma.vmem_to_hbm [thread:$0]  (%p14561_p1), %s13536_s26, 4096, %s13534_s14, %s13545_s21, %s8520_s16, %s8520_s16, %s8521_s24  }
 0x72a PF: > { %s14562_s30 = sld [smem:[#allocation11_spill]]  ;;  %s14563_s12 = sld [smem:[#allocation15_spill]] }
 0x72b   : > { %p6815_p4 = scmp.ge.s32.totalorder %s8503_s20, 2 }
 0x730   : > { %s6206_s17 = sand.u32 1, %s14562_s30   ;;  %p14564_p7 = scmp.ne.s32.totalorder %s14563_s12, 0 }
 0x731   : > { %s6207_s13 = scalar_lea.sflag [#allocation4], %s6206_s17 }
 0x732   : > { %p6808_p8 = pnand %p6815_p4, %p14564_p7 }
 0x734   : > { %8486 = dma.done.wait (!%p6808_p8), %s6207_s13, 4096  }
 0x735   : > { %8488 = vsyncadd (!%p6808_p8), %s6207_s13, 4294963200  ;;  %s14565_s20 = sld [smem:[#allocation13_spill]]  ;;  %s14566_s15 = sld [smem:[#allocation12_spill]] }
 0x736   : > { %s14567_s19 = sld [smem:[#allocation14_spill]]  ;;  %s14568_s17 = smov %s8495_s18 }
 0x73b   : > { %p23_p11 = scmp.ge.s32.totalorder %s14565_s20, 4   ;;  %s14569_s18 = smov %s14566_s15 }
 0x73d   :  { %25 = sbr.rel (!%p23_p11) target bundleno = 5 (0x5), region = 108 }
 0x744   :  { %6212 = vsyncpa [#allocation3], 1 }
 0x745   :  { %6214 = vsyncpa [#allocation3 + $0x1], 1 }
 0x746   :  { %6215 = vsyncpa [#allocation6], 1 }
 0x747   :  { %6216 = vsyncpa [#allocation4], 1 }
 0x748   :  { %6218 = vsyncpa [#allocation4 + $0x1], 1 }

</bundles_post_ra>
